<compile_context>
chip_gen: v7x
topology: tpu7x:2x2x1
jax: 0.10.0
libtpu: 0.0.40
codegen_flags: <defaults>
</compile_context>

<pallas_src>
import functools

import jax
import jax.numpy as jnp
from jax.experimental import pallas as pl
from jax.experimental.pallas import tpu as pltpu

EPS = 1e-5


# ----------------------------------------------------------------------------
# Small helpers
# ----------------------------------------------------------------------------
def _vmem_limit_bytes():
    cap = 64 * 1024 * 1024
    try:
        cap = int(pltpu.get_tpu_info().vmem_capacity_bytes)
    except Exception:
        pass
    return min(int(cap * 3 // 4), 96 * 1024 * 1024)


def _pick_row_tile(R, target=1024):
    """Largest multiple-of-8 divisor of R <= target, preferring an even tile count."""
    best = R
    best_even = None
    t = 8
    while t <= min(R, target):
        if R % t == 0:
            best = t
            if (R // t) >= 2 and (R // t) % 2 == 0:
                best_even = t
        t += 8
    return best_even if best_even is not None else best


def _split2(n):
    """Split n grid steps into (n_par, per_core) with n_par in {1, 2}."""
    if n >= 2 and n % 2 == 0:
        return 2, n // 2
    return 1, n


def _pick_images_per_block(N, HW, target=256):
    """Smallest divisor of N giving >= `target` matmul rows per call-B step."""
    for cand in range(1, N + 1):
        if N % cand == 0 and cand * HW >= target:
            return cand
    return N


def _pick_conv_row_group(H, W, P):
    """Row-group G (divisor of H) so the local f32 accumulator stays ~16 vregs."""
    lane_blocks = (P + 127) // 128
    budget_rows = max(8, 128 // lane_blocks)
    g = 1
    for cand in range(1, H + 1):
        if H % cand == 0 and cand * W <= budget_rows:
            g = cand
    return g


def _finalize_stats(partial, count):
    """Combine per-core partial (sum, sumsq) -> (2, C) [mean; rstd] in f32."""
    s = jnp.sum(partial[:, 0, :], axis=0)
    ss = jnp.sum(partial[:, 1, :], axis=0)
    mean = s / count
    var = jnp.maximum(ss / count - mean * mean, 0.0)   # clamp E[x^2]-m^2 cancellation
    rstd = jax.lax.rsqrt(var + EPS)
    return jnp.stack([mean, rstd], axis=0)


# ----------------------------------------------------------------------------
# Kernels
# ----------------------------------------------------------------------------
def _conv1_stats_kernel(x_ref, w1_ref, a1_ref, st_ref):
    """a1 = bf16(x @ W1); accumulate per-core partial sum / sumsq of a1."""
    t = pl.program_id(1)

    @pl.when(t == 0)
    def _init():
        st_ref[...] = jnp.zeros_like(st_ref)

    a1 = jnp.dot(x_ref[...].astype(jnp.bfloat16), w1_ref[...],
                 preferred_element_type=jnp.float32)
    a1b = a1.astype(jnp.bfloat16)
    a1_ref[...] = a1b
    a1f = a1b.astype(jnp.float32)
    st_ref[0, 0:1, :] += jnp.sum(a1f, axis=0, keepdims=True)
    st_ref[0, 1:2, :] += jnp.sum(a1f * a1f, axis=0, keepdims=True)


def _conv3x3_stats_kernel(a1_ref, st1_ref, g1_ref, b1_ref, w2_ref,
                          a2_ref, st_ref, hpad_ref, *, n_img, H, W, P, G):
    """h1 = relu(bn1(a1)); a2 = bf16(conv3x3(h1)); per-core partial stats(a2).

    The 9 shifted-window matmuls accumulate into a local f32 value, chunked over
    row groups of G image rows so the accumulator stays in vregs.  The padded
    h1 plane lives in a bf16 VMEM scratch (zero ring written once).
    """
    t = pl.program_id(1)

    @pl.when(t == 0)
    def _init():
        st_ref[...] = jnp.zeros_like(st_ref)
        # zero ring is written once; the interior is overwritten every image
        hpad_ref[...] = jnp.zeros_like(hpad_ref)

    st1 = st1_ref[...]                                  # (2, P): [mean; rstd]
    mean1 = st1[0:1, :].reshape(1, 1, P)
    rstd1 = st1[1:2, :].reshape(1, 1, P)
    gamma1 = g1_ref[...].reshape(1, 1, P)
    beta1 = b1_ref[...].reshape(1, 1, P)

    s_loc = jnp.zeros((1, P), jnp.float32)
    ss_loc = jnp.zeros((1, P), jnp.float32)

    for im in range(n_img):
        a1 = a1_ref[im].astype(jnp.float32)             # (H, W, P)
        h1 = jnp.maximum((a1 - mean1) * rstd1 * gamma1 + beta1, 0.0)
        hpad_ref[1:H + 1, 1:W + 1, :] = h1.astype(jnp.bfloat16)

        for gi in range(H // G):
            r0 = gi * G
            acc = None
            for ky in range(3):
                for kx in range(3):
                    win = hpad_ref[r0 + ky:r0 + ky + G, kx:kx + W, :]   # (G,W,P) bf16
                    contrib = jnp.dot(win.reshape(G * W, P), w2_ref[ky, kx],
                                      preferred_element_type=jnp.float32)
                    acc = contrib if acc is None else acc + contrib
            a2b = acc.astype(jnp.bfloat16)               # (G*W, P)
            a2_ref[im, pl.ds(r0 * W, G * W), :] = a2b
            a2f = a2b.astype(jnp.float32)
            s_loc = s_loc + jnp.sum(a2f, axis=0, keepdims=True)
            ss_loc = ss_loc + jnp.sum(a2f * a2f, axis=0, keepdims=True)

    st_ref[0, 0:1, :] += s_loc
    st_ref[0, 1:2, :] += ss_loc


def _conv3_stats_kernel(a2_ref, st2_ref, g2_ref, b2_ref, w3_ref, a3_ref, st_ref):
    """h2 = relu(bn2(a2)); a3 = bf16(h2 @ W3); per-core partial stats(a3)."""
    t = pl.program_id(1)

    @pl.when(t == 0)
    def _init():
        st_ref[...] = jnp.zeros_like(st_ref)

    st2 = st2_ref[...]
    h2 = jnp.maximum(
        (a2_ref[...].astype(jnp.float32) - st2[0:1, :]) * st2[1:2, :] * g2_ref[...]
        + b2_ref[...], 0.0)
    a3 = jnp.dot(h2.astype(jnp.bfloat16), w3_ref[...],
                 preferred_element_type=jnp.float32)
    a3b = a3.astype(jnp.bfloat16)
    a3_ref[...] = a3b
    a3f = a3b.astype(jnp.float32)
    st_ref[0, 0:1, :] += jnp.sum(a3f, axis=0, keepdims=True)
    st_ref[0, 1:2, :] += jnp.sum(a3f * a3f, axis=0, keepdims=True)


def _bn3_residual_kernel(a3_ref, x_ref, st3_ref, g3_ref, b3_ref, out_ref):
    """out = relu(bn3(a3) + identity).  Independent row tiles -> fully parallel."""
    st3 = st3_ref[...]
    y = (a3_ref[...].astype(jnp.float32) - st3[0:1, :]) * st3[1:2, :] * g3_ref[...] \
        + b3_ref[...]
    out_ref[...] = jnp.maximum(y + x_ref[...], 0.0)


# ----------------------------------------------------------------------------
# Wrapper (NHWC hot path + NCHW adapter)
# ----------------------------------------------------------------------------
def init_params(key, inplanes, planes):
    """Synthetic params; conv weights stored matmul-ready and in bf16."""
    ks = jax.random.split(key, 9)
    cout = planes * 4
    return {
        "w1": (0.1 * jax.random.normal(ks[0], (inplanes, planes))).astype(jnp.bfloat16),
        "w2": (0.1 * jax.random.normal(ks[1], (3, 3, planes, planes))).astype(jnp.bfloat16),
        "w3": (0.1 * jax.random.normal(ks[2], (planes, cout))).astype(jnp.bfloat16),
        "g1": (1.0 + 0.1 * jax.random.normal(ks[3], (1, planes))).astype(jnp.float32),
        "b1": (0.1 * jax.random.normal(ks[4], (1, planes))).astype(jnp.float32),
        "g2": (1.0 + 0.1 * jax.random.normal(ks[5], (1, planes))).astype(jnp.float32),
        "b2": (0.1 * jax.random.normal(ks[6], (1, planes))).astype(jnp.float32),
        "g3": (1.0 + 0.1 * jax.random.normal(ks[7], (1, cout))).astype(jnp.float32),
        "b3": (0.1 * jax.random.normal(ks[8], (1, cout))).astype(jnp.float32),
    }


def bottleneck_forward_nhwc(x_nhwc, params):
    N, H, W, Cin = x_nhwc.shape
    P = params["w1"].shape[1]
    Cout = 4 * P
    assert Cin == Cout, "identity path needs inplanes == planes*4 (downsample=None)"
    HW = H * W
    R = N * HW
    vmem_limit = _vmem_limit_bytes()

    x_flat = x_nhwc.astype(jnp.float32).reshape(R, Cin)

    # row tiling for the 1x1 / elementwise calls
    block_rows = _pick_row_tile(R, target=1024)
    g_rows = R // block_rows
    n_par_a, gpc_a = _split2(g_rows)

    cp_red = pltpu.CompilerParams(
        dimension_semantics=("parallel", "arbitrary"), vmem_limit_bytes=vmem_limit)
    cp_par = pltpu.CompilerParams(
        dimension_semantics=("parallel",), vmem_limit_bytes=vmem_limit)

    # ---- Call A: conv1 (1x1) + partial stats(a1) -----------------------------
    a1_flat, st1_part = pl.pallas_call(
        _conv1_stats_kernel,
        grid=(n_par_a, gpc_a),
        in_specs=[
            pl.BlockSpec((block_rows, Cin), lambda c, t: (c * gpc_a + t, 0)),
            pl.BlockSpec((Cin, P), lambda c, t: (0, 0)),
        ],
        out_specs=(
            pl.BlockSpec((block_rows, P), lambda c, t: (c * gpc_a + t, 0)),
            pl.BlockSpec((1, 2, P), lambda c, t: (c, 0, 0)),
        ),
        out_shape=(
            jax.ShapeDtypeStruct((R, P), jnp.bfloat16),
            jax.ShapeDtypeStruct((n_par_a, 2, P), jnp.float32),
        ),
        compiler_params=cp_red,
        cost_estimate=pl.CostEstimate(
            flops=2 * R * Cin * P, transcendentals=0,
            bytes_accessed=R * Cin * 4 + R * P * 2 + Cin * P * 2),
    )(x_flat, params["w1"])
    stats1 = _finalize_stats(st1_part, float(R))

    # ---- Call B: bn1+relu + conv2 (3x3, pad=1) + partial stats(a2) ----------
    n_img = _pick_images_per_block(N, HW, target=256)
    n_grp_b = N // n_img
    n_par_b, gpc_b = _split2(n_grp_b)
    G = _pick_conv_row_group(H, W, P)

    a1_4d = a1_flat.reshape(N, H, W, P)
    a2_3d, st2_part = pl.pallas_call(
        functools.partial(_conv3x3_stats_kernel, n_img=n_img, H=H, W=W, P=P, G=G),
        grid=(n_par_b, gpc_b),
        in_specs=[
            pl.BlockSpec((n_img, H, W, P), lambda c, t: (c * gpc_b + t, 0, 0, 0)),
            pl.BlockSpec((2, P), lambda c, t: (0, 0)),
            pl.BlockSpec((1, P), lambda c, t: (0, 0)),
            pl.BlockSpec((1, P), lambda c, t: (0, 0)),
            pl.BlockSpec((3, 3, P, P), lambda c, t: (0, 0, 0, 0)),
        ],
        out_specs=(
            pl.BlockSpec((n_img, HW, P), lambda c, t: (c * gpc_b + t, 0, 0)),
            pl.BlockSpec((1, 2, P), lambda c, t: (c, 0, 0)),
        ),
        out_shape=(
            jax.ShapeDtypeStruct((N, HW, P), jnp.bfloat16),
            jax.ShapeDtypeStruct((n_par_b, 2, P), jnp.float32),
        ),
        scratch_shapes=[pltpu.VMEM((H + 2, W + 2, P), jnp.bfloat16)],
        compiler_params=cp_red,
        cost_estimate=pl.CostEstimate(
            flops=2 * R * 9 * P * P, transcendentals=0,
            bytes_accessed=2 * R * P * 2 + 9 * P * P * 2),
    )(a1_4d, stats1, params["g1"], params["b1"], params["w2"])
    stats2 = _finalize_stats(st2_part, float(R))

    # ---- Call C: bn2+relu + conv3 (1x1, x4) + partial stats(a3) --------------
    a2_flat = a2_3d.reshape(R, P)
    a3_flat, st3_part = pl.pallas_call(
        _conv3_stats_kernel,
        grid=(n_par_a, gpc_a),
        in_specs=[
            pl.BlockSpec((block_rows, P), lambda c, t: (c * gpc_a + t, 0)),
            pl.BlockSpec((2, P), lambda c, t: (0, 0)),
            pl.BlockSpec((1, P), lambda c, t: (0, 0)),
            pl.BlockSpec((1, P), lambda c, t: (0, 0)),
            pl.BlockSpec((P, Cout), lambda c, t: (0, 0)),
        ],
        out_specs=(
            pl.BlockSpec((block_rows, Cout), lambda c, t: (c * gpc_a + t, 0)),
            pl.BlockSpec((1, 2, Cout), lambda c, t: (c, 0, 0)),
        ),
        out_shape=(
            jax.ShapeDtypeStruct((R, Cout), jnp.bfloat16),
            jax.ShapeDtypeStruct((n_par_a, 2, Cout), jnp.float32),
        ),
        compiler_params=cp_red,
        cost_estimate=pl.CostEstimate(
            flops=2 * R * P * Cout, transcendentals=0,
            bytes_accessed=R * P * 2 + R * Cout * 2 + P * Cout * 2),
    )(a2_flat, stats2, params["g2"], params["b2"], params["w3"])
    stats3 = _finalize_stats(st3_part, float(R))

    # ---- Call D: bn3 + residual add + relu (fully parallel) ------------------
    out_flat = pl.pallas_call(
        _bn3_residual_kernel,
        grid=(g_rows,),
        in_specs=[
            pl.BlockSpec((block_rows, Cout), lambda i: (i, 0)),
            pl.BlockSpec((block_rows, Cin), lambda i: (i, 0)),
            pl.BlockSpec((2, Cout), lambda i: (0, 0)),
            pl.BlockSpec((1, Cout), lambda i: (0, 0)),
            pl.BlockSpec((1, Cout), lambda i: (0, 0)),
        ],
        out_specs=pl.BlockSpec((block_rows, Cout), lambda i: (i, 0)),
        out_shape=jax.ShapeDtypeStruct((R, Cout), jnp.float32),
        compiler_params=cp_par,
        cost_estimate=pl.CostEstimate(
            flops=5 * R * Cout, transcendentals=0,
            bytes_accessed=R * Cout * (2 + 4 + 4)),
    )(a3_flat, x_flat, stats3, params["g3"], params["b3"])

    return out_flat.reshape(N, H, W, Cout)


def bottleneck_forward_nchw(x_nchw, params):
    """Drop-in NCHW interface matching the PyTorch module.  For full networks,
    stay in NHWC (bottleneck_forward_nhwc) to avoid these HBM transposes."""
    x_nhwc = jnp.transpose(x_nchw, (0, 2, 3, 1))
    out = bottleneck_forward_nhwc(x_nhwc, params)
    return jnp.transpose(out, (0, 3, 1, 2))


# ----------------------------------------------------------------------------
# Pure-JAX reference (matching numerics: bf16 matmul inputs + bf16-stored
# intermediates, f32 accumulation and BN statistics)
# ----------------------------------------------------------------------------
def bottleneck_ref_nhwc(x_nhwc, params):
    f32 = jnp.float32
    x = x_nhwc.astype(f32)

    def bn(h, g, b):
        mean = jnp.mean(h, axis=(0, 1, 2), keepdims=True)
        var = jnp.maximum(
            jnp.mean(h * h, axis=(0, 1, 2), keepdims=True) - mean * mean, 0.0)
        return (h - mean) * jax.lax.rsqrt(var + EPS) * g.reshape(1, 1, 1, -1) \
            + b.reshape(1, 1, 1, -1)

    a1 = jnp.einsum("nhwc,co->nhwo", x.astype(jnp.bfloat16), params["w1"],
                    preferred_element_type=f32).astype(jnp.bfloat16).astype(f32)
    h1 = jax.nn.relu(bn(a1, params["g1"], params["b1"])).astype(jnp.bfloat16)
    a2 = jax.lax.conv_general_dilated(
        h1, params["w2"], window_strides=(1, 1), padding="SAME",
        dimension_numbers=("NHWC", "HWIO", "NHWC"),
        preferred_element_type=f32).astype(jnp.bfloat16).astype(f32)
    h2 = jax.nn.relu(bn(a2, params["g2"], params["b2"])).astype(jnp.bfloat16)
    a3 = jnp.einsum("nhwc,co->nhwo", h2, params["w3"],
                    preferred_element_type=f32).astype(jnp.bfloat16).astype(f32)
    out = jax.nn.relu(bn(a3, params["g3"], params["b3"]) + x)
    return out


if __name__ == "__main__":
    # Small but lane-dense: planes=32 -> inplanes = Cout = 128 channels,
    # 16x16 spatial, batch=2 -> 512 activation rows.
    N, H, W = 2, 16, 16
    planes = 32
    inplanes = planes * 4

    key = jax.random.PRNGKey(0)
    kx, kp = jax.random.split(key)
    x_nhwc = jax.random.normal(kx, (N, H, W, inplanes), dtype=jnp.float32)
    params = init_params(kp, inplanes, planes)

    fwd = jax.jit(bottleneck_forward_nhwc)
    out = jax.block_until_ready(fwd(x_nhwc, params))
    ref = jax.block_until_ready(bottleneck_ref_nhwc(x_nhwc, params))

    assert out.shape == (N, H, W, inplanes)
    max_err = float(jnp.max(jnp.abs(out - ref)))
    assert jnp.allclose(out, ref, atol=1e-2, rtol=1e-2), f"max abs err {max_err}"

    # NCHW drop-in interface (module-faithful layout) smoke test
    x_nchw = jnp.transpose(x_nhwc, (0, 3, 1, 2))
    out_nchw = jax.block_until_ready(jax.jit(bottleneck_forward_nchw)(x_nchw, params))
    ref_nchw = jnp.transpose(ref, (0, 3, 1, 2))
    assert jnp.allclose(out_nchw, ref_nchw, atol=1e-2, rtol=1e-2)

    print("KERNEL_OK")
</pallas_src>

<mosaic_0001>
module attributes {stable_mosaic.version = 11 : i64} {
  func.func @_conv1_stats_kernel(%arg0: i32, %arg1: i32, %arg2: memref<256x128xf32, #tpu.memory_space<vmem>>, %arg3: memref<128x32xbf16, #tpu.memory_space<vmem>>, %arg4: memref<256x32xbf16, #tpu.memory_space<vmem>>, %arg5: memref<1x2x32xf32, #tpu.memory_space<vmem>>) attributes {dimension_semantics = [#tpu.dimension_semantics<parallel>, #tpu.dimension_semantics<arbitrary>], iteration_bounds = array<i64: 2, 1>, scalar_prefetch = 0 : i64, scratch_operands = 0 : i64, tpu.core_type = #tpu.core_type<tc>, window_params = [{transform_indices = @transform_0, window_bounds = array<i64: 256, 128>}, {pipeline_mode = #tpu.pipeline_mode<synchronous>, transform_indices = @transform_1, window_bounds = array<i64: 128, 32>}, {transform_indices = @transform_2, window_bounds = array<i64: 256, 32>}, {transform_indices = @transform_3, window_bounds = array<i64: 1, 2, 32>}]} {
    %c0_i32 = arith.constant 0 : i32
    %0 = arith.cmpi eq, %arg1, %c0_i32 : i32
    %1 = arith.extui %0 : i1 to i32
    %c0_i32_0 = arith.constant 0 : i32
    %2 = arith.cmpi ne, %1, %c0_i32_0 : i32
    scf.if %2 {
      %cst_19 = arith.constant 0.000000e+00 : f32
      %27 = vector.broadcast %cst_19 : f32 to vector<1x2x32xf32>
      %c0_20 = arith.constant 0 : index
      %c0_21 = arith.constant 0 : index
      %c0_22 = arith.constant 0 : index
      %28 = vector.load %arg5[%c0_20, %c0_21, %c0_22] : memref<1x2x32xf32, #tpu.memory_space<vmem>>, vector<1x2x32xf32>
      tpu.vector_store %arg5[%c0_20, %c0_21, %c0_22], %27 {strides = array<i32>} : memref<1x2x32xf32, #tpu.memory_space<vmem>>, vector<1x2x32xf32>,
    } else {
    }
    %c0 = arith.constant 0 : index
    %c0_1 = arith.constant 0 : index
    %3 = vector.load %arg2[%c0, %c0_1] : memref<256x128xf32, #tpu.memory_space<vmem>>, vector<256x128xf32>
    %4 = arith.truncf %3 : vector<256x128xf32> to vector<256x128xbf16>
    %c0_2 = arith.constant 0 : index
    %c0_3 = arith.constant 0 : index
    %5 = vector.load %arg3[%c0_2, %c0_3] : memref<128x32xbf16, #tpu.memory_space<vmem>>, vector<128x32xbf16>
    %cst = arith.constant dense<0.000000e+00> : vector<256x32xf32>
    %6 = tpu.matmul %4, %5, %cst {dimension_numbers = #tpu.dot_dimension_numbers<[1], [0], [0], [1], [0, 0, 1, 1], [], []>} : vector<256x128xbf16>, vector<128x32xbf16>, vector<256x32xf32> -> vector<256x32xf32>
    %7 = arith.truncf %6 : vector<256x32xf32> to vector<256x32xbf16>
    %c0_4 = arith.constant 0 : index
    %c0_5 = arith.constant 0 : index
    %8 = vector.load %arg4[%c0_4, %c0_5] : memref<256x32xbf16, #tpu.memory_space<vmem>>, vector<256x32xbf16>
    tpu.vector_store %arg4[%c0_4, %c0_5], %7 {strides = array<i32>} : memref<256x32xbf16, #tpu.memory_space<vmem>>, vector<256x32xbf16>,
    %9 = arith.extf %7 : vector<256x32xbf16> to vector<256x32xf32>
    %c0_6 = arith.constant 0 : index
    %c0_7 = arith.constant 0 : index
    %c0_8 = arith.constant 0 : index
    %10 = vector.load %arg5[%c0_6, %c0_7, %c0_8] : memref<1x2x32xf32, #tpu.memory_space<vmem>>, vector<1x1x32xf32>
    %11 = vector.shape_cast %10 : vector<1x1x32xf32> to vector<1x32xf32>
    %cst_9 = arith.constant dense<0.000000e+00> : vector<32xf32>
    %12 = vector.multi_reduction <add>, %9, %cst_9 [0] : vector<256x32xf32> to vector<32xf32>
    %13 = vector.shape_cast %12 : vector<32xf32> to vector<1x32xf32>
    %14 = arith.addf %11, %13 : vector<1x32xf32>
    %c0_10 = arith.constant 0 : index
    %c0_11 = arith.constant 0 : index
    %c0_12 = arith.constant 0 : index
    %15 = vector.load %arg5[%c0_10, %c0_11, %c0_12] : memref<1x2x32xf32, #tpu.memory_space<vmem>>, vector<1x1x32xf32>
    %16 = vector.shape_cast %15 : vector<1x1x32xf32> to vector<1x32xf32>
    %17 = vector.shape_cast %14 : vector<1x32xf32> to vector<1x1x32xf32>
    tpu.vector_store %arg5[%c0_10, %c0_11, %c0_12], %17 {strides = array<i32>} : memref<1x2x32xf32, #tpu.memory_space<vmem>>, vector<1x1x32xf32>,
    %c0_13 = arith.constant 0 : index
    %c1 = arith.constant 1 : index
    %c0_14 = arith.constant 0 : index
    %18 = vector.load %arg5[%c0_13, %c1, %c0_14] : memref<1x2x32xf32, #tpu.memory_space<vmem>>, vector<1x1x32xf32>
    %19 = vector.shape_cast %18 : vector<1x1x32xf32> to vector<1x32xf32>
    %20 = arith.mulf %9, %9 : vector<256x32xf32>
    %cst_15 = arith.constant dense<0.000000e+00> : vector<32xf32>
    %21 = vector.multi_reduction <add>, %20, %cst_15 [0] : vector<256x32xf32> to vector<32xf32>
    %22 = vector.shape_cast %21 : vector<32xf32> to vector<1x32xf32>
    %23 = arith.addf %19, %22 : vector<1x32xf32>
    %c0_16 = arith.constant 0 : index
    %c1_17 = arith.constant 1 : index
    %c0_18 = arith.constant 0 : index
    %24 = vector.load %arg5[%c0_16, %c1_17, %c0_18] : memref<1x2x32xf32, #tpu.memory_space<vmem>>, vector<1x1x32xf32>
    %25 = vector.shape_cast %24 : vector<1x1x32xf32> to vector<1x32xf32>
    %26 = vector.shape_cast %23 : vector<1x32xf32> to vector<1x1x32xf32>
    tpu.vector_store %arg5[%c0_16, %c1_17, %c0_18], %26 {strides = array<i32>} : memref<1x2x32xf32, #tpu.memory_space<vmem>>, vector<1x1x32xf32>,
    return
  }
  func.func @transform_0(%arg0: i32, %arg1: i32) -> (i32, i32) {
    %c1_i32 = arith.constant 1 : i32
    %0 = arith.muli %arg0, %c1_i32 : i32
    %1 = arith.addi %0, %arg1 : i32
    %c0_i32 = arith.constant 0 : i32
    %c0_i32_0 = arith.constant 0 : i32
    return %1, %c0_i32 : i32, i32
  }
  func.func @transform_1(%arg0: i32, %arg1: i32) -> (i32, i32) {
    %c0_i32 = arith.constant 0 : i32
    %c0_i32_0 = arith.constant 0 : i32
    %c0_i32_1 = arith.constant 0 : i32
    return %c0_i32, %c0_i32_0 : i32, i32
  }
  func.func @transform_2(%arg0: i32, %arg1: i32) -> (i32, i32) {
    %c1_i32 = arith.constant 1 : i32
    %0 = arith.muli %arg0, %c1_i32 : i32
    %1 = arith.addi %0, %arg1 : i32
    %c0_i32 = arith.constant 0 : i32
    %c0_i32_0 = arith.constant 0 : i32
    return %1, %c0_i32 : i32, i32
  }
  func.func @transform_3(%arg0: i32, %arg1: i32) -> (i32, i32, i32) {
    %c0_i32 = arith.constant 0 : i32
    %c0_i32_0 = arith.constant 0 : i32
    %c0_i32_1 = arith.constant 0 : i32
    return %arg0, %c0_i32, %c0_i32_0 : i32, i32, i32
  }
}

module attributes {stable_mosaic.version = 11 : i64} {
  func.func @_conv3_stats_kernel(%arg0: i32, %arg1: i32, %arg2: memref<256x32xbf16, #tpu.memory_space<vmem>>, %arg3: memref<2x32xf32, #tpu.memory_space<vmem>>, %arg4: memref<1x32xf32, #tpu.memory_space<vmem>>, %arg5: memref<1x32xf32, #tpu.memory_space<vmem>>, %arg6: memref<32x128xbf16, #tpu.memory_space<vmem>>, %arg7: memref<256x128xbf16, #tpu.memory_space<vmem>>, %arg8: memref<1x2x128xf32, #tpu.memory_space<vmem>>) attributes {dimension_semantics = [#tpu.dimension_semantics<parallel>, #tpu.dimension_semantics<arbitrary>], iteration_bounds = array<i64: 2, 1>, scalar_prefetch = 0 : i64, scratch_operands = 0 : i64, tpu.core_type = #tpu.core_type<tc>, window_params = [{transform_indices = @transform_0, window_bounds = array<i64: 256, 32>}, {pipeline_mode = #tpu.pipeline_mode<synchronous>, transform_indices = @transform_1, window_bounds = array<i64: 2, 32>}, {pipeline_mode = #tpu.pipeline_mode<synchronous>, transform_indices = @transform_2, window_bounds = array<i64: 1, 32>}, {pipeline_mode = #tpu.pipeline_mode<synchronous>, transform_indices = @transform_3, window_bounds = array<i64: 1, 32>}, {pipeline_mode = #tpu.pipeline_mode<synchronous>, transform_indices = @transform_4, window_bounds = array<i64: 32, 128>}, {transform_indices = @transform_5, window_bounds = array<i64: 256, 128>}, {transform_indices = @transform_6, window_bounds = array<i64: 1, 2, 128>}]} {
    %c0_i32 = arith.constant 0 : i32
    %0 = arith.cmpi eq, %arg1, %c0_i32 : i32
    %1 = arith.extui %0 : i1 to i32
    %c0_i32_0 = arith.constant 0 : i32
    %2 = arith.cmpi ne, %1, %c0_i32_0 : i32
    scf.if %2 {
      %cst_26 = arith.constant 0.000000e+00 : f32
      %43 = vector.broadcast %cst_26 : f32 to vector<1x2x128xf32>
      %c0_27 = arith.constant 0 : index
      %c0_28 = arith.constant 0 : index
      %c0_29 = arith.constant 0 : index
      %44 = vector.load %arg8[%c0_27, %c0_28, %c0_29] : memref<1x2x128xf32, #tpu.memory_space<vmem>>, vector<1x2x128xf32>
      tpu.vector_store %arg8[%c0_27, %c0_28, %c0_29], %43 {strides = array<i32>} : memref<1x2x128xf32, #tpu.memory_space<vmem>>, vector<1x2x128xf32>,
    } else {
    }
    %c0 = arith.constant 0 : index
    %c0_1 = arith.constant 0 : index
    %3 = vector.load %arg3[%c0, %c0_1] : memref<2x32xf32, #tpu.memory_space<vmem>>, vector<2x32xf32>
    %c0_2 = arith.constant 0 : index
    %c0_3 = arith.constant 0 : index
    %4 = vector.load %arg2[%c0_2, %c0_3] : memref<256x32xbf16, #tpu.memory_space<vmem>>, vector<256x32xbf16>
    %5 = arith.extf %4 : vector<256x32xbf16> to vector<256x32xf32>
    %6 = vector.extract_strided_slice %3 {offsets = [0, 0], sizes = [1, 32], strides = [1, 1]} : vector<2x32xf32> to vector<1x32xf32>
    %7 = vector.broadcast %6 : vector<1x32xf32> to vector<256x32xf32>
    %8 = arith.subf %5, %7 : vector<256x32xf32>
    %9 = vector.extract_strided_slice %3 {offsets = [1, 0], sizes = [1, 32], strides = [1, 1]} : vector<2x32xf32> to vector<1x32xf32>
    %10 = vector.broadcast %9 : vector<1x32xf32> to vector<256x32xf32>
    %11 = arith.mulf %8, %10 : vector<256x32xf32>
    %c0_4 = arith.constant 0 : index
    %c0_5 = arith.constant 0 : index
    %12 = vector.load %arg4[%c0_4, %c0_5] : memref<1x32xf32, #tpu.memory_space<vmem>>, vector<1x32xf32>
    %13 = vector.broadcast %12 : vector<1x32xf32> to vector<256x32xf32>
    %14 = arith.mulf %11, %13 : vector<256x32xf32>
    %c0_6 = arith.constant 0 : index
    %c0_7 = arith.constant 0 : index
    %15 = vector.load %arg5[%c0_6, %c0_7] : memref<1x32xf32, #tpu.memory_space<vmem>>, vector<1x32xf32>
    %16 = vector.broadcast %15 : vector<1x32xf32> to vector<256x32xf32>
    %17 = arith.addf %14, %16 : vector<256x32xf32>
    %cst = arith.constant 0.000000e+00 : f32
    %18 = vector.broadcast %cst : f32 to vector<256x32xf32>
    %19 = arith.maximumf %17, %18 : vector<256x32xf32>
    %20 = arith.truncf %19 : vector<256x32xf32> to vector<256x32xbf16>
    %c0_8 = arith.constant 0 : index
    %c0_9 = arith.constant 0 : index
    %21 = vector.load %arg6[%c0_8, %c0_9] : memref<32x128xbf16, #tpu.memory_space<vmem>>, vector<32x128xbf16>
    %cst_10 = arith.constant dense<0.000000e+00> : vector<256x128xf32>
    %22 = tpu.matmul %20, %21, %cst_10 {dimension_numbers = #tpu.dot_dimension_numbers<[1], [0], [0], [1], [0, 0, 1, 1], [], []>} : vector<256x32xbf16>, vector<32x128xbf16>, vector<256x128xf32> -> vector<256x128xf32>
    %23 = arith.truncf %22 : vector<256x128xf32> to vector<256x128xbf16>
    %c0_11 = arith.constant 0 : index
    %c0_12 = arith.constant 0 : index
    %24 = vector.load %arg7[%c0_11, %c0_12] : memref<256x128xbf16, #tpu.memory_space<vmem>>, vector<256x128xbf16>
    tpu.vector_store %arg7[%c0_11, %c0_12], %23 {strides = array<i32>} : memref<256x128xbf16, #tpu.memory_space<vmem>>, vector<256x128xbf16>,
    %25 = arith.extf %23 : vector<256x128xbf16> to vector<256x128xf32>
    %c0_13 = arith.constant 0 : index
    %c0_14 = arith.constant 0 : index
    %c0_15 = arith.constant 0 : index
    %26 = vector.load %arg8[%c0_13, %c0_14, %c0_15] : memref<1x2x128xf32, #tpu.memory_space<vmem>>, vector<1x1x128xf32>
    %27 = vector.shape_cast %26 : vector<1x1x128xf32> to vector<1x128xf32>
    %cst_16 = arith.constant dense<0.000000e+00> : vector<128xf32>
    %28 = vector.multi_reduction <add>, %25, %cst_16 [0] : vector<256x128xf32> to vector<128xf32>
    %29 = vector.shape_cast %28 : vector<128xf32> to vector<1x128xf32>
    %30 = arith.addf %27, %29 : vector<1x128xf32>
    %c0_17 = arith.constant 0 : index
    %c0_18 = arith.constant 0 : index
    %c0_19 = arith.constant 0 : index
    %31 = vector.load %arg8[%c0_17, %c0_18, %c0_19] : memref<1x2x128xf32, #tpu.memory_space<vmem>>, vector<1x1x128xf32>
    %32 = vector.shape_cast %31 : vector<1x1x128xf32> to vector<1x128xf32>
    %33 = vector.shape_cast %30 : vector<1x128xf32> to vector<1x1x128xf32>
    tpu.vector_store %arg8[%c0_17, %c0_18, %c0_19], %33 {strides = array<i32>} : memref<1x2x128xf32, #tpu.memory_space<vmem>>, vector<1x1x128xf32>,
    %c0_20 = arith.constant 0 : index
    %c1 = arith.constant 1 : index
    %c0_21 = arith.constant 0 : index
    %34 = vector.load %arg8[%c0_20, %c1, %c0_21] : memref<1x2x128xf32, #tpu.memory_space<vmem>>, vector<1x1x128xf32>
    %35 = vector.shape_cast %34 : vector<1x1x128xf32> to vector<1x128xf32>
    %36 = arith.mulf %25, %25 : vector<256x128xf32>
    %cst_22 = arith.constant dense<0.000000e+00> : vector<128xf32>
    %37 = vector.multi_reduction <add>, %36, %cst_22 [0] : vector<256x128xf32> to vector<128xf32>
    %38 = vector.shape_cast %37 : vector<128xf32> to vector<1x128xf32>
    %39 = arith.addf %35, %38 : vector<1x128xf32>
    %c0_23 = arith.constant 0 : index
    %c1_24 = arith.constant 1 : index
    %c0_25 = arith.constant 0 : index
    %40 = vector.load %arg8[%c0_23, %c1_24, %c0_25] : memref<1x2x128xf32, #tpu.memory_space<vmem>>, vector<1x1x128xf32>
    %41 = vector.shape_cast %40 : vector<1x1x128xf32> to vector<1x128xf32>
    %42 = vector.shape_cast %39 : vector<1x128xf32> to vector<1x1x128xf32>
    tpu.vector_store %arg8[%c0_23, %c1_24, %c0_25], %42 {strides = array<i32>} : memref<1x2x128xf32, #tpu.memory_space<vmem>>, vector<1x1x128xf32>,
    return
  }
  func.func @transform_0(%arg0: i32, %arg1: i32) -> (i32, i32) {
    %c1_i32 = arith.constant 1 : i32
    %0 = arith.muli %arg0, %c1_i32 : i32
    %1 = arith.addi %0, %arg1 : i32
    %c0_i32 = arith.constant 0 : i32
    %c0_i32_0 = arith.constant 0 : i32
    return %1, %c0_i32 : i32, i32
  }
  func.func @transform_1(%arg0: i32, %arg1: i32) -> (i32, i32) {
    %c0_i32 = arith.constant 0 : i32
    %c0_i32_0 = arith.constant 0 : i32
    %c0_i32_1 = arith.constant 0 : i32
    return %c0_i32, %c0_i32_0 : i32, i32
  }
  func.func @transform_2(%arg0: i32, %arg1: i32) -> (i32, i32) {
    %c0_i32 = arith.constant 0 : i32
    %c0_i32_0 = arith.constant 0 : i32
    %c0_i32_1 = arith.constant 0 : i32
    return %c0_i32, %c0_i32_0 : i32, i32
  }
  func.func @transform_3(%arg0: i32, %arg1: i32) -> (i32, i32) {
    %c0_i32 = arith.constant 0 : i32
    %c0_i32_0 = arith.constant 0 : i32
    %c0_i32_1 = arith.constant 0 : i32
    return %c0_i32, %c0_i32_0 : i32, i32
  }
  func.func @transform_4(%arg0: i32, %arg1: i32) -> (i32, i32) {
    %c0_i32 = arith.constant 0 : i32
    %c0_i32_0 = arith.constant 0 : i32
    %c0_i32_1 = arith.constant 0 : i32
    return %c0_i32, %c0_i32_0 : i32, i32
  }
  func.func @transform_5(%arg0: i32, %arg1: i32) -> (i32, i32) {
    %c1_i32 = arith.constant 1 : i32
    %0 = arith.muli %arg0, %c1_i32 : i32
    %1 = arith.addi %0, %arg1 : i32
    %c0_i32 = arith.constant 0 : i32
    %c0_i32_0 = arith.constant 0 : i32
    return %1, %c0_i32 : i32, i32
  }
  func.func @transform_6(%arg0: i32, %arg1: i32) -> (i32, i32, i32) {
    %c0_i32 = arith.constant 0 : i32
    %c0_i32_0 = arith.constant 0 : i32
    %c0_i32_1 = arith.constant 0 : i32
    return %arg0, %c0_i32, %c0_i32_0 : i32, i32, i32
  }
}

module attributes {stable_mosaic.version = 11 : i64} {
  func.func @_conv3x3_stats_kernel(%arg0: i32, %arg1: i32, %arg2: memref<1x16x16x32xbf16, #tpu.memory_space<vmem>>, %arg3: memref<2x32xf32, #tpu.memory_space<vmem>>, %arg4: memref<1x32xf32, #tpu.memory_space<vmem>>, %arg5: memref<1x32xf32, #tpu.memory_space<vmem>>, %arg6: memref<3x3x32x32xbf16, #tpu.memory_space<vmem>>, %arg7: memref<1x256x32xbf16, #tpu.memory_space<vmem>>, %arg8: memref<1x2x32xf32, #tpu.memory_space<vmem>>, %arg9: memref<18x18x32xbf16, #tpu.memory_space<vmem>>) attributes {dimension_semantics = [#tpu.dimension_semantics<parallel>, #tpu.dimension_semantics<arbitrary>], iteration_bounds = array<i64: 2, 1>, scalar_prefetch = 0 : i64, scratch_operands = 1 : i64, tpu.core_type = #tpu.core_type<tc>, window_params = [{transform_indices = @transform_0, window_bounds = array<i64: 1, 16, 16, 32>}, {pipeline_mode = #tpu.pipeline_mode<synchronous>, transform_indices = @transform_1, window_bounds = array<i64: 2, 32>}, {pipeline_mode = #tpu.pipeline_mode<synchronous>, transform_indices = @transform_2, window_bounds = array<i64: 1, 32>}, {pipeline_mode = #tpu.pipeline_mode<synchronous>, transform_indices = @transform_3, window_bounds = array<i64: 1, 32>}, {pipeline_mode = #tpu.pipeline_mode<synchronous>, transform_indices = @transform_4, window_bounds = array<i64: 3, 3, 32, 32>}, {transform_indices = @transform_5, window_bounds = array<i64: 1, 256, 32>}, {transform_indices = @transform_6, window_bounds = array<i64: 1, 2, 32>}]} {
    %c0_i32 = arith.constant 0 : i32
    %0 = arith.cmpi eq, %arg1, %c0_i32 : i32
    %1 = arith.extui %0 : i1 to i32
    %c0_i32_0 = arith.constant 0 : i32
    %2 = arith.cmpi ne, %1, %c0_i32_0 : i32
    scf.if %2 {
      %cst_175 = arith.constant 0.000000e+00 : f32
      %171 = vector.broadcast %cst_175 : f32 to vector<1x2x32xf32>
      %c0_176 = arith.constant 0 : index
      %c0_177 = arith.constant 0 : index
      %c0_178 = arith.constant 0 : index
      %172 = vector.load %arg8[%c0_176, %c0_177, %c0_178] : memref<1x2x32xf32, #tpu.memory_space<vmem>>, vector<1x2x32xf32>
      tpu.vector_store %arg8[%c0_176, %c0_177, %c0_178], %171 {strides = array<i32>} : memref<1x2x32xf32, #tpu.memory_space<vmem>>, vector<1x2x32xf32>,
      %cst_179 = arith.constant 0.000000e+00 : bf16
      %173 = vector.broadcast %cst_179 : bf16 to vector<18x18x32xbf16>
      %c0_180 = arith.constant 0 : index
      %c0_181 = arith.constant 0 : index
      %c0_182 = arith.constant 0 : index
      %174 = vector.load %arg9[%c0_180, %c0_181, %c0_182] : memref<18x18x32xbf16, #tpu.memory_space<vmem>>, vector<18x18x32xbf16>
      tpu.vector_store %arg9[%c0_180, %c0_181, %c0_182], %173 {strides = array<i32>} : memref<18x18x32xbf16, #tpu.memory_space<vmem>>, vector<18x18x32xbf16>,
    } else {
    }
    %c0 = arith.constant 0 : index
    %c0_1 = arith.constant 0 : index
    %3 = vector.load %arg3[%c0, %c0_1] : memref<2x32xf32, #tpu.memory_space<vmem>>, vector<2x32xf32>
    %4 = vector.extract_strided_slice %3 {offsets = [0, 0], sizes = [1, 32], strides = [1, 1]} : vector<2x32xf32> to vector<1x32xf32>
    %5 = vector.shape_cast %4 : vector<1x32xf32> to vector<1x1x32xf32>
    %6 = vector.extract_strided_slice %3 {offsets = [1, 0], sizes = [1, 32], strides = [1, 1]} : vector<2x32xf32> to vector<1x32xf32>
    %7 = vector.shape_cast %6 : vector<1x32xf32> to vector<1x1x32xf32>
    %c0_2 = arith.constant 0 : index
    %c0_3 = arith.constant 0 : index
    %8 = vector.load %arg4[%c0_2, %c0_3] : memref<1x32xf32, #tpu.memory_space<vmem>>, vector<1x32xf32>
    %9 = vector.shape_cast %8 : vector<1x32xf32> to vector<1x1x32xf32>
    %c0_4 = arith.constant 0 : index
    %c0_5 = arith.constant 0 : index
    %10 = vector.load %arg5[%c0_4, %c0_5] : memref<1x32xf32, #tpu.memory_space<vmem>>, vector<1x32xf32>
    %11 = vector.shape_cast %10 : vector<1x32xf32> to vector<1x1x32xf32>
    %cst = arith.constant 0.000000e+00 : f32
    %12 = vector.broadcast %cst : f32 to vector<1x32xf32>
    %cst_6 = arith.constant 0.000000e+00 : f32
    %13 = vector.broadcast %cst_6 : f32 to vector<1x32xf32>
    %c0_7 = arith.constant 0 : index
    %c0_8 = arith.constant 0 : index
    %c0_9 = arith.constant 0 : index
    %c0_10 = arith.constant 0 : index
    %14 = vector.load %arg2[%c0_7, %c0_8, %c0_9, %c0_10] : memref<1x16x16x32xbf16, #tpu.memory_space<vmem>>, vector<1x16x16x32xbf16>
    %15 = vector.shape_cast %14 : vector<1x16x16x32xbf16> to vector<16x16x32xbf16>
    %16 = arith.extf %15 : vector<16x16x32xbf16> to vector<16x16x32xf32>
    %17 = vector.broadcast %5 : vector<1x1x32xf32> to vector<16x16x32xf32>
    %18 = arith.subf %16, %17 : vector<16x16x32xf32>
    %19 = vector.broadcast %7 : vector<1x1x32xf32> to vector<16x16x32xf32>
    %20 = arith.mulf %18, %19 : vector<16x16x32xf32>
    %21 = vector.broadcast %9 : vector<1x1x32xf32> to vector<16x16x32xf32>
    %22 = arith.mulf %20, %21 : vector<16x16x32xf32>
    %23 = vector.broadcast %11 : vector<1x1x32xf32> to vector<16x16x32xf32>
    %24 = arith.addf %22, %23 : vector<16x16x32xf32>
    %cst_11 = arith.constant 0.000000e+00 : f32
    %25 = vector.broadcast %cst_11 : f32 to vector<16x16x32xf32>
    %26 = arith.maximumf %24, %25 : vector<16x16x32xf32>
    %27 = arith.truncf %26 : vector<16x16x32xf32> to vector<16x16x32xbf16>
    %c1 = arith.constant 1 : index
    %c1_12 = arith.constant 1 : index
    %c0_13 = arith.constant 0 : index
    %28 = vector.load %arg9[%c1, %c1_12, %c0_13] : memref<18x18x32xbf16, #tpu.memory_space<vmem>>, vector<16x16x32xbf16>
    tpu.vector_store %arg9[%c1, %c1_12, %c0_13], %27 {strides = array<i32>} : memref<18x18x32xbf16, #tpu.memory_space<vmem>>, vector<16x16x32xbf16>,
    %c0_14 = arith.constant 0 : index
    %c0_15 = arith.constant 0 : index
    %c0_16 = arith.constant 0 : index
    %29 = vector.load %arg9[%c0_14, %c0_15, %c0_16] : memref<18x18x32xbf16, #tpu.memory_space<vmem>>, vector<8x16x32xbf16>
    %30 = vector.shape_cast %29 : vector<8x16x32xbf16> to vector<128x32xbf16>
    %c0_17 = arith.constant 0 : index
    %c0_18 = arith.constant 0 : index
    %c0_19 = arith.constant 0 : index
    %c0_20 = arith.constant 0 : index
    %31 = vector.load %arg6[%c0_17, %c0_18, %c0_19, %c0_20] : memref<3x3x32x32xbf16, #tpu.memory_space<vmem>>, vector<1x1x32x32xbf16>
    %32 = vector.shape_cast %31 : vector<1x1x32x32xbf16> to vector<32x32xbf16>
    %cst_21 = arith.constant dense<0.000000e+00> : vector<128x32xf32>
    %33 = tpu.matmul %30, %32, %cst_21 {dimension_numbers = #tpu.dot_dimension_numbers<[1], [0], [0], [1], [0, 0, 1, 1], [], []>} : vector<128x32xbf16>, vector<32x32xbf16>, vector<128x32xf32> -> vector<128x32xf32>
    %c0_22 = arith.constant 0 : index
    %c1_23 = arith.constant 1 : index
    %c0_24 = arith.constant 0 : index
    %34 = vector.load %arg9[%c0_22, %c1_23, %c0_24] : memref<18x18x32xbf16, #tpu.memory_space<vmem>>, vector<8x16x32xbf16>
    %35 = vector.shape_cast %34 : vector<8x16x32xbf16> to vector<128x32xbf16>
    %c0_25 = arith.constant 0 : index
    %c1_26 = arith.constant 1 : index
    %c0_27 = arith.constant 0 : index
    %c0_28 = arith.constant 0 : index
    %36 = vector.load %arg6[%c0_25, %c1_26, %c0_27, %c0_28] : memref<3x3x32x32xbf16, #tpu.memory_space<vmem>>, vector<1x1x32x32xbf16>
    %37 = vector.shape_cast %36 : vector<1x1x32x32xbf16> to vector<32x32xbf16>
    %cst_29 = arith.constant dense<0.000000e+00> : vector<128x32xf32>
    %38 = tpu.matmul %35, %37, %cst_29 {dimension_numbers = #tpu.dot_dimension_numbers<[1], [0], [0], [1], [0, 0, 1, 1], [], []>} : vector<128x32xbf16>, vector<32x32xbf16>, vector<128x32xf32> -> vector<128x32xf32>
    %39 = arith.addf %33, %38 : vector<128x32xf32>
    %c0_30 = arith.constant 0 : index
    %c2 = arith.constant 2 : index
    %c0_31 = arith.constant 0 : index
    %40 = vector.load %arg9[%c0_30, %c2, %c0_31] : memref<18x18x32xbf16, #tpu.memory_space<vmem>>, vector<8x16x32xbf16>
    %41 = vector.shape_cast %40 : vector<8x16x32xbf16> to vector<128x32xbf16>
    %c0_32 = arith.constant 0 : index
    %c2_33 = arith.constant 2 : index
    %c0_34 = arith.constant 0 : index
    %c0_35 = arith.constant 0 : index
    %42 = vector.load %arg6[%c0_32, %c2_33, %c0_34, %c0_35] : memref<3x3x32x32xbf16, #tpu.memory_space<vmem>>, vector<1x1x32x32xbf16>
    %43 = vector.shape_cast %42 : vector<1x1x32x32xbf16> to vector<32x32xbf16>
    %cst_36 = arith.constant dense<0.000000e+00> : vector<128x32xf32>
    %44 = tpu.matmul %41, %43, %cst_36 {dimension_numbers = #tpu.dot_dimension_numbers<[1], [0], [0], [1], [0, 0, 1, 1], [], []>} : vector<128x32xbf16>, vector<32x32xbf16>, vector<128x32xf32> -> vector<128x32xf32>
    %45 = arith.addf %39, %44 : vector<128x32xf32>
    %c1_37 = arith.constant 1 : index
    %c0_38 = arith.constant 0 : index
    %c0_39 = arith.constant 0 : index
    %46 = vector.load %arg9[%c1_37, %c0_38, %c0_39] : memref<18x18x32xbf16, #tpu.memory_space<vmem>>, vector<8x16x32xbf16>
    %47 = vector.shape_cast %46 : vector<8x16x32xbf16> to vector<128x32xbf16>
    %c1_40 = arith.constant 1 : index
    %c0_41 = arith.constant 0 : index
    %c0_42 = arith.constant 0 : index
    %c0_43 = arith.constant 0 : index
    %48 = vector.load %arg6[%c1_40, %c0_41, %c0_42, %c0_43] : memref<3x3x32x32xbf16, #tpu.memory_space<vmem>>, vector<1x1x32x32xbf16>
    %49 = vector.shape_cast %48 : vector<1x1x32x32xbf16> to vector<32x32xbf16>
    %cst_44 = arith.constant dense<0.000000e+00> : vector<128x32xf32>
    %50 = tpu.matmul %47, %49, %cst_44 {dimension_numbers = #tpu.dot_dimension_numbers<[1], [0], [0], [1], [0, 0, 1, 1], [], []>} : vector<128x32xbf16>, vector<32x32xbf16>, vector<128x32xf32> -> vector<128x32xf32>
    %51 = arith.addf %45, %50 : vector<128x32xf32>
    %c1_45 = arith.constant 1 : index
    %c1_46 = arith.constant 1 : index
    %c0_47 = arith.constant 0 : index
    %52 = vector.load %arg9[%c1_45, %c1_46, %c0_47] : memref<18x18x32xbf16, #tpu.memory_space<vmem>>, vector<8x16x32xbf16>
    %53 = vector.shape_cast %52 : vector<8x16x32xbf16> to vector<128x32xbf16>
    %c1_48 = arith.constant 1 : index
    %c1_49 = arith.constant 1 : index
    %c0_50 = arith.constant 0 : index
    %c0_51 = arith.constant 0 : index
    %54 = vector.load %arg6[%c1_48, %c1_49, %c0_50, %c0_51] : memref<3x3x32x32xbf16, #tpu.memory_space<vmem>>, vector<1x1x32x32xbf16>
    %55 = vector.shape_cast %54 : vector<1x1x32x32xbf16> to vector<32x32xbf16>
    %cst_52 = arith.constant dense<0.000000e+00> : vector<128x32xf32>
    %56 = tpu.matmul %53, %55, %cst_52 {dimension_numbers = #tpu.dot_dimension_numbers<[1], [0], [0], [1], [0, 0, 1, 1], [], []>} : vector<128x32xbf16>, vector<32x32xbf16>, vector<128x32xf32> -> vector<128x32xf32>
    %57 = arith.addf %51, %56 : vector<128x32xf32>
    %c1_53 = arith.constant 1 : index
    %c2_54 = arith.constant 2 : index
    %c0_55 = arith.constant 0 : index
    %58 = vector.load %arg9[%c1_53, %c2_54, %c0_55] : memref<18x18x32xbf16, #tpu.memory_space<vmem>>, vector<8x16x32xbf16>
    %59 = vector.shape_cast %58 : vector<8x16x32xbf16> to vector<128x32xbf16>
    %c1_56 = arith.constant 1 : index
    %c2_57 = arith.constant 2 : index
    %c0_58 = arith.constant 0 : index
    %c0_59 = arith.constant 0 : index
    %60 = vector.load %arg6[%c1_56, %c2_57, %c0_58, %c0_59] : memref<3x3x32x32xbf16, #tpu.memory_space<vmem>>, vector<1x1x32x32xbf16>
    %61 = vector.shape_cast %60 : vector<1x1x32x32xbf16> to vector<32x32xbf16>
    %cst_60 = arith.constant dense<0.000000e+00> : vector<128x32xf32>
    %62 = tpu.matmul %59, %61, %cst_60 {dimension_numbers = #tpu.dot_dimension_numbers<[1], [0], [0], [1], [0, 0, 1, 1], [], []>} : vector<128x32xbf16>, vector<32x32xbf16>, vector<128x32xf32> -> vector<128x32xf32>
    %63 = arith.addf %57, %62 : vector<128x32xf32>
    %c2_61 = arith.constant 2 : index
    %c0_62 = arith.constant 0 : index
    %c0_63 = arith.constant 0 : index
    %64 = vector.load %arg9[%c2_61, %c0_62, %c0_63] : memref<18x18x32xbf16, #tpu.memory_space<vmem>>, vector<8x16x32xbf16>
    %65 = vector.shape_cast %64 : vector<8x16x32xbf16> to vector<128x32xbf16>
    %c2_64 = arith.constant 2 : index
    %c0_65 = arith.constant 0 : index
    %c0_66 = arith.constant 0 : index
    %c0_67 = arith.constant 0 : index
    %66 = vector.load %arg6[%c2_64, %c0_65, %c0_66, %c0_67] : memref<3x3x32x32xbf16, #tpu.memory_space<vmem>>, vector<1x1x32x32xbf16>
    %67 = vector.shape_cast %66 : vector<1x1x32x32xbf16> to vector<32x32xbf16>
    %cst_68 = arith.constant dense<0.000000e+00> : vector<128x32xf32>
    %68 = tpu.matmul %65, %67, %cst_68 {dimension_numbers = #tpu.dot_dimension_numbers<[1], [0], [0], [1], [0, 0, 1, 1], [], []>} : vector<128x32xbf16>, vector<32x32xbf16>, vector<128x32xf32> -> vector<128x32xf32>
    %69 = arith.addf %63, %68 : vector<128x32xf32>
    %c2_69 = arith.constant 2 : index
    %c1_70 = arith.constant 1 : index
    %c0_71 = arith.constant 0 : index
    %70 = vector.load %arg9[%c2_69, %c1_70, %c0_71] : memref<18x18x32xbf16, #tpu.memory_space<vmem>>, vector<8x16x32xbf16>
    %71 = vector.shape_cast %70 : vector<8x16x32xbf16> to vector<128x32xbf16>
    %c2_72 = arith.constant 2 : index
    %c1_73 = arith.constant 1 : index
    %c0_74 = arith.constant 0 : index
    %c0_75 = arith.constant 0 : index
    %72 = vector.load %arg6[%c2_72, %c1_73, %c0_74, %c0_75] : memref<3x3x32x32xbf16, #tpu.memory_space<vmem>>, vector<1x1x32x32xbf16>
    %73 = vector.shape_cast %72 : vector<1x1x32x32xbf16> to vector<32x32xbf16>
    %cst_76 = arith.constant dense<0.000000e+00> : vector<128x32xf32>
    %74 = tpu.matmul %71, %73, %cst_76 {dimension_numbers = #tpu.dot_dimension_numbers<[1], [0], [0], [1], [0, 0, 1, 1], [], []>} : vector<128x32xbf16>, vector<32x32xbf16>, vector<128x32xf32> -> vector<128x32xf32>
    %75 = arith.addf %69, %74 : vector<128x32xf32>
    %c2_77 = arith.constant 2 : index
    %c2_78 = arith.constant 2 : index
    %c0_79 = arith.constant 0 : index
    %76 = vector.load %arg9[%c2_77, %c2_78, %c0_79] : memref<18x18x32xbf16, #tpu.memory_space<vmem>>, vector<8x16x32xbf16>
    %77 = vector.shape_cast %76 : vector<8x16x32xbf16> to vector<128x32xbf16>
    %c2_80 = arith.constant 2 : index
    %c2_81 = arith.constant 2 : index
    %c0_82 = arith.constant 0 : index
    %c0_83 = arith.constant 0 : index
    %78 = vector.load %arg6[%c2_80, %c2_81, %c0_82, %c0_83] : memref<3x3x32x32xbf16, #tpu.memory_space<vmem>>, vector<1x1x32x32xbf16>
    %79 = vector.shape_cast %78 : vector<1x1x32x32xbf16> to vector<32x32xbf16>
    %cst_84 = arith.constant dense<0.000000e+00> : vector<128x32xf32>
    %80 = tpu.matmul %77, %79, %cst_84 {dimension_numbers = #tpu.dot_dimension_numbers<[1], [0], [0], [1], [0, 0, 1, 1], [], []>} : vector<128x32xbf16>, vector<32x32xbf16>, vector<128x32xf32> -> vector<128x32xf32>
    %81 = arith.addf %75, %80 : vector<128x32xf32>
    %82 = arith.truncf %81 : vector<128x32xf32> to vector<128x32xbf16>
    %c0_85 = arith.constant 0 : index
    %c0_86 = arith.constant 0 : index
    %c0_87 = arith.constant 0 : index
    %83 = vector.load %arg7[%c0_85, %c0_86, %c0_87] : memref<1x256x32xbf16, #tpu.memory_space<vmem>>, vector<1x128x32xbf16>
    %84 = vector.shape_cast %83 : vector<1x128x32xbf16> to vector<128x32xbf16>
    %85 = vector.shape_cast %82 : vector<128x32xbf16> to vector<1x128x32xbf16>
    tpu.vector_store %arg7[%c0_85, %c0_86, %c0_87], %85 {strides = array<i32>} : memref<1x256x32xbf16, #tpu.memory_space<vmem>>, vector<1x128x32xbf16>,
    %86 = arith.extf %82 : vector<128x32xbf16> to vector<128x32xf32>
    %cst_88 = arith.constant dense<0.000000e+00> : vector<32xf32>
    %87 = vector.multi_reduction <add>, %86, %cst_88 [0] : vector<128x32xf32> to vector<32xf32>
    %88 = vector.shape_cast %87 : vector<32xf32> to vector<1x32xf32>
    %89 = arith.addf %12, %88 : vector<1x32xf32>
    %90 = arith.mulf %86, %86 : vector<128x32xf32>
    %cst_89 = arith.constant dense<0.000000e+00> : vector<32xf32>
    %91 = vector.multi_reduction <add>, %90, %cst_89 [0] : vector<128x32xf32> to vector<32xf32>
    %92 = vector.shape_cast %91 : vector<32xf32> to vector<1x32xf32>
    %93 = arith.addf %13, %92 : vector<1x32xf32>
    %c8 = arith.constant 8 : index
    %c0_90 = arith.constant 0 : index
    %c0_91 = arith.constant 0 : index
    %94 = vector.load %arg9[%c8, %c0_90, %c0_91] : memref<18x18x32xbf16, #tpu.memory_space<vmem>>, vector<8x16x32xbf16>
    %95 = vector.shape_cast %94 : vector<8x16x32xbf16> to vector<128x32xbf16>
    %c0_92 = arith.constant 0 : index
    %c0_93 = arith.constant 0 : index
    %c0_94 = arith.constant 0 : index
    %c0_95 = arith.constant 0 : index
    %96 = vector.load %arg6[%c0_92, %c0_93, %c0_94, %c0_95] : memref<3x3x32x32xbf16, #tpu.memory_space<vmem>>, vector<1x1x32x32xbf16>
    %97 = vector.shape_cast %96 : vector<1x1x32x32xbf16> to vector<32x32xbf16>
    %cst_96 = arith.constant dense<0.000000e+00> : vector<128x32xf32>
    %98 = tpu.matmul %95, %97, %cst_96 {dimension_numbers = #tpu.dot_dimension_numbers<[1], [0], [0], [1], [0, 0, 1, 1], [], []>} : vector<128x32xbf16>, vector<32x32xbf16>, vector<128x32xf32> -> vector<128x32xf32>
    %c8_97 = arith.constant 8 : index
    %c1_98 = arith.constant 1 : index
    %c0_99 = arith.constant 0 : index
    %99 = vector.load %arg9[%c8_97, %c1_98, %c0_99] : memref<18x18x32xbf16, #tpu.memory_space<vmem>>, vector<8x16x32xbf16>
    %100 = vector.shape_cast %99 : vector<8x16x32xbf16> to vector<128x32xbf16>
    %c0_100 = arith.constant 0 : index
    %c1_101 = arith.constant 1 : index
    %c0_102 = arith.constant 0 : index
    %c0_103 = arith.constant 0 : index
    %101 = vector.load %arg6[%c0_100, %c1_101, %c0_102, %c0_103] : memref<3x3x32x32xbf16, #tpu.memory_space<vmem>>, vector<1x1x32x32xbf16>
    %102 = vector.shape_cast %101 : vector<1x1x32x32xbf16> to vector<32x32xbf16>
    %cst_104 = arith.constant dense<0.000000e+00> : vector<128x32xf32>
    %103 = tpu.matmul %100, %102, %cst_104 {dimension_numbers = #tpu.dot_dimension_numbers<[1], [0], [0], [1], [0, 0, 1, 1], [], []>} : vector<128x32xbf16>, vector<32x32xbf16>, vector<128x32xf32> -> vector<128x32xf32>
    %104 = arith.addf %98, %103 : vector<128x32xf32>
    %c8_105 = arith.constant 8 : index
    %c2_106 = arith.constant 2 : index
    %c0_107 = arith.constant 0 : index
    %105 = vector.load %arg9[%c8_105, %c2_106, %c0_107] : memref<18x18x32xbf16, #tpu.memory_space<vmem>>, vector<8x16x32xbf16>
    %106 = vector.shape_cast %105 : vector<8x16x32xbf16> to vector<128x32xbf16>
    %c0_108 = arith.constant 0 : index
    %c2_109 = arith.constant 2 : index
    %c0_110 = arith.constant 0 : index
    %c0_111 = arith.constant 0 : index
    %107 = vector.load %arg6[%c0_108, %c2_109, %c0_110, %c0_111] : memref<3x3x32x32xbf16, #tpu.memory_space<vmem>>, vector<1x1x32x32xbf16>
    %108 = vector.shape_cast %107 : vector<1x1x32x32xbf16> to vector<32x32xbf16>
    %cst_112 = arith.constant dense<0.000000e+00> : vector<128x32xf32>
    %109 = tpu.matmul %106, %108, %cst_112 {dimension_numbers = #tpu.dot_dimension_numbers<[1], [0], [0], [1], [0, 0, 1, 1], [], []>} : vector<128x32xbf16>, vector<32x32xbf16>, vector<128x32xf32> -> vector<128x32xf32>
    %110 = arith.addf %104, %109 : vector<128x32xf32>
    %c9 = arith.constant 9 : index
    %c0_113 = arith.constant 0 : index
    %c0_114 = arith.constant 0 : index
    %111 = vector.load %arg9[%c9, %c0_113, %c0_114] : memref<18x18x32xbf16, #tpu.memory_space<vmem>>, vector<8x16x32xbf16>
    %112 = vector.shape_cast %111 : vector<8x16x32xbf16> to vector<128x32xbf16>
    %c1_115 = arith.constant 1 : index
    %c0_116 = arith.constant 0 : index
    %c0_117 = arith.constant 0 : index
    %c0_118 = arith.constant 0 : index
    %113 = vector.load %arg6[%c1_115, %c0_116, %c0_117, %c0_118] : memref<3x3x32x32xbf16, #tpu.memory_space<vmem>>, vector<1x1x32x32xbf16>
    %114 = vector.shape_cast %113 : vector<1x1x32x32xbf16> to vector<32x32xbf16>
    %cst_119 = arith.constant dense<0.000000e+00> : vector<128x32xf32>
    %115 = tpu.matmul %112, %114, %cst_119 {dimension_numbers = #tpu.dot_dimension_numbers<[1], [0], [0], [1], [0, 0, 1, 1], [], []>} : vector<128x32xbf16>, vector<32x32xbf16>, vector<128x32xf32> -> vector<128x32xf32>
    %116 = arith.addf %110, %115 : vector<128x32xf32>
    %c9_120 = arith.constant 9 : index
    %c1_121 = arith.constant 1 : index
    %c0_122 = arith.constant 0 : index
    %117 = vector.load %arg9[%c9_120, %c1_121, %c0_122] : memref<18x18x32xbf16, #tpu.memory_space<vmem>>, vector<8x16x32xbf16>
    %118 = vector.shape_cast %117 : vector<8x16x32xbf16> to vector<128x32xbf16>
    %c1_123 = arith.constant 1 : index
    %c1_124 = arith.constant 1 : index
    %c0_125 = arith.constant 0 : index
    %c0_126 = arith.constant 0 : index
    %119 = vector.load %arg6[%c1_123, %c1_124, %c0_125, %c0_126] : memref<3x3x32x32xbf16, #tpu.memory_space<vmem>>, vector<1x1x32x32xbf16>
    %120 = vector.shape_cast %119 : vector<1x1x32x32xbf16> to vector<32x32xbf16>
    %cst_127 = arith.constant dense<0.000000e+00> : vector<128x32xf32>
    %121 = tpu.matmul %118, %120, %cst_127 {dimension_numbers = #tpu.dot_dimension_numbers<[1], [0], [0], [1], [0, 0, 1, 1], [], []>} : vector<128x32xbf16>, vector<32x32xbf16>, vector<128x32xf32> -> vector<128x32xf32>
    %122 = arith.addf %116, %121 : vector<128x32xf32>
    %c9_128 = arith.constant 9 : index
    %c2_129 = arith.constant 2 : index
    %c0_130 = arith.constant 0 : index
    %123 = vector.load %arg9[%c9_128, %c2_129, %c0_130] : memref<18x18x32xbf16, #tpu.memory_space<vmem>>, vector<8x16x32xbf16>
    %124 = vector.shape_cast %123 : vector<8x16x32xbf16> to vector<128x32xbf16>
    %c1_131 = arith.constant 1 : index
    %c2_132 = arith.constant 2 : index
    %c0_133 = arith.constant 0 : index
    %c0_134 = arith.constant 0 : index
    %125 = vector.load %arg6[%c1_131, %c2_132, %c0_133, %c0_134] : memref<3x3x32x32xbf16, #tpu.memory_space<vmem>>, vector<1x1x32x32xbf16>
    %126 = vector.shape_cast %125 : vector<1x1x32x32xbf16> to vector<32x32xbf16>
    %cst_135 = arith.constant dense<0.000000e+00> : vector<128x32xf32>
    %127 = tpu.matmul %124, %126, %cst_135 {dimension_numbers = #tpu.dot_dimension_numbers<[1], [0], [0], [1], [0, 0, 1, 1], [], []>} : vector<128x32xbf16>, vector<32x32xbf16>, vector<128x32xf32> -> vector<128x32xf32>
    %128 = arith.addf %122, %127 : vector<128x32xf32>
    %c10 = arith.constant 10 : index
    %c0_136 = arith.constant 0 : index
    %c0_137 = arith.constant 0 : index
    %129 = vector.load %arg9[%c10, %c0_136, %c0_137] : memref<18x18x32xbf16, #tpu.memory_space<vmem>>, vector<8x16x32xbf16>
    %130 = vector.shape_cast %129 : vector<8x16x32xbf16> to vector<128x32xbf16>
    %c2_138 = arith.constant 2 : index
    %c0_139 = arith.constant 0 : index
    %c0_140 = arith.constant 0 : index
    %c0_141 = arith.constant 0 : index
    %131 = vector.load %arg6[%c2_138, %c0_139, %c0_140, %c0_141] : memref<3x3x32x32xbf16, #tpu.memory_space<vmem>>, vector<1x1x32x32xbf16>
    %132 = vector.shape_cast %131 : vector<1x1x32x32xbf16> to vector<32x32xbf16>
    %cst_142 = arith.constant dense<0.000000e+00> : vector<128x32xf32>
    %133 = tpu.matmul %130, %132, %cst_142 {dimension_numbers = #tpu.dot_dimension_numbers<[1], [0], [0], [1], [0, 0, 1, 1], [], []>} : vector<128x32xbf16>, vector<32x32xbf16>, vector<128x32xf32> -> vector<128x32xf32>
    %134 = arith.addf %128, %133 : vector<128x32xf32>
    %c10_143 = arith.constant 10 : index
    %c1_144 = arith.constant 1 : index
    %c0_145 = arith.constant 0 : index
    %135 = vector.load %arg9[%c10_143, %c1_144, %c0_145] : memref<18x18x32xbf16, #tpu.memory_space<vmem>>, vector<8x16x32xbf16>
    %136 = vector.shape_cast %135 : vector<8x16x32xbf16> to vector<128x32xbf16>
    %c2_146 = arith.constant 2 : index
    %c1_147 = arith.constant 1 : index
    %c0_148 = arith.constant 0 : index
    %c0_149 = arith.constant 0 : index
    %137 = vector.load %arg6[%c2_146, %c1_147, %c0_148, %c0_149] : memref<3x3x32x32xbf16, #tpu.memory_space<vmem>>, vector<1x1x32x32xbf16>
    %138 = vector.shape_cast %137 : vector<1x1x32x32xbf16> to vector<32x32xbf16>
    %cst_150 = arith.constant dense<0.000000e+00> : vector<128x32xf32>
    %139 = tpu.matmul %136, %138, %cst_150 {dimension_numbers = #tpu.dot_dimension_numbers<[1], [0], [0], [1], [0, 0, 1, 1], [], []>} : vector<128x32xbf16>, vector<32x32xbf16>, vector<128x32xf32> -> vector<128x32xf32>
    %140 = arith.addf %134, %139 : vector<128x32xf32>
    %c10_151 = arith.constant 10 : index
    %c2_152 = arith.constant 2 : index
    %c0_153 = arith.constant 0 : index
    %141 = vector.load %arg9[%c10_151, %c2_152, %c0_153] : memref<18x18x32xbf16, #tpu.memory_space<vmem>>, vector<8x16x32xbf16>
    %142 = vector.shape_cast %141 : vector<8x16x32xbf16> to vector<128x32xbf16>
    %c2_154 = arith.constant 2 : index
    %c2_155 = arith.constant 2 : index
    %c0_156 = arith.constant 0 : index
    %c0_157 = arith.constant 0 : index
    %143 = vector.load %arg6[%c2_154, %c2_155, %c0_156, %c0_157] : memref<3x3x32x32xbf16, #tpu.memory_space<vmem>>, vector<1x1x32x32xbf16>
    %144 = vector.shape_cast %143 : vector<1x1x32x32xbf16> to vector<32x32xbf16>
    %cst_158 = arith.constant dense<0.000000e+00> : vector<128x32xf32>
    %145 = tpu.matmul %142, %144, %cst_158 {dimension_numbers = #tpu.dot_dimension_numbers<[1], [0], [0], [1], [0, 0, 1, 1], [], []>} : vector<128x32xbf16>, vector<32x32xbf16>, vector<128x32xf32> -> vector<128x32xf32>
    %146 = arith.addf %140, %145 : vector<128x32xf32>
    %147 = arith.truncf %146 : vector<128x32xf32> to vector<128x32xbf16>
    %c0_159 = arith.constant 0 : index
    %c128 = arith.constant 128 : index
    %c0_160 = arith.constant 0 : index
    %148 = vector.load %arg7[%c0_159, %c128, %c0_160] : memref<1x256x32xbf16, #tpu.memory_space<vmem>>, vector<1x128x32xbf16>
    %149 = vector.shape_cast %148 : vector<1x128x32xbf16> to vector<128x32xbf16>
    %150 = vector.shape_cast %147 : vector<128x32xbf16> to vector<1x128x32xbf16>
    tpu.vector_store %arg7[%c0_159, %c128, %c0_160], %150 {strides = array<i32>} : memref<1x256x32xbf16, #tpu.memory_space<vmem>>, vector<1x128x32xbf16>,
    %151 = arith.extf %147 : vector<128x32xbf16> to vector<128x32xf32>
    %cst_161 = arith.constant dense<0.000000e+00> : vector<32xf32>
    %152 = vector.multi_reduction <add>, %151, %cst_161 [0] : vector<128x32xf32> to vector<32xf32>
    %153 = vector.shape_cast %152 : vector<32xf32> to vector<1x32xf32>
    %154 = arith.addf %89, %153 : vector<1x32xf32>
    %155 = arith.mulf %151, %151 : vector<128x32xf32>
    %cst_162 = arith.constant dense<0.000000e+00> : vector<32xf32>
    %156 = vector.multi_reduction <add>, %155, %cst_162 [0] : vector<128x32xf32> to vector<32xf32>
    %157 = vector.shape_cast %156 : vector<32xf32> to vector<1x32xf32>
    %158 = arith.addf %93, %157 : vector<1x32xf32>
    %c0_163 = arith.constant 0 : index
    %c0_164 = arith.constant 0 : index
    %c0_165 = arith.constant 0 : index
    %159 = vector.load %arg8[%c0_163, %c0_164, %c0_165] : memref<1x2x32xf32, #tpu.memory_space<vmem>>, vector<1x1x32xf32>
    %160 = vector.shape_cast %159 : vector<1x1x32xf32> to vector<1x32xf32>
    %161 = arith.addf %160, %154 : vector<1x32xf32>
    %c0_166 = arith.constant 0 : index
    %c0_167 = arith.constant 0 : index
    %c0_168 = arith.constant 0 : index
    %162 = vector.load %arg8[%c0_166, %c0_167, %c0_168] : memref<1x2x32xf32, #tpu.memory_space<vmem>>, vector<1x1x32xf32>
    %163 = vector.shape_cast %162 : vector<1x1x32xf32> to vector<1x32xf32>
    %164 = vector.shape_cast %161 : vector<1x32xf32> to vector<1x1x32xf32>
    tpu.vector_store %arg8[%c0_166, %c0_167, %c0_168], %164 {strides = array<i32>} : memref<1x2x32xf32, #tpu.memory_space<vmem>>, vector<1x1x32xf32>,
    %c0_169 = arith.constant 0 : index
    %c1_170 = arith.constant 1 : index
    %c0_171 = arith.constant 0 : index
    %165 = vector.load %arg8[%c0_169, %c1_170, %c0_171] : memref<1x2x32xf32, #tpu.memory_space<vmem>>, vector<1x1x32xf32>
    %166 = vector.shape_cast %165 : vector<1x1x32xf32> to vector<1x32xf32>
    %167 = arith.addf %166, %158 : vector<1x32xf32>
    %c0_172 = arith.constant 0 : index
    %c1_173 = arith.constant 1 : index
    %c0_174 = arith.constant 0 : index
    %168 = vector.load %arg8[%c0_172, %c1_173, %c0_174] : memref<1x2x32xf32, #tpu.memory_space<vmem>>, vector<1x1x32xf32>
    %169 = vector.shape_cast %168 : vector<1x1x32xf32> to vector<1x32xf32>
    %170 = vector.shape_cast %167 : vector<1x32xf32> to vector<1x1x32xf32>
    tpu.vector_store %arg8[%c0_172, %c1_173, %c0_174], %170 {strides = array<i32>} : memref<1x2x32xf32, #tpu.memory_space<vmem>>, vector<1x1x32xf32>,
    return
  }
  func.func @transform_0(%arg0: i32, %arg1: i32) -> (i32, i32, i32, i32) {
    %c1_i32 = arith.constant 1 : i32
    %0 = arith.muli %arg0, %c1_i32 : i32
    %1 = arith.addi %0, %arg1 : i32
    %c0_i32 = arith.constant 0 : i32
    %c0_i32_0 = arith.constant 0 : i32
    %c0_i32_1 = arith.constant 0 : i32
    %c0_i32_2 = arith.constant 0 : i32
    return %1, %c0_i32, %c0_i32_0, %c0_i32_1 : i32, i32, i32, i32
  }
  func.func @transform_1(%arg0: i32, %arg1: i32) -> (i32, i32) {
    %c0_i32 = arith.constant 0 : i32
    %c0_i32_0 = arith.constant 0 : i32
    %c0_i32_1 = arith.constant 0 : i32
    return %c0_i32, %c0_i32_0 : i32, i32
  }
  func.func @transform_2(%arg0: i32, %arg1: i32) -> (i32, i32) {
    %c0_i32 = arith.constant 0 : i32
    %c0_i32_0 = arith.constant 0 : i32
    %c0_i32_1 = arith.constant 0 : i32
    return %c0_i32, %c0_i32_0 : i32, i32
  }
  func.func @transform_3(%arg0: i32, %arg1: i32) -> (i32, i32) {
    %c0_i32 = arith.constant 0 : i32
    %c0_i32_0 = arith.constant 0 : i32
    %c0_i32_1 = arith.constant 0 : i32
    return %c0_i32, %c0_i32_0 : i32, i32
  }
  func.func @transform_4(%arg0: i32, %arg1: i32) -> (i32, i32, i32, i32) {
    %c0_i32 = arith.constant 0 : i32
    %c0_i32_0 = arith.constant 0 : i32
    %c0_i32_1 = arith.constant 0 : i32
    %c0_i32_2 = arith.constant 0 : i32
    %c0_i32_3 = arith.constant 0 : i32
    return %c0_i32, %c0_i32_0, %c0_i32_1, %c0_i32_2 : i32, i32, i32, i32
  }
  func.func @transform_5(%arg0: i32, %arg1: i32) -> (i32, i32, i32) {
    %c1_i32 = arith.constant 1 : i32
    %0 = arith.muli %arg0, %c1_i32 : i32
    %1 = arith.addi %0, %arg1 : i32
    %c0_i32 = arith.constant 0 : i32
    %c0_i32_0 = arith.constant 0 : i32
    %c0_i32_1 = arith.constant 0 : i32
    return %1, %c0_i32, %c0_i32_0 : i32, i32, i32
  }
  func.func @transform_6(%arg0: i32, %arg1: i32) -> (i32, i32, i32) {
    %c0_i32 = arith.constant 0 : i32
    %c0_i32_0 = arith.constant 0 : i32
    %c0_i32_1 = arith.constant 0 : i32
    return %arg0, %c0_i32, %c0_i32_0 : i32, i32, i32
  }
}

module attributes {stable_mosaic.version = 11 : i64} {
  func.func @_bn3_residual_kernel(%arg0: i32, %arg1: memref<256x128xbf16, #tpu.memory_space<vmem>>, %arg2: memref<256x128xf32, #tpu.memory_space<vmem>>, %arg3: memref<2x128xf32, #tpu.memory_space<vmem>>, %arg4: memref<1x128xf32, #tpu.memory_space<vmem>>, %arg5: memref<1x128xf32, #tpu.memory_space<vmem>>, %arg6: memref<256x128xf32, #tpu.memory_space<vmem>>) attributes {dimension_semantics = [#tpu.dimension_semantics<parallel>], iteration_bounds = array<i64: 2>, scalar_prefetch = 0 : i64, scratch_operands = 0 : i64, tpu.core_type = #tpu.core_type<tc>, window_params = [{transform_indices = @transform_0, window_bounds = array<i64: 256, 128>}, {transform_indices = @transform_1, window_bounds = array<i64: 256, 128>}, {pipeline_mode = #tpu.pipeline_mode<synchronous>, transform_indices = @transform_2, window_bounds = array<i64: 2, 128>}, {pipeline_mode = #tpu.pipeline_mode<synchronous>, transform_indices = @transform_3, window_bounds = array<i64: 1, 128>}, {pipeline_mode = #tpu.pipeline_mode<synchronous>, transform_indices = @transform_4, window_bounds = array<i64: 1, 128>}, {transform_indices = @transform_5, window_bounds = array<i64: 256, 128>}]} {
    %c0 = arith.constant 0 : index
    %c0_0 = arith.constant 0 : index
    %0 = vector.load %arg3[%c0, %c0_0] : memref<2x128xf32, #tpu.memory_space<vmem>>, vector<2x128xf32>
    %c0_1 = arith.constant 0 : index
    %c0_2 = arith.constant 0 : index
    %1 = vector.load %arg1[%c0_1, %c0_2] : memref<256x128xbf16, #tpu.memory_space<vmem>>, vector<256x128xbf16>
    %2 = arith.extf %1 : vector<256x128xbf16> to vector<256x128xf32>
    %3 = vector.extract_strided_slice %0 {offsets = [0, 0], sizes = [1, 128], strides = [1, 1]} : vector<2x128xf32> to vector<1x128xf32>
    %4 = vector.broadcast %3 : vector<1x128xf32> to vector<256x128xf32>
    %5 = arith.subf %2, %4 : vector<256x128xf32>
    %6 = vector.extract_strided_slice %0 {offsets = [1, 0], sizes = [1, 128], strides = [1, 1]} : vector<2x128xf32> to vector<1x128xf32>
    %7 = vector.broadcast %6 : vector<1x128xf32> to vector<256x128xf32>
    %8 = arith.mulf %5, %7 : vector<256x128xf32>
    %c0_3 = arith.constant 0 : index
    %c0_4 = arith.constant 0 : index
    %9 = vector.load %arg4[%c0_3, %c0_4] : memref<1x128xf32, #tpu.memory_space<vmem>>, vector<1x128xf32>
    %10 = vector.broadcast %9 : vector<1x128xf32> to vector<256x128xf32>
    %11 = arith.mulf %8, %10 : vector<256x128xf32>
    %c0_5 = arith.constant 0 : index
    %c0_6 = arith.constant 0 : index
    %12 = vector.load %arg5[%c0_5, %c0_6] : memref<1x128xf32, #tpu.memory_space<vmem>>, vector<1x128xf32>
    %13 = vector.broadcast %12 : vector<1x128xf32> to vector<256x128xf32>
    %14 = arith.addf %11, %13 : vector<256x128xf32>
    %c0_7 = arith.constant 0 : index
    %c0_8 = arith.constant 0 : index
    %15 = vector.load %arg2[%c0_7, %c0_8] : memref<256x128xf32, #tpu.memory_space<vmem>>, vector<256x128xf32>
    %16 = arith.addf %14, %15 : vector<256x128xf32>
    %cst = arith.constant 0.000000e+00 : f32
    %17 = vector.broadcast %cst : f32 to vector<256x128xf32>
    %18 = arith.maximumf %16, %17 : vector<256x128xf32>
    %c0_9 = arith.constant 0 : index
    %c0_10 = arith.constant 0 : index
    %19 = vector.load %arg6[%c0_9, %c0_10] : memref<256x128xf32, #tpu.memory_space<vmem>>, vector<256x128xf32>
    tpu.vector_store %arg6[%c0_9, %c0_10], %18 {strides = array<i32>} : memref<256x128xf32, #tpu.memory_space<vmem>>, vector<256x128xf32>,
    return
  }
  func.func @transform_0(%arg0: i32) -> (i32, i32) {
    %c0_i32 = arith.constant 0 : i32
    %c0_i32_0 = arith.constant 0 : i32
    return %arg0, %c0_i32 : i32, i32
  }
  func.func @transform_1(%arg0: i32) -> (i32, i32) {
    %c0_i32 = arith.constant 0 : i32
    %c0_i32_0 = arith.constant 0 : i32
    return %arg0, %c0_i32 : i32, i32
  }
  func.func @transform_2(%arg0: i32) -> (i32, i32) {
    %c0_i32 = arith.constant 0 : i32
    %c0_i32_0 = arith.constant 0 : i32
    %c0_i32_1 = arith.constant 0 : i32
    return %c0_i32, %c0_i32_0 : i32, i32
  }
  func.func @transform_3(%arg0: i32) -> (i32, i32) {
    %c0_i32 = arith.constant 0 : i32
    %c0_i32_0 = arith.constant 0 : i32
    %c0_i32_1 = arith.constant 0 : i32
    return %c0_i32, %c0_i32_0 : i32, i32
  }
  func.func @transform_4(%arg0: i32) -> (i32, i32) {
    %c0_i32 = arith.constant 0 : i32
    %c0_i32_0 = arith.constant 0 : i32
    %c0_i32_1 = arith.constant 0 : i32
    return %c0_i32, %c0_i32_0 : i32, i32
  }
  func.func @transform_5(%arg0: i32) -> (i32, i32) {
    %c0_i32 = arith.constant 0 : i32
    %c0_i32_0 = arith.constant 0 : i32
    return %arg0, %c0_i32 : i32, i32
  }
}

</mosaic_0001>

<bundles_post_ra>
// kernel: bottleneck_forward_nhwc.4
= control target key start
LH: loop header
LB: loop body
LE: loop exit
PB: predicated region body
PF: predicated region fallthrough
CT: control target
= control target key end

     0   :  { %9 = vsyncpa [#allocation3], 0  ;;  %s1729_s0 = inlined_call_operand.hbm [shape: f32[512,128], index: 0, kind: input, shape index: {}]   ;;  %s1730_s1 = inlined_call_operand.vmem [shape: bf16[128,32], index: 1, kind: input, shape index: {}]   ;;  %s1731_s2 = inlined_call_operand.vmem [shape: bf16[512,32], index: 2, kind: output, shape index: {0}]   ;;  %s1732_s3 = inlined_call_operand.vmem [shape: f32[2,2,32], index: 3, kind: output, shape index: {1}]  }
   0x1   :  { %11 = vsyncpa [#allocation3 + $0x1], 0  ;;  %s1334_s12 = smov 0   ;;  %s1336_s13 = smov 0  }
   0x2   :  { %s1338_s14 = smov 0   ;;  %s1340_s15 = smov 0  }
   0x3   :  { %s1342_s16 = smov 0   ;;  %s1344_s17 = smov 0  }
   0x4 LB: > { %s987_s18 = sadd.s32 4294967295, %s1308_s17   ;;  %s29_s19 = sadd.s32 1, %s1304_s16  ;;  %s1308_s17 = sphi %s1344_s17, %s17_s17   ;;  %s1304_s16 = sphi %s1342_s16, %s1740_s16   ;;  %s1300_s15 = sphi %s1340_s15, %s1739_s15   ;;  %s1296_s14 = sphi %s1338_s14, %s1738_s14   ;;  %s1292_s13 = sphi %s1336_s13, %s1737_s13   ;;  %s1288_s12 = sphi %s1334_s12, %s1736_s12  }
   0x5   : > { %p31_p0 = scmp.ge.s32.totalorder %s29_s19, 2  ;;  %s38_s20 = sadd.s32 1, %s1296_s14 }
   0x6   : > { %p45_p1 = scmp.ne.s32.totalorder %s1296_s14, %s1292_s13  ;;  %p46_p2 = scmp.eq.s32.totalorder %s1308_s17, 0 }
   0x7   : > { %s1742_s19 = smov (%p31_p0, %s29_s19), 0  ;;  %p51_p4 = scmp.ne.s32.totalorder %s1292_s13, %s1288_s12 }
   0x8   : > { %p1370_p3 = por %p46_p2, %p45_p1  ;;  %s35_s22 = ssub.s32 %s1304_s16, %s1742_s19 }
   0x9   : > { %p52_p5 = scmp.eq.s32.totalorder %s987_s18, 0  ;;  %p36_p6 = scmp.eq.s32.totalorder %s35_s22, 0 }
   0xa   : > { %p1168_p8 = scmp.lt.s32.totalorder %s1308_s17, 2  ;;  %s153_s25 = sand.u32 1, %s1296_s14  }
   0xb   : > { %p1377_p7 = por %p52_p5, %p51_p4  ;;  %s1041_s26 = sshll.u32 %s1304_s16, 12 }
   0xc   : > { %s1383_s24 = scalar_select %p36_p6, %s1296_s14, %s38_s20  }
   0xd   : > { %s991_s27 = sshll.u32 %s153_s25, 8  ;;  %s1390_s30 = scalar_lea.hbm %s1729_s0, %s1041_s26 }
   0xe   : > { %s157_s4 = scalar_lea.vmem [#allocation2], %s991_s27  ;;  %p1394_p9 = pnand %p1168_p8, %p1370_p3 }
   0xf   : > { %s165_s5 = sshll.u32 %s157_s4, 4  ;;  %s1400_s7 = scalar_lea.sflag [#allocation3], %s153_s25  ;;  %s1398_s5 = int_to_ptr.vmem [resolvable:$true] %s165_s5 }
  0x10   : > { %s1228_s8 = scalar_lea.hbm %s1390_s30, 4096  ;;  %p1230_p11 = pneg %p1394_p9 }
  0x11   : > { %p1229_p10 = scmp.ne.s32.totalorder %s1390_s30, %s1228_s8  ;;  %s1233_s11 = scalar_lea.hbm %s1729_s0, 8192 }
  0x12   : > { %p1234_p0 = scmp.lt.u32.totalorder %s1390_s30, %s1729_s0  ;;  %p1235_p1 = scmp.lt.u32.totalorder %s1233_s11, %s1228_s8 }
  0x13   : > { %p1231_p12 = pnand %p1230_p11, %p1229_p10  ;;  %p1237_p3 = scmp.lt.u32.totalorder %s1228_s8, %s1390_s30 }
  0x14   : > { %p1236_p2 = por %p1235_p1, %p1234_p0 }
  0x15   : > { %p1232_p13 = pneg %p1231_p12 }
  0x16   : > { %p1238_p4 = por %p1237_p3, %p1236_p2 }
  0x18   : > { %p1239_p5 = pnand %p1238_p4, %p1232_p13 }
  0x1a   : > { %1242 = shalt.err (!%p1239_p5)
}
  0x1b   : > { %s1243_s20 = scalar_lea.vmem %s1398_s5, 4096  ;;  %s1310_s21 = smov [#allocation2]  }
  0x1c   : > { %p1244_p6 = scmp.ne.s32.totalorder %s1398_s5, %s1243_s20  ;;  %s1248_s22 = sshll.u32 %s1310_s21, 4  ;;  %s1249_s22 = int_to_ptr.vmem [resolvable:$false] %s1248_s22 }
  0x1d   : > { %s1250_s25 = scalar_lea.vmem %s1249_s22, 8192  ;;  %p1251_p12 = scmp.lt.s32.totalorder %s1398_s5, %s1249_s22 }
  0x1e   : > { %p1246_p8 = pnand %p1244_p6, %p1230_p11  ;;  %p1252_p0 = scmp.lt.s32.totalorder %s1250_s25, %s1243_s20 }
  0x20   : > { %p1247_p10 = pneg %p1246_p8  ;;  %p1253_p1 = por %p1252_p0, %p1251_p12 }
  0x22   : > { %p1254_p2 = pnand %p1253_p1, %p1247_p10 }
  0x24   : > { %1257 = shalt.err (!%p1254_p2)
}
  0x25   : > { %s1311_s26 = smov 128   ;;  %s1312_s27 = smov 8  }
  0x26   : > { %1167 = dma.hbm_to_vmem [thread:$0]  (!%p1394_p9), %s1390_s30, 4096, %s1398_s5, %s1400_s7, %s1311_s26, %s1311_s26, %s1312_s27  }
  0x27   : > { %p994_p11 = scmp.ge.s32.totalorder %s1308_s17, 1  ;;  %p173_p13 = scmp.lt.s32.totalorder %s1308_s17, 3 }
  0x29   : > { %p174_p3 = pnand %p994_p11, %p173_p13 }
  0x2a   : > { %s179_s28 = sand.u32 (!%p174_p3), 1, %s1292_s13  }
  0x2b   : > { %177 = sbr.rel (%p174_p3) target bundleno = 385 (0x181), region = 28  ;;  %s995_s29 = sshll.u32 (!%p174_p3), %s179_s28, 8 }
  0x2c   : > { %s180_s4 = scalar_lea.sflag (!%p174_p3), [#allocation3], %s179_s28  ;;  %s1431_s8 = scalar_lea.vmem (!%p174_p3), [#allocation2], %s995_s29 }
  0x32   : > { %1283 = dma.done.wait (%p1377_p7), %s180_s4, 4096  }
  0x33   : > { %1285 = vsyncadd (%p1377_p7), %s180_s4, 4294963200  ;;  %v1220_v0 = vld [vmem:[%s1730_s1] sm:$0xff]   ;;  %v1221_v1 = vld [vmem:[%s1730_s1 + $0x8] sm:$0xff]   ;;  %p221_p7 = scmp.lt.s32.totalorder %s1300_s15, 1  ;;  %vm230_vm0 = vcmask 254976   ;;  %v1313_v56 = vmov 0.0  }
  0x34   : > { %1098 = vmatprep.subr.bf16.mxu0 %v1220_v0  ;;  %1146 = vmatprep.subr.bf16.mxu1 %v1220_v0  ;;  %v1222_v2 = vld [vmem:[%s1730_s1 + $0x10] sm:$0xff]   ;;  %v1223_v3 = vld [vmem:[%s1730_s1 + $0x18] sm:$0xff]   ;;  %v232_v4 = vld [vmem:[%s1431_s8] sm:$0xff]  ;;  %s996_s30 = sshll.u32 %s1300_s15, 5  ;;  %vm633_vm1 = vcmask 257024   ;;  %vm699_vm2 = vcmask 261120  }
  0x35   : > { %1099 = vmatpush3.bf16.msra.mxu0 %v1220_v0  ;;  %1154 = vmatpush3.bf16.msra.mxu1 %v1220_v0  ;;  %v233_v5 = vld [vmem:[%s1431_s8 + $0x8] sm:$0xff]  ;;  %v1224_v7 = vld [vmem:[%s1730_s1 + $0x20] sm:$0xff]   ;;  %v1226_v12 = vld [vmem:[%s1730_s1 + $0x30] sm:$0xff]   ;;  %s222_s28 = scalar_select %p221_p7, %s1300_s15, 1  ;;  %vm770_vm3 = vcmask 253952  }
  0x36   : > { %1100 = vmatprep.subr.bf16.mxu0 %v1221_v1  ;;  %1147 = vmatprep.subr.bf16.mxu1 %v1221_v1  ;;  %v264_v6 = vpack.c.bf16 %v233_v5, %v232_v4  ;;  %v248_v8 = vld [vmem:[%s1431_s8 + $0x80] sm:$0xff]  ;;  %v249_v9 = vld [vmem:[%s1431_s8 + $0x88] sm:$0xff]  ;;  %v1227_v13 = vld [vmem:[%s1730_s1 + $0x38] sm:$0xff]   ;;  %p215_p9 = scmp.lt.s32.totalorder %s996_s30, 63 }
  0x37   : > { %v272_v10 = vpack.c.bf16 %v249_v9, %v248_v8  ;;  %v1225_v11 = vld [vmem:[%s1730_s1 + $0x28] sm:$0xff]   ;;  %v234_v14 = vld [vmem:[%s1431_s8 + $0x10] sm:$0xff]  ;;  %v235_v15 = vld [vmem:[%s1431_s8 + $0x18] sm:$0xff]  ;;  %s998_s29 = sshll.u32 %s222_s28, 1 }
  0x38   : > { %1114 = vmatprep.mubr.bf16.mxu0 %v264_v6  ;;  %v236_v16 = vld [vmem:[%s1431_s8 + $0x20] sm:$0xff]  ;;  %v237_v17 = vld [vmem:[%s1431_s8 + $0x28] sm:$0xff]  ;;  %v250_v18 = vld [vmem:[%s1431_s8 + $0x90] sm:$0xff]  ;;  %v265_v22 = vpack.c.bf16 %v235_v15, %v234_v14  ;;  %s1498_s10 = scalar_lea.vmem %s1732_s3, %s998_s29  ;;  %s1744_s30 = smov (!%p215_p9, %s996_s30), 63 }
  0x39   : > { %1101 = vmatpush3.bf16.msra.mxu0 %v1221_v1  ;;  %1155 = vmatpush3.bf16.msra.mxu1 %v1221_v1  ;;  %v251_v19 = vld [vmem:[%s1431_s8 + $0x98] sm:$0xff]  ;;  %v252_v20 = vld [vmem:[%s1431_s8 + $0xa0] sm:$0xff]  ;;  %v253_v21 = vld [vmem:[%s1431_s8 + $0xa8] sm:$0xff]  ;;  %v266_v23 = vpack.c.bf16 %v237_v17, %v236_v16  ;;  %231 = vst.msk [vmem:[%s1498_s10] sm:$0x3] %vm230_vm0, %v1313_v56 }
  0x3a   : > { %1102 = vmatprep.subr.bf16.mxu0 %v1222_v2  ;;  %1148 = vmatprep.subr.bf16.mxu1 %v1222_v2  ;;  %v273_v24 = vpack.c.bf16 %v251_v19, %v250_v18  ;;  %v274_v25 = vpack.c.bf16 %v253_v21, %v252_v20  ;;  %v238_v26 = vld [vmem:[%s1431_s8 + $0x30] sm:$0xff]  ;;  %v239_v27 = vld [vmem:[%s1431_s8 + $0x38] sm:$0xff]  ;;  %v240_v28 = vld [vmem:[%s1431_s8 + $0x40] sm:$0xff] }
  0x3b   : > { %1130 = vmatprep.mubr.bf16.mxu1 %v272_v10  ;;  %v241_v29 = vld [vmem:[%s1431_s8 + $0x48] sm:$0xff]  ;;  %v254_v30 = vld [vmem:[%s1431_s8 + $0xb0] sm:$0xff]  ;;  %v255_v31 = vld [vmem:[%s1431_s8 + $0xb8] sm:$0xff]  ;;  %v267_v34 = vpack.c.bf16 %v239_v27, %v238_v26 }
  0x3c   : > { %v256_v32 = vld [vmem:[%s1431_s8 + $0xc0] sm:$0xff]  ;;  %v257_v33 = vld [vmem:[%s1431_s8 + $0xc8] sm:$0xff]  ;;  %v268_v35 = vpack.c.bf16 %v241_v29, %v240_v28  ;;  %v275_v36 = vpack.c.bf16 %v255_v31, %v254_v30  ;;  %v242_v38 = vld [vmem:[%s1431_s8 + $0x50] sm:$0xff] }
  0x3d   : > { %1103 = vmatpush3.bf16.msra.mxu0 %v1222_v2  ;;  %1156 = vmatpush3.bf16.msra.mxu1 %v1222_v2  ;;  %v276_v37 = vpack.c.bf16 %v257_v33, %v256_v32  ;;  %v243_v39 = vld [vmem:[%s1431_s8 + $0x58] sm:$0xff]  ;;  %v244_v40 = vld [vmem:[%s1431_s8 + $0x60] sm:$0xff]  ;;  %v245_v41 = vld [vmem:[%s1431_s8 + $0x68] sm:$0xff] }
  0x3e   : > { %1104 = vmatprep.subr.bf16.mxu0 %v1223_v3  ;;  %1149 = vmatprep.subr.bf16.mxu1 %v1223_v3  ;;  %v258_v42 = vld [vmem:[%s1431_s8 + $0xd0] sm:$0xff]  ;;  %v259_v43 = vld [vmem:[%s1431_s8 + $0xd8] sm:$0xff]  ;;  %v260_v44 = vld [vmem:[%s1431_s8 + $0xe0] sm:$0xff]  ;;  %v269_v46 = vpack.c.bf16 %v243_v39, %v242_v38  ;;  %v270_v47 = vpack.c.bf16 %v245_v41, %v244_v40 }
  0x3f   : > { %v261_v45 = vld [vmem:[%s1431_s8 + $0xe8] sm:$0xff]  ;;  %v277_v48 = vpack.c.bf16 %v259_v43, %v258_v42  ;;  %v246_v50 = vld [vmem:[%s1431_s8 + $0x70] sm:$0xff]  ;;  %v247_v51 = vld [vmem:[%s1431_s8 + $0x78] sm:$0xff] }
  0x40   : > { %v278_v49 = vpack.c.bf16 %v261_v45, %v260_v44  ;;  %v262_v52 = vld [vmem:[%s1431_s8 + $0xf0] sm:$0xff]  ;;  %v263_v53 = vld [vmem:[%s1431_s8 + $0xf8] sm:$0xff]  ;;  %v271_v54 = vpack.c.bf16 %v247_v51, %v246_v50  ;;  %s997_s8 = sshll.u32 %s1744_s30, 2 }
  0x41   : > { %1105 = vmatpush3.bf16.msra.mxu0 %v1223_v3  ;;  %1157 = vmatpush3.bf16.msra.mxu1 %v1223_v3  ;;  %v279_v55 = vpack.c.bf16 %v263_v53, %v262_v52  ;;  %s1505_s7 = scalar_lea.vmem %s1731_s2, %s997_s8 }
  0x42   : > { %1106 = vmatprep.subr.bf16.mxu0 %v1224_v7  ;;  %1150 = vmatprep.subr.bf16.mxu1 %v1224_v7 }
  0x45   : > { %1107 = vmatpush3.bf16.msra.mxu0 %v1224_v7  ;;  %1158 = vmatpush3.bf16.msra.mxu1 %v1224_v7 }
  0x46   : > { %1108 = vmatprep.subr.bf16.mxu0 %v1225_v11  ;;  %1151 = vmatprep.subr.bf16.mxu1 %v1225_v11 }
  0x49   : > { %1109 = vmatpush3.bf16.msra.mxu0 %v1225_v11  ;;  %1159 = vmatpush3.bf16.msra.mxu1 %v1225_v11 }
  0x4a   : > { %1110 = vmatprep.subr.bf16.mxu0 %v1226_v12  ;;  %1152 = vmatprep.subr.bf16.mxu1 %v1226_v12 }
  0x4d   : > { %1111 = vmatpush3.bf16.msra.mxu0 %v1226_v12  ;;  %1160 = vmatpush3.bf16.msra.mxu1 %v1226_v12 }
  0x4e   : > { %1112 = vmatprep.subr.bf16.mxu0 %v1227_v13  ;;  %1153 = vmatprep.subr.bf16.mxu1 %v1227_v13 }
  0x51   : > { %1113 = vmatpush3.bf16.msra.mxu0 %v1227_v13  ;;  %1161 = vmatpush3.bf16.msra.mxu1 %v1227_v13 }
  0x54   : > { %1115 = vmatmul.mubr.bf16.vlgmr.msra.gmra.mrb[0].mxu0 %v265_v22  ;;  %1131 = vmatmul.mubr.bf16.vlgmr.msra.gmra.mrb[0].mxu1 %v273_v24 }
  0x55   : > { %1118 = vmatprep.mubr.bf16.mxu0 %v266_v23  ;;  %1134 = vmatprep.mubr.bf16.mxu1 %v274_v25 }
  0x5c   : > { %1119 = vmatmul.mubr.bf16.gmra.mrb[4].mxu0 %v267_v34  ;;  %1135 = vmatmul.mubr.bf16.gmra.mrb[4].mxu1 %v275_v36 }
  0x5d   : > { %1122 = vmatprep.mubr.bf16.mxu0 %v268_v35  ;;  %1138 = vmatprep.mubr.bf16.mxu1 %v276_v37 }
  0x64   : > { %1123 = vmatmul.mubr.bf16.gmra.mrb[8].mxu0 %v269_v46  ;;  %1139 = vmatmul.mubr.bf16.gmra.mrb[8].mxu1 %v277_v48 }
  0x65   : > { %1126 = vmatprep.mubr.bf16.mxu0 %v270_v47  ;;  %1142 = vmatprep.mubr.bf16.mxu1 %v278_v49 }
  0x6c   : > { %1127 = vmatmul.mubr.bf16.gmra.mrb[12].mxu0 %v271_v54  ;;  %1143 = vmatmul.mubr.bf16.gmra.mrb[12].mxu1 %v279_v55 }
 0x127   : > { %v1116_v57 = vpop.f32.mrb[0].mxu0  ;;  %v1132_v60 = vpop.f32.mrb[0].mxu1 }
 0x128   : > { %v1044_v58 = vpack.c.bf16 %v1116_v57, %v1116_v57  ;;  %v378_v59 = vpop.f32.mrb[1].mxu0  ;;  %v1060_v63 = vpack.c.bf16 %v1132_v60, %v1132_v60  ;;  %v442_v0 = vpop.f32.mrb[1].mxu1 }
 0x129   : > { %v1042_v61 = vpack.c.bf16 %v378_v59, %v378_v59  ;;  %v1117_v62 = vpop.f32.mrb[2].mxu0  ;;  %v1058_v4 = vpack.c.bf16 %v442_v0, %v442_v0  ;;  %v1133_v5 = vpop.f32.mrb[2].mxu1 }
 0x12a   : > { %636 = vst.msk [vmem:[%s1505_s7 + $0x8] sm:$0xf] %vm633_vm1, %v1044_v58  ;;  %v506_v1 = vpack.c.bf16 %v1117_v62, %v1116_v57  ;;  %v1045_v2 = vpack.c.bf16 %v1117_v62, %v1117_v62  ;;  %v381_v3 = vpop.f32.mrb[3].mxu0  ;;  %652 = vst.msk [vmem:[%s1505_s7 + $0x48] sm:$0xf] %vm633_vm1, %v1060_v63  ;;  %v1513_v8 = vpack.c.bf16 %v1133_v5, %v1132_v60  ;;  %v445_v10 = vpop.f32.mrb[3].mxu1 }
 0x12b   : > { %634 = vst.msk [vmem:[%s1505_s7] sm:$0xf] %vm633_vm1, %v1042_v61  ;;  %v505_v6 = vpack.c.bf16 %v381_v3, %v378_v59  ;;  %v1043_v7 = vpack.c.bf16 %v381_v3, %v381_v3  ;;  %v1061_v9 = vpack.c.bf16 %v1133_v5, %v1133_v5  ;;  %650 = vst.msk [vmem:[%s1505_s7 + $0x40] sm:$0xf] %vm633_vm1, %v1058_v4 }
 0x12c   : > { %637 = vst.msk [vmem:[%s1505_s7 + $0xc] sm:$0xf] %vm633_vm1, %v1045_v2  ;;  %v668_v11 = vunpack.c.l.bf16 %v506_v1  ;;  %v1519_v12 = vpack.c.bf16 %v445_v10, %v442_v0  ;;  %v1059_v13 = vpack.c.bf16 %v445_v10, %v445_v10  ;;  %v669_v14 = vunpack.c.h.bf16 %v506_v1 }
 0x12d   : > { %635 = vst.msk [vmem:[%s1505_s7 + $0x4] sm:$0xf] %vm633_vm1, %v1043_v7  ;;  %v666_v15 = vunpack.c.l.bf16 %v505_v6  ;;  %v667_v16 = vunpack.c.h.bf16 %v505_v6  ;;  %653 = vst.msk [vmem:[%s1505_s7 + $0x4c] sm:$0xf] %vm633_vm1, %v1061_v9 }
 0x12e   : > { %v775_v17 = vmul.f32 %v668_v11, %v668_v11  ;;  %651 = vst.msk [vmem:[%s1505_s7 + $0x44] sm:$0xf] %vm633_vm1, %v1059_v13  ;;  %v703_v23 = vsel %vm699_vm2, %v668_v11, 0.0  ;;  %v776_v28 = vmul.f32 %v669_v14, %v669_v14  ;;  %v705_v40 = vsel %vm699_vm2, %v669_v14, 0.0 }
 0x12f   : > { %v700_v18 = vsel %vm699_vm2, %v666_v15, 0.0  ;;  %v701_v19 = vsel %vm699_vm2, %v667_v16, 0.0  ;;  %v773_v20 = vmul.f32 %v666_v15, %v666_v15  ;;  %v774_v21 = vmul.f32 %v667_v16, %v667_v16  ;;  %v1120_v22 = vpop.f32.mrb[4].mxu0  ;;  %v1530_v27 = vpop.f32.mrb[4].mxu1 }
 0x130   : > { %v702_v24 = vadd.f32 %v701_v19, %v700_v18  ;;  %v1048_v25 = vpack.c.bf16 %v1120_v22, %v1120_v22  ;;  %v394_v26 = vpop.f32.mrb[5].mxu0  ;;  %v1534_v33 = vpop.f32.mrb[5].mxu1  ;;  %v808_v41 = vsel %vm699_vm2, %v775_v17, 0.0  ;;  %v810_v50 = vsel %vm699_vm2, %v776_v28, 0.0 }
 0x131   : > { %v805_v29 = vsel %vm699_vm2, %v773_v20, 0.0  ;;  %v806_v30 = vsel %vm699_vm2, %v774_v21, 0.0  ;;  %v1046_v31 = vpack.c.bf16 %v394_v26, %v394_v26  ;;  %v1121_v32 = vpop.f32.mrb[6].mxu0  ;;  %v1538_v39 = vpop.f32.mrb[6].mxu1 }
 0x132   : > { %v704_v34 = vadd.f32 %v703_v23, %v702_v24  ;;  %v807_v35 = vadd.f32 %v806_v30, %v805_v29  ;;  %640 = vst.msk [vmem:[%s1505_s7 + $0x18] sm:$0xf] %vm633_vm1, %v1048_v25  ;;  %v508_v36 = vpack.c.bf16 %v1121_v32, %v1120_v22  ;;  %v1049_v37 = vpack.c.bf16 %v1121_v32, %v1121_v32  ;;  %v397_v38 = vpop.f32.mrb[7].mxu0  ;;  %v1544_v44 = vpop.f32.mrb[7].mxu1 }
 0x133   : > { %638 = vst.msk [vmem:[%s1505_s7 + $0x10] sm:$0xf] %vm633_vm1, %v1046_v31  ;;  %v507_v42 = vpack.c.bf16 %v397_v38, %v394_v26  ;;  %v1047_v43 = vpack.c.bf16 %v397_v38, %v397_v38 }
 0x134   : > { %v809_v45 = vadd.f32 %v808_v41, %v807_v35  ;;  %641 = vst.msk [vmem:[%s1505_s7 + $0x1c] sm:$0xf] %vm633_vm1, %v1049_v37  ;;  %v672_v46 = vunpack.c.l.bf16 %v508_v36  ;;  %v706_v47 = vadd.f32 %v705_v40, %v704_v34  ;;  %v673_v51 = vunpack.c.h.bf16 %v508_v36 }
 0x135   : > { %639 = vst.msk [vmem:[%s1505_s7 + $0x14] sm:$0xf] %vm633_vm1, %v1047_v43  ;;  %v670_v48 = vunpack.c.l.bf16 %v507_v42  ;;  %v671_v49 = vunpack.c.h.bf16 %v507_v42 }
 0x136   : > { %v711_v56 = vsel %vm699_vm2, %v672_v46, 0.0  ;;  %v779_v57 = vmul.f32 %v672_v46, %v672_v46  ;;  %v811_v59 = vadd.f32 %v810_v50, %v809_v45  ;;  %v780_v11 = vmul.f32 %v673_v51, %v673_v51 }
 0x137   : > { %v707_v52 = vsel %vm699_vm2, %v670_v48, 0.0  ;;  %v777_v53 = vmul.f32 %v670_v48, %v670_v48  ;;  %v778_v54 = vmul.f32 %v671_v49, %v671_v49  ;;  %v1124_v55 = vpop.f32.mrb[8].mxu0  ;;  %v1553_v61 = vpop.f32.mrb[8].mxu1  ;;  %v709_v62 = vsel %vm699_vm2, %v671_v49, 0.0 }
 0x138   : > { %v708_v58 = vadd.f32 %v707_v52, %v706_v47  ;;  %v410_v60 = vpop.f32.mrb[9].mxu0  ;;  %v1052_v0 = vpack.c.bf16 %v1124_v55, %v1124_v55  ;;  %v1557_v3 = vpop.f32.mrb[9].mxu1  ;;  %v816_v20 = vsel %vm699_vm2, %v779_v57, 0.0  ;;  %v713_v23 = vsel %vm699_vm2, %v673_v51, 0.0 }
 0x139   : > { %v812_v63 = vsel %vm699_vm2, %v777_v53, 0.0  ;;  %v1050_v1 = vpack.c.bf16 %v410_v60, %v410_v60  ;;  %v1125_v2 = vpop.f32.mrb[10].mxu0  ;;  %v1559_v10 = vpop.f32.mrb[10].mxu1  ;;  %v814_v13 = vsel %vm699_vm2, %v778_v54, 0.0  ;;  %v818_v25 = vsel %vm699_vm2, %v780_v11, 0.0 }
 0x13a   : > { %v710_v4 = vadd.f32 %v709_v62, %v708_v58  ;;  %v813_v5 = vadd.f32 %v812_v63, %v811_v59  ;;  %v510_v6 = vpack.c.bf16 %v1125_v2, %v1124_v55  ;;  %v1053_v7 = vpack.c.bf16 %v1125_v2, %v1125_v2  ;;  %v413_v9 = vpop.f32.mrb[11].mxu0  ;;  %644 = vst.msk [vmem:[%s1505_s7 + $0x28] sm:$0xf] %vm633_vm1, %v1052_v0  ;;  %v1566_v16 = vpop.f32.mrb[11].mxu1 }
 0x13b   : > { %642 = vst.msk [vmem:[%s1505_s7 + $0x20] sm:$0xf] %vm633_vm1, %v1050_v1  ;;  %v509_v14 = vpack.c.bf16 %v413_v9, %v410_v60  ;;  %v1051_v15 = vpack.c.bf16 %v413_v9, %v413_v9  ;;  %v683_v11 = vunpack.c.h.bf16 %v1519_v12 }
 0x13c   : > { %v712_v17 = vadd.f32 %v711_v56, %v710_v4  ;;  %v815_v18 = vadd.f32 %v814_v13, %v813_v5  ;;  %645 = vst.msk [vmem:[%s1505_s7 + $0x2c] sm:$0xf] %vm633_vm1, %v1053_v7  ;;  %v676_v19 = vunpack.c.l.bf16 %v510_v6  ;;  %v677_v26 = vunpack.c.h.bf16 %v510_v6 }
 0x13d   : > { %643 = vst.msk [vmem:[%s1505_s7 + $0x24] sm:$0xf] %vm633_vm1, %v1051_v15  ;;  %v674_v21 = vunpack.c.l.bf16 %v509_v14  ;;  %v675_v22 = vunpack.c.h.bf16 %v509_v14  ;;  %v682_v5 = vunpack.c.l.bf16 %v1519_v12  ;;  %v1062_v12 = vpack.c.bf16 %v1534_v33, %v1534_v33 }
 0x13e   : > { %v817_v24 = vadd.f32 %v816_v20, %v815_v18  ;;  %v714_v28 = vadd.f32 %v713_v23, %v712_v17  ;;  %v719_v31 = vsel %vm699_vm2, %v676_v19, 0.0  ;;  %v783_v38 = vmul.f32 %v676_v19, %v676_v19 }
 0x13f   : > { %v715_v29 = vsel %vm699_vm2, %v674_v21, 0.0  ;;  %v1128_v30 = vpop.f32.mrb[12].mxu0  ;;  %v781_v32 = vmul.f32 %v674_v21, %v674_v21  ;;  %v782_v34 = vmul.f32 %v675_v22, %v675_v22  ;;  %v1577_v37 = vpop.f32.mrb[12].mxu1  ;;  %v717_v46 = vsel %vm699_vm2, %v675_v22, 0.0  ;;  %654 = vst.msk [vmem:[%s1505_s7 + $0x50] sm:$0xf] %vm633_vm1, %v1062_v12 }
 0x140   : > { %v819_v35 = vadd.f32 %v818_v25, %v817_v24  ;;  %v426_v36 = vpop.f32.mrb[13].mxu0  ;;  %v716_v40 = vadd.f32 %v715_v29, %v714_v28  ;;  %v1056_v41 = vpack.c.bf16 %v1128_v30, %v1128_v30  ;;  %v1579_v45 = vpop.f32.mrb[13].mxu1  ;;  %v784_v57 = vmul.f32 %v677_v26, %v677_v26 }
 0x141   : > { %v1054_v42 = vpack.c.bf16 %v426_v36, %v426_v36  ;;  %v1129_v43 = vpop.f32.mrb[14].mxu0  ;;  %v820_v47 = vsel %vm699_vm2, %v781_v32, 0.0  ;;  %v1583_v51 = vpop.f32.mrb[14].mxu1  ;;  %v822_v58 = vsel %vm699_vm2, %v782_v34, 0.0  ;;  %v721_v2 = vsel %vm699_vm2, %v677_v26, 0.0 }
 0x142   : > { %v512_v48 = vpack.c.bf16 %v1129_v43, %v1128_v30  ;;  %v1057_v49 = vpack.c.bf16 %v1129_v43, %v1129_v43  ;;  %v429_v50 = vpop.f32.mrb[15].mxu0  ;;  %v718_v52 = vadd.f32 %v717_v46, %v716_v40  ;;  %v821_v53 = vadd.f32 %v820_v47, %v819_v35  ;;  %648 = vst.msk [vmem:[%s1505_s7 + $0x38] sm:$0xf] %vm633_vm1, %v1056_v41  ;;  %v1589_v56 = vpop.f32.mrb[15].mxu1 }
 0x143   : > { %646 = vst.msk [vmem:[%s1505_s7 + $0x30] sm:$0xf] %vm633_vm1, %v1054_v42  ;;  %v511_v54 = vpack.c.bf16 %v429_v50, %v426_v36  ;;  %v1055_v55 = vpack.c.bf16 %v429_v50, %v429_v50  ;;  %v824_v4 = vsel %vm699_vm2, %v783_v38, 0.0  ;;  %v826_v13 = vsel %vm699_vm2, %v784_v57, 0.0 }
 0x144   : > { %649 = vst.msk [vmem:[%s1505_s7 + $0x3c] sm:$0xf] %vm633_vm1, %v1057_v49  ;;  %v680_v59 = vunpack.c.l.bf16 %v512_v48  ;;  %v681_v60 = vunpack.c.h.bf16 %v512_v48  ;;  %v720_v62 = vadd.f32 %v719_v31, %v718_v52  ;;  %v823_v63 = vadd.f32 %v822_v58, %v821_v53 }
 0x145   : > { %647 = vst.msk [vmem:[%s1505_s7 + $0x34] sm:$0xf] %vm633_vm1, %v1055_v55  ;;  %v678_v0 = vunpack.c.l.bf16 %v511_v54  ;;  %v679_v1 = vunpack.c.h.bf16 %v511_v54  ;;  %v1064_v24 = vpack.c.bf16 %v1530_v27, %v1530_v27  ;;  %v516_v29 = vpack.c.bf16 %v1538_v39, %v1530_v27 }
 0x146   : > { %v825_v6 = vadd.f32 %v824_v4, %v823_v63  ;;  %v722_v7 = vadd.f32 %v721_v2, %v720_v62  ;;  %v727_v14 = vsel %vm699_vm2, %v680_v59, 0.0  ;;  %v787_v18 = vmul.f32 %v680_v59, %v680_v59 }
 0x147   : > { %v723_v9 = vsel %vm699_vm2, %v678_v0, 0.0  ;;  %v785_v15 = vmul.f32 %v678_v0, %v678_v0  ;;  %v786_v17 = vmul.f32 %v679_v1, %v679_v1  ;;  %v788_v19 = vmul.f32 %v681_v60, %v681_v60  ;;  %656 = vst.msk [vmem:[%s1505_s7 + $0x58] sm:$0xf] %vm633_vm1, %v1064_v24 }
 0x148   : > { %v724_v20 = vadd.f32 %v723_v9, %v722_v7  ;;  %v827_v21 = vadd.f32 %v826_v13, %v825_v6  ;;  %v725_v22 = vsel %vm699_vm2, %v679_v1, 0.0  ;;  %v1065_v30 = vpack.c.bf16 %v1538_v39, %v1538_v39 }
 0x149   : > { %v828_v23 = vsel %vm699_vm2, %v785_v15, 0.0  ;;  %v830_v28 = vsel %vm699_vm2, %v786_v17, 0.0  ;;  %v515_v31 = vpack.c.bf16 %v1544_v44, %v1534_v33  ;;  %v1063_v32 = vpack.c.bf16 %v1544_v44, %v1544_v44 }
 0x14a   : > { %v726_v25 = vadd.f32 %v725_v22, %v724_v20  ;;  %v829_v26 = vadd.f32 %v828_v23, %v827_v21  ;;  %v1068_v34 = vpack.c.bf16 %v1553_v61, %v1553_v61  ;;  %v684_v27 = vunpack.c.l.bf16 %v1513_v8  ;;  %657 = vst.msk [vmem:[%s1505_s7 + $0x5c] sm:$0xf] %vm633_vm1, %v1065_v30 }
 0x14b   : > { %v789_v38 = vmul.f32 %v682_v5, %v682_v5  ;;  %v729_v40 = vsel %vm699_vm2, %v681_v60, 0.0  ;;  %v832_v41 = vsel %vm699_vm2, %v787_v18, 0.0  ;;  %655 = vst.msk [vmem:[%s1505_s7 + $0x54] sm:$0xf] %vm633_vm1, %v1063_v32  ;;  %v1066_v33 = vpack.c.bf16 %v1557_v3, %v1557_v3 }
 0x14c   : > { %v728_v35 = vadd.f32 %v727_v14, %v726_v25  ;;  %v831_v36 = vadd.f32 %v830_v28, %v829_v26  ;;  %660 = vst.msk [vmem:[%s1505_s7 + $0x68] sm:$0xf] %vm633_vm1, %v1068_v34  ;;  %v1637_v39 = vpack.c.bf16 %v1559_v10, %v1553_v61  ;;  %v685_v42 = vunpack.c.h.bf16 %v1513_v8 }
 0x14d   : > { %v834_v46 = vsel %vm699_vm2, %v788_v19, 0.0  ;;  %v731_v47 = vsel %vm699_vm2, %v682_v5, 0.0  ;;  %v790_v48 = vmul.f32 %v683_v11, %v683_v11  ;;  %658 = vst.msk [vmem:[%s1505_s7 + $0x60] sm:$0xf] %vm633_vm1, %v1066_v33  ;;  %v791_v49 = vmul.f32 %v684_v27, %v684_v27 }
 0x14e   : > { %v833_v44 = vadd.f32 %v832_v41, %v831_v36  ;;  %v730_v43 = vadd.f32 %v729_v40, %v728_v35  ;;  %v733_v53 = vsel %vm699_vm2, %v683_v11, 0.0  ;;  %v836_v61 = vsel %vm699_vm2, %v789_v38, 0.0 }
 0x14f   : > { %v686_v54 = vunpack.c.l.bf16 %v515_v31  ;;  %v1069_v8 = vpack.c.bf16 %v1559_v10, %v1559_v10  ;;  %v735_v55 = vsel %vm699_vm2, %v684_v27, 0.0  ;;  %v792_v57 = vmul.f32 %v685_v42, %v685_v42 }
 0x150   : > { %v732_v50 = vadd.f32 %v731_v47, %v730_v43  ;;  %v835_v52 = vadd.f32 %v834_v46, %v833_v44  ;;  %v838_v60 = vsel %vm699_vm2, %v790_v48, 0.0  ;;  %v688_v62 = vunpack.c.l.bf16 %v516_v29 }
 0x151   : > { %v687_v63 = vunpack.c.h.bf16 %v515_v31  ;;  %661 = vst.msk [vmem:[%s1505_s7 + $0x6c] sm:$0xf] %vm633_vm1, %v1069_v8  ;;  %v517_v0 = vpack.c.bf16 %v1566_v16, %v1557_v3  ;;  %v1067_v10 = vpack.c.bf16 %v1566_v16, %v1566_v16  ;;  %v1072_v4 = vpack.c.bf16 %v1577_v37, %v1577_v37 }
 0x152   : > { %v734_v58 = vadd.f32 %v733_v53, %v732_v50  ;;  %v837_v59 = vadd.f32 %v836_v61, %v835_v52  ;;  %v737_v5 = vsel %vm699_vm2, %v685_v42, 0.0  ;;  %v840_v6 = vsel %vm699_vm2, %v791_v49, 0.0 }
 0x153   : > { %v793_v7 = vmul.f32 %v686_v54, %v686_v54  ;;  %v842_v9 = vsel %vm699_vm2, %v792_v57, 0.0  ;;  %659 = vst.msk [vmem:[%s1505_s7 + $0x64] sm:$0xf] %vm633_vm1, %v1067_v10  ;;  %664 = vst.msk [vmem:[%s1505_s7 + $0x78] sm:$0xf] %vm633_vm1, %v1072_v4  ;;  %v1070_v3 = vpack.c.bf16 %v1579_v45, %v1579_v45  ;;  %v689_v16 = vunpack.c.h.bf16 %v516_v29 }
 0x154   : > { %v736_v1 = vadd.f32 %v735_v55, %v734_v58  ;;  %v839_v2 = vadd.f32 %v838_v60, %v837_v59  ;;  %v739_v14 = vsel %vm699_vm2, %v686_v54, 0.0  ;;  %v794_v15 = vmul.f32 %v687_v63, %v687_v63 }
 0x155   : > { %v520_v17 = vpack.c.bf16 %v1583_v51, %v1577_v37  ;;  %v795_v18 = vmul.f32 %v688_v62, %v688_v62  ;;  %662 = vst.msk [vmem:[%s1505_s7 + $0x70] sm:$0xf] %vm633_vm1, %v1070_v3  ;;  %v741_v21 = vsel %vm699_vm2, %v687_v63, 0.0  ;;  %v844_v22 = vsel %vm699_vm2, %v793_v7, 0.0 }
 0x156   : > { %v841_v11 = vadd.f32 %v840_v6, %v839_v2  ;;  %v738_v13 = vadd.f32 %v737_v5, %v736_v1  ;;  %v690_v23 = vunpack.c.l.bf16 %v517_v0  ;;  %v1073_v24 = vpack.c.bf16 %v1583_v51, %v1583_v51 }
 0x157   : > { %v519_v37 = vpack.c.bf16 %v1589_v56, %v1579_v45  ;;  %v743_v26 = vsel %vm699_vm2, %v688_v62, 0.0  ;;  %v796_v28 = vmul.f32 %v689_v16, %v689_v16  ;;  %v846_v29 = vsel %vm699_vm2, %v794_v15, 0.0 }
 0x158   : > { %v740_v19 = vadd.f32 %v739_v14, %v738_v13  ;;  %v843_v20 = vadd.f32 %v842_v9, %v841_v11  ;;  %v691_v30 = vunpack.c.h.bf16 %v517_v0  ;;  %665 = vst.msk [vmem:[%s1505_s7 + $0x7c] sm:$0xf] %vm633_vm1, %v1073_v24  ;;  %v1071_v34 = vpack.c.bf16 %v1589_v56, %v1589_v56 }
 0x159   : > { %v745_v51 = vsel %vm699_vm2, %v689_v16, 0.0  ;;  %v848_v35 = vsel %vm699_vm2, %v795_v18, 0.0  ;;  %v692_v36 = vunpack.c.l.bf16 %v1637_v39  ;;  %v797_v45 = vmul.f32 %v690_v23, %v690_v23 }
 0x15a   : > { %v742_v12 = vadd.f32 %v741_v21, %v740_v19  ;;  %v845_v25 = vadd.f32 %v844_v22, %v843_v20  ;;  %663 = vst.msk [vmem:[%s1505_s7 + $0x74] sm:$0xf] %vm633_vm1, %v1071_v34  ;;  %v850_v40 = vsel %vm699_vm2, %v796_v28, 0.0  ;;  %v693_v41 = vunpack.c.h.bf16 %v1637_v39 }
 0x15b   : > { %v747_v33 = vsel %vm699_vm2, %v690_v23, 0.0  ;;  %v798_v44 = vmul.f32 %v691_v30, %v691_v30  ;;  %v799_v43 = vmul.f32 %v692_v36, %v692_v36  ;;  %v749_v46 = vsel %vm699_vm2, %v691_v30, 0.0 }
 0x15c   : > { %v744_v31 = vadd.f32 %v743_v26, %v742_v12  ;;  %v847_v32 = vadd.f32 %v846_v29, %v845_v25  ;;  %v852_v47 = vsel %vm699_vm2, %v797_v45, 0.0  ;;  %v694_v48 = vunpack.c.l.bf16 %v519_v37 }
 0x15d   : > { %v751_v52 = vsel %vm699_vm2, %v692_v36, 0.0  ;;  %v800_v53 = vmul.f32 %v693_v41, %v693_v41  ;;  %v854_v61 = vsel %vm699_vm2, %v798_v44, 0.0  ;;  %v695_v54 = vunpack.c.h.bf16 %v519_v37 }
 0x15e   : > { %v849_v27 = vadd.f32 %v848_v35, %v847_v32  ;;  %v746_v38 = vadd.f32 %v745_v51, %v744_v31  ;;  %v753_v55 = vsel %vm699_vm2, %v693_v41, 0.0  ;;  %v856_v57 = vsel %vm699_vm2, %v799_v43, 0.0  ;;  %v698_v31 = vld [vmem:[%s1498_s10] sm:$0x1]  ;;  %v772_v51 = vld [vmem:[%s1498_s10 + $0x1] sm:$0x1] }
 0x15f   : > { %v696_v58 = vunpack.c.l.bf16 %v520_v17  ;;  %v801_v59 = vmul.f32 %v694_v48, %v694_v48  ;;  %v858_v63 = vsel %vm699_vm2, %v800_v53, 0.0  ;;  %v697_v0 = vunpack.c.h.bf16 %v520_v17 }
 0x160   : > { %v748_v42 = vadd.f32 %v747_v33, %v746_v38  ;;  %v851_v56 = vadd.f32 %v850_v40, %v849_v27  ;;  %v755_v1 = vsel %vm699_vm2, %v694_v48, 0.0  ;;  %v802_v2 = vmul.f32 %v695_v54, %v695_v54 }
 0x161   : > { %v803_v5 = vmul.f32 %v696_v58, %v696_v58  ;;  %v757_v6 = vsel %vm699_vm2, %v695_v54, 0.0  ;;  %v860_v7 = vsel %vm699_vm2, %v801_v59, 0.0  ;;  %v759_v13 = vsel %vm699_vm2, %v696_v58, 0.0 }
 0x162   : > { %v750_v49 = vadd.f32 %v749_v46, %v748_v42  ;;  %v853_v50 = vadd.f32 %v852_v47, %v851_v56  ;;  %v804_v3 = vmul.f32 %v697_v0, %v697_v0  ;;  %v862_v16 = vsel %vm699_vm2, %v802_v2, 0.0 }
 0x163   : > { %v761_v17 = vsel %vm699_vm2, %v697_v0, 0.0  ;;  %v864_v18 = vsel %vm699_vm2, %v803_v5, 0.0 }
 0x164   : > { %v752_v39 = vadd.f32 %v751_v52, %v750_v49  ;;  %v855_v8 = vadd.f32 %v854_v61, %v853_v50  ;;  %v866_v21 = vsel %vm699_vm2, %v804_v3, 0.0 }
 0x166   : > { %v857_v60 = vadd.f32 %v856_v57, %v855_v8  ;;  %v754_v62 = vadd.f32 %v753_v55, %v752_v39 }
 0x168   : > { %v756_v10 = vadd.f32 %v755_v1, %v754_v62  ;;  %v859_v4 = vadd.f32 %v858_v63, %v857_v60 }
 0x16a   : > { %v758_v9 = vadd.f32 %v757_v6, %v756_v10  ;;  %v861_v11 = vadd.f32 %v860_v7, %v859_v4 }
 0x16c   : > { %v760_v14 = vadd.f32 %v759_v13, %v758_v9  ;;  %v863_v15 = vadd.f32 %v862_v16, %v861_v11 }
 0x16e   : > { %v762_v19 = vadd.f32 %v761_v17, %v760_v14  ;;  %v865_v20 = vadd.f32 %v864_v18, %v863_v15 }
 0x170   : > { %v763_v22 = vrot.slane %v762_v19, 4  ;;  %v867_v23 = vadd.f32 %v866_v21, %v865_v20 }
 0x172   : > { %v764_v24 = vadd.f32 %v763_v22, %v762_v19  ;;  %v868_v12 = vrot.slane %v867_v23, 4 }
 0x174   : > { %v765_v25 = vrot.slane %v764_v24, 2  ;;  %v869_v37 = vadd.f32 %v868_v12, %v867_v23 }
 0x176   : > { %v766_v26 = vadd.f32 %v765_v25, %v764_v24  ;;  %v870_v28 = vrot.slane %v869_v37, 2 }
 0x178   : > { %v767_v29 = vrot.slane %v766_v26, 1  ;;  %v871_v30 = vadd.f32 %v870_v28, %v869_v37 }
 0x17a   : > { %v768_v32 = vadd.f32 %v767_v29, %v766_v26  ;;  %v872_v34 = vrot.slane %v871_v30, 1 }
 0x17c   : > { %v769_v35 = vadd.f32 %v768_v32, %v698_v31  ;;  %v873_v36 = vadd.f32 %v872_v34, %v871_v30 }
 0x17e   : > { %771 = vst.msk [vmem:[%s1498_s10] sm:$0x1] %vm770_vm3, %v769_v35  ;;  %v874_v45 = vadd.f32 %v873_v36, %v772_v51 }
 0x180   : > { %875 = vst.msk [vmem:[%s1498_s10 + $0x1] sm:$0x1] %vm770_vm3, %v874_v45 }
 0x181 PF: > { %s17_s17 = sadd.s32 1, %s1308_s17   ;;  %s1736_s12 = smov %s1292_s13 }
 0x182   : > { %p14_p4 = scmp.ge.s32.totalorder %s17_s17, 4   ;;  %s1737_s13 = smov %s1296_s14 }
 0x183   : > { %s1738_s14 = smov %s1383_s24  ;;  %s1739_s15 = smov %s1304_s16 }
 0x184   : > { %s1740_s16 = smov %s1742_s19  ;;  %16 = sbr.rel (!%p14_p4) target bundleno = 4 (0x4), region = 84 }
 0x18b   :  { %915 = vsyncpa [#allocation3], 1 }
 0x18c   :  { %917 = vsyncpa [#allocation3 + $0x1], 1 }

// kernel: bottleneck_forward_nhwc.6
= control target key start
LH: loop header
LB: loop body
LE: loop exit
PB: predicated region body
PF: predicated region fallthrough
CT: control target
= control target key end

     0   :  { %s1603_s21 = smov 0   ;;  %s1605_s22 = smov 0   ;;  %s1861_s0 = inlined_call_operand.vmem [shape: bf16[512,32], index: 0, kind: input, shape index: {}]   ;;  %s1862_s1 = inlined_call_operand.vmem [shape: f32[2,32], index: 1, kind: input, shape index: {}]   ;;  %s1863_s2 = inlined_call_operand.vmem [shape: f32[1,32], index: 2, kind: input, shape index: {}]   ;;  %s1864_s3 = inlined_call_operand.vmem [shape: f32[1,32], index: 3, kind: input, shape index: {}]   ;;  %s1865_s4 = inlined_call_operand.vmem [shape: bf16[32,128], index: 4, kind: input, shape index: {}]   ;;  %s1866_s5 = inlined_call_operand.vmem [shape: bf16[512,128], index: 5, kind: output, shape index: {0}]   ;;  %s1867_s6 = inlined_call_operand.vmem [shape: f32[2,2,128], index: 6, kind: output, shape index: {1}]  }
   0x1   :  { %s1607_s23 = smov 0  }
   0x2 LB: > { %s29_s24 = sadd.s32 1, %s1561_s22  ;;  %p1192_p0 = scmp.ge.s32.totalorder %s1565_s23, 1  ;;  %s1565_s23 = sphi %s1607_s23, %s17_s23   ;;  %s1561_s22 = sphi %s1605_s22, %s1869_s22   ;;  %s1557_s21 = sphi %s1603_s21, %s1868_s21  }
   0x3   : > { %p31_p1 = scmp.ge.s32.totalorder %s29_s24, 2  ;;  %p234_p2 = scmp.lt.s32.totalorder %s1565_s23, 3 }
   0x5   : > { %s1871_s24 = smov (%p31_p1, %s29_s24), 0  ;;  %p235_p3 = pnand %p1192_p0, %p234_p2 }
   0x6   : > { %v1541_v0 = vld [vmem:[%s1865_s4] sm:$0xff] (!%p235_p3)   ;;  %s1193_s27 = sshll.u32 (!%p235_p3), %s1557_s21, 5  ;;  %v361_v1 = vlaneseq (!%p235_p3)  ;;  %v1542_v2 = vld [vmem:[%s1865_s4 + $0x8] sm:$0xff] (!%p235_p3)   ;;  %vm575_vm0 = vcmask (!%p235_p3), 261120   ;;  %p286_p5 = scmp.lt.s32.totalorder (!%p235_p3), %s1557_s21, 1 }
   0x7   : > { %238 = sbr.rel (%p235_p3) target bundleno = 333 (0x14d), region = 40  ;;  %p272_p4 = scmp.lt.s32.totalorder (!%p235_p3), %s1193_s27, 63  ;;  %1476 = vmatprep.subr.bf16.mxu0 (!%p235_p3), %v1541_v0  ;;  %1512 = vmatprep.subr.bf16.mxu1 (!%p235_p3), %v1541_v0  ;;  %v296_v4 = vld [vmem:[%s1862_s1] sm:$0x3] (!%p235_p3) }
   0x8   : > { %v362_v3 = vshrl.u32 (!%p235_p3), %v361_v1, 7  ;;  %1477 = vmatpush3.bf16.msra.mxu0 (!%p235_p3), %v1541_v0  ;;  %1514 = vmatpush3.bf16.msra.mxu1 (!%p235_p3), %v1541_v0  ;;  %v1658_v25 = vld [vmem:[%s1863_s2] ss:$0 sm:$0xff] (!%p235_p3) }
   0x9   : > { %1478 = vmatprep.subr.bf16.mxu0 (!%p235_p3), %v1542_v2  ;;  %1513 = vmatprep.subr.bf16.mxu1 (!%p235_p3), %v1542_v2  ;;  %v1671_v34 = vld [vmem:[%s1864_s3] ss:$0 sm:$0xff] (!%p235_p3) }
   0xa   : > { %v363_v5 = vsub.s32 (!%p235_p3), 0, %v362_v3  ;;  %v399_v6 = vsub.s32 (!%p235_p3), 1, %v362_v3 }
   0xc   : > { %v1643_v7 = vrot.slane (!%p235_p3), %v296_v4, %v363_v5  ;;  %1479 = vmatpush3.bf16.msra.mxu0 (!%p235_p3), %v1542_v2  ;;  %v1646_v9 = vrot.slane (!%p235_p3), %v296_v4, %v399_v6  ;;  %1515 = vmatpush3.bf16.msra.mxu1 (!%p235_p3), %v1542_v2 }
   0xe   : > { %s1873_s27 = smov (!%p272_p4, %s1193_s27), 63  ;;  %s1875_s21 = smov (!%p286_p5, %s1557_s21), 1 }
   0xf   : > { %s1194_s8 = sshll.u32 %s1873_s27, 2  ;;  %s1197_s16 = sshll.u32 %s1875_s21, 1 }
  0x10   : > { %s1641_s11 = scalar_lea.vmem %s1861_s0, %s1194_s8  ;;  %s1822_s19 = scalar_lea.vmem %s1867_s6, %s1197_s16 }
  0x11   : > { %v1285_v8 = vld [vmem:[%s1641_s11] sm:$0xff]   ;;  %v1428_v10 = vld [vmem:[%s1641_s11 + $0x8] sm:$0xff]   ;;  %v1429_v11 = vld [vmem:[%s1641_s11 + $0x10] sm:$0xff]   ;;  %s1830_s26 = scalar_lea.vmem %s1866_s5, %s1194_s8 }
  0x12   : > { %v1286_v12 = vunpack.c.l.bf16 %v1285_v8  ;;  %v1287_v13 = vunpack.c.h.bf16 %v1285_v8  ;;  %v1290_v14 = vunpack.c.l.bf16 %v1428_v10  ;;  %v1291_v15 = vunpack.c.h.bf16 %v1428_v10  ;;  %v1430_v16 = vld [vmem:[%s1641_s11 + $0x18] sm:$0xff]   ;;  %v1431_v55 = vld [vmem:[%s1641_s11 + $0x20] sm:$0xff]   ;;  %v1432_v60 = vld [vmem:[%s1641_s11 + $0x28] sm:$0xff]  }
  0x13   : > { %v1294_v17 = vunpack.c.l.bf16 %v1429_v11  ;;  %v1295_v18 = vunpack.c.h.bf16 %v1429_v11  ;;  %v1298_v19 = vunpack.c.l.bf16 %v1430_v16  ;;  %v1299_v20 = vunpack.c.h.bf16 %v1430_v16  ;;  %v1433_v1 = vld [vmem:[%s1641_s11 + $0x30] sm:$0xff]   ;;  %v1434_v6 = vld [vmem:[%s1641_s11 + $0x38] sm:$0xff]  }
  0x14   : > { %v365_v21 = vsub.f32 %v1286_v12, %v1643_v7  ;;  %v366_v22 = vsub.f32 %v1287_v13, %v1643_v7  ;;  %v367_v23 = vsub.f32 %v1290_v14, %v1643_v7  ;;  %v368_v24 = vsub.f32 %v1291_v15, %v1643_v7 }
  0x15   : > { %v369_v26 = vsub.f32 %v1294_v17, %v1643_v7  ;;  %v370_v27 = vsub.f32 %v1295_v18, %v1643_v7  ;;  %v371_v28 = vsub.f32 %v1298_v19, %v1643_v7  ;;  %v372_v29 = vsub.f32 %v1299_v20, %v1643_v7 }
  0x16   : > { %v401_v30 = vmul.f32 %v1646_v9, %v365_v21  ;;  %v402_v31 = vmul.f32 %v1646_v9, %v366_v22  ;;  %v403_v32 = vmul.f32 %v1646_v9, %v367_v23  ;;  %v404_v33 = vmul.f32 %v1646_v9, %v368_v24 }
  0x17   : > { %v405_v35 = vmul.f32 %v1646_v9, %v369_v26  ;;  %v406_v36 = vmul.f32 %v1646_v9, %v370_v27  ;;  %v407_v37 = vmul.f32 %v1646_v9, %v371_v28  ;;  %v408_v38 = vmul.f32 %v1646_v9, %v372_v29 }
  0x18   : > { %v440_v39 = vmul.f32 %v1658_v25, %v401_v30  ;;  %v441_v40 = vmul.f32 %v1658_v25, %v402_v31  ;;  %v442_v41 = vmul.f32 %v1658_v25, %v403_v32  ;;  %v443_v42 = vmul.f32 %v1658_v25, %v404_v33 }
  0x19   : > { %v444_v43 = vmul.f32 %v1658_v25, %v405_v35  ;;  %v445_v44 = vmul.f32 %v1658_v25, %v406_v36  ;;  %v446_v45 = vmul.f32 %v1658_v25, %v407_v37  ;;  %v447_v46 = vmul.f32 %v1658_v25, %v408_v38 }
  0x1a   : > { %v479_v47 = vadd.f32 %v1671_v34, %v440_v39  ;;  %v480_v48 = vadd.f32 %v1671_v34, %v441_v40  ;;  %v481_v49 = vadd.f32 %v1671_v34, %v442_v41  ;;  %v482_v50 = vadd.f32 %v1671_v34, %v443_v42 }
  0x1b   : > { %v483_v51 = vadd.f32 %v1671_v34, %v444_v43  ;;  %v484_v52 = vadd.f32 %v1671_v34, %v445_v44  ;;  %v485_v53 = vadd.f32 %v1671_v34, %v446_v45  ;;  %v486_v54 = vadd.f32 %v1671_v34, %v447_v46 }
  0x1c   : > { %v511_v56 = vmax.f32 %v479_v47, 0.0  ;;  %v512_v57 = vmax.f32 %v480_v48, 0.0  ;;  %v513_v58 = vmax.f32 %v481_v49, 0.0  ;;  %v514_v59 = vmax.f32 %v482_v50, 0.0  ;;  %v1435_v47 = vld [vmem:[%s1641_s11 + $0x40] sm:$0xff]  }
  0x1d   : > { %v515_v61 = vmax.f32 %v483_v51, 0.0  ;;  %v516_v62 = vmax.f32 %v484_v52, 0.0  ;;  %v517_v63 = vmax.f32 %v485_v53, 0.0  ;;  %v518_v0 = vmax.f32 %v486_v54, 0.0 }
  0x1e   : > { %v543_v2 = vpack.c.bf16 %v512_v57, %v511_v56  ;;  %v544_v3 = vpack.c.bf16 %v514_v59, %v513_v58  ;;  %v1302_v4 = vunpack.c.l.bf16 %v1431_v55  ;;  %v1303_v5 = vunpack.c.h.bf16 %v1431_v55  ;;  %v1436_v56 = vld [vmem:[%s1641_s11 + $0x48] sm:$0xff]  }
  0x1f   : > { %v545_v8 = vpack.c.bf16 %v516_v62, %v515_v61  ;;  %v546_v10 = vpack.c.bf16 %v518_v0, %v517_v63  ;;  %v1306_v11 = vunpack.c.l.bf16 %v1432_v60  ;;  %v1307_v12 = vunpack.c.h.bf16 %v1432_v60  ;;  %v1437_v61 = vld [vmem:[%s1641_s11 + $0x50] sm:$0xff]  }
  0x20   : > { %1480 = vmatprep.mubr.msk.bf16.mxu0 %vm575_vm0, %v543_v2  ;;  %v373_v13 = vsub.f32 %v1302_v4, %v1643_v7  ;;  %v374_v14 = vsub.f32 %v1303_v5, %v1643_v7  ;;  %v1310_v15 = vunpack.c.l.bf16 %v1433_v1  ;;  %v1311_v16 = vunpack.c.h.bf16 %v1433_v1  ;;  %v1438_v2 = vld [vmem:[%s1641_s11 + $0x58] sm:$0xff]  }
  0x21   : > { %1481 = vmatmul.mubr.msk.bf16.vlgmr.msra.gmra.mrb[0].mxu0 %vm575_vm0, %v544_v3  ;;  %v375_v17 = vsub.f32 %v1306_v11, %v1643_v7  ;;  %v376_v18 = vsub.f32 %v1307_v12, %v1643_v7  ;;  %v1314_v19 = vunpack.c.l.bf16 %v1434_v6  ;;  %v1315_v20 = vunpack.c.h.bf16 %v1434_v6 }
  0x22   : > { %1484 = vmatprep.mubr.msk.bf16.mxu0 %vm575_vm0, %v545_v8  ;;  %v409_v21 = vmul.f32 %v1646_v9, %v373_v13  ;;  %v410_v22 = vmul.f32 %v1646_v9, %v374_v14  ;;  %v377_v23 = vsub.f32 %v1310_v15, %v1643_v7  ;;  %v378_v24 = vsub.f32 %v1311_v16, %v1643_v7 }
  0x23   : > { %v411_v26 = vmul.f32 %v1646_v9, %v375_v17  ;;  %v412_v27 = vmul.f32 %v1646_v9, %v376_v18  ;;  %v379_v28 = vsub.f32 %v1314_v19, %v1643_v7  ;;  %v380_v29 = vsub.f32 %v1315_v20, %v1643_v7 }
  0x24   : > { %v448_v30 = vmul.f32 %v1658_v25, %v409_v21  ;;  %v449_v31 = vmul.f32 %v1658_v25, %v410_v22  ;;  %v413_v32 = vmul.f32 %v1646_v9, %v377_v23  ;;  %v414_v33 = vmul.f32 %v1646_v9, %v378_v24 }
  0x25   : > { %v450_v35 = vmul.f32 %v1658_v25, %v411_v26  ;;  %v451_v36 = vmul.f32 %v1658_v25, %v412_v27  ;;  %v415_v37 = vmul.f32 %v1646_v9, %v379_v28  ;;  %v416_v38 = vmul.f32 %v1646_v9, %v380_v29 }
  0x26   : > { %v487_v39 = vadd.f32 %v1671_v34, %v448_v30  ;;  %v488_v40 = vadd.f32 %v1671_v34, %v449_v31  ;;  %v452_v41 = vmul.f32 %v1658_v25, %v413_v32  ;;  %v453_v42 = vmul.f32 %v1658_v25, %v414_v33 }
  0x27   : > { %v489_v43 = vadd.f32 %v1671_v34, %v450_v35  ;;  %v490_v44 = vadd.f32 %v1671_v34, %v451_v36  ;;  %v454_v45 = vmul.f32 %v1658_v25, %v415_v37  ;;  %v455_v46 = vmul.f32 %v1658_v25, %v416_v38 }
  0x28   : > { %v519_v48 = vmax.f32 %v487_v39, 0.0  ;;  %v520_v49 = vmax.f32 %v488_v40, 0.0  ;;  %v491_v50 = vadd.f32 %v1671_v34, %v452_v41  ;;  %v492_v51 = vadd.f32 %v1671_v34, %v453_v42  ;;  %v1439_v39 = vld [vmem:[%s1641_s11 + $0x60] sm:$0xff]  }
  0x29   : > { %1485 = vmatmul.mubr.msk.bf16.gmra.mrb[4].mxu0 %vm575_vm0, %v546_v10  ;;  %v521_v52 = vmax.f32 %v489_v43, 0.0  ;;  %v522_v53 = vmax.f32 %v490_v44, 0.0  ;;  %v493_v54 = vadd.f32 %v1671_v34, %v454_v45  ;;  %v494_v55 = vadd.f32 %v1671_v34, %v455_v46 }
  0x2a   : > { %v547_v57 = vpack.c.bf16 %v520_v49, %v519_v48  ;;  %v523_v58 = vmax.f32 %v491_v50, 0.0  ;;  %v524_v59 = vmax.f32 %v492_v51, 0.0  ;;  %v1318_v60 = vunpack.c.l.bf16 %v1435_v47 }
  0x2b   : > { %v548_v62 = vpack.c.bf16 %v522_v53, %v521_v52  ;;  %v525_v63 = vmax.f32 %v493_v54, 0.0  ;;  %v526_v0 = vmax.f32 %v494_v55, 0.0  ;;  %v1319_v1 = vunpack.c.h.bf16 %v1435_v47  ;;  %v1440_v52 = vld [vmem:[%s1641_s11 + $0x68] sm:$0xff]  }
  0x2c   : > { %1488 = vmatprep.mubr.msk.bf16.mxu0 %vm575_vm0, %v547_v57  ;;  %v549_v3 = vpack.c.bf16 %v524_v59, %v523_v58  ;;  %v381_v4 = vsub.f32 %v1318_v60, %v1643_v7  ;;  %v1322_v5 = vunpack.c.l.bf16 %v1436_v56  ;;  %v1323_v6 = vunpack.c.h.bf16 %v1436_v56  ;;  %v1441_v57 = vld [vmem:[%s1641_s11 + $0x70] sm:$0xff]  }
  0x2d   : > { %v550_v8 = vpack.c.bf16 %v526_v0, %v525_v63  ;;  %v382_v10 = vsub.f32 %v1319_v1, %v1643_v7  ;;  %v1326_v11 = vunpack.c.l.bf16 %v1437_v61  ;;  %v1327_v12 = vunpack.c.h.bf16 %v1437_v61 }
  0x2e   : > { %v417_v13 = vmul.f32 %v1646_v9, %v381_v4  ;;  %v383_v14 = vsub.f32 %v1322_v5, %v1643_v7  ;;  %v384_v15 = vsub.f32 %v1323_v6, %v1643_v7  ;;  %v1330_v16 = vunpack.c.l.bf16 %v1438_v2 }
  0x2f   : > { %v418_v17 = vmul.f32 %v1646_v9, %v382_v10  ;;  %v385_v18 = vsub.f32 %v1326_v11, %v1643_v7  ;;  %v386_v19 = vsub.f32 %v1327_v12, %v1643_v7  ;;  %v1331_v20 = vunpack.c.h.bf16 %v1438_v2 }
  0x30   : > { %v456_v21 = vmul.f32 %v1658_v25, %v417_v13  ;;  %v419_v22 = vmul.f32 %v1646_v9, %v383_v14  ;;  %v420_v23 = vmul.f32 %v1646_v9, %v384_v15  ;;  %v387_v24 = vsub.f32 %v1330_v16, %v1643_v7 }
  0x31   : > { %1489 = vmatmul.mubr.msk.bf16.gmra.mrb[8].mxu0 %vm575_vm0, %v548_v62  ;;  %v457_v26 = vmul.f32 %v1658_v25, %v418_v17  ;;  %v421_v27 = vmul.f32 %v1646_v9, %v385_v18  ;;  %v422_v28 = vmul.f32 %v1646_v9, %v386_v19  ;;  %v388_v29 = vsub.f32 %v1331_v20, %v1643_v7  ;;  %v1442_v62 = vld [vmem:[%s1641_s11 + $0x78] sm:$0xff]  }
  0x32   : > { %1492 = vmatprep.mubr.msk.bf16.mxu0 %vm575_vm0, %v549_v3  ;;  %v495_v30 = vadd.f32 %v1671_v34, %v456_v21  ;;  %v458_v31 = vmul.f32 %v1658_v25, %v419_v22  ;;  %v459_v32 = vmul.f32 %v1658_v25, %v420_v23  ;;  %v423_v33 = vmul.f32 %v1646_v9, %v387_v24 }
  0x33   : > { %v496_v35 = vadd.f32 %v1671_v34, %v457_v26  ;;  %v460_v36 = vmul.f32 %v1658_v25, %v421_v27  ;;  %v461_v37 = vmul.f32 %v1658_v25, %v422_v28  ;;  %v424_v38 = vmul.f32 %v1646_v9, %v388_v29 }
  0x34   : > { %v527_v40 = vmax.f32 %v495_v30, 0.0  ;;  %v497_v41 = vadd.f32 %v1671_v34, %v458_v31  ;;  %v498_v42 = vadd.f32 %v1671_v34, %v459_v32  ;;  %v462_v43 = vmul.f32 %v1658_v25, %v423_v33 }
  0x35   : > { %v528_v44 = vmax.f32 %v496_v35, 0.0  ;;  %v499_v45 = vadd.f32 %v1671_v34, %v460_v36  ;;  %v500_v46 = vadd.f32 %v1671_v34, %v461_v37  ;;  %v463_v47 = vmul.f32 %v1658_v25, %v424_v38 }
  0x36   : > { %v529_v48 = vmax.f32 %v497_v41, 0.0  ;;  %v530_v49 = vmax.f32 %v498_v42, 0.0  ;;  %v501_v50 = vadd.f32 %v1671_v34, %v462_v43  ;;  %v1334_v51 = vunpack.c.l.bf16 %v1439_v39 }
  0x37   : > { %v551_v53 = vpack.c.bf16 %v528_v44, %v527_v40  ;;  %v531_v54 = vmax.f32 %v499_v45, 0.0  ;;  %v532_v55 = vmax.f32 %v500_v46, 0.0  ;;  %v502_v56 = vadd.f32 %v1671_v34, %v463_v47 }
  0x38   : > { %v552_v58 = vpack.c.bf16 %v530_v49, %v529_v48  ;;  %v533_v59 = vmax.f32 %v501_v50, 0.0  ;;  %v1335_v60 = vunpack.c.h.bf16 %v1439_v39  ;;  %v389_v61 = vsub.f32 %v1334_v51, %v1643_v7 }
  0x39   : > { %1493 = vmatmul.mubr.msk.bf16.gmra.mrb[12].mxu0 %vm575_vm0, %v550_v8  ;;  %1496 = vmatprep.mubr.msk.bf16.mxu1 %vm575_vm0, %v551_v53  ;;  %v553_v63 = vpack.c.bf16 %v532_v55, %v531_v54  ;;  %v534_v0 = vmax.f32 %v502_v56, 0.0  ;;  %v1338_v1 = vunpack.c.l.bf16 %v1440_v52  ;;  %v1339_v2 = vunpack.c.h.bf16 %v1440_v52 }
  0x3a   : > { %1497 = vmatmul.mubr.msk.bf16.vlgmr.msra.gmra.mrb[0].mxu1 %vm575_vm0, %v552_v58  ;;  %v390_v3 = vsub.f32 %v1335_v60, %v1643_v7  ;;  %v425_v4 = vmul.f32 %v1646_v9, %v389_v61  ;;  %v1342_v5 = vunpack.c.l.bf16 %v1441_v57  ;;  %v1343_v6 = vunpack.c.h.bf16 %v1441_v57 }
  0x3b   : > { %1500 = vmatprep.mubr.msk.bf16.mxu1 %vm575_vm0, %v553_v63  ;;  %v554_v10 = vpack.c.bf16 %v534_v0, %v533_v59  ;;  %v391_v11 = vsub.f32 %v1338_v1, %v1643_v7  ;;  %v392_v8 = vsub.f32 %v1339_v2, %v1643_v7  ;;  %v1346_v12 = vunpack.c.l.bf16 %v1442_v62 }
  0x3c   : > { %v426_v13 = vmul.f32 %v1646_v9, %v390_v3  ;;  %v464_v14 = vmul.f32 %v1658_v25, %v425_v4  ;;  %v393_v15 = vsub.f32 %v1342_v5, %v1643_v7  ;;  %v394_v16 = vsub.f32 %v1343_v6, %v1643_v7 }
  0x3d   : > { %v427_v17 = vmul.f32 %v1646_v9, %v391_v11  ;;  %v428_v18 = vmul.f32 %v1646_v9, %v392_v8  ;;  %v1347_v19 = vunpack.c.h.bf16 %v1442_v62  ;;  %v395_v20 = vsub.f32 %v1346_v12, %v1643_v7 }
  0x3e   : > { %v465_v21 = vmul.f32 %v1658_v25, %v426_v13  ;;  %v503_v22 = vadd.f32 %v1671_v34, %v464_v14  ;;  %v429_v23 = vmul.f32 %v1646_v9, %v393_v15  ;;  %v430_v24 = vmul.f32 %v1646_v9, %v394_v16 }
  0x3f   : > { %v466_v26 = vmul.f32 %v1658_v25, %v427_v17  ;;  %v467_v27 = vmul.f32 %v1658_v25, %v428_v18  ;;  %v396_v28 = vsub.f32 %v1347_v19, %v1643_v7  ;;  %v431_v29 = vmul.f32 %v1646_v9, %v395_v20 }
  0x40   : > { %v504_v30 = vadd.f32 %v1671_v34, %v465_v21  ;;  %v535_v31 = vmax.f32 %v503_v22, 0.0  ;;  %v468_v32 = vmul.f32 %v1658_v25, %v429_v23  ;;  %v469_v33 = vmul.f32 %v1658_v25, %v430_v24 }
  0x41   : > { %v505_v35 = vadd.f32 %v1671_v34, %v466_v26  ;;  %v506_v36 = vadd.f32 %v1671_v34, %v467_v27  ;;  %v432_v37 = vmul.f32 %v1646_v9, %v396_v28  ;;  %v470_v40 = vmul.f32 %v1658_v25, %v431_v29 }
  0x42   : > { %1501 = vmatmul.mubr.msk.bf16.gmra.mrb[4].mxu1 %vm575_vm0, %v554_v10  ;;  %v536_v38 = vmax.f32 %v504_v30, 0.0  ;;  %v507_v7 = vadd.f32 %v1671_v34, %v468_v32  ;;  %v508_v39 = vadd.f32 %v1671_v34, %v469_v33 }
  0x43   : > { %v537_v41 = vmax.f32 %v505_v35, 0.0  ;;  %v538_v42 = vmax.f32 %v506_v36, 0.0  ;;  %v471_v43 = vmul.f32 %v1658_v25, %v432_v37  ;;  %v509_v47 = vadd.f32 %v1671_v34, %v470_v40 }
  0x44   : > { %v555_v44 = vpack.c.bf16 %v536_v38, %v535_v31  ;;  %v539_v45 = vmax.f32 %v507_v7, 0.0  ;;  %v540_v46 = vmax.f32 %v508_v39, 0.0 }
  0x45   : > { %v556_v9 = vpack.c.bf16 %v538_v42, %v537_v41  ;;  %v510_v48 = vadd.f32 %v1671_v34, %v471_v43  ;;  %v541_v50 = vmax.f32 %v509_v47, 0.0  ;;  %v1567_v34 = vmov 0.0  }
  0x46   : > { %1504 = vmatprep.mubr.msk.bf16.mxu1 %vm575_vm0, %v555_v44  ;;  %v557_v49 = vpack.c.bf16 %v540_v46, %v539_v45  ;;  %295 = vst [vmem:[%s1822_s19] sm:$0x3] %v1567_v34 }
  0x47   : > { %v542_v51 = vmax.f32 %v510_v48, 0.0 }
  0x49   : > { %v558_v25 = vpack.c.bf16 %v542_v51, %v541_v50 }
  0x4a   : > { %1505 = vmatmul.mubr.msk.bf16.gmra.mrb[8].mxu1 %vm575_vm0, %v556_v9 }
  0x4b   : > { %1508 = vmatprep.mubr.msk.bf16.mxu1 %vm575_vm0, %v557_v49 }
  0x52   : > { %1509 = vmatmul.mubr.msk.bf16.gmra.mrb[12].mxu1 %vm575_vm0, %v558_v25 }
  0xf4   : > { %v1482_v52 = vpop.f32.mrb[0].mxu0 }
  0xf5   : > { %v658_v53 = vpop.f32.mrb[1].mxu0 }
  0xf6   : > { %v1483_v54 = vpop.f32.mrb[2].mxu0 }
  0xf7   : > { %v786_v55 = vpack.c.bf16 %v1483_v54, %v1482_v52  ;;  %v661_v56 = vpop.f32.mrb[3].mxu0 }
  0xf8   : > { %v785_v57 = vpack.c.bf16 %v661_v56, %v658_v53 }
  0xf9   : > { %1443 = vst [vmem:[%s1830_s26 + $0x8] sm:$0xff] %v786_v55   ;;  %v947_v58 = vunpack.c.l.bf16 %v786_v55  ;;  %v948_v61 = vunpack.c.h.bf16 %v786_v55 }
  0xfa   : > { %1352 = vst [vmem:[%s1830_s26] sm:$0xff] %v785_v57   ;;  %v945_v59 = vunpack.c.l.bf16 %v785_v57  ;;  %v946_v60 = vunpack.c.h.bf16 %v785_v57 }
  0xfb   : > { %v1020_v3 = vmul.f32 %v947_v58, %v947_v58  ;;  %v1021_v8 = vmul.f32 %v948_v61, %v948_v61 }
  0xfc   : > { %v978_v62 = vadd.f32 %v946_v60, %v945_v59  ;;  %v1018_v63 = vmul.f32 %v945_v59, %v945_v59  ;;  %v1019_v0 = vmul.f32 %v946_v60, %v946_v60  ;;  %v1486_v1 = vpop.f32.mrb[4].mxu0 }
  0xfd   : > { %v674_v2 = vpop.f32.mrb[5].mxu0 }
  0xfe   : > { %v979_v4 = vadd.f32 %v978_v62, %v947_v58  ;;  %v1050_v5 = vadd.f32 %v1019_v0, %v1018_v63  ;;  %v1487_v6 = vpop.f32.mrb[6].mxu0 }
  0xff   : > { %v788_v10 = vpack.c.bf16 %v1487_v6, %v1486_v1  ;;  %v677_v11 = vpop.f32.mrb[7].mxu0 }
 0x100   : > { %v1051_v12 = vadd.f32 %v1050_v5, %v1020_v3  ;;  %v787_v13 = vpack.c.bf16 %v677_v11, %v674_v2  ;;  %v980_v14 = vadd.f32 %v979_v4, %v948_v61 }
 0x101   : > { %1445 = vst [vmem:[%s1830_s26 + $0x18] sm:$0xff] %v788_v10   ;;  %v951_v18 = vunpack.c.l.bf16 %v788_v10  ;;  %v952_v22 = vunpack.c.h.bf16 %v788_v10 }
 0x102   : > { %1444 = vst [vmem:[%s1830_s26 + $0x10] sm:$0xff] %v787_v13   ;;  %v949_v15 = vunpack.c.l.bf16 %v787_v13  ;;  %v950_v16 = vunpack.c.h.bf16 %v787_v13  ;;  %v1052_v17 = vadd.f32 %v1051_v12, %v1021_v8 }
 0x103   : > { %v1024_v31 = vmul.f32 %v951_v18, %v951_v18  ;;  %v1025_v36 = vmul.f32 %v952_v22, %v952_v22 }
 0x104   : > { %v981_v19 = vadd.f32 %v980_v14, %v949_v15  ;;  %v1022_v20 = vmul.f32 %v949_v15, %v949_v15  ;;  %v1490_v21 = vpop.f32.mrb[8].mxu0  ;;  %v1023_v26 = vmul.f32 %v950_v16, %v950_v16 }
 0x105   : > { %v690_v23 = vpop.f32.mrb[9].mxu0 }
 0x106   : > { %v982_v24 = vadd.f32 %v981_v19, %v950_v16  ;;  %v1053_v27 = vadd.f32 %v1052_v17, %v1022_v20  ;;  %v1491_v28 = vpop.f32.mrb[10].mxu0 }
 0x107   : > { %v790_v29 = vpack.c.bf16 %v1491_v28, %v1490_v21  ;;  %v693_v30 = vpop.f32.mrb[11].mxu0 }
 0x108   : > { %v983_v32 = vadd.f32 %v982_v24, %v951_v18  ;;  %v1054_v33 = vadd.f32 %v1053_v27, %v1023_v26  ;;  %v789_v35 = vpack.c.bf16 %v693_v30, %v690_v23 }
 0x109   : > { %1447 = vst [vmem:[%s1830_s26 + $0x28] sm:$0xff] %v790_v29   ;;  %v955_v40 = vunpack.c.l.bf16 %v790_v29  ;;  %v956_v45 = vunpack.c.h.bf16 %v790_v29 }
 0x10a   : > { %v1055_v37 = vadd.f32 %v1054_v33, %v1024_v31  ;;  %1446 = vst [vmem:[%s1830_s26 + $0x20] sm:$0xff] %v789_v35   ;;  %v953_v38 = vunpack.c.l.bf16 %v789_v35  ;;  %v954_v7 = vunpack.c.h.bf16 %v789_v35  ;;  %v984_v39 = vadd.f32 %v983_v32, %v952_v22 }
 0x10b   : > { %v1028_v25 = vmul.f32 %v955_v40, %v955_v40  ;;  %v1029_v59 = vmul.f32 %v956_v45, %v956_v45 }
 0x10c   : > { %v985_v41 = vadd.f32 %v984_v39, %v953_v38  ;;  %v1026_v42 = vmul.f32 %v953_v38, %v953_v38  ;;  %v1056_v43 = vadd.f32 %v1055_v37, %v1025_v36  ;;  %v1494_v44 = vpop.f32.mrb[12].mxu0  ;;  %v1027_v48 = vmul.f32 %v954_v7, %v954_v7 }
 0x10d   : > { %v706_v46 = vpop.f32.mrb[13].mxu0  ;;  %v1498_v9 = vpop.f32.mrb[0].mxu1 }
 0x10e   : > { %v986_v47 = vadd.f32 %v985_v41, %v954_v7  ;;  %v1057_v49 = vadd.f32 %v1056_v43, %v1026_v42  ;;  %v1495_v50 = vpop.f32.mrb[14].mxu0  ;;  %v722_v51 = vpop.f32.mrb[1].mxu1 }
 0x10f   : > { %v792_v34 = vpack.c.bf16 %v1495_v50, %v1494_v44  ;;  %v709_v52 = vpop.f32.mrb[15].mxu0  ;;  %v1499_v53 = vpop.f32.mrb[2].mxu1 }
 0x110   : > { %v987_v54 = vadd.f32 %v986_v47, %v955_v40  ;;  %v1058_v55 = vadd.f32 %v1057_v49, %v1027_v48  ;;  %v791_v56 = vpack.c.bf16 %v709_v52, %v706_v46  ;;  %v794_v57 = vpack.c.bf16 %v1499_v53, %v1498_v9  ;;  %v725_v58 = vpop.f32.mrb[3].mxu1 }
 0x111   : > { %1449 = vst [vmem:[%s1830_s26 + $0x38] sm:$0xff] %v792_v34   ;;  %v793_v60 = vpack.c.bf16 %v725_v58, %v722_v51  ;;  %v959_v1 = vunpack.c.l.bf16 %v792_v34  ;;  %v960_v6 = vunpack.c.h.bf16 %v792_v34 }
 0x112   : > { %v1059_v61 = vadd.f32 %v1058_v55, %v1028_v25  ;;  %1448 = vst [vmem:[%s1830_s26 + $0x30] sm:$0xff] %v791_v56   ;;  %v957_v62 = vunpack.c.l.bf16 %v791_v56  ;;  %v958_v63 = vunpack.c.h.bf16 %v791_v56  ;;  %v988_v0 = vadd.f32 %v987_v54, %v956_v45  ;;  %1451 = vst [vmem:[%s1830_s26 + $0x48] sm:$0xff] %v794_v57  }
 0x113   : > { %1450 = vst [vmem:[%s1830_s26 + $0x40] sm:$0xff] %v793_v60   ;;  %v1032_v13 = vmul.f32 %v959_v1, %v959_v1  ;;  %v961_v17 = vunpack.c.l.bf16 %v793_v60  ;;  %v1033_v21 = vmul.f32 %v960_v6, %v960_v6  ;;  %v962_v23 = vunpack.c.h.bf16 %v793_v60 }
 0x114   : > { %v989_v2 = vadd.f32 %v988_v0, %v957_v62  ;;  %v1030_v3 = vmul.f32 %v957_v62, %v957_v62  ;;  %v1060_v4 = vadd.f32 %v1059_v61, %v1029_v59  ;;  %v1031_v11 = vmul.f32 %v958_v63, %v958_v63 }
 0x115   : > { %v1502_v5 = vpop.f32.mrb[4].mxu1  ;;  %v963_v26 = vunpack.c.l.bf16 %v794_v57  ;;  %v1034_v28 = vmul.f32 %v961_v17, %v961_v17  ;;  %v964_v31 = vunpack.c.h.bf16 %v794_v57  ;;  %v1035_v33 = vmul.f32 %v962_v23, %v962_v23 }
 0x116   : > { %v990_v10 = vadd.f32 %v989_v2, %v958_v63  ;;  %v1061_v8 = vadd.f32 %v1060_v4, %v1030_v3  ;;  %v738_v12 = vpop.f32.mrb[5].mxu1 }
 0x117   : > { %v1503_v14 = vpop.f32.mrb[6].mxu1  ;;  %v1036_v37 = vmul.f32 %v963_v26, %v963_v26  ;;  %v1037_v44 = vmul.f32 %v964_v31, %v964_v31 }
 0x118   : > { %v991_v15 = vadd.f32 %v990_v10, %v959_v1  ;;  %v1062_v16 = vadd.f32 %v1061_v8, %v1031_v11  ;;  %v796_v18 = vpack.c.bf16 %v1503_v14, %v1502_v5  ;;  %v741_v19 = vpop.f32.mrb[7].mxu1 }
 0x119   : > { %v795_v20 = vpack.c.bf16 %v741_v19, %v738_v12 }
 0x11a   : > { %v1063_v22 = vadd.f32 %v1062_v16, %v1032_v13  ;;  %v992_v24 = vadd.f32 %v991_v15, %v960_v6  ;;  %1453 = vst [vmem:[%s1830_s26 + $0x58] sm:$0xff] %v796_v18   ;;  %v967_v47 = vunpack.c.l.bf16 %v796_v18  ;;  %v968_v25 = vunpack.c.h.bf16 %v796_v18 }
 0x11b   : > { %1452 = vst [vmem:[%s1830_s26 + $0x50] sm:$0xff] %v795_v20   ;;  %v965_v40 = vunpack.c.l.bf16 %v795_v20  ;;  %v966_v46 = vunpack.c.h.bf16 %v795_v20 }
 0x11c   : > { %v993_v27 = vadd.f32 %v992_v24, %v961_v17  ;;  %v1064_v29 = vadd.f32 %v1063_v22, %v1033_v21  ;;  %v1040_v55 = vmul.f32 %v967_v47, %v967_v47  ;;  %v1041_v63 = vmul.f32 %v968_v25, %v968_v25 }
 0x11d   : > { %v1506_v30 = vpop.f32.mrb[8].mxu1  ;;  %v1038_v49 = vmul.f32 %v965_v40, %v965_v40  ;;  %v1039_v52 = vmul.f32 %v966_v46, %v966_v46 }
 0x11e   : > { %v994_v32 = vadd.f32 %v993_v27, %v962_v23  ;;  %v1065_v35 = vadd.f32 %v1064_v29, %v1034_v28  ;;  %v754_v36 = vpop.f32.mrb[9].mxu1 }
 0x11f   : > { %v1507_v38 = vpop.f32.mrb[10].mxu1 }
 0x120   : > { %v995_v7 = vadd.f32 %v994_v32, %v963_v26  ;;  %v1066_v39 = vadd.f32 %v1065_v35, %v1035_v33  ;;  %v798_v41 = vpack.c.bf16 %v1507_v38, %v1506_v30  ;;  %v757_v42 = vpop.f32.mrb[11].mxu1 }
 0x121   : > { %v797_v43 = vpack.c.bf16 %v757_v42, %v754_v36 }
 0x122   : > { %v1067_v45 = vadd.f32 %v1066_v39, %v1036_v37  ;;  %v996_v9 = vadd.f32 %v995_v7, %v964_v31  ;;  %1455 = vst [vmem:[%s1830_s26 + $0x68] sm:$0xff] %v798_v41   ;;  %v971_v3 = vunpack.c.l.bf16 %v798_v41  ;;  %v972_v10 = vunpack.c.h.bf16 %v798_v41 }
 0x123   : > { %1454 = vst [vmem:[%s1830_s26 + $0x60] sm:$0xff] %v797_v43   ;;  %v969_v59 = vunpack.c.l.bf16 %v797_v43  ;;  %v970_v1 = vunpack.c.h.bf16 %v797_v43 }
 0x124   : > { %v997_v48 = vadd.f32 %v996_v9, %v965_v40  ;;  %v1068_v50 = vadd.f32 %v1067_v45, %v1037_v44  ;;  %v1044_v13 = vmul.f32 %v971_v3, %v971_v3  ;;  %v1045_v17 = vmul.f32 %v972_v10, %v972_v10 }
 0x125   : > { %v1510_v51 = vpop.f32.mrb[12].mxu1  ;;  %v1042_v5 = vmul.f32 %v969_v59, %v969_v59  ;;  %v1043_v8 = vmul.f32 %v970_v1, %v970_v1 }
 0x126   : > { %v998_v34 = vadd.f32 %v997_v48, %v966_v46  ;;  %v1069_v53 = vadd.f32 %v1068_v50, %v1038_v49  ;;  %v770_v54 = vpop.f32.mrb[13].mxu1  ;;  %v977_v46 = vld [vmem:[%s1822_s19] sm:$0x1]  ;;  %v1017_v48 = vld [vmem:[%s1822_s19 + $0x1] sm:$0x1] }
 0x127   : > { %v1511_v56 = vpop.f32.mrb[14].mxu1 }
 0x128   : > { %v999_v57 = vadd.f32 %v998_v34, %v967_v47  ;;  %v1070_v58 = vadd.f32 %v1069_v53, %v1039_v52  ;;  %v800_v60 = vpack.c.bf16 %v1511_v56, %v1510_v51  ;;  %v773_v61 = vpop.f32.mrb[15].mxu1 }
 0x129   : > { %v799_v62 = vpack.c.bf16 %v773_v61, %v770_v54 }
 0x12a   : > { %v1071_v0 = vadd.f32 %v1070_v58, %v1040_v55  ;;  %v1000_v2 = vadd.f32 %v999_v57, %v968_v25  ;;  %1457 = vst [vmem:[%s1830_s26 + $0x78] sm:$0xff] %v800_v60   ;;  %v975_v21 = vunpack.c.l.bf16 %v800_v60  ;;  %v976_v26 = vunpack.c.h.bf16 %v800_v60 }
 0x12b   : > { %1456 = vst [vmem:[%s1830_s26 + $0x70] sm:$0xff] %v799_v62   ;;  %v973_v16 = vunpack.c.l.bf16 %v799_v62  ;;  %v974_v19 = vunpack.c.h.bf16 %v799_v62 }
 0x12c   : > { %v1001_v4 = vadd.f32 %v1000_v2, %v969_v59  ;;  %v1072_v6 = vadd.f32 %v1071_v0, %v1041_v63  ;;  %v1048_v30 = vmul.f32 %v975_v21, %v975_v21  ;;  %v1049_v33 = vmul.f32 %v976_v26, %v976_v26 }
 0x12d   : > { %v1046_v23 = vmul.f32 %v973_v16, %v973_v16  ;;  %v1047_v28 = vmul.f32 %v974_v19, %v974_v19 }
 0x12e   : > { %v1002_v11 = vadd.f32 %v1001_v4, %v970_v1  ;;  %v1073_v12 = vadd.f32 %v1072_v6, %v1042_v5 }
 0x130   : > { %v1003_v14 = vadd.f32 %v1002_v11, %v971_v3  ;;  %v1074_v15 = vadd.f32 %v1073_v12, %v1043_v8 }
 0x132   : > { %v1075_v18 = vadd.f32 %v1074_v15, %v1044_v13  ;;  %v1004_v20 = vadd.f32 %v1003_v14, %v972_v10 }
 0x134   : > { %v1005_v22 = vadd.f32 %v1004_v20, %v973_v16  ;;  %v1076_v24 = vadd.f32 %v1075_v18, %v1045_v17 }
 0x136   : > { %v1006_v27 = vadd.f32 %v1005_v22, %v974_v19  ;;  %v1077_v29 = vadd.f32 %v1076_v24, %v1046_v23 }
 0x138   : > { %v1007_v31 = vadd.f32 %v1006_v27, %v975_v21  ;;  %v1078_v32 = vadd.f32 %v1077_v29, %v1047_v28 }
 0x13a   : > { %v1008_v35 = vadd.f32 %v1007_v31, %v976_v26  ;;  %v1079_v36 = vadd.f32 %v1078_v32, %v1048_v30 }
 0x13c   : > { %v1009_v37 = vrot.slane %v1008_v35, 4  ;;  %v1080_v38 = vadd.f32 %v1079_v36, %v1049_v33 }
 0x13e   : > { %v1010_v7 = vadd.f32 %v1009_v37, %v1008_v35  ;;  %v1081_v39 = vrot.slane %v1080_v38, 4 }
 0x140   : > { %v1011_v40 = vrot.slane %v1010_v7, 2  ;;  %v1082_v41 = vadd.f32 %v1081_v39, %v1080_v38 }
 0x142   : > { %v1012_v42 = vadd.f32 %v1011_v40, %v1010_v7  ;;  %v1083_v43 = vrot.slane %v1082_v41, 2 }
 0x144   : > { %v1013_v44 = vrot.slane %v1012_v42, 1  ;;  %v1084_v45 = vadd.f32 %v1083_v43, %v1082_v41 }
 0x146   : > { %v1014_v9 = vadd.f32 %v1013_v44, %v1012_v42  ;;  %v1085_v47 = vrot.slane %v1084_v45, 1 }
 0x148   : > { %v1015_v49 = vadd.f32 %v1014_v9, %v977_v46  ;;  %v1086_v50 = vadd.f32 %v1085_v47, %v1084_v45 }
 0x14a   : > { %1016 = vst [vmem:[%s1822_s19] sm:$0x1] %v1015_v49  ;;  %v1087_v51 = vadd.f32 %v1086_v50, %v1017_v48 }
 0x14c   : > { %1088 = vst [vmem:[%s1822_s19 + $0x1] sm:$0x1] %v1087_v51 }
 0x14d PF: > { %s17_s23 = sadd.s32 1, %s1565_s23   ;;  %s1868_s21 = smov %s1561_s22 }
 0x14e   : > { %p14_p6 = scmp.ge.s32.totalorder %s17_s23, 4   ;;  %s1869_s22 = smov %s1871_s24 }
 0x150   :  { %16 = sbr.rel (!%p14_p6) target bundleno = 2 (0x2), region = 86 }

// kernel: bottleneck_forward_nhwc.7
= control target key start
LH: loop header
LB: loop body
LE: loop exit
PB: predicated region body
PF: predicated region fallthrough
CT: control target
= control target key end

     0   :  { %10 = vsyncpa [#allocation3], 0  ;;  %s1257_s0 = inlined_call_operand.vmem [shape: bf16[512,128], index: 0, kind: input, shape index: {}]   ;;  %s1258_s1 = inlined_call_operand.vmem [shape: f32[512,128], index: 1, kind: input, shape index: {}]   ;;  %s1259_s2 = inlined_call_operand.vmem [shape: f32[2,128], index: 2, kind: input, shape index: {}]   ;;  %s1260_s3 = inlined_call_operand.vmem [shape: f32[1,128], index: 3, kind: input, shape index: {}]   ;;  %s1261_s4 = inlined_call_operand.vmem [shape: f32[1,128], index: 4, kind: input, shape index: {}]   ;;  %s1262_s5 = inlined_call_operand.hbm [shape: f32[512,128], index: 5, kind: output, shape index: {}]  }
   0x1   :  { %12 = vsyncpa [#allocation3 + $0x1], 0  ;;  %s913_s18 = smov 0   ;;  %s915_s19 = smov 0  }
   0x2   :  { %s917_s20 = smov 0   ;;  %s919_s21 = smov 0  }
   0x3 LB: > { %s934_s22 = sadd.s32 4294967295, %s878_s21   ;;  %s679_s23 = sadd.s32 4294967294, %s878_s21   ;;  %s878_s21 = sphi %s919_s21, %s1268_s21   ;;  %s874_s20 = sphi %s917_s20, %s1267_s20   ;;  %s870_s19 = sphi %s915_s19, %s1266_s19   ;;  %s866_s18 = sphi %s913_s18, %s1265_s18  }
   0x4   : > { %s938_s24 = sadd.s32 1, %s878_s21   ;;  %s140_s25 = sadd.s32 1, %s874_s20 }
   0x5   : > { %s137_s26 = ssub.s32 %s878_s21, %s938_s24  ;;  %p150_p0 = scmp.ne.s32.totalorder %s874_s20, %s870_s19 }
   0x6   : > { %p138_p1 = scmp.eq.s32.totalorder %s137_s26, 0  ;;  %p151_p2 = scmp.eq.s32.totalorder %s934_s22, 1 }
   0x7   : > { %p156_p3 = scmp.ne.s32.totalorder %s870_s19, %s866_s18  ;;  %p157_p4 = scmp.eq.s32.totalorder %s679_s23, 1 }
   0x8   : > { %s949_s27 = scalar_select %p138_p1, %s874_s20, %s140_s25  }
   0x9   : > { %p951_p5 = por %p151_p2, %p150_p0  ;;  %p955_p6 = por %p157_p4, %p156_p3 }
   0xa   : > { %p682_p7 = scmp.ge.s32.totalorder %s878_s21, 1  ;;  %p202_p8 = scmp.lt.s32.totalorder %s878_s21, 3 }
   0xc   : > { %p203_p9 = pnand %p682_p7, %p202_p8 }
   0xd   : > { %s684_s30 = sshll.u32 (!%p203_p9), %s934_s22, 5  ;;  %v313_v0 = vlaneseq (!%p203_p9)  ;;  %v248_v2 = vld [vmem:[%s1259_s2] sm:$0x3] (!%p203_p9)  ;;  %s232_s23 = sand.u32 (!%p203_p9), 1, %s870_s19  }
   0xe   : > { %206 = sbr.rel (%p203_p9) target bundleno = 98 (0x62), region = 40  ;;  %p236_p10 = scmp.lt.s32.totalorder (!%p203_p9), %s684_s30, 63  ;;  %v983_v19 = vld [vmem:[%s1260_s3] ss:$0 sm:$0xff] (!%p203_p9) }
   0xf   : > { %v314_v1 = vshrl.u32 (!%p203_p9), %v313_v0, 7  ;;  %v1000_v28 = vld [vmem:[%s1261_s4] ss:$0 sm:$0xff] (!%p203_p9)  ;;  %s695_s7 = sshll.u32 (!%p203_p9), %s934_s22, 12  ;;  %s880_s13 = smov (!%p203_p9), [#allocation2]  }
  0x10   : > { %s1204_s10 = scalar_lea.hbm (!%p203_p9), %s1262_s5, %s695_s7  ;;  %s820_s14 = sshll.u32 (!%p203_p9), %s880_s13, 4  ;;  %s821_s14 = int_to_ptr.vmem [resolvable:$false] %s820_s14 }
  0x11   : > { %v315_v3 = vsub.s32 (!%p203_p9), 0, %v314_v1  ;;  %v351_v4 = vsub.s32 (!%p203_p9), 1, %v314_v1  ;;  %s822_s15 = scalar_lea.vmem (!%p203_p9), %s821_s14, 8192 }
  0x13   : > { %v970_v5 = vrot.slane (!%p203_p9), %v248_v2, %v315_v3  ;;  %v973_v8 = vrot.slane (!%p203_p9), %v248_v2, %v351_v4 }
  0x15   : > { %s1270_s30 = smov (!%p236_p10, %s684_s30), 63 }
  0x16   : > { %s685_s8 = sshll.u32 %s1270_s30, 2  ;;  %s687_s12 = sshll.u32 %s1270_s30, 3 }
  0x17   : > { %s968_s11 = scalar_lea.vmem %s1257_s0, %s685_s8  ;;  %s990_s17 = scalar_lea.vmem %s1258_s1, %s687_s12 }
  0x18   : > { %v697_v6 = vld [vmem:[%s968_s11] sm:$0xff]   ;;  %v760_v10 = vld [vmem:[%s968_s11 + $0x8] sm:$0xff]   ;;  %v761_v13 = vld [vmem:[%s968_s11 + $0x10] sm:$0xff]   ;;  %s1018_s30 = sshll.u32 %s232_s23, 8 }
  0x19   : > { %v698_v7 = vunpack.c.l.bf16 %v697_v6  ;;  %v699_v9 = vunpack.c.h.bf16 %v697_v6  ;;  %v702_v11 = vunpack.c.l.bf16 %v760_v10  ;;  %v703_v12 = vunpack.c.h.bf16 %v760_v10  ;;  %v762_v18 = vld [vmem:[%s968_s11 + $0x18] sm:$0xff]   ;;  %v463_v37 = vld [vmem:[%s990_s17] sm:$0xff]  ;;  %v464_v38 = vld [vmem:[%s990_s17 + $0x8] sm:$0xff]  ;;  %s1042_s6 = scalar_lea.vmem [#allocation2], %s1018_s30 }
  0x1a   : > { %v706_v16 = vunpack.c.l.bf16 %v761_v13  ;;  %v707_v17 = vunpack.c.h.bf16 %v761_v13  ;;  %v710_v22 = vunpack.c.l.bf16 %v762_v18  ;;  %v711_v23 = vunpack.c.h.bf16 %v762_v18  ;;  %v465_v45 = vld [vmem:[%s990_s17 + $0x10] sm:$0xff]  ;;  %v466_v46 = vld [vmem:[%s990_s17 + $0x18] sm:$0xff]  ;;  %v467_v51 = vld [vmem:[%s990_s17 + $0x20] sm:$0xff]  ;;  %s605_s8 = sshll.u32 %s1042_s6, 4  ;;  %s1206_s8 = int_to_ptr.vmem [resolvable:$true] %s605_s8 }
  0x1b   : > { %v317_v14 = vsub.f32 %v698_v7, %v970_v5  ;;  %v318_v15 = vsub.f32 %v699_v9, %v970_v5  ;;  %v319_v20 = vsub.f32 %v702_v11, %v970_v5  ;;  %v320_v21 = vsub.f32 %v703_v12, %v970_v5  ;;  %v468_v52 = vld [vmem:[%s990_s17 + $0x28] sm:$0xff]  ;;  %v469_v59 = vld [vmem:[%s990_s17 + $0x30] sm:$0xff]  ;;  %v470_v60 = vld [vmem:[%s990_s17 + $0x38] sm:$0xff]  ;;  %s816_s12 = scalar_lea.vmem %s1206_s8, 4096  ;;  %p823_p0 = scmp.lt.s32.totalorder %s1206_s8, %s821_s14 }
  0x1c   : > { %v321_v26 = vsub.f32 %v706_v16, %v970_v5  ;;  %v322_v27 = vsub.f32 %v707_v17, %v970_v5  ;;  %v323_v31 = vsub.f32 %v710_v22, %v970_v5  ;;  %v324_v32 = vsub.f32 %v711_v23, %v970_v5  ;;  %v763_v1 = vld [vmem:[%s968_s11 + $0x20] sm:$0xff]   ;;  %v764_v7 = vld [vmem:[%s968_s11 + $0x28] sm:$0xff]   ;;  %v765_v13 = vld [vmem:[%s968_s11 + $0x30] sm:$0xff]   ;;  %p817_p11 = scmp.ne.s32.totalorder %s1206_s8, %s816_s12  ;;  %p824_p1 = scmp.lt.s32.totalorder %s822_s15, %s816_s12 }
  0x1d   : > { %v353_v24 = vmul.f32 %v973_v8, %v317_v14  ;;  %v354_v25 = vmul.f32 %v973_v8, %v318_v15  ;;  %v355_v29 = vmul.f32 %v973_v8, %v319_v20  ;;  %v356_v30 = vmul.f32 %v973_v8, %v320_v21  ;;  %v766_v18 = vld [vmem:[%s968_s11 + $0x38] sm:$0xff]  }
  0x1e   : > { %v357_v35 = vmul.f32 %v973_v8, %v321_v26  ;;  %v358_v36 = vmul.f32 %v973_v8, %v322_v27  ;;  %v359_v41 = vmul.f32 %v973_v8, %v323_v31  ;;  %v360_v42 = vmul.f32 %v973_v8, %v324_v32  ;;  %p818_p12 = pnand %p817_p11, %p951_p5  ;;  %p825_p2 = por %p824_p1, %p823_p0 }
  0x1f   : > { %v392_v33 = vmul.f32 %v983_v19, %v353_v24  ;;  %v393_v34 = vmul.f32 %v983_v19, %v354_v25  ;;  %v394_v39 = vmul.f32 %v983_v19, %v355_v29  ;;  %v395_v40 = vmul.f32 %v983_v19, %v356_v30 }
  0x20   : > { %v396_v47 = vmul.f32 %v983_v19, %v357_v35  ;;  %v397_v48 = vmul.f32 %v983_v19, %v358_v36  ;;  %v398_v53 = vmul.f32 %v983_v19, %v359_v41  ;;  %v399_v54 = vmul.f32 %v983_v19, %v360_v42  ;;  %p819_p13 = pneg %p818_p12 }
  0x21   : > { %v431_v43 = vadd.f32 %v1000_v28, %v392_v33  ;;  %v432_v44 = vadd.f32 %v1000_v28, %v393_v34  ;;  %v433_v49 = vadd.f32 %v1000_v28, %v394_v39  ;;  %v434_v50 = vadd.f32 %v1000_v28, %v395_v40 }
  0x22   : > { %v435_v57 = vadd.f32 %v1000_v28, %v396_v47  ;;  %v436_v58 = vadd.f32 %v1000_v28, %v397_v48  ;;  %v437_v63 = vadd.f32 %v1000_v28, %v398_v53  ;;  %v438_v0 = vadd.f32 %v1000_v28, %v399_v54  ;;  %v473_v53 = vld [vmem:[%s990_s17 + $0x50] sm:$0xff]  ;;  %v474_v54 = vld [vmem:[%s990_s17 + $0x58] sm:$0xff]  ;;  %p826_p3 = pnand %p825_p2, %p819_p13 }
  0x23   : > { %v495_v55 = vadd.f32 %v463_v37, %v431_v43  ;;  %v496_v56 = vadd.f32 %v464_v38, %v432_v44  ;;  %v497_v61 = vadd.f32 %v465_v45, %v433_v49  ;;  %v498_v62 = vadd.f32 %v466_v46, %v434_v50  ;;  %v471_v45 = vld [vmem:[%s990_s17 + $0x40] sm:$0xff]  ;;  %v472_v46 = vld [vmem:[%s990_s17 + $0x48] sm:$0xff] }
  0x24   : > { %v499_v4 = vadd.f32 %v467_v51, %v435_v57  ;;  %v500_v6 = vadd.f32 %v468_v52, %v436_v58  ;;  %v501_v11 = vadd.f32 %v469_v59, %v437_v63  ;;  %v502_v12 = vadd.f32 %v470_v60, %v438_v0  ;;  %v475_v59 = vld [vmem:[%s990_s17 + $0x60] sm:$0xff]  ;;  %v476_v60 = vld [vmem:[%s990_s17 + $0x68] sm:$0xff] }
  0x25   : > { %v527_v2 = vmax.f32 %v495_v55, 0.0  ;;  %v528_v3 = vmax.f32 %v496_v56, 0.0  ;;  %v529_v9 = vmax.f32 %v497_v61, 0.0  ;;  %v530_v10 = vmax.f32 %v498_v62, 0.0 }
  0x26   : > { %v531_v14 = vmax.f32 %v499_v4, 0.0  ;;  %v532_v15 = vmax.f32 %v500_v6, 0.0  ;;  %v714_v16 = vunpack.c.l.bf16 %v763_v1  ;;  %v715_v17 = vunpack.c.h.bf16 %v763_v1  ;;  %v478_v4 = vld [vmem:[%s990_s17 + $0x78] sm:$0xff] }
  0x27   : > { %559 = vst [vmem:[%s1042_s6] sm:$0xff] %v527_v2  ;;  %560 = vst [vmem:[%s1042_s6 + $0x8] sm:$0xff] %v528_v3  ;;  %v533_v20 = vmax.f32 %v501_v11, 0.0  ;;  %v534_v21 = vmax.f32 %v502_v12, 0.0  ;;  %v718_v22 = vunpack.c.l.bf16 %v764_v7  ;;  %v719_v23 = vunpack.c.h.bf16 %v764_v7  ;;  %v477_v3 = vld [vmem:[%s990_s17 + $0x70] sm:$0xff]  ;;  %v767_v11 = vld [vmem:[%s968_s11 + $0x40] sm:$0xff]  }
  0x28   : > { %561 = vst [vmem:[%s1042_s6 + $0x10] sm:$0xff] %v529_v9  ;;  %562 = vst [vmem:[%s1042_s6 + $0x18] sm:$0xff] %v530_v10  ;;  %v325_v24 = vsub.f32 %v714_v16, %v970_v5  ;;  %v326_v25 = vsub.f32 %v715_v17, %v970_v5  ;;  %v722_v26 = vunpack.c.l.bf16 %v765_v13  ;;  %v723_v27 = vunpack.c.h.bf16 %v765_v13  ;;  %v768_v16 = vld [vmem:[%s968_s11 + $0x48] sm:$0xff]  }
  0x29   : > { %563 = vst [vmem:[%s1042_s6 + $0x20] sm:$0xff] %v531_v14  ;;  %564 = vst [vmem:[%s1042_s6 + $0x28] sm:$0xff] %v532_v15  ;;  %v327_v29 = vsub.f32 %v718_v22, %v970_v5  ;;  %v328_v30 = vsub.f32 %v719_v23, %v970_v5  ;;  %v726_v31 = vunpack.c.l.bf16 %v766_v18  ;;  %v727_v32 = vunpack.c.h.bf16 %v766_v18  ;;  %v769_v22 = vld [vmem:[%s968_s11 + $0x50] sm:$0xff]  }
  0x2a   : > { %565 = vst [vmem:[%s1042_s6 + $0x30] sm:$0xff] %v533_v20  ;;  %566 = vst [vmem:[%s1042_s6 + $0x38] sm:$0xff] %v534_v21  ;;  %v361_v33 = vmul.f32 %v973_v8, %v325_v24  ;;  %v362_v34 = vmul.f32 %v973_v8, %v326_v25  ;;  %v329_v35 = vsub.f32 %v722_v26, %v970_v5  ;;  %v730_v25 = vunpack.c.l.bf16 %v767_v11 }
  0x2b   : > { %v330_v36 = vsub.f32 %v723_v27, %v970_v5  ;;  %v363_v37 = vmul.f32 %v973_v8, %v327_v29  ;;  %v364_v38 = vmul.f32 %v973_v8, %v328_v30  ;;  %v331_v39 = vsub.f32 %v726_v31, %v970_v5  ;;  %v770_v27 = vld [vmem:[%s968_s11 + $0x58] sm:$0xff]  }
  0x2c   : > { %v332_v40 = vsub.f32 %v727_v32, %v970_v5  ;;  %v400_v41 = vmul.f32 %v983_v19, %v361_v33  ;;  %v401_v42 = vmul.f32 %v983_v19, %v362_v34  ;;  %v365_v43 = vmul.f32 %v973_v8, %v329_v35 }
  0x2d   : > { %v366_v44 = vmul.f32 %v973_v8, %v330_v36  ;;  %v402_v47 = vmul.f32 %v983_v19, %v363_v37  ;;  %v403_v48 = vmul.f32 %v983_v19, %v364_v38  ;;  %v367_v49 = vmul.f32 %v973_v8, %v331_v39 }
  0x2e   : > { %v368_v50 = vmul.f32 %v973_v8, %v332_v40  ;;  %v439_v51 = vadd.f32 %v1000_v28, %v400_v41  ;;  %v440_v52 = vadd.f32 %v1000_v28, %v401_v42  ;;  %v404_v55 = vmul.f32 %v983_v19, %v365_v43 }
  0x2f   : > { %v405_v56 = vmul.f32 %v983_v19, %v366_v44  ;;  %v441_v57 = vadd.f32 %v1000_v28, %v402_v47  ;;  %v442_v58 = vadd.f32 %v1000_v28, %v403_v48  ;;  %v406_v61 = vmul.f32 %v983_v19, %v367_v49 }
  0x30   : > { %v407_v62 = vmul.f32 %v983_v19, %v368_v50  ;;  %v503_v63 = vadd.f32 %v471_v45, %v439_v51  ;;  %v504_v0 = vadd.f32 %v472_v46, %v440_v52  ;;  %v443_v1 = vadd.f32 %v1000_v28, %v404_v55 }
  0x31   : > { %v444_v2 = vadd.f32 %v1000_v28, %v405_v56  ;;  %v505_v6 = vadd.f32 %v473_v53, %v441_v57  ;;  %v506_v7 = vadd.f32 %v474_v54, %v442_v58  ;;  %v445_v9 = vadd.f32 %v1000_v28, %v406_v61  ;;  %v479_v53 = vld [vmem:[%s990_s17 + $0x80] sm:$0xff]  ;;  %v480_v54 = vld [vmem:[%s990_s17 + $0x88] sm:$0xff]  ;;  %v481_v61 = vld [vmem:[%s990_s17 + $0x90] sm:$0xff] }
  0x32   : > { %v446_v10 = vadd.f32 %v1000_v28, %v407_v62  ;;  %v535_v12 = vmax.f32 %v503_v63, 0.0  ;;  %v536_v13 = vmax.f32 %v504_v0, 0.0  ;;  %v507_v14 = vadd.f32 %v475_v59, %v443_v1  ;;  %v482_v62 = vld [vmem:[%s990_s17 + $0x98] sm:$0xff] }
  0x33   : > { %v508_v15 = vadd.f32 %v476_v60, %v444_v2  ;;  %v537_v17 = vmax.f32 %v505_v6, 0.0  ;;  %v538_v18 = vmax.f32 %v506_v7, 0.0  ;;  %v509_v20 = vadd.f32 %v477_v3, %v445_v9  ;;  %v483_v3 = vld [vmem:[%s990_s17 + $0xa0] sm:$0xff] }
  0x34   : > { %v510_v21 = vadd.f32 %v478_v4, %v446_v10  ;;  %567 = vst [vmem:[%s1042_s6 + $0x40] sm:$0xff] %v535_v12  ;;  %568 = vst [vmem:[%s1042_s6 + $0x48] sm:$0xff] %v536_v13  ;;  %v539_v23 = vmax.f32 %v507_v14, 0.0  ;;  %v731_v26 = vunpack.c.h.bf16 %v767_v11  ;;  %v734_v31 = vunpack.c.l.bf16 %v768_v16  ;;  %v484_v4 = vld [vmem:[%s990_s17 + $0xa8] sm:$0xff]  ;;  %v485_v13 = vld [vmem:[%s990_s17 + $0xb0] sm:$0xff] }
  0x35   : > { %v540_v24 = vmax.f32 %v508_v15, 0.0  ;;  %569 = vst [vmem:[%s1042_s6 + $0x50] sm:$0xff] %v537_v17  ;;  %570 = vst [vmem:[%s1042_s6 + $0x58] sm:$0xff] %v538_v18  ;;  %v541_v29 = vmax.f32 %v509_v20, 0.0  ;;  %v735_v32 = vunpack.c.h.bf16 %v768_v16  ;;  %v333_v33 = vsub.f32 %v730_v25, %v970_v5  ;;  %v486_v14 = vld [vmem:[%s990_s17 + $0xb8] sm:$0xff]  ;;  %v771_v20 = vld [vmem:[%s968_s11 + $0x60] sm:$0xff]  }
  0x36   : > { %v542_v30 = vmax.f32 %v510_v21, 0.0  ;;  %571 = vst [vmem:[%s1042_s6 + $0x60] sm:$0xff] %v539_v23  ;;  %v334_v34 = vsub.f32 %v731_v26, %v970_v5  ;;  %v738_v35 = vunpack.c.l.bf16 %v769_v22  ;;  %v739_v36 = vunpack.c.h.bf16 %v769_v22  ;;  %v772_v25 = vld [vmem:[%s968_s11 + $0x68] sm:$0xff]  }
  0x37   : > { %572 = vst [vmem:[%s1042_s6 + $0x68] sm:$0xff] %v540_v24  ;;  %573 = vst [vmem:[%s1042_s6 + $0x70] sm:$0xff] %v541_v29  ;;  %v335_v37 = vsub.f32 %v734_v31, %v970_v5  ;;  %v336_v38 = vsub.f32 %v735_v32, %v970_v5  ;;  %v742_v39 = vunpack.c.l.bf16 %v770_v27  ;;  %v743_v40 = vunpack.c.h.bf16 %v770_v27  ;;  %v773_v31 = vld [vmem:[%s968_s11 + $0x70] sm:$0xff]  }
  0x38   : > { %574 = vst [vmem:[%s1042_s6 + $0x78] sm:$0xff] %v542_v30  ;;  %v369_v41 = vmul.f32 %v973_v8, %v333_v33  ;;  %v370_v42 = vmul.f32 %v973_v8, %v334_v34  ;;  %v337_v43 = vsub.f32 %v738_v35, %v970_v5  ;;  %v338_v44 = vsub.f32 %v739_v36, %v970_v5  ;;  %v774_v36 = vld [vmem:[%s968_s11 + $0x78] sm:$0xff]   ;;  %s1216_s11 = scalar_lea.sflag [#allocation3], %s232_s23 }
  0x39   : > { %v371_v45 = vmul.f32 %v973_v8, %v335_v37  ;;  %v372_v46 = vmul.f32 %v973_v8, %v336_v38  ;;  %v339_v47 = vsub.f32 %v742_v39, %v970_v5  ;;  %v340_v48 = vsub.f32 %v743_v40, %v970_v5 }
  0x3a   : > { %v408_v49 = vmul.f32 %v983_v19, %v369_v41  ;;  %v409_v50 = vmul.f32 %v983_v19, %v370_v42  ;;  %v373_v51 = vmul.f32 %v973_v8, %v337_v43  ;;  %v374_v52 = vmul.f32 %v973_v8, %v338_v44 }
  0x3b   : > { %v410_v55 = vmul.f32 %v983_v19, %v371_v45  ;;  %v411_v56 = vmul.f32 %v983_v19, %v372_v46  ;;  %v375_v57 = vmul.f32 %v973_v8, %v339_v47  ;;  %v376_v58 = vmul.f32 %v973_v8, %v340_v48 }
  0x3c   : > { %v447_v59 = vadd.f32 %v1000_v28, %v408_v49  ;;  %v448_v60 = vadd.f32 %v1000_v28, %v409_v50  ;;  %v412_v63 = vmul.f32 %v983_v19, %v373_v51  ;;  %v413_v0 = vmul.f32 %v983_v19, %v374_v52 }
  0x3d   : > { %v449_v1 = vadd.f32 %v1000_v28, %v410_v55  ;;  %v450_v2 = vadd.f32 %v1000_v28, %v411_v56  ;;  %v414_v6 = vmul.f32 %v983_v19, %v375_v57  ;;  %v415_v7 = vmul.f32 %v983_v19, %v376_v58 }
  0x3e   : > { %v511_v9 = vadd.f32 %v479_v53, %v447_v59  ;;  %v512_v10 = vadd.f32 %v480_v54, %v448_v60  ;;  %v451_v11 = vadd.f32 %v1000_v28, %v412_v63  ;;  %v452_v12 = vadd.f32 %v1000_v28, %v413_v0 }
  0x3f   : > { %v513_v15 = vadd.f32 %v481_v61, %v449_v1  ;;  %v514_v16 = vadd.f32 %v482_v62, %v450_v2  ;;  %v453_v17 = vadd.f32 %v1000_v28, %v414_v6  ;;  %v454_v18 = vadd.f32 %v1000_v28, %v415_v7  ;;  %v487_v61 = vld [vmem:[%s990_s17 + $0xc0] sm:$0xff]  ;;  %v488_v62 = vld [vmem:[%s990_s17 + $0xc8] sm:$0xff]  ;;  %v490_v6 = vld [vmem:[%s990_s17 + $0xd8] sm:$0xff] }
  0x40   : > { %v543_v21 = vmax.f32 %v511_v9, 0.0  ;;  %v544_v22 = vmax.f32 %v512_v10, 0.0  ;;  %v515_v23 = vadd.f32 %v483_v3, %v451_v11  ;;  %v516_v24 = vadd.f32 %v484_v4, %v452_v12  ;;  %v489_v4 = vld [vmem:[%s990_s17 + $0xd0] sm:$0xff]  ;;  %v491_v12 = vld [vmem:[%s990_s17 + $0xe0] sm:$0xff] }
  0x41   : > { %v545_v26 = vmax.f32 %v513_v15, 0.0  ;;  %v546_v27 = vmax.f32 %v514_v16, 0.0  ;;  %v517_v29 = vadd.f32 %v485_v13, %v453_v17  ;;  %v518_v30 = vadd.f32 %v486_v14, %v454_v18 }
  0x42   : > { %575 = vst [vmem:[%s1042_s6 + $0x80] sm:$0xff] %v543_v21  ;;  %576 = vst [vmem:[%s1042_s6 + $0x88] sm:$0xff] %v544_v22  ;;  %v547_v32 = vmax.f32 %v515_v23, 0.0  ;;  %v548_v33 = vmax.f32 %v516_v24, 0.0  ;;  %v746_v34 = vunpack.c.l.bf16 %v771_v20  ;;  %v747_v35 = vunpack.c.h.bf16 %v771_v20  ;;  %v493_v20 = vld [vmem:[%s990_s17 + $0xf0] sm:$0xff]  ;;  %v494_v21 = vld [vmem:[%s990_s17 + $0xf8] sm:$0xff] }
  0x43   : > { %577 = vst [vmem:[%s1042_s6 + $0x90] sm:$0xff] %v545_v26  ;;  %578 = vst [vmem:[%s1042_s6 + $0x98] sm:$0xff] %v546_v27  ;;  %v549_v37 = vmax.f32 %v517_v29, 0.0  ;;  %v550_v38 = vmax.f32 %v518_v30, 0.0  ;;  %v750_v39 = vunpack.c.l.bf16 %v772_v25  ;;  %v751_v40 = vunpack.c.h.bf16 %v772_v25 }
  0x44   : > { %579 = vst [vmem:[%s1042_s6 + $0xa0] sm:$0xff] %v547_v32  ;;  %580 = vst [vmem:[%s1042_s6 + $0xa8] sm:$0xff] %v548_v33  ;;  %v341_v41 = vsub.f32 %v746_v34, %v970_v5  ;;  %v342_v42 = vsub.f32 %v747_v35, %v970_v5  ;;  %v754_v43 = vunpack.c.l.bf16 %v773_v31  ;;  %v755_v44 = vunpack.c.h.bf16 %v773_v31 }
  0x45   : > { %581 = vst [vmem:[%s1042_s6 + $0xb0] sm:$0xff] %v549_v37  ;;  %582 = vst [vmem:[%s1042_s6 + $0xb8] sm:$0xff] %v550_v38  ;;  %v343_v45 = vsub.f32 %v750_v39, %v970_v5  ;;  %v344_v46 = vsub.f32 %v751_v40, %v970_v5  ;;  %v758_v47 = vunpack.c.l.bf16 %v774_v36  ;;  %v759_v48 = vunpack.c.h.bf16 %v774_v36 }
  0x46   : > { %v377_v49 = vmul.f32 %v973_v8, %v341_v41  ;;  %v378_v50 = vmul.f32 %v973_v8, %v342_v42  ;;  %v345_v51 = vsub.f32 %v754_v43, %v970_v5  ;;  %v346_v52 = vsub.f32 %v755_v44, %v970_v5 }
  0x47   : > { %v379_v53 = vmul.f32 %v973_v8, %v343_v45  ;;  %v380_v54 = vmul.f32 %v973_v8, %v344_v46  ;;  %v347_v55 = vsub.f32 %v758_v47, %v970_v5  ;;  %v348_v56 = vsub.f32 %v759_v48, %v970_v5 }
  0x48   : > { %v416_v57 = vmul.f32 %v983_v19, %v377_v49  ;;  %v417_v58 = vmul.f32 %v983_v19, %v378_v50  ;;  %v381_v59 = vmul.f32 %v973_v8, %v345_v51  ;;  %v382_v60 = vmul.f32 %v973_v8, %v346_v52 }
  0x49   : > { %v418_v63 = vmul.f32 %v983_v19, %v379_v53  ;;  %v419_v0 = vmul.f32 %v983_v19, %v380_v54  ;;  %v383_v1 = vmul.f32 %v973_v8, %v347_v55  ;;  %v384_v5 = vmul.f32 %v973_v8, %v348_v56  ;;  %v492_v8 = vld [vmem:[%s990_s17 + $0xe8] sm:$0xff] }
  0x4a   : > { %v455_v2 = vadd.f32 %v1000_v28, %v416_v57  ;;  %v456_v3 = vadd.f32 %v1000_v28, %v417_v58  ;;  %v420_v7 = vmul.f32 %v983_v19, %v381_v59  ;;  %v421_v9 = vmul.f32 %v983_v19, %v382_v60 }
  0x4b   : > { %v457_v10 = vadd.f32 %v1000_v28, %v418_v63  ;;  %v458_v11 = vadd.f32 %v1000_v28, %v419_v0  ;;  %v422_v13 = vmul.f32 %v983_v19, %v383_v1  ;;  %v423_v14 = vmul.f32 %v983_v19, %v384_v5 }
  0x4c   : > { %v519_v15 = vadd.f32 %v487_v61, %v455_v2  ;;  %v520_v16 = vadd.f32 %v488_v62, %v456_v3  ;;  %v459_v17 = vadd.f32 %v1000_v28, %v420_v7  ;;  %v460_v18 = vadd.f32 %v1000_v28, %v421_v9 }
  0x4d   : > { %v521_v22 = vadd.f32 %v489_v4, %v457_v10  ;;  %v522_v23 = vadd.f32 %v490_v6, %v458_v11  ;;  %v461_v24 = vadd.f32 %v1000_v28, %v422_v13  ;;  %v462_v25 = vadd.f32 %v1000_v28, %v423_v14 }
  0x4e   : > { %v551_v19 = vmax.f32 %v519_v15, 0.0  ;;  %v552_v26 = vmax.f32 %v520_v16, 0.0  ;;  %v523_v27 = vadd.f32 %v491_v12, %v459_v17  ;;  %v524_v29 = vadd.f32 %v492_v8, %v460_v18 }
  0x4f   : > { %v553_v30 = vmax.f32 %v521_v22, 0.0  ;;  %v554_v31 = vmax.f32 %v522_v23, 0.0  ;;  %v525_v32 = vadd.f32 %v493_v20, %v461_v24  ;;  %v526_v33 = vadd.f32 %v494_v21, %v462_v25 }
  0x50   : > { %583 = vst [vmem:[%s1042_s6 + $0xc0] sm:$0xff] %v551_v19  ;;  %584 = vst [vmem:[%s1042_s6 + $0xc8] sm:$0xff] %v552_v26  ;;  %v555_v28 = vmax.f32 %v523_v27, 0.0  ;;  %v556_v34 = vmax.f32 %v524_v29, 0.0 }
  0x51   : > { %585 = vst [vmem:[%s1042_s6 + $0xd0] sm:$0xff] %v553_v30  ;;  %586 = vst [vmem:[%s1042_s6 + $0xd8] sm:$0xff] %v554_v31  ;;  %v557_v35 = vmax.f32 %v525_v32, 0.0  ;;  %v558_v36 = vmax.f32 %v526_v33, 0.0 }
  0x52   : > { %587 = vst [vmem:[%s1042_s6 + $0xe0] sm:$0xff] %v555_v28  ;;  %588 = vst [vmem:[%s1042_s6 + $0xe8] sm:$0xff] %v556_v34 }
  0x53   : > { %589 = vst [vmem:[%s1042_s6 + $0xf0] sm:$0xff] %v557_v35  ;;  %590 = vst [vmem:[%s1042_s6 + $0xf8] sm:$0xff] %v558_v36 }
  0x54   : > { %829 = shalt.err (!%p826_p3)
}
  0x55   : > { %s830_s16 = scalar_lea.hbm %s1204_s10, 4096  ;;  %s834_s25 = scalar_lea.hbm %s1262_s5, 8192 }
  0x56   : > { %p831_p4 = scmp.ne.s32.totalorder %s1204_s10, %s830_s16  ;;  %p835_p9 = scmp.lt.u32.totalorder %s1204_s10, %s1262_s5 }
  0x57   : > { %p836_p10 = scmp.lt.u32.totalorder %s834_s25, %s830_s16  ;;  %p838_p12 = scmp.lt.u32.totalorder %s830_s16, %s1204_s10 }
  0x58   : > { %p832_p7 = pnand %p831_p4, %p951_p5 }
  0x59   : > { %p837_p11 = por %p836_p10, %p835_p9 }
  0x5a   : > { %p833_p8 = pneg %p832_p7 }
  0x5b   : > { %p839_p13 = por %p838_p12, %p837_p11 }
  0x5d   : > { %p840_p0 = pnand %p839_p13, %p833_p8 }
  0x5f   : > { %843 = shalt.err (!%p840_p0)
}
  0x60   : > { %s881_s6 = smov 128   ;;  %s882_s7 = smov 8  }
  0x61   : > { %775 = dma.vmem_to_hbm [thread:$0]  (%p951_p5), %s1206_s8, 4096, %s1204_s10, %s1216_s11, %s881_s6, %s881_s6, %s882_s7  }
  0x62 PF: > { %p781_p1 = scmp.ge.s32.totalorder %s878_s21, 2  ;;  %s620_s22 = sand.u32 1, %s866_s18  }
  0x63   : > { %s621_s9 = scalar_lea.sflag [#allocation3], %s620_s22 }
  0x64   : > { %p778_p2 = pnand %p781_p1, %p955_p6 }
  0x66   : > { %861 = dma.done.wait (!%p778_p2), %s621_s9, 4096  }
  0x67   : > { %863 = vsyncadd (!%p778_p2), %s621_s9, 4294963200  ;;  %p15_p3 = scmp.ge.s32.totalorder %s938_s24, 4   ;;  %s1265_s18 = smov %s870_s19 }
  0x68   : > { %s1266_s19 = smov %s874_s20  ;;  %s1267_s20 = smov %s949_s27 }
  0x69   : > { %s1268_s21 = smov %s938_s24  ;;  %17 = sbr.rel (!%p15_p3) target bundleno = 3 (0x3), region = 78 }
  0x70   :  { %626 = vsyncpa [#allocation3], 1 }
  0x71   :  { %628 = vsyncpa [#allocation3 + $0x1], 1 }

// kernel: bottleneck_forward_nhwc.5
= control target key start
LH: loop header
LB: loop body
LE: loop exit
PB: predicated region body
PF: predicated region fallthrough
CT: control target
= control target key end

     0   :  { %s8365_s21 = smov 0   ;;  %s8367_s22 = smov 0   ;;  %s10562_s0 = inlined_call_operand.vmem [shape: bf16[2,16,16,32], index: 0, kind: input, shape index: {}]   ;;  %s10563_s1 = inlined_call_operand.vmem [shape: f32[2,32], index: 1, kind: input, shape index: {}]   ;;  %s10564_s2 = inlined_call_operand.vmem [shape: f32[1,32], index: 2, kind: input, shape index: {}]   ;;  %s10565_s3 = inlined_call_operand.vmem [shape: f32[1,32], index: 3, kind: input, shape index: {}]   ;;  %s10566_s4 = inlined_call_operand.vmem [shape: bf16[3,3,32,32], index: 4, kind: input, shape index: {}]   ;;  %s10567_s5 = inlined_call_operand.vmem [shape: bf16[2,256,32], index: 5, kind: output, shape index: {0}]   ;;  %s10568_s6 = inlined_call_operand.vmem [shape: f32[2,2,32], index: 6, kind: output, shape index: {1}]  }
   0x1   :  { %s8369_s23 = smov 0  }
   0x2 LB: > { %s29_s24 = sadd.s32 1, %s8322_s22  ;;  %p6729_p0 = scmp.ge.s32.totalorder %s8326_s23, 1  ;;  %s8326_s23 = sphi %s8369_s23, %s17_s23   ;;  %s8322_s22 = sphi %s8367_s22, %s10639_s22   ;;  %s8318_s21 = sphi %s8365_s21, %s10638_s21  }
   0x3   : > { %p31_p1 = scmp.ge.s32.totalorder %s29_s24, 2  ;;  %p233_p2 = scmp.lt.s32.totalorder %s8326_s23, 3 }
   0x5   : > { %s10641_s24 = smov (%p31_p1, %s29_s24), 0  ;;  %p234_p3 = pnand %p6729_p0, %p233_p2 }
   0x7   : > { %237 = sbr.rel (%p234_p3) target bundleno = 725 (0x2d5), region = 40 }
   0xe   : > { %v8206_v0 = vld [vmem:[%s10566_s4 + $0x10] sm:$0xff]   ;;  %vm294_vm0 = vcmask 257024   ;;  %v417_v1 = vlaneseq  ;;  %v8394_v3 = vld [vmem:[%s10566_s4 + $0x18] sm:$0xff]   ;;  %v8328_v4 = vmov 0   ;;  %vm297_vm1 = vcmask 253952   ;;  %p270_p4 = scmp.lt.s32.totalorder %s8318_s21, 1 }
   0xf   : > { %v8207_v2 = vld [vmem:[%s10566_s4 + $0x10] sm:$0xff]   ;;  %7564 = vmatprep.subr.bf16.mxu0 %v8206_v0  ;;  %295 = vst.msk [vmem:[#allocation2] sm:$0xf] %vm294_vm0, %v8328_v4  ;;  %296 = vst.msk [vmem:[#allocation2 + $0x4] sm:$0xf] %vm294_vm0, %v8328_v4  ;;  %v8209_v5 = vld [vmem:[%s10566_s4 + $0x18] sm:$0xff]  }
  0x10   : > { %299 = vst.msk [vmem:[#allocation2 + $0xc] sm:$0xf] %vm294_vm0, %v8328_v4  ;;  %300 = vst.msk [vmem:[#allocation2 + $0x10] sm:$0xf] %vm294_vm0, %v8328_v4  ;;  %7744 = vmatprep.subr.bf16.mxu1 %v8207_v2  ;;  %7565 = vmatpush3.bf16.msra.mxu0 %v8206_v0  ;;  %v418_v6 = vshrl.u32 %v417_v1, 7  ;;  %s10643_s21 = smov (!%p270_p4, %s8318_s21), 1 }
  0x11   : > { %302 = vst.msk [vmem:[#allocation2 + $0x18] sm:$0xf] %vm294_vm0, %v8328_v4  ;;  %303 = vst.msk [vmem:[#allocation2 + $0x1c] sm:$0xf] %vm294_vm0, %v8328_v4  ;;  %7745 = vmatpush3.bf16.msra.mxu1 %v8207_v2  ;;  %7566 = vmatprep.subr.bf16.mxu0 %v8394_v3  ;;  %vm1163_vm2 = vsmask.f32 3328 }
  0x12   : > { %305 = vst.msk [vmem:[#allocation2 + $0x24] sm:$0xf] %vm294_vm0, %v8328_v4  ;;  %306 = vst.msk [vmem:[#allocation2 + $0x28] sm:$0xf] %vm294_vm0, %v8328_v4  ;;  %7746 = vmatprep.subr.bf16.mxu1 %v8209_v5  ;;  %v8462_v7 = vld [vmem:[%s10566_s4] sm:$0xff]   ;;  %v419_v9 = vsub.s32 0, %v418_v6 }
  0x13   : > { %308 = vst.msk [vmem:[#allocation2 + $0x30] sm:$0xf] %vm294_vm0, %v8328_v4  ;;  %309 = vst.msk [vmem:[#allocation2 + $0x34] sm:$0xf] %vm294_vm0, %v8328_v4  ;;  %v350_v8 = vld [vmem:[%s10563_s1] sm:$0x3] }
  0x14   : > { %311 = vst.msk [vmem:[#allocation2 + $0x3c] sm:$0xf] %vm294_vm0, %v8328_v4  ;;  %312 = vst.msk [vmem:[#allocation2 + $0x40] sm:$0xf] %vm294_vm0, %v8328_v4  ;;  %7567 = vmatpush3.bf16.msra.mxu0 %v8394_v3  ;;  %s7239_s13 = sshll.u32 %s10643_s21, 7  ;;  %v455_v12 = vsub.s32 1, %v418_v6  ;;  %v8478_v20 = vrot.slane %v350_v8, %v419_v9 }
  0x15   : > { %314 = vst.msk [vmem:[#allocation2 + $0x48] sm:$0xf] %vm294_vm0, %v8328_v4  ;;  %315 = vst.msk [vmem:[#allocation2 + $0x4c] sm:$0xf] %vm294_vm0, %v8328_v4  ;;  %7747 = vmatpush3.bf16.msra.mxu1 %v8209_v5  ;;  %7584 = vmatprep.subr.bf16.mxu0 %v8462_v7  ;;  %s8475_s16 = scalar_lea.vmem %s10562_s0, %s7239_s13  ;;  %vm1164_vm3 = vsmask.f32 7440  ;;  %s10389_s29 = scalar_lea.vmem %s10567_s5, %s7239_s13 }
  0x16   : > { %317 = vst.msk [vmem:[#allocation2 + $0x54] sm:$0xf] %vm294_vm0, %v8328_v4  ;;  %318 = vst.msk [vmem:[#allocation2 + $0x58] sm:$0xf] %vm294_vm0, %v8328_v4  ;;  %v1135_v10 = vld [vmem:[#allocation2] sm:$0xf]  ;;  %v8481_v28 = vrot.slane %v350_v8, %v455_v12 }
  0x17   : > { %320 = vst.msk [vmem:[#allocation2 + $0x60] sm:$0xf] %vm294_vm0, %v8328_v4  ;;  %321 = vst.msk [vmem:[#allocation2 + $0x64] sm:$0xf] %vm294_vm0, %v8328_v4  ;;  %v1136_v11 = vld [vmem:[#allocation2 + $0x4] sm:$0xf] }
  0x18   : > { %323 = vst.msk [vmem:[#allocation2 + $0x6c] sm:$0xf] %vm294_vm0, %v8328_v4  ;;  %324 = vst.msk [vmem:[#allocation2 + $0x70] sm:$0xf] %vm294_vm0, %v8328_v4  ;;  %v1167_v14 = vshrl.u32 %v1135_v10, 16  ;;  %v1170_v15 = vshll.u32 %v1135_v10, 16 }
  0x19   : > { %326 = vst.msk [vmem:[#allocation2 + $0x78] sm:$0xf] %vm294_vm0, %v8328_v4  ;;  %327 = vst.msk [vmem:[#allocation2 + $0x7c] sm:$0xf] %vm294_vm0, %v8328_v4  ;;  %v1176_v16 = vshll.u32 %v1136_v11, 16  ;;  %v1180_v17 = vshrl.u32 %v1136_v11, 16 }
  0x1a   : > { %329 = vst.msk [vmem:[#allocation2 + $0x84] sm:$0xf] %vm294_vm0, %v8328_v4  ;;  %330 = vst.msk [vmem:[#allocation2 + $0x88] sm:$0xf] %vm294_vm0, %v8328_v4  ;;  %vm1399_vm4 = vcmask 261120   ;;  %v7306_v19 = vld [vmem:[%s8475_s16] sm:$0xff]  }
  0x1b   : > { %332 = vst.msk [vmem:[#allocation2 + $0x90] sm:$0xf] %vm294_vm0, %v8328_v4  ;;  %333 = vst.msk [vmem:[#allocation2 + $0x94] sm:$0xf] %vm294_vm0, %v8328_v4  ;;  %v7375_v21 = vld [vmem:[%s8475_s16 + $0x38] sm:$0xff]   ;;  %v1169_v22 = vrot.slane %v1167_v14, 4  ;;  %v7307_v26 = vunpack.c.l.bf16 %v7306_v19  ;;  %v7308_v27 = vunpack.c.h.bf16 %v7306_v19 }
  0x1c   : > { %335 = vst.msk [vmem:[#allocation2 + $0x9c] sm:$0xf] %vm294_vm0, %v8328_v4  ;;  %336 = vst.msk [vmem:[#allocation2 + $0xa0] sm:$0xf] %vm294_vm0, %v8328_v4  ;;  %v1172_v23 = vrot.slane %v1170_v15, 5  ;;  %v1178_v24 = vrot.slane %v1176_v16, 5  ;;  %v7335_v29 = vunpack.c.l.bf16 %v7375_v21  ;;  %v7336_v34 = vunpack.c.h.bf16 %v7375_v21 }
  0x1d   : > { %338 = vst.msk [vmem:[#allocation2 + $0xa8] sm:$0xf] %vm294_vm0, %v8328_v4  ;;  %339 = vst.msk [vmem:[#allocation2 + $0xac] sm:$0xf] %vm294_vm0, %v8328_v4  ;;  %v1182_v25 = vrot.slane %v1180_v17, 4  ;;  %v8486_v30 = vld [vmem:[%s10566_s4] sm:$0xff]   ;;  %v421_v37 = vsub.f32 %v7307_v26, %v8478_v20  ;;  %v422_v38 = vsub.f32 %v7308_v27, %v8478_v20 }
  0x1e   : > { %341 = vst.msk [vmem:[#allocation2 + $0xb4] sm:$0xf] %vm294_vm0, %v8328_v4  ;;  %342 = vst.msk [vmem:[#allocation2 + $0xb8] sm:$0xf] %vm294_vm0, %v8328_v4  ;;  %v1173_v31 = vor.u32 %v1172_v23, %v1169_v22  ;;  %v7376_v35 = vld [vmem:[%s8475_s16 + $0x40] sm:$0xff]   ;;  %v435_v39 = vsub.f32 %v7335_v29, %v8478_v20  ;;  %7764 = vmatprep.subr.bf16.mxu1 %v8486_v30  ;;  %v436_v44 = vsub.f32 %v7336_v34, %v8478_v20  ;;  %v7369_v50 = vld [vmem:[%s8475_s16 + $0x8] sm:$0xff]  }
  0x1f   : > { %344 = vst.msk [vmem:[#allocation2 + $0xc0] sm:$0xf] %vm294_vm0, %v8328_v4  ;;  %345 = vst.msk [vmem:[#allocation2 + $0xc4] sm:$0xf] %vm294_vm0, %v8328_v4  ;;  %v1183_v32 = vor.u32 %v1182_v25, %v1178_v24  ;;  %v7339_v40 = vunpack.c.l.bf16 %v7376_v35  ;;  %v8502_v43 = vld [vmem:[%s10564_s2] ss:$0 sm:$0xff]  ;;  %v7340_v45 = vunpack.c.h.bf16 %v7376_v35  ;;  %v457_v46 = vmul.f32 %v8481_v28, %v421_v37 }
  0x20   : > { %347 = vst.msk [vmem:[#allocation2 + $0xcc] sm:$0xf] %vm294_vm0, %v8328_v4  ;;  %348 = vst.msk [vmem:[#allocation2 + $0xd0] sm:$0xf] %vm294_vm0, %v8328_v4  ;;  %v1174_v41 = vrot.slane %v1173_v31, 4  ;;  %v458_v47 = vmul.f32 %v8481_v28, %v422_v38  ;;  %v471_v48 = vmul.f32 %v8481_v28, %v435_v39  ;;  %v472_v54 = vmul.f32 %v8481_v28, %v436_v44  ;;  %s6734_s20 = sshll.u32 %s10643_s21, 1 }
  0x21   : > { %298 = vst.msk [vmem:[#allocation2 + $0x8] sm:$0x1] %vm297_vm1, %v8328_v4  ;;  %301 = vst.msk [vmem:[#allocation2 + $0x14] sm:$0x1] %vm297_vm1, %v8328_v4  ;;  %v1184_v42 = vrot.slane %v1183_v32, 4  ;;  %v437_v49 = vsub.f32 %v7339_v40, %v8478_v20  ;;  %v438_v55 = vsub.f32 %v7340_v45, %v8478_v20  ;;  %v495_v57 = vmul.f32 %v8502_v43, %v457_v46 }
  0x22   : > { %304 = vst.msk [vmem:[#allocation2 + $0x20] sm:$0x1] %vm297_vm1, %v8328_v4  ;;  %307 = vst.msk [vmem:[#allocation2 + $0x2c] sm:$0x1] %vm297_vm1, %v8328_v4  ;;  %v8517_v53 = vld [vmem:[%s10565_s3] ss:$0 sm:$0xff]  ;;  %v496_v58 = vmul.f32 %v8502_v43, %v458_v47  ;;  %v509_v59 = vmul.f32 %v8502_v43, %v471_v48  ;;  %v510_v60 = vmul.f32 %v8502_v43, %v472_v54  ;;  %v7311_v63 = vunpack.c.l.bf16 %v7369_v50 }
  0x23   : > { %310 = vst.msk [vmem:[#allocation2 + $0x38] sm:$0x1] %vm297_vm1, %v8328_v4  ;;  %313 = vst.msk [vmem:[#allocation2 + $0x44] sm:$0x1] %vm297_vm1, %v8328_v4  ;;  %vm693_vm6 = vsmask.f32 256  ;;  %v473_v61 = vmul.f32 %v8481_v28, %v437_v49  ;;  %v474_v62 = vmul.f32 %v8481_v28, %v438_v55  ;;  %v533_v0 = vadd.f32 %v8517_v53, %v495_v57 }
  0x24   : > { %316 = vst.msk [vmem:[#allocation2 + $0x50] sm:$0x1] %vm297_vm1, %v8328_v4  ;;  %319 = vst.msk [vmem:[#allocation2 + $0x5c] sm:$0x1] %vm297_vm1, %v8328_v4  ;;  %vm694_vm7 = vsmask.f32 4368  ;;  %v534_v1 = vadd.f32 %v8517_v53, %v496_v58  ;;  %v547_v2 = vadd.f32 %v8517_v53, %v509_v59  ;;  %v7312_v3 = vunpack.c.h.bf16 %v7369_v50 }
  0x25   : > { %322 = vst.msk [vmem:[#allocation2 + $0x68] sm:$0x1] %vm297_vm1, %v8328_v4  ;;  %325 = vst.msk [vmem:[#allocation2 + $0x74] sm:$0x1] %vm297_vm1, %v8328_v4  ;;  %vm1018_vm8 = vsmask.f32 7938  ;;  %v511_v5 = vmul.f32 %v8502_v43, %v473_v61  ;;  %v512_v6 = vmul.f32 %v8502_v43, %v474_v62  ;;  %v423_v8 = vsub.f32 %v7311_v63, %v8478_v20 }
  0x26   : > { %328 = vst.msk [vmem:[#allocation2 + $0x80] sm:$0x1] %vm297_vm1, %v8328_v4  ;;  %331 = vst.msk [vmem:[#allocation2 + $0x8c] sm:$0x1] %vm297_vm1, %v8328_v4  ;;  %v565_v9 = vmax.f32 %v533_v0, 0.0  ;;  %v566_v10 = vmax.f32 %v534_v1, 0.0  ;;  %v424_v12 = vsub.f32 %v7312_v3, %v8478_v20 }
  0x27   : > { %334 = vst.msk [vmem:[#allocation2 + $0x98] sm:$0x1] %vm297_vm1, %v8328_v4  ;;  %337 = vst.msk [vmem:[#allocation2 + $0xa4] sm:$0x1] %vm297_vm1, %v8328_v4  ;;  %v579_v11 = vmax.f32 %v547_v2, 0.0  ;;  %v549_v14 = vadd.f32 %v8517_v53, %v511_v5  ;;  %v550_v15 = vadd.f32 %v8517_v53, %v512_v6  ;;  %v459_v16 = vmul.f32 %v8481_v28, %v423_v8  ;;  %v7370_v2 = vld [vmem:[%s8475_s16 + $0x10] sm:$0xff]  }
  0x28   : > { %340 = vst.msk [vmem:[#allocation2 + $0xb0] sm:$0x1] %vm297_vm1, %v8328_v4  ;;  %343 = vst.msk [vmem:[#allocation2 + $0xbc] sm:$0x1] %vm297_vm1, %v8328_v4  ;;  %v1155_v13 = vld [vmem:[#allocation2 + $0x8] sm:$0x1]  ;;  %v7241_v17 = vpack.c.bf16 %v565_v9, %v565_v9  ;;  %v460_v21 = vmul.f32 %v8481_v28, %v424_v12 }
  0x29   : > { %346 = vst.msk [vmem:[#allocation2 + $0xc8] sm:$0x1] %vm297_vm1, %v8328_v4  ;;  %349 = vst.msk [vmem:[#allocation2 + $0xd4] sm:$0x1] %vm297_vm1, %v8328_v4  ;;  %v1186_v18 = vshll.u32 %v1155_v13, 16  ;;  %v548_v4 = vadd.f32 %v8517_v53, %v510_v60  ;;  %v7255_v19 = vpack.c.bf16 %v579_v11, %v579_v11  ;;  %v581_v23 = vmax.f32 %v549_v14, 0.0 }
  0x2a   : > { %vm8491_vm5 = vmor %vm1163_vm2, %vm1164_vm3  ;;  %v497_v25 = vmul.f32 %v8502_v43, %v459_v16  ;;  %v697_v26 = vshrl.u32 %v7241_v17, 16  ;;  %v700_v27 = vshll.u32 %v7241_v17, 16  ;;  %v1020_v32 = vld [vmem:[#allocation2 + $0xc] sm:$0xf]  ;;  %v1027_v34 = vld [vmem:[#allocation2 + $0x14] sm:$0x1]  ;;  %v7315_v14 = vunpack.c.l.bf16 %v7370_v2 }
  0x2b   : > { %v1188_v33 = vrot.slane %v1186_v18, 5  ;;  %v1179_v51 = vsel %vm8491_vm5, %v1174_v41, %v1178_v24  ;;  %v580_v13 = vmax.f32 %v548_v4, 0.0  ;;  %v7242_v18 = vpack.c.bf16 %v566_v10, %v566_v10  ;;  %vm8543_vm9 = vmand %vm297_vm1, %vm693_vm6  ;;  %v1072_v44 = vld [vmem:[#allocation2 + $0x60] sm:$0xf]  ;;  %v1079_v8 = vld [vmem:[#allocation2 + $0x6c] sm:$0xf] }
  0x2c   : > { %v582_v24 = vmax.f32 %v550_v15, 0.0  ;;  %v816_v35 = vshrl.u32 %v7255_v19, 16  ;;  %v819_v37 = vshll.u32 %v7255_v19, 16  ;;  %vm8549_vm10 = vmor %vm693_vm6, %vm694_vm7  ;;  %v699_v41 = vrot.slane %v697_v26, 7  ;;  %v1076_v50 = vld [vmem:[#allocation2 + $0x68] sm:$0x1] }
  0x2d   : > { %v1189_v52 = vsel %vm8491_vm5, %v1184_v42, %v1188_v33  ;;  %v7256_v22 = vpack.c.bf16 %v580_v13, %v580_v13  ;;  %v705_v29 = vshrl.u32 %v7242_v18, 16  ;;  %v708_v31 = vshll.u32 %v7242_v18, 16  ;;  %vm8555_vm11 = vmand %vm294_vm0, %vm1018_vm8 }
  0x2e   : > { %v6773_v56 = vcombine.low %v1179_v51, %v1189_v52  ;;  %v7257_v45 = vpack.c.bf16 %v581_v23, %v581_v23  ;;  %v7258_v46 = vpack.c.bf16 %v582_v24, %v582_v24  ;;  %v818_v48 = vrot.slane %v816_v35, 7 }
  0x2f   : > { %v824_v38 = vshrl.u32 %v7256_v22, 16  ;;  %v827_v39 = vshll.u32 %v7256_v22, 16  ;;  %v707_v42 = vrot.slane %v705_v29, 7  ;;  %v498_v51 = vmul.f32 %v8502_v43, %v460_v21  ;;  %v8578_v21 = vld [vmem:[%s8475_s16 + $0x48] sm:$0xff]   ;;  %v1083_v22 = vld [vmem:[#allocation2 + $0x74] sm:$0x1] }
  0x30   : > { %7568 = vmatprep.mubr.msk.bf16.mxu0 %vm1399_vm4, %v6773_v56  ;;  %v535_v52 = vadd.f32 %v8517_v53, %v497_v25  ;;  %v702_v54 = vor.u32 %v700_v27, %v699_v41  ;;  %v703_v55 = vrot.slane %v699_v41, 4  ;;  %v821_v58 = vor.u32 %v819_v37, %v818_v48 }
  0x31   : > { %v826_v49 = vrot.slane %v824_v38, 7  ;;  %v710_v56 = vor.u32 %v708_v31, %v707_v42  ;;  %v712_v57 = vrot.slane %v707_v42, 4  ;;  %v822_v59 = vrot.slane %v818_v48, 4 }
  0x32   : > { %v1021_v63 = vsel %vm8555_vm11, %v702_v54, %v1020_v32  ;;  %v833_v1 = vshrl.u32 %v7257_v45, 16  ;;  %v1073_v4 = vsel %vm8555_vm11, %v821_v58, %v1072_v44  ;;  %v836_v6 = vshll.u32 %v7257_v45, 16 }
  0x33   : > { %v829_v60 = vor.u32 %v827_v39, %v826_v49  ;;  %v831_v61 = vrot.slane %v826_v49, 4  ;;  %v711_v62 = vsel %vm8549_vm10, %v703_v55, %v710_v56  ;;  %v1028_v0 = vsel %vm8543_vm9, %v712_v57, %v1027_v34  ;;  %1022 = vst [vmem:[#allocation2 + $0xc] sm:$0xf] %v1021_v63  ;;  %1074 = vst [vmem:[#allocation2 + $0x60] sm:$0xf] %v1073_v4 }
  0x34   : > { %1024 = vst.msk [vmem:[#allocation2 + $0x10] sm:$0xf] %vm294_vm0, %v711_v62  ;;  %1029 = vst [vmem:[#allocation2 + $0x14] sm:$0x1] %v1028_v0  ;;  %v835_v9 = vrot.slane %v833_v1, 7  ;;  %v841_v10 = vshrl.u32 %v7258_v46, 16  ;;  %v536_v12 = vadd.f32 %v8517_v53, %v498_v51  ;;  %v7316_v15 = vunpack.c.h.bf16 %v7370_v2 }
  0x35   : > { %v830_v3 = vsel %vm8549_vm10, %v822_v59, %v829_v60  ;;  %v1077_v5 = vsel %vm8543_vm9, %v831_v61, %v1076_v50  ;;  %v844_v11 = vshll.u32 %v7258_v46, 16  ;;  %v567_v13 = vmax.f32 %v535_v52, 0.0 }
  0x36   : > { %1075 = vst.msk [vmem:[#allocation2 + $0x64] sm:$0xf] %vm294_vm0, %v830_v3  ;;  %1078 = vst [vmem:[#allocation2 + $0x68] sm:$0x1] %v1077_v5  ;;  %v838_v16 = vor.u32 %v836_v6, %v835_v9  ;;  %v839_v17 = vrot.slane %v835_v9, 4  ;;  %v843_v18 = vrot.slane %v841_v10, 7  ;;  %v425_v27 = vsub.f32 %v7315_v14, %v8478_v20 }
  0x37   : > { %v568_v19 = vmax.f32 %v536_v12, 0.0  ;;  %v7243_v23 = vpack.c.bf16 %v567_v13, %v567_v13  ;;  %v426_v31 = vsub.f32 %v7316_v15, %v8478_v20  ;;  %v7343_v32 = vunpack.c.l.bf16 %v8578_v21 }
  0x38   : > { %v846_v24 = vor.u32 %v844_v11, %v843_v18  ;;  %v848_v25 = vrot.slane %v843_v18, 4  ;;  %v1080_v26 = vsel %vm8555_vm11, %v838_v16, %v1079_v8  ;;  %v7344_v42 = vunpack.c.h.bf16 %v8578_v21 }
  0x39   : > { %1081 = vst [vmem:[#allocation2 + $0x6c] sm:$0xf] %v1080_v26  ;;  %v714_v29 = vshrl.u32 %v7243_v23, 16  ;;  %v8589_v41 = vpack.c.bf16 %v568_v19, %v568_v19  ;;  %v717_v54 = vshll.u32 %v7243_v23, 16  ;;  %v461_v55 = vmul.f32 %v8481_v28, %v425_v27 }
  0x3a   : > { %v1137_v34 = vld [vmem:[#allocation2 + $0xc] sm:$0xf]  ;;  %v847_v38 = vsel %vm8549_vm10, %v839_v17, %v846_v24  ;;  %v1084_v39 = vsel %vm8543_vm9, %v848_v25, %v1083_v22  ;;  %v3885_v49 = vld [vmem:[#allocation2 + $0x60] sm:$0xf]  ;;  %v462_v10 = vmul.f32 %v8481_v28, %v426_v31  ;;  %vm1718_vm12 = vcmask 1042432  }
  0x3b   : > { %v1138_v35 = vld [vmem:[#allocation2 + $0x10] sm:$0xf]  ;;  %v1156_v37 = vld [vmem:[#allocation2 + $0x14] sm:$0x1]  ;;  %v1191_v44 = vshrl.u32 %v1137_v34, 16  ;;  %v1194_v45 = vshll.u32 %v1137_v34, 16 }
  0x3c   : > { %v1200_v46 = vshll.u32 %v1138_v35, 16  ;;  %v1204_v48 = vshrl.u32 %v1138_v35, 16  ;;  %1082 = vst.msk [vmem:[#allocation2 + $0x70] sm:$0xf] %vm294_vm0, %v847_v38  ;;  %1085 = vst [vmem:[#allocation2 + $0x74] sm:$0x1] %v1084_v39 }
  0x3d   : > { %v1210_v50 = vshll.u32 %v1156_v37, 16  ;;  %v3886_v51 = vld [vmem:[#allocation2 + $0x64] sm:$0xf]  ;;  %v3914_v52 = vshrl.u32 %v3885_v49, 16  ;;  %v1193_v56 = vrot.slane %v1191_v44, 4  ;;  %v1196_v57 = vrot.slane %v1194_v45, 5 }
  0x3e   : > { %v1202_v58 = vrot.slane %v1200_v46, 5  ;;  %v1206_v59 = vrot.slane %v1204_v48, 4  ;;  %v3905_v60 = vld [vmem:[#allocation2 + $0x68] sm:$0x1]  ;;  %v3917_v63 = vshll.u32 %v3885_v49, 16  ;;  %v3923_v0 = vshll.u32 %v3886_v51, 16 }
  0x3f   : > { %v1212_v61 = vrot.slane %v1210_v50, 5  ;;  %v3916_v62 = vrot.slane %v3914_v52, 4  ;;  %v1197_v1 = vor.u32 %v1196_v57, %v1193_v56  ;;  %v3927_v3 = vshrl.u32 %v3886_v51, 16  ;;  %v8212_v35 = vld [vmem:[%s10566_s4 + $0x8] sm:$0xff]   ;;  %v1030_v48 = vld [vmem:[#allocation2 + $0x18] sm:$0xf] }
  0x40   : > { %v1207_v2 = vor.u32 %v1206_v59, %v1202_v58  ;;  %v3933_v4 = vshll.u32 %v3905_v60, 16  ;;  %v3919_v5 = vrot.slane %v3917_v63, 5  ;;  %v3925_v6 = vrot.slane %v3923_v0, 5  ;;  %v3887_v8 = vld [vmem:[#allocation2 + $0x6c] sm:$0xf] }
  0x41   : > { %v8594_v9 = vrot.slane %v714_v29, 7  ;;  %v1198_v11 = vrot.slane %v1197_v1, 4  ;;  %v3929_v13 = vrot.slane %v3927_v3, 4  ;;  %v3938_v18 = vshrl.u32 %v3887_v8, 16 }
  0x42   : > { %v1208_v12 = vrot.slane %v1207_v2, 4  ;;  %v3935_v14 = vrot.slane %v3933_v4, 5  ;;  %v3920_v15 = vor.u32 %v3919_v5, %v3916_v62  ;;  %v3941_v19 = vshll.u32 %v3887_v8, 16 }
  0x43   : > { %v3888_v16 = vld [vmem:[#allocation2 + $0x70] sm:$0xf]  ;;  %v3906_v17 = vld [vmem:[#allocation2 + $0x74] sm:$0x1]  ;;  %v719_v22 = vor.u32 %v717_v54, %v8594_v9  ;;  %v1203_v23 = vsel %vm8491_vm5, %v1198_v11, %v1202_v58  ;;  %v3930_v25 = vor.u32 %v3929_v13, %v3925_v6  ;;  %v3940_v31 = vrot.slane %v3938_v18, 4  ;;  %v8213_v11 = vld [vmem:[%s10566_s4 + $0x8] sm:$0xff]  }
  0x44   : > { %v1213_v24 = vsel %vm8491_vm5, %v1208_v12, %v1212_v61  ;;  %v3947_v26 = vshll.u32 %v3888_v16, 16  ;;  %v3921_v29 = vrot.slane %v3920_v15, 4  ;;  %v3943_v34 = vrot.slane %v3941_v19, 5  ;;  %v7378_v61 = vld [vmem:[%s8475_s16 + $0x50] sm:$0xff]  }
  0x45   : > { %v6774_v27 = vcombine.low %v1203_v23, %v1213_v24  ;;  %v3931_v37 = vrot.slane %v3930_v25, 4  ;;  %v3951_v39 = vshrl.u32 %v3888_v16, 16  ;;  %v3957_v44 = vshll.u32 %v3906_v17, 16 }
  0x46   : > { %v3949_v38 = vrot.slane %v3947_v26, 5  ;;  %v3926_v45 = vsel %vm8491_vm5, %v3921_v29, %v3925_v6  ;;  %v3944_v46 = vor.u32 %v3943_v34, %v3940_v31  ;;  %v439_v49 = vsub.f32 %v7343_v32, %v8478_v20 }
  0x47   : > { %7569 = vmatmul.mubr.msk.bf16.vlgmr.msra.gmra.mrb[0].mxu0 %vm1399_vm4, %v6774_v27  ;;  %v440_v50 = vsub.f32 %v7344_v42, %v8478_v20  ;;  %v3936_v51 = vsel %vm8491_vm5, %v3931_v37, %v3935_v14  ;;  %v3953_v52 = vrot.slane %v3951_v39, 4  ;;  %v3959_v54 = vrot.slane %v3957_v44, 5  ;;  %v1034_v42 = vld [vmem:[#allocation2 + $0x20] sm:$0x1] }
  0x48   : > { %7585 = vmatpush3.bf16.msra.mxu0 %v8462_v7  ;;  %v720_v56 = vrot.slane %v8594_v9, 4  ;;  %v7007_v57 = vcombine.low %v3926_v45, %v3936_v51  ;;  %v3945_v58 = vrot.slane %v3944_v46, 4  ;;  %v722_v59 = vshrl.u32 %v8589_v41, 16  ;;  %v1037_v51 = vld [vmem:[#allocation2 + $0x24] sm:$0xf] }
  0x49   : > { %v725_v60 = vshll.u32 %v8589_v41, 16  ;;  %7586 = vmatprep.subr.bf16.mxu0 %v8212_v35  ;;  %v3954_v21 = vor.u32 %v3953_v52, %v3949_v38  ;;  %v1031_v32 = vsel %vm8555_vm11, %v719_v22, %v1030_v48  ;;  %v499_v7 = vmul.f32 %v8502_v43, %v461_v55  ;;  %v8631_v55 = vld [vmem:[%s8475_s16 + $0x18] sm:$0xff]   ;;  %v1041_v52 = vld [vmem:[#allocation2 + $0x2c] sm:$0x1] }
  0x4a   : > { %v500_v62 = vmul.f32 %v8502_v43, %v462_v10  ;;  %7748 = vmatprep.mubr.msk.bf16.mxu1 %vm1399_vm4, %v7007_v57  ;;  %v3950_v63 = vsel %vm8491_vm5, %v3945_v58, %v3949_v38  ;;  %v724_v0 = vrot.slane %v722_v59, 7  ;;  %1032 = vst [vmem:[#allocation2 + $0x18] sm:$0xf] %v1031_v32  ;;  %v475_v41 = vmul.f32 %v8481_v28, %v439_v49 }
  0x4b   : > { %v476_v1 = vmul.f32 %v8481_v28, %v440_v50  ;;  %v3955_v2 = vrot.slane %v3954_v21, 4  ;;  %v537_v3 = vadd.f32 %v8517_v53, %v499_v7  ;;  %v7347_v5 = vunpack.c.l.bf16 %v7378_v61 }
  0x4c   : > { %v538_v4 = vadd.f32 %v8517_v53, %v500_v62  ;;  %7587 = vmatpush3.bf16.msra.mxu0 %v8212_v35  ;;  %v727_v6 = vor.u32 %v725_v60, %v724_v0  ;;  %v729_v8 = vrot.slane %v724_v0, 4  ;;  %v513_v9 = vmul.f32 %v8502_v43, %v475_v41 }
  0x4d   : > { %v514_v10 = vmul.f32 %v8502_v43, %v476_v1  ;;  %v3960_v12 = vsel %vm8491_vm5, %v3955_v2, %v3959_v54  ;;  %v569_v13 = vmax.f32 %v537_v3, 0.0  ;;  %v7348_v15 = vunpack.c.h.bf16 %v7378_v61 }
  0x4e   : > { %v570_v14 = vmax.f32 %v538_v4, 0.0  ;;  %v7008_v16 = vcombine.low %v3950_v63, %v3960_v12  ;;  %v728_v17 = vsel %vm8549_vm10, %v720_v56, %v727_v6  ;;  %v1035_v18 = vsel %vm8543_vm9, %v729_v8, %v1034_v42  ;;  %v1086_v42 = vld [vmem:[#allocation2 + $0x78] sm:$0xf] }
  0x4f   : > { %v551_v19 = vadd.f32 %v8517_v53, %v513_v9  ;;  %1033 = vst.msk [vmem:[#allocation2 + $0x1c] sm:$0xf] %vm294_vm0, %v728_v17  ;;  %1036 = vst [vmem:[#allocation2 + $0x20] sm:$0x1] %v1035_v18  ;;  %v7245_v22 = vpack.c.bf16 %v569_v13, %v569_v13  ;;  %v552_v24 = vadd.f32 %v8517_v53, %v514_v10  ;;  %v7319_v29 = vunpack.c.l.bf16 %v8631_v55  ;;  %v8215_v17 = vld [vmem:[%s10566_s4 + $0x20] sm:$0xff]  }
  0x50   : > { %v7246_v23 = vpack.c.bf16 %v570_v14, %v570_v14  ;;  %v441_v25 = vsub.f32 %v7347_v5, %v8478_v20  ;;  %7749 = vmatmul.mubr.msk.bf16.vlgmr.msra.gmra.mrb[0].mxu1 %vm1399_vm4, %v7008_v16  ;;  %v442_v27 = vsub.f32 %v7348_v15, %v8478_v20  ;;  %v7320_v31 = vunpack.c.h.bf16 %v8631_v55  ;;  %v8667_v16 = vld [vmem:[%s8475_s16 + $0x20] sm:$0xff]  }
  0x51   : > { %v583_v26 = vmax.f32 %v551_v19, 0.0  ;;  %7765 = vmatpush3.bf16.msra.mxu1 %v8486_v30  ;;  %v1139_v34 = vld [vmem:[#allocation2 + $0x18] sm:$0xf]  ;;  %v731_v35 = vshrl.u32 %v7245_v22, 16  ;;  %v734_v37 = vshll.u32 %v7245_v22, 16  ;;  %v584_v46 = vmax.f32 %v552_v24, 0.0 }
  0x52   : > { %v739_v38 = vshrl.u32 %v7246_v23, 16  ;;  %v742_v39 = vshll.u32 %v7246_v23, 16  ;;  %v1215_v44 = vshrl.u32 %v1139_v34, 16  ;;  %v1218_v45 = vshll.u32 %v1139_v34, 16  ;;  %7766 = vmatprep.subr.bf16.mxu1 %v8213_v11 }
  0x53   : > { %v7259_v48 = vpack.c.bf16 %v583_v26, %v583_v26  ;;  %v733_v49 = vrot.slane %v731_v35, 7  ;;  %v477_v54 = vmul.f32 %v8481_v28, %v441_v25  ;;  %v478_v56 = vmul.f32 %v8481_v28, %v442_v27  ;;  %v1090_v35 = vld [vmem:[#allocation2 + $0x80] sm:$0x1] }
  0x54   : > { %v741_v50 = vrot.slane %v739_v38, 7  ;;  %v1217_v57 = vrot.slane %v1215_v44, 4  ;;  %v1220_v30 = vrot.slane %v1218_v45, 5  ;;  %v7260_v58 = vpack.c.bf16 %v584_v46, %v584_v46 }
  0x55   : > { %v850_v59 = vshrl.u32 %v7259_v48, 16  ;;  %v736_v60 = vor.u32 %v734_v37, %v733_v49  ;;  %v737_v61 = vrot.slane %v733_v49, 4  ;;  %7767 = vmatpush3.bf16.msra.mxu1 %v8213_v11  ;;  %v853_v41 = vshll.u32 %v7259_v48, 16  ;;  %v8214_v11 = vld [vmem:[%s10566_s4 + $0x20] sm:$0xff]  }
  0x56   : > { %v744_v21 = vor.u32 %v742_v39, %v741_v50  ;;  %v746_v32 = vrot.slane %v741_v50, 4  ;;  %v1140_v7 = vld [vmem:[#allocation2 + $0x1c] sm:$0xf]  ;;  %v1157_v62 = vld [vmem:[#allocation2 + $0x20] sm:$0x1]  ;;  %v1221_v63 = vor.u32 %v1220_v30, %v1217_v57  ;;  %v515_v1 = vmul.f32 %v8502_v43, %v477_v54  ;;  %7604 = vmatprep.subr.bf16.mxu0 %v8214_v11  ;;  %7784 = vmatprep.subr.bf16.mxu1 %v8215_v17 }
  0x57   : > { %v852_v0 = vrot.slane %v850_v59, 7  ;;  %v1224_v2 = vshll.u32 %v1140_v7, 16  ;;  %v1228_v3 = vshrl.u32 %v1140_v7, 16  ;;  %v1234_v4 = vshll.u32 %v1157_v62, 16 }
  0x58   : > { %v745_v5 = vsel %vm8549_vm10, %v737_v61, %v744_v21  ;;  %v1222_v6 = vrot.slane %v1221_v63, 4  ;;  %v1038_v8 = vsel %vm8555_vm11, %v736_v60, %v1037_v51  ;;  %v1042_v9 = vsel %vm8543_vm9, %v746_v32, %v1041_v52 }
  0x59   : > { %1040 = vst.msk [vmem:[#allocation2 + $0x28] sm:$0xf] %vm294_vm0, %v745_v5  ;;  %v855_v10 = vor.u32 %v853_v41, %v852_v0  ;;  %v1226_v12 = vrot.slane %v1224_v2, 5  ;;  %v1230_v13 = vrot.slane %v1228_v3, 4  ;;  %v1236_v14 = vrot.slane %v1234_v4, 5 }
  0x5a   : > { %1039 = vst [vmem:[#allocation2 + $0x24] sm:$0xf] %v1038_v8  ;;  %1043 = vst [vmem:[#allocation2 + $0x2c] sm:$0x1] %v1042_v9  ;;  %v856_v15 = vrot.slane %v852_v0, 4  ;;  %v858_v18 = vshrl.u32 %v7260_v58, 16  ;;  %v516_v23 = vmul.f32 %v8502_v43, %v478_v56  ;;  %v553_v26 = vadd.f32 %v8517_v53, %v515_v1 }
  0x5b   : > { %v861_v19 = vshll.u32 %v7260_v58, 16  ;;  %v1087_v22 = vsel %vm8555_vm11, %v855_v10, %v1086_v42  ;;  %v1227_v24 = vsel %vm8491_vm5, %v1222_v6, %v1226_v12  ;;  %v1231_v25 = vor.u32 %v1230_v13, %v1226_v12  ;;  %v1093_v6 = vld [vmem:[#allocation2 + $0x84] sm:$0xf] }
  0x5c   : > { %1088 = vst [vmem:[#allocation2 + $0x78] sm:$0xf] %v1087_v22  ;;  %v427_v27 = vsub.f32 %v7319_v29, %v8478_v20  ;;  %v860_v34 = vrot.slane %v858_v18, 7  ;;  %v554_v37 = vadd.f32 %v8517_v53, %v516_v23  ;;  %v428_v38 = vsub.f32 %v7320_v31, %v8478_v20 }
  0x5d   : > { %v7323_v39 = vunpack.c.l.bf16 %v8667_v16  ;;  %v1232_v44 = vrot.slane %v1231_v25, 4  ;;  %v585_v45 = vmax.f32 %v553_v26, 0.0  ;;  %v7324_v48 = vunpack.c.h.bf16 %v8667_v16 }
  0x5e   : > { %v463_v46 = vmul.f32 %v8481_v28, %v427_v27  ;;  %v863_v49 = vor.u32 %v861_v19, %v860_v34  ;;  %v865_v50 = vrot.slane %v860_v34, 4  ;;  %v586_v29 = vmax.f32 %v554_v37, 0.0 }
  0x5f   : > { %v464_v51 = vmul.f32 %v8481_v28, %v428_v38  ;;  %v1237_v52 = vsel %vm8491_vm5, %v1232_v44, %v1236_v14  ;;  %v7261_v56 = vpack.c.bf16 %v585_v45, %v585_v45  ;;  %v8691_v31 = vsub.f32 %v7323_v39, %v8478_v20 }
  0x60   : > { %v1142_v54 = vld [vmem:[#allocation2 + $0x28] sm:$0xf]  ;;  %v501_v55 = vmul.f32 %v8502_v43, %v463_v46  ;;  %v6775_v57 = vcombine.low %v1227_v24, %v1237_v52  ;;  %v864_v61 = vsel %vm8549_vm10, %v856_v15, %v863_v49  ;;  %v1091_v7 = vsel %vm8543_vm9, %v865_v50, %v1090_v35  ;;  %v1097_v49 = vld [vmem:[#allocation2 + $0x8c] sm:$0x1] }
  0x61   : > { %v1141_v30 = vld [vmem:[#allocation2 + $0x24] sm:$0xf]  ;;  %v1158_v58 = vld [vmem:[#allocation2 + $0x2c] sm:$0x1]  ;;  %v1248_v59 = vshll.u32 %v1142_v54, 16  ;;  %v1252_v60 = vshrl.u32 %v1142_v54, 16  ;;  %v7262_v41 = vpack.c.bf16 %v586_v29, %v586_v29  ;;  %v502_v24 = vmul.f32 %v8502_v43, %v464_v51 }
  0x62   : > { %v1239_v21 = vshrl.u32 %v1141_v30, 16  ;;  %v1242_v32 = vshll.u32 %v1141_v30, 16  ;;  %v1258_v42 = vshll.u32 %v1158_v58, 16  ;;  %1089 = vst.msk [vmem:[#allocation2 + $0x7c] sm:$0xf] %vm294_vm0, %v864_v61  ;;  %7572 = vmatprep.mubr.msk.bf16.mxu0 %vm1399_vm4, %v6775_v57  ;;  %v867_v1 = vshrl.u32 %v7261_v56, 16 }
  0x63   : > { %v1250_v62 = vrot.slane %v1248_v59, 5  ;;  %v1254_v63 = vrot.slane %v1252_v60, 4  ;;  %1092 = vst [vmem:[#allocation2 + $0x80] sm:$0x1] %v1091_v7  ;;  %v3889_v0 = vld [vmem:[#allocation2 + $0x78] sm:$0xf]  ;;  %v539_v25 = vadd.f32 %v8517_v53, %v501_v55  ;;  %v430_v37 = vsub.f32 %v7324_v48, %v8478_v20 }
  0x64   : > { %v1241_v2 = vrot.slane %v1239_v21, 4  ;;  %v1244_v3 = vrot.slane %v1242_v32, 5  ;;  %v1260_v4 = vrot.slane %v1258_v42, 5  ;;  %v3962_v5 = vshrl.u32 %v3889_v0, 16  ;;  %v8712_v57 = vld [vmem:[%s8475_s16 + $0x58] sm:$0xff]   ;;  %v8721_v61 = vld [vmem:[%s8475_s16 + $0x60] sm:$0xff]  }
  0x65   : > { %v1255_v8 = vor.u32 %v1254_v63, %v1250_v62  ;;  %v3965_v9 = vshll.u32 %v3889_v0, 16  ;;  %v869_v10 = vrot.slane %v867_v1, 7  ;;  %v870_v11 = vshll.u32 %v7261_v56, 16 }
  0x66   : > { %v1245_v12 = vor.u32 %v1244_v3, %v1241_v2  ;;  %v3964_v13 = vrot.slane %v3962_v5, 4  ;;  %v875_v14 = vshrl.u32 %v7262_v41, 16  ;;  %v878_v15 = vshll.u32 %v7262_v41, 16 }
  0x67   : > { %v1256_v16 = vrot.slane %v1255_v8, 4  ;;  %v3967_v17 = vrot.slane %v3965_v9, 5  ;;  %v872_v18 = vor.u32 %v870_v11, %v869_v10  ;;  %v873_v19 = vrot.slane %v869_v10, 4 }
  0x68   : > { %v1246_v22 = vrot.slane %v1245_v12, 4  ;;  %v877_v23 = vrot.slane %v875_v14, 7  ;;  %v540_v55 = vadd.f32 %v8517_v53, %v502_v24  ;;  %v571_v59 = vmax.f32 %v539_v25, 0.0 }
  0x69   : > { %v1261_v26 = vsel %vm8491_vm5, %v1256_v16, %v1260_v4  ;;  %v3890_v27 = vld [vmem:[#allocation2 + $0x7c] sm:$0xf]  ;;  %v3968_v34 = vor.u32 %v3967_v17, %v3964_v13  ;;  %v1094_v35 = vsel %vm8555_vm11, %v872_v18, %v1093_v6  ;;  %v465_v60 = vmul.f32 %v8481_v28, %v8691_v31  ;;  %v1044_v16 = vld [vmem:[#allocation2 + $0x30] sm:$0xf]  ;;  %v1048_v17 = vld [vmem:[#allocation2 + $0x38] sm:$0x1] }
  0x6a   : > { %v1251_v38 = vsel %vm8491_vm5, %v1246_v22, %v1250_v62  ;;  %v3907_v39 = vld [vmem:[#allocation2 + $0x80] sm:$0x1]  ;;  %v3971_v44 = vshll.u32 %v3890_v27, 16  ;;  %v3975_v45 = vshrl.u32 %v3890_v27, 16  ;;  %v880_v46 = vor.u32 %v878_v15, %v877_v23  ;;  %1095 = vst [vmem:[#allocation2 + $0x84] sm:$0xf] %v1094_v35 }
  0x6b   : > { %v6776_v50 = vcombine.low %v1251_v38, %v1261_v26  ;;  %v3969_v29 = vrot.slane %v3968_v34, 4  ;;  %v3981_v51 = vshll.u32 %v3907_v39, 16  ;;  %v882_v52 = vrot.slane %v877_v23, 4 }
  0x6c   : > { %v3973_v54 = vrot.slane %v3971_v44, 5  ;;  %v3977_v56 = vrot.slane %v3975_v45, 4  ;;  %v881_v48 = vsel %vm8549_vm10, %v873_v19, %v880_v46  ;;  %v572_v42 = vmax.f32 %v540_v55, 0.0 }
  0x6d   : > { %7573 = vmatmul.mubr.msk.bf16.gmra.mrb[4].mxu0 %vm1399_vm4, %v6776_v50  ;;  %v3983_v30 = vrot.slane %v3981_v51, 5  ;;  %1096 = vst.msk [vmem:[#allocation2 + $0x88] sm:$0xf] %vm294_vm0, %v881_v48  ;;  %v1098_v58 = vsel %vm8543_vm9, %v882_v52, %v1097_v49  ;;  %v466_v7 = vmul.f32 %v8481_v28, %v430_v37  ;;  %v7247_v62 = vpack.c.bf16 %v571_v59, %v571_v59 }
  0x6e   : > { %v3974_v21 = vsel %vm8491_vm5, %v3969_v29, %v3973_v54  ;;  %v3978_v32 = vor.u32 %v3977_v56, %v3973_v54  ;;  %1099 = vst [vmem:[#allocation2 + $0x8c] sm:$0x1] %v1098_v58  ;;  %v503_v63 = vmul.f32 %v8502_v43, %v465_v60  ;;  %v7351_v0 = vunpack.c.l.bf16 %v8712_v57 }
  0x6f   : > { %v7352_v41 = vunpack.c.h.bf16 %v8712_v57  ;;  %v7248_v2 = vpack.c.bf16 %v572_v42, %v572_v42  ;;  %v504_v31 = vmul.f32 %v8502_v43, %v466_v7  ;;  %v7355_v3 = vunpack.c.l.bf16 %v8721_v61 }
  0x70   : > { %v3979_v1 = vrot.slane %v3978_v32, 4  ;;  %v748_v5 = vshrl.u32 %v7247_v62, 16  ;;  %v751_v6 = vshll.u32 %v7247_v62, 16  ;;  %v541_v8 = vadd.f32 %v8517_v53, %v503_v63 }
  0x71   : > { %v8731_v4 = vld [vmem:[#allocation2 + $0x84] sm:$0xf]  ;;  %v443_v9 = vsub.f32 %v7351_v0, %v8478_v20  ;;  %v756_v13 = vshrl.u32 %v7248_v2, 16  ;;  %v759_v15 = vshll.u32 %v7248_v2, 16  ;;  %v542_v18 = vadd.f32 %v8517_v53, %v504_v31  ;;  %v8762_v0 = vld [vmem:[%s10564_s2] ss:$0 sm:$0xff] }
  0x72   : > { %v3984_v10 = vsel %vm8491_vm5, %v3979_v1, %v3983_v30  ;;  %v3986_v11 = vshrl.u32 %v8731_v4, 16  ;;  %v3989_v12 = vshll.u32 %v8731_v4, 16  ;;  %v750_v43 = vrot.slane %v748_v5, 7 }
  0x73   : > { %v7009_v14 = vcombine.low %v3974_v21, %v3984_v10  ;;  %v758_v24 = vrot.slane %v756_v13, 7  ;;  %v573_v25 = vmax.f32 %v541_v8, 0.0  ;;  %v574_v50 = vmax.f32 %v542_v18, 0.0  ;;  %v1055_v8 = vld [vmem:[#allocation2 + $0x44] sm:$0x1] }
  0x74   : > { %v8740_v19 = vld [vmem:[#allocation2 + $0x88] sm:$0xf]  ;;  %v3988_v22 = vrot.slane %v3986_v11, 4  ;;  %v3991_v23 = vrot.slane %v3989_v12, 5  ;;  %v753_v35 = vor.u32 %v751_v6, %v750_v43  ;;  %v754_v37 = vrot.slane %v750_v43, 4 }
  0x75   : > { %7752 = vmatprep.mubr.msk.bf16.mxu1 %vm1399_vm4, %v7009_v14  ;;  %v3908_v26 = vld [vmem:[#allocation2 + $0x8c] sm:$0x1]  ;;  %v3995_v27 = vshll.u32 %v8740_v19, 16  ;;  %v3999_v34 = vshrl.u32 %v8740_v19, 16  ;;  %v761_v44 = vor.u32 %v759_v15, %v758_v24  ;;  %v763_v45 = vrot.slane %v758_v24, 4 }
  0x76   : > { %v3992_v38 = vor.u32 %v3991_v23, %v3988_v22  ;;  %v4005_v39 = vshll.u32 %v3908_v26, 16  ;;  %v1045_v49 = vsel %vm8555_vm11, %v753_v35, %v1044_v16  ;;  %v7249_v48 = vpack.c.bf16 %v573_v25, %v573_v25  ;;  %v1051_v6 = vld [vmem:[#allocation2 + $0x3c] sm:$0xf]  ;;  %v8773_v10 = vld [vmem:[%s10565_s3] ss:$0 sm:$0xff] }
  0x77   : > { %v3997_v53 = vrot.slane %v3995_v27, 5  ;;  %v4001_v46 = vrot.slane %v3999_v34, 4  ;;  %v762_v52 = vsel %vm8549_vm10, %v754_v37, %v761_v44  ;;  %1046 = vst [vmem:[#allocation2 + $0x30] sm:$0xf] %v1045_v49  ;;  %v1049_v54 = vsel %vm8543_vm9, %v763_v45, %v1048_v17  ;;  %v7373_v45 = vld [vmem:[%s8475_s16 + $0x28] sm:$0xff]  }
  0x78   : > { %v3993_v29 = vrot.slane %v3992_v38, 4  ;;  %v4007_v51 = vrot.slane %v4005_v39, 5  ;;  %1047 = vst.msk [vmem:[#allocation2 + $0x34] sm:$0xf] %vm294_vm0, %v762_v52  ;;  %1050 = vst [vmem:[#allocation2 + $0x38] sm:$0x1] %v1049_v54  ;;  %v7250_v55 = vpack.c.bf16 %v574_v50, %v574_v50  ;;  %v444_v57 = vsub.f32 %v7352_v41, %v8478_v20 }
  0x79   : > { %v4002_v56 = vor.u32 %v4001_v46, %v3997_v53  ;;  %v479_v58 = vmul.f32 %v8481_v28, %v443_v9  ;;  %v7356_v59 = vunpack.c.h.bf16 %v8721_v61  ;;  %v445_v60 = vsub.f32 %v7355_v3, %v8478_v20 }
  0x7a   : > { %v3998_v30 = vsel %vm8491_vm5, %v3993_v29, %v3997_v53  ;;  %v765_v32 = vshrl.u32 %v7249_v48, 16  ;;  %v768_v42 = vshll.u32 %v7249_v48, 16  ;;  %v773_v7 = vshrl.u32 %v7250_v55, 16 }
  0x7b   : > { %v4003_v21 = vrot.slane %v4002_v56, 4  ;;  %v776_v62 = vshll.u32 %v7250_v55, 16  ;;  %v480_v63 = vmul.f32 %v8481_v28, %v444_v57  ;;  %v517_v41 = vmul.f32 %v8762_v0, %v479_v58 }
  0x7c   : > { %v446_v1 = vsub.f32 %v7356_v59, %v8478_v20  ;;  %v767_v2 = vrot.slane %v765_v32, 7  ;;  %v775_v31 = vrot.slane %v773_v7, 7  ;;  %v481_v3 = vmul.f32 %v8481_v28, %v445_v60 }
  0x7d   : > { %v4008_v61 = vsel %vm8491_vm5, %v4003_v21, %v4007_v51  ;;  %v518_v9 = vmul.f32 %v8762_v0, %v480_v63  ;;  %v555_v11 = vadd.f32 %v8773_v10, %v517_v41  ;;  %v7327_v55 = vunpack.c.l.bf16 %v7373_v45 }
  0x7e   : > { %v7010_v5 = vcombine.low %v3998_v30, %v4008_v61  ;;  %v482_v12 = vmul.f32 %v8481_v28, %v446_v1  ;;  %v8777_v13 = vld [vmem:[#allocation2 + $0x30] sm:$0xf]  ;;  %v770_v14 = vor.u32 %v768_v42, %v767_v2  ;;  %v771_v43 = vrot.slane %v767_v2, 4 }
  0x7f   : > { %v778_v15 = vor.u32 %v776_v62, %v775_v31  ;;  %v780_v16 = vrot.slane %v775_v31, 4  ;;  %v8780_v17 = vld [vmem:[#allocation2 + $0x34] sm:$0xf]  ;;  %v8782_v18 = vld [vmem:[#allocation2 + $0x38] sm:$0x1]  ;;  %v1263_v22 = vshrl.u32 %v8777_v13, 16  ;;  %v556_v24 = vadd.f32 %v8773_v10, %v518_v9 }
  0x80   : > { %7753 = vmatmul.mubr.msk.bf16.gmra.mrb[4].mxu1 %vm1399_vm4, %v7010_v5  ;;  %v1266_v23 = vshll.u32 %v8777_v13, 16  ;;  %v519_v25 = vmul.f32 %v8762_v0, %v481_v3  ;;  %v1272_v26 = vshll.u32 %v8780_v17, 16  ;;  %v1276_v27 = vshrl.u32 %v8780_v17, 16  ;;  %v1100_v3 = vld [vmem:[#allocation2 + $0x90] sm:$0xf] }
  0x81   : > { %v1282_v34 = vshll.u32 %v8782_v18, 16  ;;  %v779_v35 = vsel %vm8549_vm10, %v771_v43, %v778_v15  ;;  %v1265_v37 = vrot.slane %v1263_v22, 4  ;;  %v1052_v39 = vsel %vm8555_vm11, %v770_v14, %v1051_v6 }
  0x82   : > { %v1268_v38 = vrot.slane %v1266_v23, 5  ;;  %1054 = vst.msk [vmem:[#allocation2 + $0x40] sm:$0xf] %vm294_vm0, %v779_v35  ;;  %v1056_v44 = vsel %vm8543_vm9, %v780_v16, %v1055_v8  ;;  %v1274_v53 = vrot.slane %v1272_v26, 5  ;;  %v1278_v46 = vrot.slane %v1276_v27, 4 }
  0x83   : > { %v1284_v49 = vrot.slane %v1282_v34, 5  ;;  %1053 = vst [vmem:[#allocation2 + $0x3c] sm:$0xf] %v1052_v39  ;;  %1057 = vst [vmem:[#allocation2 + $0x44] sm:$0x1] %v1056_v44  ;;  %v587_v50 = vmax.f32 %v555_v11, 0.0  ;;  %v520_v52 = vmul.f32 %v8762_v0, %v482_v12  ;;  %v557_v54 = vadd.f32 %v8773_v10, %v519_v25 }
  0x84   : > { %v1269_v29 = vor.u32 %v1268_v38, %v1265_v37  ;;  %v588_v51 = vmax.f32 %v556_v24, 0.0  ;;  %v1279_v56 = vor.u32 %v1278_v46, %v1274_v53  ;;  %v7328_v57 = vunpack.c.h.bf16 %v7373_v45  ;;  %v1104_v24 = vld [vmem:[#allocation2 + $0x98] sm:$0x1] }
  0x85   : > { %v7263_v48 = vpack.c.bf16 %v587_v50, %v587_v50  ;;  %v558_v59 = vadd.f32 %v8773_v10, %v520_v52  ;;  %v589_v60 = vmax.f32 %v557_v54, 0.0  ;;  %v431_v7 = vsub.f32 %v7327_v55, %v8478_v20  ;;  %v7374_v52 = vld [vmem:[%s8475_s16 + $0x30] sm:$0xff]  }
  0x86   : > { %v1270_v30 = vrot.slane %v1269_v29, 4  ;;  %v7264_v58 = vpack.c.bf16 %v588_v51, %v588_v51  ;;  %v1280_v21 = vrot.slane %v1279_v56, 4  ;;  %v432_v6 = vsub.f32 %v7328_v57, %v8478_v20 }
  0x87   : > { %v884_v32 = vshrl.u32 %v7263_v48, 16  ;;  %v887_v42 = vshll.u32 %v7263_v48, 16  ;;  %v590_v1 = vmax.f32 %v558_v59, 0.0  ;;  %v7265_v5 = vpack.c.bf16 %v589_v60, %v589_v60 }
  0x88   : > { %v1275_v62 = vsel %vm8491_vm5, %v1270_v30, %v1274_v53  ;;  %v892_v63 = vshrl.u32 %v7264_v58, 16  ;;  %v895_v41 = vshll.u32 %v7264_v58, 16  ;;  %v1285_v61 = vsel %vm8491_vm5, %v1280_v21, %v1284_v49  ;;  %v1107_v58 = vld [vmem:[#allocation2 + $0x9c] sm:$0xf] }
  0x89   : > { %v8807_v2 = vld [vmem:[#allocation2 + $0x40] sm:$0xf]  ;;  %v886_v31 = vrot.slane %v884_v32, 7  ;;  %v6777_v8 = vcombine.low %v1275_v62, %v1285_v61  ;;  %v7266_v43 = vpack.c.bf16 %v590_v1, %v590_v1  ;;  %v901_v46 = vshrl.u32 %v7265_v5, 16  ;;  %v1111_v62 = vld [vmem:[#allocation2 + $0xa4] sm:$0x1] }
  0x8a   : > { %v8810_v9 = vld [vmem:[#allocation2 + $0x3c] sm:$0xf]  ;;  %v8812_v11 = vld [vmem:[#allocation2 + $0x44] sm:$0x1]  ;;  %v1296_v12 = vshll.u32 %v8807_v2, 16  ;;  %v1300_v14 = vshrl.u32 %v8807_v2, 16  ;;  %v467_v59 = vmul.f32 %v8481_v28, %v431_v7  ;;  %v468_v60 = vmul.f32 %v8481_v28, %v432_v6 }
  0x8b   : > { %v1287_v15 = vshrl.u32 %v8810_v9, 16  ;;  %v1290_v16 = vshll.u32 %v8810_v9, 16  ;;  %v1306_v22 = vshll.u32 %v8812_v11, 16  ;;  %v889_v23 = vor.u32 %v887_v42, %v886_v31  ;;  %7576 = vmatprep.mubr.msk.bf16.mxu0 %vm1399_vm4, %v6777_v8  ;;  %v8839_v8 = vld [vmem:[%s8475_s16 + $0x68] sm:$0xff]  }
  0x8c   : > { %v1298_v25 = vrot.slane %v1296_v12, 5  ;;  %v1302_v26 = vrot.slane %v1300_v14, 4  ;;  %v890_v27 = vrot.slane %v886_v31, 4  ;;  %v894_v34 = vrot.slane %v892_v63, 7 }
  0x8d   : > { %v1289_v35 = vrot.slane %v1287_v15, 4  ;;  %v1292_v37 = vrot.slane %v1290_v16, 5  ;;  %v1308_v38 = vrot.slane %v1306_v22, 5  ;;  %v1101_v39 = vsel %vm8555_vm11, %v889_v23, %v1100_v3  ;;  %v8850_v22 = vld [vmem:[%s8475_s16 + $0x70] sm:$0xff]  }
  0x8e   : > { %v1303_v44 = vor.u32 %v1302_v26, %v1298_v25  ;;  %v897_v45 = vor.u32 %v895_v41, %v894_v34  ;;  %v899_v53 = vrot.slane %v894_v34, 4  ;;  %1102 = vst [vmem:[#allocation2 + $0x90] sm:$0xf] %v1101_v39  ;;  %v904_v50 = vshll.u32 %v7265_v5, 16 }
  0x8f   : > { %v1293_v49 = vor.u32 %v1292_v37, %v1289_v35  ;;  %v909_v29 = vshrl.u32 %v7266_v43, 16  ;;  %v912_v51 = vshll.u32 %v7266_v43, 16  ;;  %v903_v55 = vrot.slane %v901_v46, 7 }
  0x90   : > { %v1304_v54 = vrot.slane %v1303_v44, 4  ;;  %v898_v56 = vsel %vm8549_vm10, %v890_v27, %v897_v45  ;;  %v1105_v48 = vsel %vm8543_vm9, %v899_v53, %v1104_v24  ;;  %v7331_v63 = vunpack.c.l.bf16 %v7374_v52 }
  0x91   : > { %v1294_v57 = vrot.slane %v1293_v49, 4  ;;  %1103 = vst.msk [vmem:[#allocation2 + $0x94] sm:$0xf] %vm294_vm0, %v898_v56  ;;  %1106 = vst [vmem:[#allocation2 + $0x98] sm:$0x1] %v1105_v48  ;;  %v911_v30 = vrot.slane %v909_v29, 7  ;;  %v906_v32 = vor.u32 %v904_v50, %v903_v55  ;;  %v505_v31 = vmul.f32 %v8762_v0, %v467_v59 }
  0x92   : > { %v1309_v21 = vsel %vm8491_vm5, %v1304_v54, %v1308_v38  ;;  %v907_v42 = vrot.slane %v903_v55, 4  ;;  %v506_v5 = vmul.f32 %v8762_v0, %v468_v60  ;;  %v7332_v6 = vunpack.c.h.bf16 %v7374_v52 }
  0x93   : > { %v1299_v41 = vsel %vm8491_vm5, %v1294_v57, %v1298_v25  ;;  %v914_v1 = vor.u32 %v912_v51, %v911_v30  ;;  %v916_v61 = vrot.slane %v911_v30, 4  ;;  %v1108_v7 = vsel %vm8555_vm11, %v906_v32, %v1107_v58 }
  0x94   : > { %v6778_v3 = vcombine.low %v1299_v41, %v1309_v21  ;;  %1109 = vst [vmem:[#allocation2 + $0x9c] sm:$0xf] %v1108_v7  ;;  %v543_v15 = vadd.f32 %v8773_v10, %v505_v31  ;;  %v433_v16 = vsub.f32 %v7331_v63, %v8478_v20  ;;  %v544_v25 = vadd.f32 %v8773_v10, %v506_v5 }
  0x95   : > { %v8841_v12 = vld [vmem:[#allocation2 + $0x90] sm:$0xf]  ;;  %v915_v14 = vsel %vm8549_vm10, %v907_v42, %v914_v1  ;;  %v1112_v43 = vsel %vm8543_vm9, %v916_v61, %v1111_v62  ;;  %v434_v26 = vsub.f32 %v7332_v6, %v8478_v20  ;;  %v7359_v35 = vunpack.c.l.bf16 %v8839_v8 }
  0x96   : > { %7577 = vmatmul.mubr.msk.bf16.gmra.mrb[8].mxu0 %vm1399_vm4, %v6778_v3  ;;  %v4010_v23 = vshrl.u32 %v8841_v12, 16  ;;  %v4013_v24 = vshll.u32 %v8841_v12, 16  ;;  %1110 = vst.msk [vmem:[#allocation2 + $0xa0] sm:$0xf] %vm294_vm0, %v915_v14  ;;  %1113 = vst [vmem:[#allocation2 + $0xa4] sm:$0x1] %v1112_v43  ;;  %v469_v34 = vmul.f32 %v8481_v28, %v433_v16  ;;  %v7360_v37 = vunpack.c.h.bf16 %v8839_v8 }
  0x97   : > { %v575_v27 = vmax.f32 %v543_v15, 0.0  ;;  %v470_v53 = vmul.f32 %v8481_v28, %v434_v26  ;;  %v7363_v46 = vunpack.c.l.bf16 %v8850_v22  ;;  %v576_v51 = vmax.f32 %v544_v25, 0.0  ;;  %v1058_v14 = vld [vmem:[#allocation2 + $0x48] sm:$0xf] }
  0x98   : > { %v8861_v38 = vld [vmem:[#allocation2 + $0x94] sm:$0xf]  ;;  %v8863_v39 = vld [vmem:[#allocation2 + $0x98] sm:$0x1]  ;;  %v4012_v44 = vrot.slane %v4010_v23, 4  ;;  %v4015_v45 = vrot.slane %v4013_v24, 5  ;;  %v507_v56 = vmul.f32 %v8762_v0, %v469_v34 }
  0x99   : > { %v4019_v49 = vshll.u32 %v8861_v38, 16  ;;  %v4023_v50 = vshrl.u32 %v8861_v38, 16  ;;  %v4029_v29 = vshll.u32 %v8863_v39, 16  ;;  %v7251_v54 = vpack.c.bf16 %v575_v27, %v575_v27 }
  0x9a   : > { %v4016_v52 = vor.u32 %v4015_v45, %v4012_v44  ;;  %v508_v48 = vmul.f32 %v8762_v0, %v470_v53  ;;  %v7252_v58 = vpack.c.bf16 %v576_v51, %v576_v51  ;;  %v545_v42 = vadd.f32 %v8773_v10, %v507_v56 }
  0x9b   : > { %v4021_v55 = vrot.slane %v4019_v49, 5  ;;  %v4025_v57 = vrot.slane %v4023_v50, 4  ;;  %v4031_v30 = vrot.slane %v4029_v29, 5  ;;  %v8872_v60 = vld [vmem:[#allocation2 + $0x9c] sm:$0xf]  ;;  %v782_v21 = vshrl.u32 %v7251_v54, 16 }
  0x9c   : > { %v4017_v59 = vrot.slane %v4016_v52, 4  ;;  %v785_v32 = vshll.u32 %v7251_v54, 16  ;;  %v4034_v1 = vshrl.u32 %v8872_v60, 16  ;;  %v4037_v61 = vshll.u32 %v8872_v60, 16  ;;  %v1062_v52 = vld [vmem:[#allocation2 + $0x50] sm:$0x1] }
  0x9d   : > { %v4026_v62 = vor.u32 %v4025_v57, %v4021_v55  ;;  %v8875_v63 = vld [vmem:[#allocation2 + $0xa0] sm:$0xf]  ;;  %v8877_v41 = vld [vmem:[#allocation2 + $0xa4] sm:$0x1]  ;;  %v546_v31 = vadd.f32 %v8773_v10, %v508_v48  ;;  %v784_v23 = vrot.slane %v782_v21, 7  ;;  %v790_v27 = vshrl.u32 %v7252_v58, 16 }
  0x9e   : > { %v4022_v3 = vsel %vm8491_vm5, %v4017_v59, %v4021_v55  ;;  %v4043_v7 = vshll.u32 %v8875_v63, 16  ;;  %v4047_v5 = vshrl.u32 %v8875_v63, 16  ;;  %v4053_v6 = vshll.u32 %v8877_v41, 16 }
  0x9f   : > { %v4027_v43 = vrot.slane %v4026_v62, 4  ;;  %v4036_v15 = vrot.slane %v4034_v1, 4  ;;  %v4039_v16 = vrot.slane %v4037_v61, 5  ;;  %v787_v45 = vor.u32 %v785_v32, %v784_v23 }
  0xa0   : > { %v4045_v24 = vrot.slane %v4043_v7, 5  ;;  %v4049_v25 = vrot.slane %v4047_v5, 4  ;;  %v4055_v26 = vrot.slane %v4053_v6, 5  ;;  %v788_v53 = vrot.slane %v784_v23, 4 }
  0xa1   : > { %v4032_v34 = vsel %vm8491_vm5, %v4027_v43, %v4031_v30  ;;  %v4040_v44 = vor.u32 %v4039_v16, %v4036_v15  ;;  %v792_v29 = vrot.slane %v790_v27, 7  ;;  %v793_v51 = vshll.u32 %v7252_v58, 16 }
  0xa2   : > { %v7011_v49 = vcombine.low %v4022_v3, %v4032_v34  ;;  %v4050_v50 = vor.u32 %v4049_v25, %v4045_v24  ;;  %v1059_v56 = vsel %vm8555_vm11, %v787_v45, %v1058_v14  ;;  %v577_v48 = vmax.f32 %v545_v42, 0.0  ;;  %v1069_v25 = vld [vmem:[#allocation2 + $0x5c] sm:$0x1] }
  0xa3   : > { %v4041_v54 = vrot.slane %v4040_v44, 4  ;;  %v578_v55 = vmax.f32 %v546_v31, 0.0  ;;  %v795_v59 = vor.u32 %v793_v51, %v792_v29  ;;  %v797_v21 = vrot.slane %v792_v29, 4  ;;  %1060 = vst [vmem:[#allocation2 + $0x48] sm:$0xf] %v1059_v56 }
  0xa4   : > { %7756 = vmatprep.mubr.msk.bf16.mxu1 %vm1399_vm4, %v7011_v49  ;;  %v4051_v57 = vrot.slane %v4050_v50, 4  ;;  %v447_v30 = vsub.f32 %v7359_v35, %v8478_v20  ;;  %v7253_v62 = vpack.c.bf16 %v577_v48, %v577_v48  ;;  %v448_v1 = vsub.f32 %v7360_v37, %v8478_v20 }
  0xa5   : > { %v4046_v32 = vsel %vm8491_vm5, %v4041_v54, %v4045_v24  ;;  %v7254_v58 = vpack.c.bf16 %v578_v55, %v578_v55  ;;  %v796_v61 = vsel %vm8549_vm10, %v788_v53, %v795_v59  ;;  %v1063_v31 = vsel %vm8543_vm9, %v797_v21, %v1062_v52  ;;  %v1065_v24 = vld [vmem:[#allocation2 + $0x54] sm:$0xf] }
  0xa6   : > { %v4056_v42 = vsel %vm8491_vm5, %v4051_v57, %v4055_v26  ;;  %v483_v35 = vmul.f32 %v8481_v28, %v447_v30  ;;  %1061 = vst.msk [vmem:[#allocation2 + $0x4c] sm:$0xf] %vm294_vm0, %v796_v61  ;;  %1064 = vst [vmem:[#allocation2 + $0x50] sm:$0x1] %v1063_v31  ;;  %v799_v7 = vshrl.u32 %v7253_v62, 16  ;;  %v802_v5 = vshll.u32 %v7253_v62, 16 }
  0xa7   : > { %v7012_v3 = vcombine.low %v4046_v32, %v4056_v42  ;;  %v807_v6 = vshrl.u32 %v7254_v58, 16  ;;  %v810_v8 = vshll.u32 %v7254_v58, 16  ;;  %v484_v37 = vmul.f32 %v8481_v28, %v448_v1 }
  0xa8   : > { %v521_v14 = vmul.f32 %v8762_v0, %v483_v35  ;;  %v7364_v43 = vunpack.c.h.bf16 %v8850_v22  ;;  %v801_v15 = vrot.slane %v799_v7, 7  ;;  %v449_v23 = vsub.f32 %v7363_v46, %v8478_v20 }
  0xa9   : > { %7757 = vmatmul.mubr.msk.bf16.gmra.mrb[8].mxu1 %vm1399_vm4, %v7012_v3  ;;  %v809_v16 = vrot.slane %v807_v6, 7  ;;  %v522_v26 = vmul.f32 %v8762_v0, %v484_v37  ;;  %vm1719_vm13 = vcmask 1046532   ;;  %vm292_vm15 = vcmask 254976  }
  0xaa   : > { %v559_v27 = vadd.f32 %v8773_v10, %v521_v14  ;;  %v450_v34 = vsub.f32 %v7364_v43, %v8478_v20  ;;  %v8916_v44 = vld [vmem:[#allocation2 + $0x48] sm:$0xf]  ;;  %v804_v45 = vor.u32 %v802_v5, %v801_v15  ;;  %v805_v53 = vrot.slane %v801_v15, 4  ;;  %vm9049_vm14 = vmor %vm1718_vm12, %vm1719_vm13 }
  0xab   : > { %v812_v49 = vor.u32 %v810_v8, %v809_v16  ;;  %v814_v50 = vrot.slane %v809_v16, 4  ;;  %v1311_v29 = vshrl.u32 %v8916_v44, 16  ;;  %v1314_v51 = vshll.u32 %v8916_v44, 16 }
  0xac   : > { %v560_v22 = vadd.f32 %v8773_v10, %v522_v26  ;;  %v591_v46 = vmax.f32 %v559_v27, 0.0  ;;  %v1066_v54 = vsel %vm8555_vm11, %v804_v45, %v1065_v24  ;;  %v485_v48 = vmul.f32 %v8481_v28, %v449_v23  ;;  %v1114_v26 = vld [vmem:[#allocation2 + $0xa8] sm:$0xf] }
  0xad   : > { %v813_v52 = vsel %vm8549_vm10, %v805_v53, %v812_v49  ;;  %v1070_v56 = vsel %vm8543_vm9, %v814_v50, %v1069_v25  ;;  %v8928_v55 = vld [vmem:[#allocation2 + $0x4c] sm:$0xf]  ;;  %v8930_v57 = vld [vmem:[#allocation2 + $0x50] sm:$0x1]  ;;  %v1313_v59 = vrot.slane %v1311_v29, 4  ;;  %v1316_v21 = vrot.slane %v1314_v51, 5 }
  0xae   : > { %1067 = vst [vmem:[#allocation2 + $0x54] sm:$0xf] %v1066_v54  ;;  %1068 = vst.msk [vmem:[#allocation2 + $0x58] sm:$0xf] %vm294_vm0, %v813_v52  ;;  %v7267_v30 = vpack.c.bf16 %v591_v46, %v591_v46  ;;  %v486_v32 = vmul.f32 %v8481_v28, %v450_v34  ;;  %v1320_v62 = vshll.u32 %v8928_v55, 16  ;;  %v1324_v58 = vshrl.u32 %v8928_v55, 16 }
  0xaf   : > { %1071 = vst [vmem:[#allocation2 + $0x5c] sm:$0x1] %v1070_v56  ;;  %v1330_v1 = vshll.u32 %v8930_v57, 16  ;;  %v592_v42 = vmax.f32 %v560_v22, 0.0  ;;  %v1317_v61 = vor.u32 %v1316_v21, %v1313_v59  ;;  %v523_v35 = vmul.f32 %v8762_v0, %v485_v48  ;;  %v1118_v21 = vld [vmem:[#allocation2 + $0xb0] sm:$0x1] }
  0xb0   : > { %v918_v31 = vshrl.u32 %v7267_v30, 16  ;;  %v1322_v3 = vrot.slane %v1320_v62, 5  ;;  %v1326_v7 = vrot.slane %v1324_v58, 4  ;;  %v921_v6 = vshll.u32 %v7267_v30, 16 }
  0xb1   : > { %v7268_v5 = vpack.c.bf16 %v592_v42, %v592_v42  ;;  %v1318_v8 = vrot.slane %v1317_v61, 4  ;;  %v524_v14 = vmul.f32 %v8762_v0, %v486_v32  ;;  %v1332_v15 = vrot.slane %v1330_v1, 5 }
  0xb2   : > { %v920_v37 = vrot.slane %v918_v31, 7  ;;  %v1327_v43 = vor.u32 %v1326_v7, %v1322_v3  ;;  %v561_v27 = vadd.f32 %v8773_v10, %v523_v35 }
  0xb3   : > { %v926_v16 = vshrl.u32 %v7268_v5, 16  ;;  %v929_v23 = vshll.u32 %v7268_v5, 16  ;;  %v1323_v24 = vsel %vm8491_vm5, %v1318_v8, %v1322_v3  ;;  %v562_v0 = vadd.f32 %v8773_v10, %v524_v14 }
  0xb4   : > { %v924_v25 = vrot.slane %v920_v37, 4  ;;  %v1328_v34 = vrot.slane %v1327_v43, 4  ;;  %v923_v49 = vor.u32 %v921_v6, %v920_v37  ;;  %v593_v35 = vmax.f32 %v561_v27, 0.0  ;;  %v8277_v27 = vld [vmem:[#allocation2] sm:$0xf] }
  0xb5   : > { %v8942_v45 = vld [vmem:[#allocation2 + $0x54] sm:$0xf]  ;;  %v8944_v53 = vld [vmem:[#allocation2 + $0x58] sm:$0xf]  ;;  %v928_v50 = vrot.slane %v926_v16, 7  ;;  %v594_v3 = vmax.f32 %v562_v0, 0.0 }
  0xb6   : > { %v8947_v29 = vld [vmem:[#allocation2 + $0x5c] sm:$0x1]  ;;  %v1335_v51 = vshrl.u32 %v8942_v45, 16  ;;  %v1338_v22 = vshll.u32 %v8942_v45, 16  ;;  %v1344_v46 = vshll.u32 %v8944_v53, 16  ;;  %v1348_v52 = vshrl.u32 %v8944_v53, 16 }
  0xb7   : > { %v1333_v54 = vsel %vm8491_vm5, %v1328_v34, %v1332_v15  ;;  %v1354_v56 = vshll.u32 %v8947_v29, 16  ;;  %v931_v48 = vor.u32 %v929_v23, %v928_v50  ;;  %v933_v59 = vrot.slane %v928_v50, 4  ;;  %v8970_v34 = vld [vmem:[#allocation2 + $0x4] sm:$0xf] }
  0xb8   : > { %v6779_v30 = vcombine.low %v1323_v24, %v1333_v54  ;;  %v1337_v10 = vrot.slane %v1335_v51, 4  ;;  %v1340_v32 = vrot.slane %v1338_v22, 5  ;;  %v1346_v62 = vrot.slane %v1344_v46, 5 }
  0xb9   : > { %v1350_v58 = vrot.slane %v1348_v52, 4  ;;  %v932_v1 = vsel %vm8549_vm10, %v924_v25, %v931_v48  ;;  %v1115_v42 = vsel %vm8555_vm11, %v923_v49, %v1114_v26  ;;  %v1119_v31 = vsel %vm8543_vm9, %v933_v59, %v1118_v21  ;;  %v1121_v52 = vld [vmem:[#allocation2 + $0xb4] sm:$0xf] }
  0xba   : > { %7580 = vmatprep.mubr.msk.bf16.mxu0 %vm1399_vm4, %v6779_v30  ;;  %v1341_v61 = vor.u32 %v1340_v32, %v1337_v10  ;;  %1116 = vst [vmem:[#allocation2 + $0xa8] sm:$0xf] %v1115_v42  ;;  %1117 = vst.msk [vmem:[#allocation2 + $0xac] sm:$0xf] %vm294_vm0, %v932_v1  ;;  %v1356_v5 = vrot.slane %v1354_v56, 5  ;;  %v7269_v8 = vpack.c.bf16 %v593_v35, %v593_v35 }
  0xbb   : > { %v1351_v7 = vor.u32 %v1350_v58, %v1346_v62  ;;  %1120 = vst [vmem:[#allocation2 + $0xb0] sm:$0x1] %v1119_v31  ;;  %v7270_v37 = vpack.c.bf16 %v594_v3, %v594_v3  ;;  %v6791_v49 = vcombine.low %v8277_v27, %v8970_v34  ;;  %v1125_v58 = vld [vmem:[#allocation2 + $0xbc] sm:$0x1] }
  0xbc   : > { %v1342_v6 = vrot.slane %v1341_v61, 4  ;;  %v935_v16 = vshrl.u32 %v7269_v8, 16  ;;  %v938_v25 = vshll.u32 %v7269_v8, 16 }
  0xbd   : > { %v1352_v14 = vrot.slane %v1351_v7, 4  ;;  %v943_v23 = vshrl.u32 %v7270_v37, 16  ;;  %v946_v26 = vshll.u32 %v7270_v37, 16  ;;  %v8279_v37 = vld [vmem:[#allocation2 + $0xc] sm:$0xf] }
  0xbe   : > { %v1347_v15 = vsel %vm8491_vm5, %v1342_v6, %v1346_v62  ;;  %v937_v0 = vrot.slane %v935_v16, 7 }
  0xbf   : > { %v1357_v24 = vsel %vm8491_vm5, %v1352_v14, %v1356_v5  ;;  %v945_v51 = vrot.slane %v943_v23, 7  ;;  %v8991_v14 = vld [vmem:[#allocation2 + $0x10] sm:$0xf]  ;;  %v8281_v23 = vld [vmem:[#allocation2 + $0x18] sm:$0xf] }
  0xc0   : > { %v6780_v50 = vcombine.low %v1347_v15, %v1357_v24  ;;  %v940_v10 = vor.u32 %v938_v25, %v937_v0  ;;  %v941_v32 = vrot.slane %v937_v0, 4  ;;  %v6792_v15 = vcombine.low %v8279_v37, %v8991_v14  ;;  %v8996_v24 = vld [vmem:[#allocation2 + $0x1c] sm:$0xf] }
  0xc1   : > { %v8973_v22 = vld [vmem:[#allocation2 + $0xa8] sm:$0xf]  ;;  %v8975_v46 = vld [vmem:[#allocation2 + $0xac] sm:$0xf]  ;;  %v948_v62 = vor.u32 %v946_v26, %v945_v51  ;;  %v950_v3 = vrot.slane %v945_v51, 4  ;;  %v6793_v25 = vcombine.low %v8281_v23, %v8996_v24 }
  0xc2   : > { %7581 = vmatmul.mubr.msk.bf16.gmra.mrb[12].mxu0 %vm1399_vm4, %v6780_v50  ;;  %v8978_v54 = vld [vmem:[#allocation2 + $0xb0] sm:$0x1]  ;;  %v4058_v56 = vshrl.u32 %v8973_v22, 16  ;;  %v4061_v48 = vshll.u32 %v8973_v22, 16  ;;  %v4067_v59 = vshll.u32 %v8975_v46, 16  ;;  %v4071_v21 = vshrl.u32 %v8975_v46, 16 }
  0xc3   : > { %v4077_v30 = vshll.u32 %v8978_v54, 16  ;;  %7588 = vmatprep.mubr.msk.bf16.mxu0 %vm1399_vm4, %v6791_v49  ;;  %v949_v35 = vsel %vm8549_vm10, %v941_v32, %v948_v62  ;;  %v1122_v7 = vsel %vm8555_vm11, %v940_v10, %v1121_v52  ;;  %v1126_v16 = vsel %vm8543_vm9, %v950_v3, %v1125_v58  ;;  %v8216_v49 = vld [vmem:[%s10566_s4 + $0x28] sm:$0xff]   ;;  %v8283_v52 = vld [vmem:[%s10566_s4 + $0x20] sm:$0xff]  }
  0xc4   : > { %v4060_v1 = vrot.slane %v4058_v56, 4  ;;  %v4063_v42 = vrot.slane %v4061_v48, 5  ;;  %v4069_v61 = vrot.slane %v4067_v59, 5  ;;  %v4073_v31 = vrot.slane %v4071_v21, 4  ;;  %1123 = vst [vmem:[#allocation2 + $0xb4] sm:$0xf] %v1122_v7 }
  0xc5   : > { %v4079_v8 = vrot.slane %v4077_v30, 5  ;;  %1124 = vst.msk [vmem:[#allocation2 + $0xb8] sm:$0xf] %vm294_vm0, %v949_v35  ;;  %1127 = vst [vmem:[#allocation2 + $0xbc] sm:$0x1] %v1126_v16  ;;  %v9014_v56 = vld [vmem:[%s10566_s4 + $0x30] sm:$0xff]  }
  0xc6   : > { %v4064_v5 = vor.u32 %v4063_v42, %v4060_v1  ;;  %v4074_v6 = vor.u32 %v4073_v31, %v4069_v61  ;;  %v9021_v21 = vld [vmem:[#allocation2 + $0x28] sm:$0xf]  ;;  %v8285_v30 = vld [vmem:[#allocation2 + $0x24] sm:$0xf]  ;;  %v1723_v16 = vrot.slane %v8970_v34, 5  ;;  %v6796_v34 = vcombine.low %v8810_v9, %v8807_v2 }
  0xc7   : > { %v6794_v10 = vcombine.low %v8285_v30, %v9021_v21  ;;  %v1695_v23 = vld [vmem:[#allocation2 + $0xc] sm:$0xe]  ;;  %v6797_v9 = vcombine.low %v8916_v44, %v8928_v55  ;;  %v4444_v44 = vld [vmem:[#allocation2 + $0x9c] sm:$0xe] }
  0xc8   : > { %v4065_v26 = vrot.slane %v4064_v5, 4  ;;  %v4075_v27 = vrot.slane %v4074_v6, 4  ;;  %v1730_v6 = vrot.slane %v8991_v14, 5 }
  0xca   : > { %v4070_v50 = vsel %vm8491_vm5, %v4065_v26, %v4069_v61  ;;  %v4080_v0 = vsel %vm8491_vm5, %v4075_v27, %v4079_v8  ;;  %7589 = vmatmul.mubr.msk.bf16.vlgmr.msra.gmra.mrb[0].mxu0 %vm1399_vm4, %v6792_v15  ;;  %v6795_v61 = vcombine.low %v8777_v13, %v8780_v17  ;;  %v1694_v15 = vld [vmem:[#allocation2] sm:$0xe]  ;;  %v8287_v27 = vld [vmem:[#allocation2 + $0x14] sm:$0x1] }
  0xcb   : > { %v7013_v51 = vcombine.low %v4070_v50, %v4080_v0  ;;  %7605 = vmatpush3.bf16.msra.mxu0 %v8283_v52  ;;  %7592 = vmatprep.mubr.msk.bf16.mxu0 %vm1399_vm4, %v6793_v25  ;;  %v9017_v48 = vld [vmem:[#allocation2 + $0xb4] sm:$0xf]  ;;  %v8286_v25 = vld [vmem:[#allocation2 + $0x8] sm:$0x1]  ;;  %v8288_v0 = vld [vmem:[#allocation2 + $0x60] sm:$0xf] }
  0xcc   : > { %7606 = vmatprep.subr.bf16.mxu0 %v8216_v49  ;;  %v9019_v59 = vld [vmem:[#allocation2 + $0xb8] sm:$0xf]  ;;  %v4082_v32 = vshrl.u32 %v9017_v48, 16  ;;  %v4085_v62 = vshll.u32 %v9017_v48, 16  ;;  %v9028_v42 = vld [vmem:[#allocation2 + $0xbc] sm:$0x1] }
  0xcd   : > { %7760 = vmatprep.mubr.msk.bf16.mxu1 %vm1399_vm4, %v7013_v51  ;;  %v4091_v58 = vshll.u32 %v9019_v59, 16  ;;  %v4095_v1 = vshrl.u32 %v9019_v59, 16  ;;  %v4101_v5 = vshll.u32 %v9028_v42, 16  ;;  %v1726_v26 = vrot.slane %v8286_v25, 5  ;;  %v9038_v51 = vld [vmem:[#allocation2 + $0x64] sm:$0xf] }
  0xce   : > { %v4084_v31 = vrot.slane %v4082_v32, 4  ;;  %v4087_v35 = vrot.slane %v4085_v62, 5  ;;  %v7025_v52 = vcombine.low %v8288_v0, %v9038_v51  ;;  %v6809_v30 = vrot.slane %v1694_v15, 9  ;;  %v8292_v15 = vld [vmem:[#allocation2 + $0x78] sm:$0xf] }
  0xcf   : > { %7607 = vmatpush3.bf16.msra.mxu0 %v8216_v49  ;;  %v4093_v3 = vrot.slane %v4091_v58, 5  ;;  %v4097_v7 = vrot.slane %v4095_v1, 4  ;;  %v4103_v13 = vrot.slane %v4101_v5, 5  ;;  %v1733_v49 = vrot.slane %v8287_v27, 5  ;;  %v8290_v5 = vld [vmem:[#allocation2 + $0x6c] sm:$0xf] }
  0xd0   : > { %7624 = vmatprep.subr.bf16.mxu0 %v9014_v56  ;;  %v4088_v8 = vor.u32 %v4087_v35, %v4084_v31  ;;  %v1725_v1 = vrot.slane %v1723_v16, 4  ;;  %v9054_v31 = vld [vmem:[%s8475_s16 + $0x78] sm:$0xff]   ;;  %v1724_v25 = vsel %vm9049_vm14, %v6809_v30, %v1723_v16  ;;  %v9068_v27 = vld [vmem:[#allocation2 + $0x24] sm:$0xe]  ;;  %v7028_v30 = vcombine.low %v8731_v4, %v8740_v19  ;;  %v4446_v43 = vld [vmem:[#allocation2 + $0xb4] sm:$0xe]  ;;  %s10381_s16 = scalar_lea.vmem %s10568_s6, %s6734_s20 }
  0xd1   : > { %v4098_v37 = vor.u32 %v4097_v7, %v4093_v3  ;;  %v1696_v7 = vld [vmem:[#allocation2 + $0x18] sm:$0xe]  ;;  %v4465_v4 = vrot.slane %v9038_v51, 5  ;;  %v8298_v19 = vld [vmem:[%s10565_s3] ss:$0 sm:$0xff] }
  0xd2   : > { %7593 = vmatmul.mubr.msk.bf16.gmra.mrb[4].mxu0 %vm1399_vm4, %v6794_v10  ;;  %v4089_v50 = vrot.slane %v4088_v8, 4  ;;  %v6810_v10 = vrot.slane %v1695_v23, 9  ;;  %v9060_v8 = vld [vmem:[#allocation2 + $0x70] sm:$0xf]  ;;  %v9063_v23 = vld [vmem:[#allocation2 + $0x7c] sm:$0xf] }
  0xd3   : > { %7596 = vmatprep.mubr.msk.bf16.mxu0 %vm1399_vm4, %v6795_v61  ;;  %v4099_v14 = vrot.slane %v4098_v37, 4  ;;  %v1732_v61 = vrot.slane %v1730_v6, 4  ;;  %v7026_v37 = vcombine.low %v8290_v5, %v9060_v8  ;;  %v6811_v16 = vrot.slane %v1696_v7, 9 }
  0xd4   : > { %v4094_v32 = vsel %vm8491_vm5, %v4089_v50, %v4093_v3  ;;  %v1737_v3 = vrot.slane %v8996_v24, 5  ;;  %v7367_v24 = vunpack.c.l.bf16 %v9054_v31  ;;  %v1727_v50 = vsel %vm9049_vm14, %v1725_v1, %v1726_v26 }
  0xd5   : > { %v4104_v62 = vsel %vm8491_vm5, %v4099_v14, %v4103_v13  ;;  %v7027_v13 = vcombine.low %v8292_v15, %v9063_v23  ;;  %v9077_v14 = vsel %vm9049_vm14, %v6810_v10, %v1730_v6  ;;  %v9081_v0 = vsel %vm9049_vm14, %v1732_v61, %v1733_v49  ;;  %v1701_v61 = vld [vmem:[#allocation2 + $0x54] sm:$0xe]  ;;  %v4445_v15 = vld [vmem:[#allocation2 + $0xa8] sm:$0xe] }
  0xd6   : > { %v7014_v35 = vcombine.low %v4094_v32, %v4104_v62  ;;  %v6798_v26 = vcombine.low %v8942_v45, %v8944_v53  ;;  %v7368_v6 = vunpack.c.h.bf16 %v9054_v31  ;;  %v1739_v10 = vrot.slane %v1737_v3, 4  ;;  %v8294_v32 = vld [vmem:[#allocation2 + $0x20] sm:$0x1] }
  0xd7   : > { %v1740_v62 = vrot.slane %v8294_v32, 5  ;;  %v7048_v1 = vrot.slane %v4444_v44, 9  ;;  %v4500_v5 = vrot.slane %v8875_v63, 5  ;;  %v9098_v45 = vsel %vm9049_vm14, %v6811_v16, %v1737_v3 }
  0xd8   : > { %7761 = vmatmul.mubr.msk.bf16.gmra.mrb[12].mxu1 %vm1399_vm4, %v7014_v35  ;;  %v6821_v35 = vcombine.low %v1724_v25, %v1727_v50  ;;  %v1744_v31 = vrot.slane %v9021_v21, 5  ;;  %v451_v44 = vsub.f32 %v7367_v24, %v8478_v20  ;;  %v8217_v25 = vld [vmem:[%s10566_s4 + $0x28] sm:$0xff]   ;;  %v1765_v49 = vrot.slane %v8928_v55, 5 }
  0xd9   : > { %7768 = vmatprep.mubr.msk.bf16.mxu1 %vm1399_vm4, %v7025_v52  ;;  %v9107_v50 = vsel %vm9049_vm14, %v7048_v1, %v4500_v5  ;;  %v1768_v3 = vrot.slane %v8930_v57, 5  ;;  %v9113_v16 = vsel %vm9049_vm14, %v1739_v10, %v1740_v62  ;;  %v1772_v24 = vrot.slane %v8944_v53, 5  ;;  %v8295_v10 = vld [vmem:[%s10566_s4 + $0x20] sm:$0xff]  }
  0xda   : > { %7597 = vmatmul.mubr.msk.bf16.gmra.mrb[8].mxu0 %vm1399_vm4, %v6796_v34  ;;  %v1700_v34 = vld [vmem:[#allocation2 + $0x48] sm:$0xe]  ;;  %v1775_v7 = vrot.slane %v8947_v29, 5  ;;  %v1751_v52 = vrot.slane %v8780_v17, 5  ;;  %v1767_v57 = vrot.slane %v1765_v49, 4  ;;  %v7049_v62 = vrot.slane %v4445_v15, 9 }
  0xdb   : > { %7600 = vmatprep.mubr.msk.bf16.mxu0 %vm1399_vm4, %v6797_v9  ;;  %v4503_v9 = vrot.slane %v8877_v41, 5  ;;  %v6815_v32 = vrot.slane %v1700_v34, 9  ;;  %v4502_v41 = vrot.slane %v4500_v5, 4  ;;  %v6816_v34 = vrot.slane %v1701_v61, 9 }
  0xdc   : > { %v4507_v61 = vrot.slane %v8975_v46, 5  ;;  %v4510_v5 = vrot.slane %v8978_v54, 5 }
  0xdd   : > { %v9121_v1 = vsel %vm9049_vm14, %v4502_v41, %v4503_v9  ;;  %v9125_v55 = vsel %vm9049_vm14, %v6815_v32, %v1765_v49  ;;  %v9135_v29 = vsel %vm9049_vm14, %v6816_v34, %v1772_v24  ;;  %v9141_v49 = vld [vmem:[%s10566_s4 + $0x30] sm:$0xff]   ;;  %v7050_v9 = vrot.slane %v4446_v43, 9 }
  0xde   : > { %v7060_v53 = vcombine.low %v9107_v50, %v9121_v1  ;;  %v4514_v32 = vrot.slane %v9019_v59, 5  ;;  %v4517_v41 = vrot.slane %v9028_v42, 5  ;;  %v9162_v43 = vsel %vm9049_vm14, %v7049_v62, %v4507_v61  ;;  %v9411_v1 = vld [vmem:[#allocation2 + $0x38] sm:$0x1] }
  0xdf   : > { %v4509_v54 = vrot.slane %v4507_v61, 4  ;;  %v487_v42 = vmul.f32 %v8481_v28, %v451_v44  ;;  %v1746_v62 = vrot.slane %v1744_v31, 4 }
  0xe0   : > { %7769 = vmatmul.mubr.msk.bf16.vlgmr.msra.gmra.mrb[0].mxu1 %vm1399_vm4, %v7026_v37  ;;  %v1774_v37 = vrot.slane %v1772_v24, 4  ;;  %v8296_v24 = vld [vmem:[#allocation2 + $0x2c] sm:$0x1] }
  0xe1   : > { %7785 = vmatpush3.bf16.msra.mxu1 %v8295_v10  ;;  %7772 = vmatprep.mubr.msk.bf16.mxu1 %vm1399_vm4, %v7027_v13  ;;  %v9145_v13 = vsel %vm9049_vm14, %v1767_v57, %v1768_v3  ;;  %v1698_v3 = vld [vmem:[#allocation2 + $0x30] sm:$0xe]  ;;  %v1747_v57 = vrot.slane %v8296_v24, 5  ;;  %v4516_v10 = vrot.slane %v4514_v32, 4 }
  0xe2   : > { %7786 = vmatprep.subr.bf16.mxu1 %v8217_v25  ;;  %7601 = vmatmul.mubr.msk.bf16.gmra.mrb[12].mxu0 %vm1399_vm4, %v6798_v26  ;;  %v6827_v15 = vcombine.low %v9125_v55, %v9145_v13  ;;  %v9154_v26 = vsel %vm9049_vm14, %v1774_v37, %v1775_v7  ;;  %v9167_v7 = vsel %vm9049_vm14, %v7050_v9, %v4514_v32  ;;  %v8221_v9 = vld [vmem:[%s10566_s4 + $0x38] sm:$0xff]  }
  0xe3   : > { %7608 = vmatprep.mubr.msk.bf16.mxu0 %vm1399_vm4, %v6821_v35  ;;  %v6828_v34 = vcombine.low %v9135_v29, %v9154_v26  ;;  %v452_v35 = vsub.f32 %v7368_v6, %v8478_v20  ;;  %v6823_v37 = vcombine.low %v9098_v45, %v9113_v16  ;;  %v9177_v20 = vsel %vm9049_vm14, %v4509_v54, %v4510_v5  ;;  %v8297_v45 = vld [vmem:[%s10564_s2] ss:$0 sm:$0xff]  ;;  %v4439_v54 = vld [vmem:[#allocation2 + $0x60] sm:$0xe] }
  0xe4   : > { %v7061_v61 = vcombine.low %v9162_v43, %v9177_v20  ;;  %v9184_v44 = vsel %vm9049_vm14, %v4516_v10, %v4517_v41  ;;  %v525_v16 = vmul.f32 %v8297_v45, %v487_v42  ;;  %v1754_v5 = vrot.slane %v8782_v18, 5  ;;  %v1699_v10 = vld [vmem:[#allocation2 + $0x3c] sm:$0xe]  ;;  %v8299_v42 = vld [vmem:[#allocation2 + $0x68] sm:$0x1] }
  0xe5   : > { %7787 = vmatpush3.bf16.msra.mxu1 %v8217_v25  ;;  %v488_v6 = vmul.f32 %v8481_v28, %v452_v35  ;;  %v6813_v25 = vrot.slane %v1698_v3, 9  ;;  %v1753_v28 = vrot.slane %v1751_v52, 4  ;;  %v7062_v32 = vcombine.low %v9167_v7, %v9184_v44 }
  0xe6   : > { %7804 = vmatprep.subr.bf16.mxu1 %v9141_v49  ;;  %v10596_v3 = vcombine.low %v8841_v12, %v8861_v38  ;;  %v563_v18 = vadd.f32 %v8298_v19, %v525_v16  ;;  %v10598_v12 = vrot.slane %v9068_v27, 9  ;;  %v1748_v24 = vsel %vm9049_vm14, %v1746_v62, %v1747_v57  ;;  %v9233_v27 = vld [vmem:[%s10566_s4 + $0x40] sm:$0xff]  }
  0xe7   : > { %v526_v41 = vmul.f32 %v8297_v45, %v488_v6  ;;  %v4468_v6 = vrot.slane %v8299_v42, 5  ;;  %v1755_v21 = vsel %vm9049_vm14, %v1753_v28, %v1754_v5  ;;  %v7043_v57 = vrot.slane %v4439_v54, 9 }
  0xe8   : > { %7773 = vmatmul.mubr.msk.bf16.gmra.mrb[4].mxu1 %vm1399_vm4, %v7028_v30  ;;  %v10597_v30 = vcombine.low %v9077_v14, %v9081_v0  ;;  %v1745_v51 = vsel %vm9049_vm14, %v10598_v12, %v1744_v31  ;;  %v1758_v14 = vrot.slane %v8807_v2, 5  ;;  %v595_v0 = vmax.f32 %v563_v18, 0.0  ;;  %v8300_v18 = vld [vmem:[#allocation2 + $0x74] sm:$0x1]  ;;  %v1128_v12 = vld [vmem:[#allocation2 + $0xc0] sm:$0xf] }
  0xe9   : > { %7776 = vmatprep.mubr.msk.bf16.mxu1 %vm1399_vm4, %v10596_v3  ;;  %v564_v35 = vadd.f32 %v8298_v19, %v526_v41  ;;  %v7031_v2 = vcombine.low %v8973_v22, %v8975_v46  ;;  %v6824_v17 = vcombine.low %v1745_v51, %v1748_v24  ;;  %v6814_v45 = vrot.slane %v1699_v10, 9 }
  0xea   : > { %7609 = vmatmul.mubr.msk.bf16.vlgmr.msra.gmra.mrb[0].mxu0 %vm1399_vm4, %v10597_v30  ;;  %v7271_v62 = vpack.c.bf16 %v595_v0, %v595_v0  ;;  %v1760_v28 = vrot.slane %v1758_v14, 4  ;;  %v4472_v3 = vrot.slane %v9060_v8, 5  ;;  %v10599_v19 = vcombine.low %v8872_v60, %v8875_v63  ;;  %v4441_v60 = vld [vmem:[#allocation2 + $0x78] sm:$0xe] }
  0xeb   : > { %7625 = vmatpush3.bf16.msra.mxu0 %v9014_v56  ;;  %7612 = vmatprep.mubr.msk.bf16.mxu0 %vm1399_vm4, %v6823_v37  ;;  %v1752_v56 = vsel %vm9049_vm14, %v6813_v25, %v1751_v52  ;;  %v596_v31 = vmax.f32 %v564_v35, 0.0  ;;  %v4467_v37 = vrot.slane %v4465_v4, 4  ;;  %v1761_v52 = vrot.slane %v8812_v11, 5  ;;  %v4440_v11 = vld [vmem:[#allocation2 + $0x6c] sm:$0xe] }
  0xec   : > { %7626 = vmatprep.subr.bf16.mxu0 %v8221_v9  ;;  %v6825_v16 = vcombine.low %v1752_v56, %v1755_v21  ;;  %v952_v5 = vshrl.u32 %v7271_v62, 16  ;;  %v955_v41 = vshll.u32 %v7271_v62, 16  ;;  %v4475_v30 = vrot.slane %v8300_v18, 5  ;;  %v8302_v62 = vld [vmem:[#allocation2 + $0x80] sm:$0x1] }
  0xed   : > { %v7272_v25 = vpack.c.bf16 %v596_v31, %v596_v31  ;;  %v4469_v8 = vsel %vm9049_vm14, %v4467_v37, %v4468_v6  ;;  %v4479_v63 = vrot.slane %v9063_v23, 5  ;;  %v1759_v51 = vsel %vm9049_vm14, %v6814_v45, %v1758_v14  ;;  %v4442_v31 = vld [vmem:[#allocation2 + $0x84] sm:$0xe]  ;;  %v4443_v18 = vld [vmem:[#allocation2 + $0x90] sm:$0xe] }
  0xee   : > { %v954_v54 = vrot.slane %v952_v5, 7  ;;  %v1762_v24 = vsel %vm9049_vm14, %v1760_v28, %v1761_v52  ;;  %v7032_v0 = vcombine.low %v9017_v48, %v9019_v59  ;;  %v7044_v42 = vrot.slane %v4440_v11, 9  ;;  %v2165_v48 = vld [vmem:[#allocation2 + $0xc] sm:$0xf]  ;;  %v2168_v28 = vld [vmem:[#allocation2 + $0x18] sm:$0xf] }
  0xef   : > { %7627 = vmatpush3.bf16.msra.mxu0 %v8221_v9  ;;  %v960_v22 = vshrl.u32 %v7272_v25, 16  ;;  %v963_v46 = vshll.u32 %v7272_v25, 16  ;;  %v4466_v9 = vsel %vm9049_vm14, %v7043_v57, %v4465_v4  ;;  %v4474_v6 = vrot.slane %v4472_v3, 4 }
  0xf0   : > { %7777 = vmatmul.mubr.msk.bf16.gmra.mrb[8].mxu1 %vm1399_vm4, %v10599_v19  ;;  %7644 = vmatprep.subr.bf16.mxu0 %v9233_v27  ;;  %v957_v4 = vor.u32 %v955_v41, %v954_v54  ;;  %v958_v10 = vrot.slane %v954_v54, 4  ;;  %v7055_v56 = vcombine.low %v4466_v9, %v4469_v8  ;;  %v7045_v21 = vrot.slane %v4441_v60, 9  ;;  %v8303_v41 = vld [vmem:[#allocation2 + $0x8c] sm:$0x1] }
  0xf1   : > { %7780 = vmatprep.mubr.msk.bf16.mxu1 %vm1399_vm4, %v7031_v2  ;;  %v9251_v35 = vrot.slane %v960_v22, 7  ;;  %v8301_v2 = vld [vmem:[#allocation2 + $0x88] sm:$0xf]  ;;  %v4481_v37 = vrot.slane %v4479_v63, 4  ;;  %v6826_v45 = vcombine.low %v1759_v51, %v1762_v24  ;;  %v4473_v59 = vsel %vm9049_vm14, %v7044_v42, %v4472_v3  ;;  %v8223_v42 = vld [vmem:[#allocation2 + $0xc] sm:$0xff]  }
  0xf2   : > { %7613 = vmatmul.mubr.msk.bf16.gmra.mrb[4].mxu0 %vm1399_vm4, %v6824_v17  ;;  %v4486_v57 = vrot.slane %v8301_v2, 5  ;;  %v1129_v14 = vsel %vm8555_vm11, %v957_v4, %v1128_v12  ;;  %v4482_v17 = vrot.slane %v8302_v62, 5  ;;  %v4476_v47 = vsel %vm9049_vm14, %v4474_v6, %v4475_v30  ;;  %v9307_v62 = vld [vmem:[#allocation2 + $0x70] sm:$0xf] }
  0xf3   : > { %7616 = vmatprep.mubr.msk.bf16.mxu0 %vm1399_vm4, %v6825_v16  ;;  %v965_v23 = vor.u32 %v963_v46, %v9251_v35  ;;  %1130 = vst [vmem:[#allocation2 + $0xc0] sm:$0xf] %v1129_v14  ;;  %v7046_v25 = vrot.slane %v4442_v31, 9  ;;  %v9271_v16 = vld [vmem:[#allocation2 + $0x10] sm:$0xf]  ;;  %v4480_v40 = vsel %vm9049_vm14, %v7045_v21, %v4479_v63  ;;  %v4489_v19 = vrot.slane %v8303_v41, 5 }
  0xf4   : > { %v4488_v5 = vrot.slane %v4486_v57, 4  ;;  %v4493_v22 = vrot.slane %v8861_v38, 5  ;;  %v9277_v46 = vld [vmem:[#allocation2 + $0x1c] sm:$0xf]  ;;  %v4483_v3 = vsel %vm9049_vm14, %v4481_v37, %v4482_v17  ;;  %v967_v30 = vrot.slane %v9251_v35, 4 }
  0xf5   : > { %v966_v52 = vsel %vm8549_vm10, %v958_v10, %v965_v23  ;;  %v2190_v11 = vshrl.u32 %v2165_v48, 16  ;;  %v2193_v54 = vshll.u32 %v2165_v48, 16  ;;  %v2199_v9 = vshll.u32 %v9271_v16, 16  ;;  %v1132_v63 = vld [vmem:[#allocation2 + $0xc8] sm:$0x1]  ;;  %v8222_v35 = vld [vmem:[%s10566_s4 + $0x38] sm:$0xff]  }
  0xf6   : > { %1131 = vst.msk [vmem:[#allocation2 + $0xc4] sm:$0xf] %vm294_vm0, %v966_v52  ;;  %v2203_v38 = vshrl.u32 %v9271_v16, 16  ;;  %v2214_v8 = vshrl.u32 %v2168_v28, 16  ;;  %v2217_v60 = vshll.u32 %v2168_v28, 16  ;;  %v7056_v12 = vcombine.low %v4473_v59, %v4476_v47 }
  0xf7   : > { %v9291_v51 = vsel %vm9049_vm14, %v7046_v25, %v4486_v57  ;;  %v2223_v55 = vshll.u32 %v9277_v46, 16  ;;  %v2227_v13 = vshrl.u32 %v9277_v46, 16  ;;  %v7057_v24 = vcombine.low %v4480_v40, %v4483_v3  ;;  %v9301_v23 = vld [vmem:[#allocation2 + $0x14] sm:$0x1]  ;;  %v9318_v59 = vld [vmem:[#allocation2 + $0x20] sm:$0x1] }
  0xf8   : > { %7781 = vmatmul.mubr.msk.bf16.gmra.mrb[12].mxu1 %vm1399_vm4, %v7032_v0  ;;  %v7047_v4 = vrot.slane %v4443_v18, 9  ;;  %v4495_v10 = vrot.slane %v4493_v22, 4  ;;  %v4496_v0 = vrot.slane %v8863_v39, 5  ;;  %v4490_v6 = vsel %vm9049_vm14, %v4488_v5, %v4489_v19  ;;  %v4909_v5 = vld [vmem:[#allocation2 + $0x78] sm:$0xf] }
  0xf9   : > { %7788 = vmatprep.mubr.msk.bf16.mxu1 %vm1399_vm4, %v7055_v56  ;;  %v2192_v56 = vrot.slane %v2190_v11, 4  ;;  %v2195_v21 = vrot.slane %v2193_v54, 5  ;;  %v1133_v31 = vsel %vm8543_vm9, %v967_v30, %v1132_v63  ;;  %v9305_v2 = vrot.slane %v2199_v9, 5  ;;  %v9337_v18 = vld [vmem:[#allocation2 + $0x7c] sm:$0xf]  ;;  %v8229_v54 = vld [vmem:[#allocation2 + $0x24] sm:$0xff]  }
  0xfa   : > { %7617 = vmatmul.mubr.msk.bf16.gmra.mrb[8].mxu0 %vm1399_vm4, %v6826_v45  ;;  %v2205_v57 = vrot.slane %v2203_v38, 4  ;;  %v2216_v14 = vrot.slane %v2214_v8, 4  ;;  %v2219_v37 = vrot.slane %v2217_v60, 5  ;;  %1134 = vst [vmem:[#allocation2 + $0xc8] sm:$0x1] %v1133_v31  ;;  %v9310_v39 = vrot.slane %v2223_v55, 5 }
  0xfb   : > { %7620 = vmatprep.mubr.msk.bf16.mxu0 %vm1399_vm4, %v6827_v15  ;;  %v4906_v15 = vld [vmem:[#allocation2 + $0x6c] sm:$0xf]  ;;  %v2229_v17 = vrot.slane %v2227_v13, 4  ;;  %v4494_v33 = vsel %vm9049_vm14, %v7047_v4, %v4493_v22  ;;  %v4497_v48 = vsel %vm9049_vm14, %v4495_v10, %v4496_v0  ;;  %v2196_v47 = vor.u32 %v2195_v21, %v2192_v56  ;;  %v8224_v11 = vld [vmem:[#allocation2 + $0x18] sm:$0xff]   ;;  %v9339_v9 = vld [vmem:[#allocation2 + $0x74] sm:$0x1] }
  0xfc   : > { %v4931_v45 = vshrl.u32 %v4906_v15, 16  ;;  %v4934_v52 = vshll.u32 %v4906_v15, 16  ;;  %v2209_v25 = vshll.u32 %v9301_v23, 16  ;;  %v4940_v28 = vshll.u32 %v9307_v62, 16  ;;  %v2171_v55 = vld [vmem:[#allocation2 + $0x24] sm:$0xf] }
  0xfd   : > { %v4944_v40 = vshrl.u32 %v9307_v62, 16  ;;  %v7058_v41 = vcombine.low %v9291_v51, %v4490_v6  ;;  %v2206_v29 = vor.u32 %v2205_v57, %v9305_v2  ;;  %v2220_v26 = vor.u32 %v2219_v37, %v2216_v14  ;;  %v9346_v4 = vld [vmem:[#allocation2 + $0x28] sm:$0xf] }
  0xfe   : > { %v2233_v19 = vshll.u32 %v9318_v59, 16  ;;  %v4933_v22 = vrot.slane %v4931_v45, 4  ;;  %v4936_v3 = vrot.slane %v4934_v52, 5  ;;  %v7059_v30 = vcombine.low %v4494_v33, %v4497_v48  ;;  %v8235_v10 = vld [vmem:[%s10566_s4 + $0x48] sm:$0xff]   ;;  %v9363_v33 = vld [vmem:[#allocation2 + $0x80] sm:$0x1] }
  0xff   : > { %v4955_v38 = vshrl.u32 %v4909_v5, 16  ;;  %v4958_v8 = vshll.u32 %v4909_v5, 16  ;;  %v2197_v60 = vrot.slane %v2196_v47, 4  ;;  %v2211_v63 = vrot.slane %v2209_v25, 5  ;;  %10600 = vst [vmem:[#allocation3_spill] sm:$0xff] %v9363_v33 }
 0x100   : > { %7789 = vmatmul.mubr.msk.bf16.vlgmr.msra.gmra.mrb[0].mxu1 %vm1399_vm4, %v7056_v12  ;;  %v9342_v12 = vrot.slane %v4940_v28, 5  ;;  %v4946_v51 = vrot.slane %v4944_v40, 4  ;;  %v2207_v13 = vrot.slane %v2206_v29, 4  ;;  %v2221_v15 = vrot.slane %v2220_v26, 4  ;;  %v9381_v5 = vld [vmem:[#allocation2 + $0x2c] sm:$0x1] }
 0x101   : > { %7805 = vmatpush3.bf16.msra.mxu1 %v9141_v49  ;;  %7792 = vmatprep.mubr.msk.bf16.mxu1 %vm1399_vm4, %v7057_v24  ;;  %v9327_v49 = vld [vmem:[%s10566_s4 + $0x40] sm:$0xff]   ;;  %v4964_v24 = vshll.u32 %v9337_v18, 16  ;;  %v4937_v6 = vor.u32 %v4936_v3, %v4933_v22  ;;  %v4950_v56 = vshll.u32 %v9339_v9, 16  ;;  %v4957_v21 = vrot.slane %v4955_v38, 4  ;;  %v9385_v22 = vld [vmem:[#allocation2 + $0x34] sm:$0xf] }
 0x102   : > { %7806 = vmatprep.subr.bf16.mxu1 %v8222_v35  ;;  %7621 = vmatmul.mubr.msk.bf16.gmra.mrb[12].mxu0 %vm1399_vm4, %v6828_v34  ;;  %v2230_v34 = vor.u32 %v2229_v17, %v9310_v39  ;;  %v4960_v31 = vrot.slane %v4958_v8, 5  ;;  %v2238_v57 = vshrl.u32 %v2171_v55, 16  ;;  %v2241_v14 = vshll.u32 %v2171_v55, 16  ;;  %v8233_v38 = vld [vmem:[#allocation2 + $0x3c] sm:$0xff]  }
 0x103   : > { %7628 = vmatprep.mubr.msk.bf16.mxu0 %vm1399_vm4, %v8223_v42  ;;  %v2235_v42 = vrot.slane %v2233_v19, 5  ;;  %v4947_v37 = vor.u32 %v4946_v51, %v9342_v12  ;;  %v2247_v17 = vshll.u32 %v9346_v4, 16  ;;  %v2251_v45 = vshrl.u32 %v9346_v4, 16 }
 0x104   : > { %v2231_v0 = vrot.slane %v2230_v34, 4  ;;  %v2202_v52 = vsel %vm8491_vm5, %v2197_v60, %v9305_v2  ;;  %v9365_v48 = vrot.slane %v4964_v24, 5  ;;  %v2212_v25 = vsel %vm8491_vm5, %v2207_v13, %v2211_v63  ;;  %v9377_v2 = vld [vmem:[%s10566_s4 + $0x50] sm:$0xff]  }
 0x105   : > { %7807 = vmatpush3.bf16.msra.mxu1 %v8222_v35  ;;  %v4968_v35 = vshrl.u32 %v9337_v18, 16  ;;  %v2226_v28 = vsel %vm8491_vm5, %v2221_v15, %v9310_v39  ;;  %v9379_v40 = vrot.slane %v4950_v56, 5  ;;  %v9383_v29 = vrot.slane %v4937_v6, 4  ;;  %v8230_v39 = vld [vmem:[#allocation2 + $0x30] sm:$0xff]  }
 0x106   : > { %7824 = vmatprep.subr.bf16.mxu1 %v9327_v49  ;;  %v4961_v26 = vor.u32 %v4960_v31, %v4957_v21  ;;  %v2240_v34 = vrot.slane %v2238_v57, 4  ;;  %v2243_v19 = vrot.slane %v2241_v14, 5  ;;  %v9387_v3 = vrot.slane %v4947_v37, 4  ;;  %v2177_v57 = vld [vmem:[#allocation2 + $0x3c] sm:$0xf] }
 0x107   : > { %v4970_v47 = vrot.slane %v4968_v35, 4  ;;  %v2257_v60 = vshll.u32 %v9381_v5, 16  ;;  %v2271_v55 = vshll.u32 %v9385_v22, 16  ;;  %v2275_v13 = vshrl.u32 %v9385_v22, 16 }
 0x108   : > { %7793 = vmatmul.mubr.msk.bf16.gmra.mrb[4].mxu1 %vm1399_vm4, %v7058_v41  ;;  %v2174_v41 = vld [vmem:[#allocation2 + $0x30] sm:$0xf]  ;;  %v9405_v15 = vcombine.low %v2202_v52, %v2212_v25  ;;  %v9409_v35 = vrot.slane %v4961_v26, 4  ;;  %v2244_v50 = vor.u32 %v2243_v19, %v2240_v34  ;;  %v4953_v43 = vsel %vm8491_vm5, %v9387_v3, %v9379_v40  ;;  %v8234_v40 = vld [vmem:[#allocation2 + $0x48] sm:$0xff]   ;;  %v8239_v19 = vld [vmem:[#allocation2 + $0x54] sm:$0xff]  }
 0x109   : > { %7796 = vmatprep.mubr.msk.bf16.mxu1 %vm1399_vm4, %v7059_v30  ;;  %v4974_v30 = vshll.u32 %v9363_v33, 16  ;;  %v4971_v8 = vor.u32 %v4970_v47, %v9365_v48  ;;  %v2262_v63 = vshrl.u32 %v2174_v41, 16  ;;  %v2265_v51 = vshll.u32 %v2174_v41, 16  ;;  %v8226_v52 = vld [vmem:[#allocation2 + $0x6c] sm:$0xff]  }
 0x10a   : > { %7629 = vmatmul.mubr.msk.bf16.vlgmr.msra.gmra.mrb[0].mxu0 %vm1399_vm4, %v8224_v11  ;;  %v9390_v11 = vrot.slane %v2247_v17, 5  ;;  %v2259_v56 = vrot.slane %v2257_v60, 5  ;;  %v2277_v14 = vrot.slane %v2275_v13, 4  ;;  %v4967_v47 = vsel %vm8491_vm5, %v9409_v35, %v9365_v48  ;;  %v9462_v35 = vld [vmem:[#allocation2 + $0x94] sm:$0xf] }
 0x10b   : > { %7645 = vmatpush3.bf16.msra.mxu0 %v9233_v27  ;;  %7632 = vmatprep.mubr.msk.bf16.mxu0 %vm1399_vm4, %v8229_v54  ;;  %v2236_v27 = vsel %vm8491_vm5, %v2231_v0, %v2235_v42  ;;  %v2253_v54 = vrot.slane %v2251_v45, 4  ;;  %v9422_v20 = vrot.slane %v4974_v30, 5  ;;  %v9425_v0 = vld [vmem:[#allocation2 + $0x88] sm:$0xf]  ;;  %v4915_v42 = vld [vmem:[#allocation2 + $0x90] sm:$0xf] }
 0x10c   : > { %7646 = vmatprep.subr.bf16.mxu0 %v8235_v10  ;;  %v9407_v24 = vcombine.low %v2226_v28, %v2236_v27  ;;  %10601 = vst [vmem:[#allocation4_spill] sm:$0xff] %v9425_v0  ;;  %v4972_v6 = vrot.slane %v4971_v8, 4  ;;  %v2264_v21 = vrot.slane %v2262_v63, 4  ;;  %v2267_v31 = vrot.slane %v2265_v51, 5  ;;  %v9430_v45 = vld [vmem:[#allocation2 + $0x40] sm:$0xf] }
 0x10d   : > { %v2245_v25 = vrot.slane %v2244_v50, 4  ;;  %v4988_v28 = vshll.u32 %v9425_v0, 16  ;;  %v4992_v27 = vshrl.u32 %v9425_v0, 16  ;;  %v5003_v26 = vshrl.u32 %v4915_v42, 16  ;;  %10603 = vst [vmem:[#allocation6_spill] sm:$0xff] %v9462_v35 }
 0x10e   : > { %v5006_v34 = vshll.u32 %v4915_v42, 16  ;;  %v2289_v3 = vshll.u32 %v2177_v57, 16  ;;  %v2295_v30 = vshll.u32 %v9430_v45, 16  ;;  %v2268_v48 = vor.u32 %v2267_v31, %v2264_v21  ;;  %v8228_v21 = vld [vmem:[#allocation2 + $0x78] sm:$0xff]  }
 0x10f   : > { %7647 = vmatpush3.bf16.msra.mxu0 %v8235_v10  ;;  %v4943_v10 = vsel %vm8491_vm5, %v9383_v29, %v9342_v12  ;;  %v9428_v12 = vrot.slane %v2271_v55, 5  ;;  %v2281_v29 = vshll.u32 %v9411_v1, 16  ;;  %v4977_v63 = vsel %vm8491_vm5, %v4972_v6, %v9422_v20  ;;  %v9453_v55 = vld [vmem:[#allocation2 + $0x8c] sm:$0x1]  ;;  %v9465_v20 = vld [vmem:[#allocation2 + $0x44] sm:$0x1] }
 0x110   : > { %7797 = vmatmul.mubr.msk.bf16.gmra.mrb[8].mxu1 %vm1399_vm4, %v7060_v53  ;;  %7664 = vmatprep.subr.bf16.mxu0 %v9377_v2  ;;  %v4912_v53 = vld [vmem:[#allocation2 + $0x84] sm:$0xf]  ;;  %v2250_v51 = vsel %vm8491_vm5, %v2245_v25, %v9390_v11  ;;  %10602 = vst [vmem:[#allocation5_spill] sm:$0xff] %v9453_v55  ;;  %v9455_v7 = vrot.slane %v4988_v28, 5  ;;  %v4994_v44 = vrot.slane %v4992_v27, 4  ;;  %v5005_v50 = vrot.slane %v5003_v26, 4 }
 0x111   : > { %7800 = vmatprep.mubr.msk.bf16.mxu1 %vm1399_vm4, %v7061_v61  ;;  %v2254_v61 = vor.u32 %v2253_v54, %v9390_v11  ;;  %v4979_v37 = vshrl.u32 %v4912_v53, 16  ;;  %v4982_v17 = vshll.u32 %v4912_v53, 16  ;;  %v2299_v54 = vshrl.u32 %v9430_v45, 16 }
 0x112   : > { %7633 = vmatmul.mubr.msk.bf16.gmra.mrb[4].mxu0 %vm1399_vm4, %v8230_v39  ;;  %v2286_v39 = vshrl.u32 %v2177_v57, 16  ;;  %v9460_v13 = vrot.slane %v2281_v29, 5  ;;  %v5008_v53 = vrot.slane %v5006_v34, 5  ;;  %v9467_v42 = vrot.slane %v2295_v30, 5  ;;  %v9482_v34 = vld [vmem:[#allocation2 + $0x98] sm:$0x1] }
 0x113   : > { %7636 = vmatprep.mubr.msk.bf16.mxu0 %vm1399_vm4, %v8233_v38  ;;  %v2255_v41 = vrot.slane %v2254_v61, 4  ;;  %v2278_v38 = vor.u32 %v2277_v14, %v9428_v12  ;;  %v4981_v8 = vrot.slane %v4979_v37, 4  ;;  %v4984_v60 = vrot.slane %v4982_v17, 5  ;;  %v2180_v37 = vld [vmem:[#allocation2 + $0x48] sm:$0xf]  ;;  %10604 = vst [vmem:[#allocation7_spill] sm:$0xff] %v9482_v34 }
 0x114   : > { %v2288_v11 = vrot.slane %v2286_v39, 4  ;;  %v2291_v61 = vrot.slane %v2289_v3, 5  ;;  %v2301_v6 = vrot.slane %v2299_v54, 4  ;;  %v2269_v31 = vrot.slane %v2268_v48, 4  ;;  %v8231_v17 = vld [vmem:[#allocation2 + $0x84] sm:$0xff]  }
 0x115   : > { %v2279_v57 = vrot.slane %v2278_v38, 4  ;;  %v4985_v14 = vor.u32 %v4984_v60, %v4981_v8  ;;  %v4995_v25 = vor.u32 %v4994_v44, %v9455_v7  ;;  %v5012_v28 = vshll.u32 %v9462_v35, 16  ;;  %v9486_v3 = vld [vmem:[#allocation2 + $0x4c] sm:$0xf]  ;;  %v2183_v60 = vld [vmem:[#allocation2 + $0x54] sm:$0xf] }
 0x116   : > { %v5016_v27 = vshrl.u32 %v9462_v35, 16  ;;  %v9478_v29 = vcombine.low %v4967_v47, %v4977_v63  ;;  %v2302_v39 = vor.u32 %v2301_v6, %v9467_v42  ;;  %v2310_v30 = vshrl.u32 %v2180_v37, 16 }
 0x117   : > { %v2313_v54 = vshll.u32 %v2180_v37, 16  ;;  %v2274_v47 = vsel %vm8491_vm5, %v2269_v31, %v9428_v12  ;;  %v2284_v48 = vsel %vm8491_vm5, %v2279_v57, %v9460_v13  ;;  %v9495_v38 = vrot.slane %v4985_v14, 4  ;;  %v9512_v13 = vld [vmem:[%s10566_s4 + $0x50] sm:$0xff]  }
 0x118   : > { %7801 = vmatmul.mubr.msk.bf16.gmra.mrb[12].mxu1 %vm1399_vm4, %v7062_v32  ;;  %v2260_v32 = vsel %vm8491_vm5, %v2255_v41, %v2259_v56  ;;  %v4998_v56 = vshll.u32 %v9453_v55, 16  ;;  %v8240_v41 = vld [vmem:[#allocation2 + $0x60] sm:$0xff]   ;;  %v9501_v63 = vrot.slane %v4995_v25, 4  ;;  %v5018_v44 = vrot.slane %v5016_v27, 4  ;;  %v8232_v14 = vld [vmem:[#allocation2 + $0x90] sm:$0xff]  }
 0x119   : > { %7808 = vmatprep.mubr.msk.bf16.mxu1 %vm1399_vm4, %v8226_v52  ;;  %v9470_v52 = vcombine.low %v4943_v10, %v4953_v43  ;;  %v9480_v26 = vcombine.low %v2250_v51, %v2260_v32  ;;  %v2305_v10 = vshll.u32 %v9465_v20, 16  ;;  %v2292_v43 = vor.u32 %v2291_v61, %v2288_v11  ;;  %v9506_v32 = vld [vmem:[#allocation2 + $0x58] sm:$0xf] }
 0x11a   : > { %7637 = vmatmul.mubr.msk.bf16.gmra.mrb[8].mxu0 %vm1399_vm4, %v8234_v40  ;;  %v8237_v40 = vld [vmem:[%s10566_s4 + $0x48] sm:$0xff]   ;;  %v9497_v8 = vrot.slane %v4998_v56, 5  ;;  %v9503_v51 = vrot.slane %v5012_v28, 5  ;;  %v5022_v12 = vshll.u32 %v9482_v34, 16  ;;  %10605 = vst [vmem:[#allocation8_spill] sm:$0xff] %v9506_v32  ;;  %v2323_v11 = vshrl.u32 %v9486_v3, 16 }
 0x11b   : > { %7640 = vmatprep.mubr.msk.bf16.mxu0 %vm1399_vm4, %v8239_v19  ;;  %v5009_v19 = vor.u32 %v5008_v53, %v5005_v50  ;;  %v2307_v50 = vrot.slane %v2305_v10, 5  ;;  %v2319_v53 = vshll.u32 %v9486_v3, 16  ;;  %v2293_v61 = vrot.slane %v2292_v43, 4  ;;  %v8236_v28 = vld [vmem:[#allocation2 + $0x9c] sm:$0xff]   ;;  %v9558_v34 = vld [vmem:[#allocation2 + $0x64] sm:$0xf] }
 0x11c   : > { %v2303_v6 = vrot.slane %v2302_v39, 4  ;;  %v2312_v31 = vrot.slane %v2310_v30, 4  ;;  %v2315_v57 = vrot.slane %v2313_v54, 5  ;;  %v2334_v56 = vshrl.u32 %v2183_v60, 16  ;;  %v4918_v10 = vld [vmem:[#allocation2 + $0x9c] sm:$0xf] }
 0x11d   : > { %v2337_v37 = vshll.u32 %v2183_v60, 16  ;;  %v2347_v25 = vshrl.u32 %v9506_v32, 16  ;;  %v9524_v27 = vcombine.low %v2274_v47, %v2284_v48  ;;  %v5019_v43 = vor.u32 %v5018_v44, %v9503_v51  ;;  %v9541_v54 = vld [vmem:[#allocation2 + $0xa0] sm:$0xf]  ;;  %10608 = vst [vmem:[#allocation11_spill] sm:$0xff] %v9558_v34 }
 0x11e   : > { %v2325_v39 = vrot.slane %v2323_v11, 4  ;;  %10607 = vst [vmem:[#allocation10_spill] sm:$0xff] %v9541_v54  ;;  %v2298_v48 = vsel %vm8491_vm5, %v2293_v61, %v9467_v42  ;;  %v2308_v60 = vsel %vm8491_vm5, %v2303_v6, %v2307_v50  ;;  %v2316_v44 = vor.u32 %v2315_v57, %v2312_v31  ;;  %v9563_v31 = vld [vmem:[#allocation2 + $0x5c] sm:$0x1] }
 0x11f   : > { %v2336_v11 = vrot.slane %v2334_v56, 4  ;;  %v2349_v47 = vrot.slane %v2347_v25, 4  ;;  %v5027_v42 = vshrl.u32 %v4918_v10, 16  ;;  %v5030_v61 = vshll.u32 %v4918_v10, 16  ;;  %10609 = vst [vmem:[#allocation12_spill] sm:$0xff] %v9563_v31 }
 0x120   : > { %7809 = vmatmul.mubr.msk.bf16.vlgmr.msra.gmra.mrb[0].mxu1 %vm1399_vm4, %v8228_v21  ;;  %v9520_v21 = vld [vmem:[#allocation2 + $0x50] sm:$0x1]  ;;  %v5036_v50 = vshll.u32 %v9541_v54, 16  ;;  %v5040_v6 = vshrl.u32 %v9541_v54, 16  ;;  %v5020_v57 = vrot.slane %v5019_v43, 4  ;;  %v2367_v54 = vshll.u32 %v9558_v34, 16 }
 0x121   : > { %7825 = vmatpush3.bf16.msra.mxu1 %v9327_v49  ;;  %7812 = vmatprep.mubr.msk.bf16.mxu1 %vm1399_vm4, %v8231_v17  ;;  %v9514_v49 = vrot.slane %v5009_v19, 4  ;;  %10606 = vst [vmem:[#allocation9_spill] sm:$0xff] %v9520_v21  ;;  %v2343_v17 = vshll.u32 %v9506_v32, 16  ;;  %v9534_v19 = vrot.slane %v5022_v12, 5  ;;  %v2329_v30 = vshll.u32 %v9520_v21, 16  ;;  %v8245_v12 = vld [vmem:[%s10566_s4 + $0x58] sm:$0xff]  }
 0x122   : > { %7826 = vmatprep.subr.bf16.mxu1 %v8237_v40  ;;  %7641 = vmatmul.mubr.msk.bf16.gmra.mrb[12].mxu0 %vm1399_vm4, %v8240_v41  ;;  %v4921_v25 = vld [vmem:[#allocation2 + $0xa8] sm:$0xf]  ;;  %v2371_v55 = vshrl.u32 %v9558_v34, 16  ;;  %v2317_v43 = vrot.slane %v2316_v44, 4  ;;  %v9582_v35 = vrot.slane %v5036_v50, 5  ;;  %v5042_v21 = vrot.slane %v5040_v6, 4 }
 0x123   : > { %7648 = vmatprep.mubr.msk.bf16.mxu0 %vm1399_vm4, %v9405_v15  ;;  %v2339_v15 = vrot.slane %v2337_v37, 5  ;;  %v9556_v41 = vrot.slane %v2343_v17, 5  ;;  %v2331_v37 = vrot.slane %v2329_v30, 5  ;;  %v9568_v17 = vld [vmem:[#allocation2 + $0xa4] sm:$0x1]  ;;  %v2353_v30 = vshll.u32 %v9563_v31, 16 }
 0x124   : > { %v5046_v44 = vshll.u32 %v9568_v17, 16  ;;  %v5051_v0 = vshrl.u32 %v4921_v25, 16  ;;  %v9587_v33 = vrot.slane %v2367_v54, 5  ;;  %v2373_v32 = vrot.slane %v2371_v55, 4 }
 0x125   : > { %7827 = vmatpush3.bf16.msra.mxu1 %v8237_v40  ;;  %v9538_v40 = vrot.slane %v2319_v53, 5  ;;  %v2186_v53 = vld [vmem:[#allocation2 + $0x60] sm:$0xf]  ;;  %v2355_v6 = vrot.slane %v2353_v30, 5  ;;  %v10610_v54 = vsel %vm8491_vm5, %v9501_v63, %v9497_v8  ;;  %v10611_v55 = vsel %vm8491_vm5, %v9495_v38, %v9455_v7  ;;  %v9643_v30 = vld [vmem:[#allocation2 + $0xb0] sm:$0x1] }
 0x126   : > { %7844 = vmatprep.subr.bf16.mxu1 %v9512_v13  ;;  %v2361_v10 = vshll.u32 %v2186_v53, 16  ;;  %v5053_v63 = vrot.slane %v5051_v0, 4  ;;  %v10612_v38 = vsel %vm8491_vm5, %v9514_v49, %v9503_v51  ;;  %v9635_v49 = vld [vmem:[#allocation2 + $0xb8] sm:$0xf] }
 0x127   : > { %v2326_v56 = vor.u32 %v2325_v39, %v9538_v40  ;;  %v2350_v39 = vor.u32 %v2349_v47, %v9556_v41  ;;  %v9585_v47 = vld [vmem:[#allocation2 + $0x68] sm:$0x1] }
 0x128   : > { %7813 = vmatmul.mubr.msk.bf16.gmra.mrb[4].mxu1 %vm1399_vm4, %v8232_v14  ;;  %v6869_v14 = vcombine.low %v2298_v48, %v2308_v60  ;;  %v2340_v48 = vor.u32 %v2339_v15, %v2336_v11  ;;  %v5029_v60 = vrot.slane %v5027_v42, 4  ;;  %v5054_v15 = vshll.u32 %v4921_v25, 16  ;;  %v9611_v25 = vld [vmem:[#allocation2 + $0xac] sm:$0xf] }
 0x129   : > { %7816 = vmatprep.mubr.msk.bf16.mxu1 %vm1399_vm4, %v8236_v28  ;;  %v2358_v28 = vshrl.u32 %v2186_v53, 16  ;;  %v5032_v53 = vrot.slane %v5030_v61, 5  ;;  %v2327_v34 = vrot.slane %v2326_v56, 4  ;;  %v2363_v31 = vrot.slane %v2361_v10, 5 }
 0x12a   : > { %7649 = vmatmul.mubr.msk.bf16.vlgmr.msra.gmra.mrb[0].mxu0 %vm1399_vm4, %v9407_v24  ;;  %v8238_v24 = vld [vmem:[#allocation2 + $0xa8] sm:$0xff]   ;;  %v5025_v42 = vsel %vm8491_vm5, %v5020_v57, %v9534_v19  ;;  %v2341_v61 = vrot.slane %v2340_v48, 4  ;;  %v2351_v50 = vrot.slane %v2350_v39, 4  ;;  %v2322_v19 = vsel %vm8491_vm5, %v2317_v43, %v9538_v40 }
 0x12b   : > { %7665 = vmatpush3.bf16.msra.mxu0 %v9377_v2  ;;  %7652 = vmatprep.mubr.msk.bf16.mxu0 %vm1399_vm4, %v9480_v26  ;;  %v9580_v2 = vld [vmem:[%s10566_s4 + $0x60] sm:$0xff]   ;;  %v8241_v26 = vld [vmem:[#allocation2 + $0xb4] sm:$0xff]   ;;  %v2360_v11 = vrot.slane %v2358_v28, 4  ;;  %v5033_v57 = vor.u32 %v5032_v53, %v5029_v60  ;;  %v5043_v56 = vor.u32 %v5042_v21, %v9582_v35  ;;  %v2332_v8 = vsel %vm8491_vm5, %v2327_v34, %v2331_v37  ;;  %v2559_v39 = vld [vmem:[#allocation2 + $0xc] sm:$0xe] }
 0x12c   : > { %7666 = vmatprep.subr.bf16.mxu0 %v8245_v12  ;;  %v5056_v28 = vrot.slane %v5054_v15, 5  ;;  %v2377_v7 = vshll.u32 %v9585_v47, 16  ;;  %v9623_v40 = vcombine.low %v10612_v38, %v5025_v42  ;;  %v9626_v21 = vrot.slane %v5046_v44, 5  ;;  %v8242_v34 = vld [vmem:[#allocation2 + $0xc0] sm:$0xff]   ;;  %v9673_v38 = vld [vmem:[#allocation2 + $0xbc] sm:$0x1] }
 0x12d   : > { %v2364_v10 = vor.u32 %v2363_v31, %v2360_v11  ;;  %v5060_v0 = vshll.u32 %v9611_v25, 16  ;;  %v2346_v37 = vsel %vm8491_vm5, %v2341_v61, %v9556_v41  ;;  %v2356_v51 = vsel %vm8491_vm5, %v2351_v50, %v2355_v6 }
 0x12e   : > { %v6870_v43 = vcombine.low %v2322_v19, %v2332_v8  ;;  %v9638_v48 = vrot.slane %v5033_v57, 4  ;;  %v9640_v31 = vrot.slane %v5043_v56, 4  ;;  %v2379_v60 = vrot.slane %v2377_v7, 5  ;;  %v4927_v56 = vld [vmem:[#allocation2 + $0xc0] sm:$0xf] }
 0x12f   : > { %7667 = vmatpush3.bf16.msra.mxu0 %v8245_v12  ;;  %v9605_v12 = vcombine.low %v10611_v55, %v10610_v54  ;;  %v6871_v44 = vcombine.low %v2346_v37, %v2356_v51  ;;  %v2365_v15 = vrot.slane %v2364_v10, 4  ;;  %v5084_v42 = vshll.u32 %v9635_v49, 16 }
 0x130   : > { %7817 = vmatmul.mubr.msk.bf16.gmra.mrb[8].mxu1 %vm1399_vm4, %v8238_v24  ;;  %7684 = vmatprep.subr.bf16.mxu0 %v9580_v2  ;;  %v4924_v24 = vld [vmem:[#allocation2 + $0xb4] sm:$0xf]  ;;  %v6883_v61 = vrot.slane %v2559_v39, 9  ;;  %v2596_v6 = vrot.slane %v9301_v23, 5  ;;  %v5039_v54 = vsel %vm8491_vm5, %v9638_v48, %v9582_v35  ;;  %v9655_v55 = vrot.slane %v5060_v0, 5 }
 0x131   : > { %7820 = vmatprep.mubr.msk.bf16.mxu1 %vm1399_vm4, %v8241_v26  ;;  %v5057_v26 = vor.u32 %v5056_v28, %v5053_v63  ;;  %v5075_v41 = vshrl.u32 %v4924_v24, 16  ;;  %v5078_v53 = vshll.u32 %v4924_v24, 16  ;;  %v5070_v57 = vshll.u32 %v9643_v30, 16  ;;  %v9665_v28 = vld [vmem:[#allocation2 + $0xc4] sm:$0xf] }
 0x132   : > { %7653 = vmatmul.mubr.msk.bf16.gmra.mrb[4].mxu0 %vm1399_vm4, %v9524_v27  ;;  %v2374_v27 = vor.u32 %v2373_v32, %v9587_v33  ;;  %v5064_v32 = vshrl.u32 %v9611_v25, 16  ;;  %v5049_v23 = vsel %vm8491_vm5, %v9640_v31, %v9626_v21  ;;  %v2370_v35 = vsel %vm8491_vm5, %v2365_v15, %v9587_v33  ;;  %v2560_v0 = vld [vmem:[#allocation2 + $0x18] sm:$0xe]  ;;  %v2561_v31 = vld [vmem:[#allocation2 + $0x24] sm:$0xe] }
 0x133   : > { %7656 = vmatprep.mubr.msk.bf16.mxu0 %vm1399_vm4, %v6869_v14  ;;  %v2593_v14 = vrot.slane %v9271_v16, 5  ;;  %v5088_v16 = vshrl.u32 %v9635_v49, 16  ;;  %v9663_v8 = vrot.slane %v5057_v26, 4  ;;  %v5080_v63 = vrot.slane %v5078_v53, 5 }
 0x134   : > { %v2375_v11 = vrot.slane %v2374_v27, 4  ;;  %v5066_v19 = vrot.slane %v5064_v32, 4  ;;  %v9675_v10 = vrot.slane %v5084_v42, 5  ;;  %v2600_v21 = vrot.slane %v9277_v46, 5  ;;  %v8246_v46 = vld [vmem:[%s10566_s4 + $0x58] sm:$0xff]  }
 0x135   : > { %v2595_v50 = vrot.slane %v2593_v14, 4  ;;  %v5090_v27 = vrot.slane %v5088_v16, 4  ;;  %v2594_v24 = vsel %vm9049_vm14, %v6883_v61, %v2593_v14  ;;  %v2607_v37 = vrot.slane %v9346_v4, 5 }
 0x136   : > { %v2380_v7 = vsel %vm8491_vm5, %v2375_v11, %v2379_v60  ;;  %v5099_v33 = vshrl.u32 %v4927_v56, 16  ;;  %v5102_v51 = vshll.u32 %v4927_v56, 16  ;;  %v5112_v48 = vshrl.u32 %v9665_v28, 16 }
 0x137   : > { %v5067_v32 = vor.u32 %v5066_v19, %v9655_v55  ;;  %v6872_v14 = vcombine.low %v2370_v35, %v2380_v7  ;;  %v5094_v26 = vshll.u32 %v9673_v38, 16  ;;  %v2602_v4 = vrot.slane %v2600_v21, 4  ;;  %v2562_v7 = vld [vmem:[#allocation2 + $0x30] sm:$0xe] }
 0x138   : > { %7821 = vmatmul.mubr.msk.bf16.gmra.mrb[12].mxu1 %vm1399_vm4, %v8242_v34  ;;  %v2597_v34 = vsel %vm9049_vm14, %v2595_v50, %v2596_v6  ;;  %v2603_v53 = vrot.slane %v9318_v59, 5  ;;  %v6885_v15 = vrot.slane %v2561_v31, 9  ;;  %v2609_v11 = vrot.slane %v2607_v37, 4 }
 0x139   : > { %7828 = vmatprep.mubr.msk.bf16.mxu1 %vm1399_vm4, %v9470_v52  ;;  %v5077_v52 = vrot.slane %v5075_v41, 4  ;;  %v6895_v60 = vcombine.low %v2594_v24, %v2597_v34  ;;  %v6884_v41 = vrot.slane %v2560_v0, 9  ;;  %v2610_v42 = vrot.slane %v9381_v5, 5  ;;  %v9706_v5 = vld [vmem:[%s10566_s4 + $0x60] sm:$0xff]   ;;  %v2563_v0 = vld [vmem:[#allocation2 + $0x3c] sm:$0xe] }
 0x13a   : > { %7657 = vmatmul.mubr.msk.bf16.gmra.mrb[8].mxu0 %vm1399_vm4, %v6870_v43  ;;  %v5108_v43 = vshll.u32 %v9665_v28, 16  ;;  %v5101_v16 = vrot.slane %v5099_v33, 4  ;;  %v5104_v61 = vrot.slane %v5102_v51, 5  ;;  %v5114_v6 = vrot.slane %v5112_v48, 4  ;;  %v5299_v51 = vld [vmem:[#allocation2 + $0x6c] sm:$0xe] }
 0x13b   : > { %7660 = vmatprep.mubr.msk.bf16.mxu0 %vm1399_vm4, %v6871_v44  ;;  %v5081_v39 = vor.u32 %v5080_v63, %v5077_v52  ;;  %v5091_v44 = vor.u32 %v5090_v27, %v9675_v10  ;;  %v7103_v59 = vcombine.low %v5039_v54, %v5049_v23  ;;  %v5068_v19 = vrot.slane %v5067_v32, 4  ;;  %v9701_v52 = vld [vmem:[#allocation2 + $0xc8] sm:$0x1] }
 0x13c   : > { %v9698_v50 = vrot.slane %v5108_v43, 5  ;;  %v2604_v54 = vsel %vm9049_vm14, %v2602_v4, %v2603_v53  ;;  %v2608_v63 = vsel %vm9049_vm14, %v6885_v15, %v2607_v37  ;;  %v2611_v35 = vsel %vm9049_vm14, %v2609_v11, %v2610_v42  ;;  %v5300_v53 = vld [vmem:[#allocation2 + $0x78] sm:$0xe] }
 0x13d   : > { %v5082_v56 = vrot.slane %v5081_v39, 4  ;;  %v5092_v23 = vrot.slane %v5091_v44, 4  ;;  %v2621_v27 = vrot.slane %v9430_v45, 5  ;;  %v5105_v24 = vor.u32 %v5104_v61, %v5101_v16  ;;  %v2564_v61 = vld [vmem:[#allocation2 + $0x48] sm:$0xe] }
 0x13e   : > { %v5115_v34 = vor.u32 %v5114_v6, %v9698_v50  ;;  %v5333_v43 = vrot.slane %v9307_v62, 5  ;;  %v2617_v31 = vrot.slane %v9411_v1, 5  ;;  %v6887_v32 = vrot.slane %v2563_v0, 9  ;;  %v8249_v62 = vld [vmem:[%s10566_s4 + $0x68] sm:$0xff]  }
 0x13f   : > { %v5087_v33 = vsel %vm8491_vm5, %v5082_v56, %v9675_v10  ;;  %v2624_v10 = vrot.slane %v9465_v20, 5  ;;  %v5106_v39 = vrot.slane %v5105_v24, 4  ;;  %v7117_v1 = vrot.slane %v5299_v51, 9  ;;  %v2565_v56 = vld [vmem:[#allocation2 + $0x54] sm:$0xe] }
 0x140   : > { %7829 = vmatmul.mubr.msk.bf16.vlgmr.msra.gmra.mrb[0].mxu1 %vm1399_vm4, %v9478_v29  ;;  %v5072_v29 = vrot.slane %v5070_v57, 5  ;;  %v2614_v57 = vrot.slane %v9385_v22, 5  ;;  %v5118_v22 = vshll.u32 %v9701_v52, 16  ;;  %v5336_v4 = vrot.slane %v9339_v9, 5  ;;  %v10618_v51 = vld [vmem:[#allocation6_spill] sm:$0xff] }
 0x141   : > { %7845 = vmatpush3.bf16.msra.mxu1 %v9512_v13  ;;  %7832 = vmatprep.mubr.msk.bf16.mxu1 %vm1399_vm4, %v9605_v12  ;;  %v5096_v13 = vrot.slane %v5094_v26, 5  ;;  %v2601_v12 = vsel %vm9049_vm14, %v6884_v41, %v2600_v21  ;;  %v5063_v21 = vsel %vm8491_vm5, %v9663_v8, %v9655_v55  ;;  %v6897_v55 = vcombine.low %v2608_v63, %v2611_v35  ;;  %v10615_v63 = vld [vmem:[#allocation4_spill] sm:$0xff] }
 0x142   : > { %7846 = vmatprep.subr.bf16.mxu1 %v8246_v46  ;;  %7661 = vmatmul.mubr.msk.bf16.gmra.mrb[12].mxu0 %vm1399_vm4, %v6872_v14  ;;  %v5073_v37 = vsel %vm8491_vm5, %v5068_v19, %v5072_v29  ;;  %v6896_v45 = vcombine.low %v2601_v12, %v2604_v54  ;;  %v6886_v8 = vrot.slane %v2562_v7, 9  ;;  %v2616_v48 = vrot.slane %v2614_v57, 4  ;;  %v10614_v12 = vld [vmem:[#allocation3_spill] sm:$0xff] }
 0x143   : > { %7668 = vmatprep.mubr.msk.bf16.mxu0 %vm1399_vm4, %v6895_v60  ;;  %v2623_v14 = vrot.slane %v2621_v27, 4  ;;  %v5116_v26 = vrot.slane %v5115_v34, 4  ;;  %v5120_v60 = vrot.slane %v5118_v22, 5  ;;  %v7104_v41 = vcombine.low %v5063_v21, %v5073_v37  ;;  %v10616_v21 = vld [vmem:[#allocation9_spill] sm:$0xff]  ;;  %v10617_v37 = vld [vmem:[#allocation12_spill] sm:$0xff] }
 0x144   : > { %v2615_v20 = vsel %vm9049_vm14, %v6886_v8, %v2614_v57  ;;  %v2618_v15 = vsel %vm9049_vm14, %v2616_v48, %v2617_v31  ;;  %v2628_v11 = vrot.slane %v9486_v3, 5  ;;  %v5340_v42 = vrot.slane %v9337_v18, 5  ;;  %v10619_v48 = vld [vmem:[#allocation5_spill] sm:$0xff] }
 0x145   : > { %7847 = vmatpush3.bf16.msra.mxu1 %v8246_v46  ;;  %v5097_v46 = vsel %vm8491_vm5, %v5092_v23, %v5096_v13  ;;  %v2622_v16 = vsel %vm9049_vm14, %v6887_v32, %v2621_v27  ;;  %v2625_v9 = vsel %vm9049_vm14, %v2623_v14, %v2624_v10  ;;  %v5111_v3 = vsel %vm8491_vm5, %v5106_v39, %v9698_v50  ;;  %v5301_v23 = vld [vmem:[#allocation2 + $0x84] sm:$0xe] }
 0x146   : > { %7864 = vmatprep.subr.bf16.mxu1 %v9706_v5  ;;  %v7105_v44 = vcombine.low %v5087_v33, %v5097_v46  ;;  %v5121_v18 = vsel %vm8491_vm5, %v5116_v26, %v5120_v60  ;;  %v5334_v19 = vsel %vm9049_vm14, %v7117_v1, %v5333_v43  ;;  %v7118_v29 = vrot.slane %v5300_v53, 9  ;;  %v5302_v46 = vld [vmem:[#allocation2 + $0x90] sm:$0xe] }
 0x147   : > { %v5343_v54 = vrot.slane %v10614_v12, 5  ;;  %v6898_v57 = vcombine.low %v2615_v20, %v2618_v15  ;;  %v5347_v35 = vrot.slane %v10615_v63, 5  ;;  %v6899_v7 = vcombine.low %v2622_v16, %v2625_v9  ;;  %v10621_v20 = vld [vmem:[#allocation7_spill] sm:$0xff]  ;;  %v10622_v9 = vld [vmem:[#allocation10_spill] sm:$0xff] }
 0x148   : > { %7833 = vmatmul.mubr.msk.bf16.gmra.mrb[4].mxu1 %vm1399_vm4, %v9623_v40  ;;  %v5335_v40 = vrot.slane %v5333_v43, 4  ;;  %v6888_v27 = vrot.slane %v2564_v61, 9  ;;  %v2630_v50 = vrot.slane %v2628_v11, 4  ;;  %v2631_v24 = vrot.slane %v10616_v21, 5  ;;  %v5305_v12 = vld [vmem:[#allocation2 + $0xb4] sm:$0xe] }
 0x149   : > { %7836 = vmatprep.mubr.msk.bf16.mxu1 %vm1399_vm4, %v7103_v59  ;;  %v9760_v59 = vld [vmem:[%s10566_s4 + $0x70] sm:$0xff]   ;;  %v5342_v34 = vrot.slane %v5340_v42, 4  ;;  %v6889_v22 = vrot.slane %v2565_v56, 9  ;;  %v2638_v33 = vrot.slane %v10617_v37, 5  ;;  %v5354_v43 = vrot.slane %v10618_v51, 5 }
 0x14a   : > { %7669 = vmatmul.mubr.msk.bf16.vlgmr.msra.gmra.mrb[0].mxu0 %vm1399_vm4, %v6896_v45  ;;  %v5337_v13 = vsel %vm9049_vm14, %v5335_v40, %v5336_v4  ;;  %v7119_v45 = vrot.slane %v5301_v23, 9  ;;  %v5349_v8 = vrot.slane %v5347_v35, 4  ;;  %v5350_v31 = vrot.slane %v10619_v48, 5  ;;  %v2566_v40 = vld [vmem:[#allocation2 + $0x60] sm:$0xe] }
 0x14b   : > { %7685 = vmatpush3.bf16.msra.mxu0 %v9580_v2  ;;  %7672 = vmatprep.mubr.msk.bf16.mxu0 %vm1399_vm4, %v6897_v55  ;;  %v10613_v2 = vld [vmem:[#allocation8_spill] sm:$0xff]  ;;  %v7106_v55 = vcombine.low %v5111_v3, %v5121_v18  ;;  %v7129_v32 = vcombine.low %v5334_v19, %v5337_v13  ;;  %v2629_v14 = vsel %vm9049_vm14, %v6888_v27, %v2628_v11  ;;  %v7120_v53 = vrot.slane %v5302_v46, 9  ;;  %v5303_v11 = vld [vmem:[#allocation2 + $0x9c] sm:$0xe] }
 0x14c   : > { %7686 = vmatprep.subr.bf16.mxu0 %v8249_v62  ;;  %v2635_v6 = vrot.slane %v10613_v2, 5  ;;  %v2632_v10 = vsel %vm9049_vm14, %v2630_v50, %v2631_v24  ;;  %v9789_v26 = vsel %vm9049_vm14, %v7118_v29, %v5340_v42  ;;  %v9793_v60 = vsel %vm9049_vm14, %v5342_v34, %v5343_v54  ;;  %v5306_v23 = vld [vmem:[#allocation2 + $0xc0] sm:$0xe]  ;;  %v3036_v50 = vld [vmem:[#allocation2 + $0x18] sm:$0xf] }
 0x14d   : > { %v9801_v4 = vsel %vm9049_vm14, %v7119_v45, %v5347_v35  ;;  %v5357_v15 = vrot.slane %v10621_v20, 5  ;;  %v5351_v42 = vsel %vm9049_vm14, %v5349_v8, %v5350_v31  ;;  %v6900_v16 = vcombine.low %v2629_v14, %v2632_v10  ;;  %v9839_v37 = vld [vmem:[#allocation2 + $0x1c] sm:$0xf]  ;;  %v9842_v8 = vld [vmem:[#allocation2 + $0x28] sm:$0xf] }
 0x14e   : > { %v2637_v0 = vrot.slane %v2635_v6, 4  ;;  %v2636_v1 = vsel %vm9049_vm14, %v6889_v22, %v2635_v6  ;;  %v5361_v61 = vrot.slane %v10622_v9, 5  ;;  %v5368_v2 = vrot.slane %v9611_v25, 5  ;;  %v5304_v6 = vld [vmem:[#allocation2 + $0xa8] sm:$0xe] }
 0x14f   : > { %7687 = vmatpush3.bf16.msra.mxu0 %v8249_v62  ;;  %v10620_v62 = vld [vmem:[#allocation11_spill] sm:$0xff]  ;;  %v6890_v18 = vrot.slane %v2566_v40, 9  ;;  %v2645_v29 = vrot.slane %v9585_v47, 5  ;;  %v7130_v56 = vcombine.low %v9789_v26, %v9793_v60  ;;  %v7121_v13 = vrot.slane %v5303_v11, 9  ;;  %v8250_v31 = vld [vmem:[%s10566_s4 + $0x68] sm:$0xff]  }
 0x150   : > { %7837 = vmatmul.mubr.msk.bf16.gmra.mrb[8].mxu1 %vm1399_vm4, %v7104_v41  ;;  %7704 = vmatprep.subr.bf16.mxu0 %v9760_v59  ;;  %v2642_v39 = vrot.slane %v10620_v62, 5  ;;  %v2639_v41 = vsel %vm9049_vm14, %v2637_v0, %v2638_v33  ;;  %v5375_v54 = vrot.slane %v9635_v49, 5  ;;  %v9817_v25 = vsel %vm9049_vm14, %v7120_v53, %v5354_v43  ;;  %v3039_v33 = vld [vmem:[#allocation2 + $0x24] sm:$0xf]  ;;  %v9863_v62 = vld [vmem:[#allocation2 + $0x20] sm:$0x1] }
 0x151   : > { %7840 = vmatprep.mubr.msk.bf16.mxu1 %vm1399_vm4, %v7105_v44  ;;  %v5356_v44 = vrot.slane %v5354_v43, 4  ;;  %v6901_v3 = vcombine.low %v2636_v1, %v2639_v41  ;;  %v5382_v63 = vrot.slane %v9665_v28, 5  ;;  %v5363_v35 = vrot.slane %v5361_v61, 4  ;;  %v5774_v60 = vld [vmem:[#allocation2 + $0x78] sm:$0xf] }
 0x152   : > { %7673 = vmatmul.mubr.msk.bf16.gmra.mrb[4].mxu0 %vm1399_vm4, %v6898_v57  ;;  %v2644_v19 = vrot.slane %v2642_v39, 4  ;;  %v7131_v57 = vcombine.low %v9801_v4, %v5351_v42  ;;  %v5364_v49 = vrot.slane %v9568_v17, 5  ;;  %v5371_v27 = vrot.slane %v9643_v30, 5  ;;  %v9870_v53 = vld [vmem:[#allocation2 + $0x7c] sm:$0xf] }
 0x153   : > { %7676 = vmatprep.mubr.msk.bf16.mxu0 %vm1399_vm4, %v6899_v7  ;;  %v9821_v47 = vsel %vm9049_vm14, %v5356_v44, %v5357_v15  ;;  %v7122_v7 = vrot.slane %v5304_v6, 9  ;;  %v5370_v21 = vrot.slane %v5368_v2, 4  ;;  %v2643_v24 = vsel %vm9049_vm14, %v6890_v18, %v2642_v39 }
 0x154   : > { %v2646_v34 = vsel %vm9049_vm14, %v2644_v19, %v2645_v29  ;;  %v7123_v22 = vrot.slane %v5305_v12, 9  ;;  %v7132_v28 = vcombine.low %v9817_v25, %v9821_v47  ;;  %v9836_v17 = vsel %vm9049_vm14, %v7121_v13, %v5361_v61  ;;  %v8252_v19 = vld [vmem:[#allocation2 + $0x24] sm:$0xff]  }
 0x155   : > { %v5377_v0 = vrot.slane %v5375_v54, 4  ;;  %v5378_v30 = vrot.slane %v9673_v38, 5  ;;  %v7124_v45 = vrot.slane %v5306_v23, 9  ;;  %v5384_v51 = vrot.slane %v5382_v63, 4 }
 0x156   : > { %v5385_v43 = vrot.slane %v9701_v52, 5  ;;  %v9846_v48 = vsel %vm9049_vm14, %v5363_v35, %v5364_v49  ;;  %v9853_v38 = vsel %vm9049_vm14, %v7122_v7, %v5368_v2  ;;  %v6902_v46 = vcombine.low %v2643_v24, %v2646_v34  ;;  %v9908_v49 = vld [vmem:[#allocation2 + $0x2c] sm:$0x1]  ;;  %v9910_v7 = vld [vmem:[#allocation2 + $0x80] sm:$0x1] }
 0x157   : > { %v3064_v14 = vshll.u32 %v3036_v50, 16  ;;  %v9857_v52 = vsel %vm9049_vm14, %v5370_v21, %v5371_v27  ;;  %v9861_v10 = vsel %vm9049_vm14, %v7123_v22, %v5375_v54  ;;  %v3070_v39 = vshll.u32 %v9839_v37, 16  ;;  %v5777_v54 = vld [vmem:[#allocation2 + $0x84] sm:$0xf]  ;;  %v9912_v27 = vld [vmem:[#allocation2 + $0x88] sm:$0xf] }
 0x158   : > { %7841 = vmatmul.mubr.msk.bf16.gmra.mrb[12].mxu1 %vm1399_vm4, %v7106_v55  ;;  %v3061_v55 = vshrl.u32 %v3036_v50, 16  ;;  %v3074_v26 = vshrl.u32 %v9839_v37, 16  ;;  %v3085_v1 = vshrl.u32 %v3039_v33, 16  ;;  %v3088_v41 = vshll.u32 %v3039_v33, 16  ;;  %10623 = vst [vmem:[#allocation8_spill] sm:$0xff] %v9912_v27  ;;  %v8257_v50 = vld [vmem:[#allocation2 + $0x30] sm:$0xff]  }
 0x159   : > { %7848 = vmatprep.mubr.msk.bf16.mxu1 %vm1399_vm4, %v7129_v32  ;;  %v8251_v32 = vld [vmem:[#allocation2 + $0x18] sm:$0xff]   ;;  %v3094_v40 = vshll.u32 %v9842_v8, 16  ;;  %v3098_v4 = vshrl.u32 %v9842_v8, 16  ;;  %v9876_v44 = vsel %vm9049_vm14, %v5377_v0, %v5378_v30  ;;  %v9880_v20 = vsel %vm9049_vm14, %v7124_v45, %v5382_v63 }
 0x15a   : > { %7677 = vmatmul.mubr.msk.bf16.gmra.mrb[8].mxu0 %vm1399_vm4, %v6900_v16  ;;  %v9884_v15 = vsel %vm9049_vm14, %v5384_v51, %v5385_v43  ;;  %v3063_v11 = vrot.slane %v3061_v55, 4  ;;  %v3066_v42 = vrot.slane %v3064_v14, 5  ;;  %v3080_v16 = vshll.u32 %v9863_v62, 16  ;;  %v9919_v51 = vld [vmem:[#allocation2 + $0x34] sm:$0xf]  ;;  %v8263_v43 = vld [vmem:[%s10566_s4 + $0x78] sm:$0xff]  }
 0x15b   : > { %7680 = vmatprep.mubr.msk.bf16.mxu0 %vm1399_vm4, %v6901_v3  ;;  %v5799_v9 = vshrl.u32 %v5774_v60, 16  ;;  %v5802_v61 = vshll.u32 %v5774_v60, 16  ;;  %v9894_v2 = vrot.slane %v3070_v39, 5  ;;  %v3076_v6 = vrot.slane %v3074_v26, 4 }
 0x15c   : > { %v5808_v3 = vshll.u32 %v9870_v53, 16  ;;  %v5812_v18 = vshrl.u32 %v9870_v53, 16  ;;  %v3087_v29 = vrot.slane %v3085_v1, 4  ;;  %v9898_v13 = vrot.slane %v3094_v40, 5 }
 0x15d   : > { %v3100_v12 = vrot.slane %v3098_v4, 4  ;;  %v7134_v23 = vcombine.low %v9853_v38, %v9857_v52  ;;  %v7135_v63 = vcombine.low %v9861_v10, %v9876_v44  ;;  %v7136_v35 = vcombine.low %v9880_v20, %v9884_v15  ;;  %v5783_v15 = vld [vmem:[#allocation2 + $0x9c] sm:$0xf] }
 0x15e   : > { %v3067_v21 = vor.u32 %v3066_v42, %v3063_v11  ;;  %v9915_v24 = vrot.slane %v3080_v16, 5  ;;  %v5801_v34 = vrot.slane %v5799_v9, 4  ;;  %v5804_v22 = vrot.slane %v5802_v61, 5  ;;  %v8258_v42 = vld [vmem:[#allocation2 + $0x3c] sm:$0xff]  }
 0x15f   : > { %v9917_v0 = vrot.slane %v5808_v3, 5  ;;  %v5814_v30 = vrot.slane %v5812_v18, 4  ;;  %v5823_v33 = vshrl.u32 %v5777_v54, 16  ;;  %v5826_v45 = vshll.u32 %v5777_v54, 16  ;;  %v3045_v3 = vld [vmem:[#allocation2 + $0x3c] sm:$0xf] }
 0x160   : > { %7849 = vmatmul.mubr.msk.bf16.vlgmr.msra.gmra.mrb[0].mxu1 %vm1399_vm4, %v7130_v56  ;;  %v3090_v56 = vrot.slane %v3088_v41, 5  ;;  %v3077_v55 = vor.u32 %v3076_v6, %v9894_v2  ;;  %v5836_v14 = vshrl.u32 %v9912_v27, 16  ;;  %v5818_v39 = vshll.u32 %v9910_v7, 16  ;;  %v9943_v41 = vld [vmem:[%s10566_s4 + $0x80] sm:$0xff]  }
 0x161   : > { %7865 = vmatpush3.bf16.msra.mxu1 %v9706_v5  ;;  %7852 = vmatprep.mubr.msk.bf16.mxu1 %vm1399_vm4, %v7131_v57  ;;  %v9890_v5 = vld [vmem:[%s10566_s4 + $0x70] sm:$0xff]   ;;  %v7133_v57 = vcombine.low %v9836_v17, %v9846_v48  ;;  %v3118_v26 = vshll.u32 %v9919_v51, 16  ;;  %v3122_v60 = vshrl.u32 %v9919_v51, 16  ;;  %v3068_v1 = vrot.slane %v3067_v21, 4 }
 0x162   : > { %7866 = vmatprep.subr.bf16.mxu1 %v8250_v31  ;;  %7681 = vmatmul.mubr.msk.bf16.gmra.mrb[12].mxu0 %vm1399_vm4, %v6902_v46  ;;  %v3042_v17 = vld [vmem:[#allocation2 + $0x30] sm:$0xf]  ;;  %v3091_v48 = vor.u32 %v3090_v56, %v3087_v29  ;;  %v3104_v46 = vshll.u32 %v9908_v49, 16  ;;  %v5815_v40 = vor.u32 %v5814_v30, %v9917_v0  ;;  %v5825_v4 = vrot.slane %v5823_v33, 4  ;;  %v9948_v56 = vld [vmem:[#allocation2 + $0x40] sm:$0xf] }
 0x163   : > { %7688 = vmatprep.mubr.msk.bf16.mxu0 %vm1399_vm4, %v8251_v32  ;;  %v5832_v32 = vshll.u32 %v9912_v27, 16  ;;  %v3109_v25 = vshrl.u32 %v3042_v17, 16  ;;  %v3112_v47 = vshll.u32 %v3042_v17, 16  ;;  %v5828_v11 = vrot.slane %v5826_v45, 5  ;;  %v9954_v30 = vld [vmem:[#allocation2 + $0x38] sm:$0x1] }
 0x164   : > { %v3078_v16 = vrot.slane %v3077_v55, 4  ;;  %v3092_v9 = vrot.slane %v3091_v48, 4  ;;  %v3106_v6 = vrot.slane %v3104_v46, 5  ;;  %v5838_v18 = vrot.slane %v5836_v14, 4 }
 0x165   : > { %7867 = vmatpush3.bf16.msra.mxu1 %v8250_v31  ;;  %v3101_v31 = vor.u32 %v3100_v12, %v9898_v13  ;;  %v3114_v29 = vrot.slane %v3112_v47, 5  ;;  %v5820_v54 = vrot.slane %v5818_v39, 5  ;;  %v3124_v21 = vrot.slane %v3122_v60, 4  ;;  %v9989_v47 = vld [vmem:[#allocation2 + $0x44] sm:$0x1] }
 0x166   : > { %7884 = vmatprep.subr.bf16.mxu1 %v9890_v5  ;;  %v5829_v17 = vor.u32 %v5828_v11, %v5825_v4  ;;  %v3133_v33 = vshrl.u32 %v3045_v3, 16  ;;  %v3136_v45 = vshll.u32 %v3045_v3, 16  ;;  %v3073_v55 = vsel %vm8491_vm5, %v3068_v1, %v9894_v2  ;;  %v8262_v11 = vld [vmem:[#allocation2 + $0x54] sm:$0xff]  }
 0x167   : > { %v3102_v61 = vrot.slane %v3101_v31, 4  ;;  %v3083_v48 = vsel %vm8491_vm5, %v3078_v16, %v9915_v24  ;;  %v3146_v31 = vshrl.u32 %v9948_v56, 16  ;;  %v3097_v38 = vsel %vm8491_vm5, %v3092_v9, %v9898_v13  ;;  %v5780_v24 = vld [vmem:[#allocation2 + $0x90] sm:$0xf] }
 0x168   : > { %7853 = vmatmul.mubr.msk.bf16.gmra.mrb[4].mxu1 %vm1399_vm4, %v7132_v28  ;;  %v5805_v28 = vor.u32 %v5804_v22, %v5801_v34  ;;  %v8261_v34 = vld [vmem:[#allocation2 + $0x48] sm:$0xff]   ;;  %v5816_v22 = vrot.slane %v5815_v40, 4  ;;  %v3135_v14 = vrot.slane %v3133_v33, 4  ;;  %v5850_v60 = vshll.u32 %v5780_v24, 16 }
 0x169   : > { %7856 = vmatprep.mubr.msk.bf16.mxu1 %vm1399_vm4, %v7133_v57  ;;  %v9950_v57 = vld [vmem:[#allocation2 + $0x8c] sm:$0x1]  ;;  %v3107_v46 = vsel %vm8491_vm5, %v3102_v61, %v3106_v6  ;;  %v3148_v39 = vrot.slane %v3146_v31, 4  ;;  %v3048_v61 = vld [vmem:[#allocation2 + $0x48] sm:$0xf]  ;;  %v8267_v6 = vld [vmem:[#allocation2 + $0x60] sm:$0xff]  }
 0x16a   : > { %7689 = vmatmul.mubr.msk.bf16.vlgmr.msra.gmra.mrb[0].mxu0 %vm1399_vm4, %v8252_v19  ;;  %v3111_v19 = vrot.slane %v3109_v25, 4  ;;  %v5806_v12 = vrot.slane %v5805_v28, 4  ;;  %10624 = vst [vmem:[#allocation3_spill] sm:$0xff] %v9950_v57  ;;  %v5842_v2 = vshll.u32 %v9950_v57, 16  ;;  %v5821_v13 = vsel %vm8491_vm5, %v5816_v22, %v5820_v54  ;;  %v10002_v54 = vld [vmem:[#allocation2 + $0x4c] sm:$0xf] }
 0x16b   : > { %7705 = vmatpush3.bf16.msra.mxu0 %v9760_v59  ;;  %7692 = vmatprep.mubr.msk.bf16.mxu0 %vm1399_vm4, %v8257_v50  ;;  %v9946_v59 = vrot.slane %v5832_v32, 5  ;;  %v9952_v50 = vrot.slane %v3118_v26, 5  ;;  %v5830_v32 = vrot.slane %v5829_v17, 4  ;;  %v3138_v25 = vrot.slane %v3136_v45, 5  ;;  %v10012_v22 = vld [vmem:[#allocation2 + $0x98] sm:$0x1] }
 0x16c   : > { %7706 = vmatprep.subr.bf16.mxu0 %v8263_v43  ;;  %v5811_v10 = vsel %vm8491_vm5, %v5806_v12, %v9917_v0  ;;  %v5847_v26 = vshrl.u32 %v5780_v24, 16  ;;  %v8254_v0 = vld [vmem:[#allocation2 + $0x78] sm:$0xff]   ;;  %v5844_v40 = vrot.slane %v5842_v2, 5  ;;  %v9995_v3 = vcombine.low %v3097_v38, %v3107_v46  ;;  %v10000_v12 = vld [vmem:[#allocation2 + $0x94] sm:$0xf]  ;;  %10626 = vst [vmem:[#allocation9_spill] sm:$0xff] %v10012_v22 }
 0x16d   : > { %v5839_v52 = vor.u32 %v5838_v18, %v9946_v59  ;;  %v3125_v44 = vor.u32 %v3124_v21, %v9952_v50  ;;  %v9997_v18 = vcombine.low %v5811_v10, %v5821_v13  ;;  %10625 = vst [vmem:[#allocation4_spill] sm:$0xff] %v10000_v12  ;;  %v5835_v21 = vsel %vm8491_vm5, %v5830_v32, %v9946_v59  ;;  %v8256_v24 = vld [vmem:[#allocation2 + $0x84] sm:$0xff]   ;;  %v8259_v46 = vld [vmem:[#allocation2 + $0x90] sm:$0xff]   ;;  %v8265_v32 = vld [vmem:[%s10566_s4 + $0x78] sm:$0xff]  }
 0x16e   : > { %v5849_v17 = vrot.slane %v5847_v26, 4  ;;  %v5852_v33 = vrot.slane %v5850_v60, 5  ;;  %v3166_v31 = vshll.u32 %v10002_v54, 16  ;;  %v3170_v38 = vshrl.u32 %v10002_v54, 16 }
 0x16f   : > { %7707 = vmatpush3.bf16.msra.mxu0 %v8263_v43  ;;  %v3142_v43 = vshll.u32 %v9948_v56, 16  ;;  %v5840_v1 = vrot.slane %v5839_v52, 4  ;;  %v3126_v16 = vrot.slane %v3125_v44, 4  ;;  %v5860_v2 = vshrl.u32 %v10000_v12, 16 }
 0x170   : > { %7857 = vmatmul.mubr.msk.bf16.gmra.mrb[8].mxu1 %vm1399_vm4, %v7134_v23  ;;  %7724 = vmatprep.subr.bf16.mxu0 %v9943_v41  ;;  %v3115_v23 = vor.u32 %v3114_v29, %v3111_v19  ;;  %v3139_v19 = vor.u32 %v3138_v25, %v3135_v14  ;;  %v3152_v29 = vshll.u32 %v9989_v47, 16  ;;  %v5853_v44 = vor.u32 %v5852_v33, %v5849_v17 }
 0x171   : > { %7860 = vmatprep.mubr.msk.bf16.mxu1 %vm1399_vm4, %v7135_v63  ;;  %v3128_v63 = vshll.u32 %v9954_v30, 16  ;;  %v9991_v28 = vrot.slane %v3142_v43, 5  ;;  %v5845_v45 = vsel %vm8491_vm5, %v5840_v1, %v5844_v40  ;;  %v10024_v43 = vld [vmem:[#allocation2 + $0xa0] sm:$0xf]  ;;  %v5874_v13 = vshll.u32 %v5783_v15, 16 }
 0x172   : > { %7693 = vmatmul.mubr.msk.bf16.gmra.mrb[4].mxu0 %vm1399_vm4, %v8258_v42  ;;  %v3116_v4 = vrot.slane %v3115_v23, 4  ;;  %v9993_v42 = vcombine.low %v3073_v55, %v3083_v48  ;;  %v3160_v55 = vshll.u32 %v3048_v61, 16  ;;  %v5856_v48 = vshll.u32 %v10000_v12, 16  ;;  %10627 = vst [vmem:[#allocation12_spill] sm:$0xff] %v10024_v43  ;;  %v10131_v12 = vld [vmem:[#allocation2 + $0xb0] sm:$0x1] }
 0x173   : > { %7696 = vmatprep.mubr.msk.bf16.mxu0 %vm1399_vm4, %v8261_v34  ;;  %v3130_v9 = vrot.slane %v3128_v63, 5  ;;  %v3149_v34 = vor.u32 %v3148_v39, %v9991_v28  ;;  %v3140_v52 = vrot.slane %v3139_v19, 4  ;;  %v5866_v23 = vshll.u32 %v10012_v22, 16  ;;  %v10037_v39 = vld [vmem:[#allocation2 + $0x50] sm:$0x1] }
 0x174   : > { %v3121_v20 = vsel %vm8491_vm5, %v3116_v4, %v9952_v50  ;;  %v3154_v50 = vrot.slane %v3152_v29, 5  ;;  %v5871_v63 = vshrl.u32 %v5783_v15, 16  ;;  %v10034_v14 = vcombine.low %v5835_v21, %v5845_v45  ;;  %v10043_v4 = vld [vmem:[#allocation2 + $0xa4] sm:$0x1]  ;;  %v10053_v21 = vld [vmem:[#allocation2 + $0x58] sm:$0xf] }
 0x175   : > { %v3131_v59 = vsel %vm8491_vm5, %v3126_v16, %v3130_v9  ;;  %v3150_v10 = vrot.slane %v3149_v34, 4  ;;  %v5880_v25 = vshll.u32 %v10024_v43, 16  ;;  %v3162_v60 = vrot.slane %v3160_v55, 5  ;;  %10628 = vst [vmem:[#allocation6_spill] sm:$0xff] %v10043_v4  ;;  %v3051_v9 = vld [vmem:[#allocation2 + $0x54] sm:$0xf] }
 0x176   : > { %v10039_v1 = vcombine.low %v3121_v20, %v3131_v59  ;;  %v10041_v40 = vrot.slane %v5856_v48, 5  ;;  %v3172_v16 = vrot.slane %v3170_v38, 4  ;;  %v10050_v19 = vrot.slane %v5866_v23, 5  ;;  %v3054_v20 = vld [vmem:[#allocation2 + $0x60] sm:$0xf] }
 0x177   : > { %v5884_v29 = vshrl.u32 %v10024_v43, 16  ;;  %v3155_v34 = vsel %vm8491_vm5, %v3150_v10, %v3154_v50  ;;  %v10058_v17 = vrot.slane %v5853_v44, 4  ;;  %v5873_v33 = vrot.slane %v5871_v63, 4  ;;  %v10065_v59 = vld [vmem:[#allocation2 + $0x64] sm:$0xf] }
 0x178   : > { %7861 = vmatmul.mubr.msk.bf16.gmra.mrb[12].mxu1 %vm1399_vm4, %v7136_v35  ;;  %v3157_v35 = vshrl.u32 %v3048_v61, 16  ;;  %v3145_v61 = vsel %vm8491_vm5, %v3140_v52, %v9991_v28  ;;  %v5876_v45 = vrot.slane %v5874_v13, 5  ;;  %v10062_v28 = vrot.slane %v5880_v25, 5  ;;  %v10071_v48 = vld [vmem:[%s10566_s4 + $0x80] sm:$0xff]   ;;  %v8264_v25 = vld [vmem:[#allocation2 + $0xa8] sm:$0xff]  }
 0x179   : > { %7868 = vmatprep.mubr.msk.bf16.mxu1 %vm1399_vm4, %v8254_v0  ;;  %v8268_v0 = vld [vmem:[#allocation2 + $0x6c] sm:$0xff]   ;;  %v3181_v55 = vshrl.u32 %v3051_v9, 16  ;;  %v3190_v38 = vshll.u32 %v10053_v21, 16  ;;  %v3194_v52 = vshrl.u32 %v10053_v21, 16  ;;  %v10078_v50 = vcombine.low %v3145_v61, %v3155_v34  ;;  %v5786_v34 = vld [vmem:[#allocation2 + $0xa8] sm:$0xf] }
 0x17a   : > { %7697 = vmatmul.mubr.msk.bf16.gmra.mrb[8].mxu0 %vm1399_vm4, %v8262_v11  ;;  %v3159_v26 = vrot.slane %v3157_v35, 4  ;;  %v10045_v11 = vrot.slane %v3166_v31, 5  ;;  %v3176_v35 = vshll.u32 %v10037_v39, 16  ;;  %v3184_v31 = vshll.u32 %v3051_v9, 16 }
 0x17b   : > { %7700 = vmatprep.mubr.msk.bf16.mxu0 %vm1399_vm4, %v8267_v6  ;;  %v5862_v6 = vrot.slane %v5860_v2, 4  ;;  %v5886_v23 = vrot.slane %v5884_v29, 4  ;;  %v3205_v10 = vshrl.u32 %v3054_v20, 16  ;;  %v3208_v44 = vshll.u32 %v3054_v20, 16 }
 0x17c   : > { %v3163_v15 = vor.u32 %v3162_v60, %v3159_v26  ;;  %v3214_v63 = vshll.u32 %v10065_v59, 16  ;;  %v3218_v13 = vshrl.u32 %v10065_v59, 16  ;;  %v5877_v26 = vor.u32 %v5876_v45, %v5873_v33 }
 0x17d   : > { %v5863_v2 = vor.u32 %v5862_v6, %v10041_v40  ;;  %v3186_v61 = vrot.slane %v3184_v31, 5  ;;  %v10087_v6 = vrot.slane %v3190_v38, 5  ;;  %v3196_v29 = vrot.slane %v3194_v52, 4  ;;  %v10104_v52 = vld [vmem:[#allocation2 + $0x70] sm:$0xf] }
 0x17e   : > { %v3164_v60 = vrot.slane %v3163_v15, 4  ;;  %v5887_v33 = vor.u32 %v5886_v23, %v10062_v28  ;;  %v8273_v15 = vld [vmem:[%s10566_s4 + $0x88] sm:$0xff]   ;;  %v10102_v31 = vrot.slane %v3214_v63, 5  ;;  %v3220_v38 = vrot.slane %v3218_v13, 4  ;;  %10629 = vst [vmem:[#allocation5_spill] sm:$0xff] %v10104_v52 }
 0x17f   : > { %v5895_v20 = vshrl.u32 %v5786_v34, 16  ;;  %v10120_v63 = vld [vmem:[#allocation2 + $0xac] sm:$0xf]  ;;  %v5898_v13 = vshll.u32 %v5786_v34, 16 }
 0x180   : > { %7869 = vmatmul.mubr.msk.bf16.vlgmr.msra.gmra.mrb[0].mxu1 %vm1399_vm4, %v8256_v24  ;;  %v5890_v24 = vshll.u32 %v10043_v4, 16  ;;  %v3169_v23 = vsel %vm8491_vm5, %v3164_v60, %v10045_v11  ;;  %v10113_v4 = vld [vmem:[#allocation2 + $0x68] sm:$0x1]  ;;  %v8266_v60 = vld [vmem:[#allocation2 + $0xb4] sm:$0xff]   ;;  %v5888_v43 = vrot.slane %v5887_v33, 4  ;;  %v5904_v34 = vshll.u32 %v10120_v63, 16 }
 0x181   : > { %7885 = vmatpush3.bf16.msra.mxu1 %v9890_v5  ;;  %7872 = vmatprep.mubr.msk.bf16.mxu1 %vm1399_vm4, %v8259_v46  ;;  %v3173_v5 = vor.u32 %v3172_v16, %v10045_v11  ;;  %v8260_v46 = vld [vmem:[#allocation2 + $0x9c] sm:$0xff]   ;;  %v3183_v16 = vrot.slane %v3181_v55, 4  ;;  %v3207_v55 = vrot.slane %v3205_v10, 4  ;;  %v5789_v33 = vld [vmem:[#allocation2 + $0xb4] sm:$0xf] }
 0x182   : > { %7886 = vmatprep.subr.bf16.mxu1 %v8265_v32  ;;  %7701 = vmatmul.mubr.msk.bf16.gmra.mrb[12].mxu0 %vm1399_vm4, %v8268_v0  ;;  %v3178_v0 = vrot.slane %v3176_v35, 5  ;;  %v10096_v45 = vrot.slane %v5890_v24, 5  ;;  %v3057_v35 = vld [vmem:[#allocation2 + $0x6c] sm:$0xf] }
 0x183   : > { %7708 = vmatprep.mubr.msk.bf16.mxu0 %vm1399_vm4, %v9993_v42  ;;  %v10084_v42 = vld [vmem:[#allocation2 + $0x5c] sm:$0x1]  ;;  %v3174_v9 = vrot.slane %v3173_v5, 4  ;;  %v3210_v5 = vrot.slane %v3208_v44, 5  ;;  %v3187_v10 = vor.u32 %v3186_v61, %v3183_v16  ;;  %v3197_v44 = vor.u32 %v3196_v29, %v10087_v6  ;;  %v8269_v61 = vld [vmem:[#allocation2 + $0xc0] sm:$0xff]  }
 0x184   : > { %v3200_v24 = vshll.u32 %v10084_v42, 16  ;;  %v3229_v11 = vshrl.u32 %v3057_v35, 16  ;;  %v3221_v16 = vor.u32 %v3220_v38, %v10102_v31 }
 0x185   : > { %7887 = vmatpush3.bf16.msra.mxu1 %v8265_v32  ;;  %v10093_v32 = vrot.slane %v5863_v2, 4  ;;  %v10107_v2 = vrot.slane %v5877_v26, 4  ;;  %v3238_v26 = vshll.u32 %v10104_v52, 16  ;;  %v3188_v22 = vrot.slane %v3187_v10, 4  ;;  %v10140_v10 = vld [vmem:[#allocation2 + $0x74] sm:$0x1] }
 0x186   : > { %7904 = vmatprep.subr.bf16.mxu1 %v10071_v48  ;;  %v3202_v29 = vrot.slane %v3200_v24, 5  ;;  %v3198_v57 = vrot.slane %v3197_v44, 4  ;;  %v3222_v24 = vrot.slane %v3221_v16, 4  ;;  %v10147_v44 = vrot.slane %v5904_v34, 5  ;;  %v5792_v34 = vld [vmem:[#allocation2 + $0xc0] sm:$0xf] }
 0x187   : > { %v10133_v38 = vrot.slane %v3238_v26, 5  ;;  %v5919_v26 = vshrl.u32 %v5789_v33, 16 }
 0x188   : > { %7873 = vmatmul.mubr.msk.bf16.gmra.mrb[4].mxu1 %vm1399_vm4, %v8260_v46  ;;  %v3179_v46 = vsel %vm8491_vm5, %v3174_v9, %v3178_v0  ;;  %v3211_v0 = vor.u32 %v3210_v5, %v3207_v55  ;;  %v3224_v9 = vshll.u32 %v10113_v4, 16  ;;  %v3231_v55 = vrot.slane %v3229_v11, 4 }
 0x189   : > { %7876 = vmatprep.mubr.msk.bf16.mxu1 %vm1399_vm4, %v8264_v25  ;;  %v3232_v25 = vshll.u32 %v3057_v35, 16  ;;  %v6943_v35 = vcombine.low %v3169_v23, %v3179_v46  ;;  %v5914_v11 = vshll.u32 %v10131_v12, 16 }
 0x18a   : > { %7709 = vmatmul.mubr.msk.bf16.vlgmr.msra.gmra.mrb[0].mxu0 %vm1399_vm4, %v9995_v3  ;;  %v3242_v3 = vshrl.u32 %v10104_v52, 16  ;;  %v5900_v52 = vrot.slane %v5898_v13, 5  ;;  %v3212_v23 = vrot.slane %v3211_v0, 4  ;;  %v3226_v46 = vrot.slane %v3224_v9, 5  ;;  %v8270_v0 = vld [vmem:[#allocation2 + $0xcc] sm:$0xff]  }
 0x18b   : > { %7725 = vmatpush3.bf16.msra.mxu0 %v9943_v41  ;;  %7712 = vmatprep.mubr.msk.bf16.mxu0 %vm1399_vm4, %v10039_v1  ;;  %v5897_v41 = vrot.slane %v5895_v20, 4  ;;  %v5908_v1 = vshrl.u32 %v10120_v63, 16  ;;  %v3234_v5 = vrot.slane %v3232_v25, 5  ;;  %v5869_v20 = vsel %vm8491_vm5, %v10093_v32, %v10050_v19  ;;  %v10183_v9 = vld [vmem:[#allocation2 + $0xbc] sm:$0x1] }
 0x18c   : > { %7726 = vmatprep.subr.bf16.mxu0 %v8273_v15  ;;  %v3244_v27 = vrot.slane %v3242_v3, 4  ;;  %v5893_v19 = vsel %vm8491_vm5, %v5888_v43, %v10096_v45  ;;  %v3193_v32 = vsel %vm8491_vm5, %v3188_v22, %v10087_v6  ;;  %v10630_v22 = vsel %vm8491_vm5, %v10058_v17, %v10041_v40  ;;  %v3430_v17 = vld [vmem:[#allocation2 + $0x18] sm:$0xe] }
 0x18d   : > { %v5910_v13 = vrot.slane %v5908_v1, 4  ;;  %v5901_v25 = vor.u32 %v5900_v52, %v5897_v41  ;;  %v3235_v3 = vor.u32 %v3234_v5, %v3231_v55  ;;  %v10170_v43 = vcombine.low %v10630_v22, %v5869_v20  ;;  %v10190_v5 = vld [vmem:[#allocation2 + $0xc4] sm:$0xf] }
 0x18e   : > { %v3217_v6 = vsel %vm8491_vm5, %v3212_v23, %v10102_v31  ;;  %v3464_v45 = vrot.slane %v9839_v37, 5  ;;  %v10181_v16 = vrot.slane %v5914_v11, 5  ;;  %v5922_v40 = vshll.u32 %v5789_v33, 16  ;;  %v3431_v22 = vld [vmem:[#allocation2 + $0x24] sm:$0xe] }
 0x18f   : > { %7727 = vmatpush3.bf16.msra.mxu0 %v8273_v15  ;;  %v5883_v15 = vsel %vm8491_vm5, %v10107_v2, %v10062_v28  ;;  %v3203_v28 = vsel %vm8491_vm5, %v3198_v57, %v3202_v29  ;;  %v10161_v2 = vld [vmem:[#allocation2 + $0xb8] sm:$0xf]  ;;  %v3227_v57 = vsel %vm8491_vm5, %v3222_v24, %v3226_v46  ;;  %v5911_v52 = vor.u32 %v5910_v13, %v10147_v44 }
 0x190   : > { %7877 = vmatmul.mubr.msk.bf16.gmra.mrb[8].mxu1 %vm1399_vm4, %v8266_v60  ;;  %v3248_v60 = vshll.u32 %v10140_v10, 16  ;;  %v10185_v29 = vrot.slane %v5901_v25, 4  ;;  %v10187_v41 = vrot.slane %v5919_v26, 4  ;;  %v5928_v31 = vshll.u32 %v10161_v2, 16 }
 0x191   : > { %7880 = vmatprep.mubr.msk.bf16.mxu1 %vm1399_vm4, %v8269_v61  ;;  %v6944_v61 = vcombine.low %v3193_v32, %v3203_v28  ;;  %v6945_v1 = vcombine.low %v3217_v6, %v3227_v57  ;;  %v3236_v37 = vrot.slane %v3235_v3, 4  ;;  %v5932_v20 = vshrl.u32 %v10161_v2, 16 }
 0x192   : > { %7713 = vmatmul.mubr.msk.bf16.gmra.mrb[4].mxu0 %vm1399_vm4, %v10078_v50  ;;  %v3245_v50 = vor.u32 %v3244_v27, %v10133_v38  ;;  %v10178_v27 = vcombine.low %v5883_v15, %v5893_v19  ;;  %v3250_v55 = vrot.slane %v3248_v60, 5  ;;  %v6957_v33 = vrot.slane %v3430_v17, 9 }
 0x193   : > { %7716 = vmatprep.mubr.msk.bf16.mxu0 %vm1399_vm4, %v6943_v35  ;;  %v3466_v23 = vrot.slane %v3464_v45, 4  ;;  %v3467_v24 = vrot.slane %v9863_v62, 5  ;;  %v5912_v46 = vrot.slane %v5911_v52, 4  ;;  %v5924_v15 = vrot.slane %v5922_v40, 5  ;;  %v3432_v40 = vld [vmem:[#allocation2 + $0x30] sm:$0xe] }
 0x194   : > { %v3246_v35 = vrot.slane %v3245_v50, 4  ;;  %v5938_v13 = vshll.u32 %v10183_v9, 16  ;;  %v5943_v11 = vshrl.u32 %v5792_v34, 16  ;;  %v10199_v19 = vrot.slane %v5928_v31, 5  ;;  %v10230_v31 = vld [vmem:[#allocation2 + $0xd0] sm:$0xf] }
 0x195   : > { %v5946_v32 = vshll.u32 %v5792_v34, 16  ;;  %v5952_v25 = vshll.u32 %v10190_v5, 16  ;;  %v5956_v26 = vshrl.u32 %v10190_v5, 16  ;;  %v5907_v62 = vsel %vm8491_vm5, %v10185_v29, %v10147_v44  ;;  %v10232_v34 = vld [vmem:[#allocation2 + $0xc8] sm:$0x1] }
 0x196   : > { %v3251_v28 = vsel %vm8491_vm5, %v3246_v35, %v3250_v55  ;;  %v3471_v3 = vrot.slane %v9842_v8, 5  ;;  %v5934_v50 = vrot.slane %v5932_v20, 4  ;;  %v3465_v60 = vsel %vm9049_vm14, %v6957_v33, %v3464_v45  ;;  %v5795_v8 = vld [vmem:[#allocation2 + $0xcc] sm:$0xf] }
 0x197   : > { %v3478_v44 = vrot.slane %v9919_v51, 5  ;;  %v5917_v6 = vsel %vm8491_vm5, %v5912_v46, %v10181_v16  ;;  %v10223_v57 = vrot.slane %v5938_v13, 5  ;;  %v5945_v52 = vrot.slane %v5943_v11, 4  ;;  %v8274_v45 = vld [vmem:[%s10566_s4 + $0x88] sm:$0xff]  }
 0x198   : > { %7881 = vmatmul.mubr.msk.bf16.gmra.mrb[12].mxu1 %vm1399_vm4, %v8270_v0  ;;  %v3468_v0 = vsel %vm9049_vm14, %v3466_v23, %v3467_v24  ;;  %v10228_v29 = vrot.slane %v5952_v25, 5  ;;  %v5958_v51 = vrot.slane %v5956_v26, 4  ;;  %v5935_v35 = vor.u32 %v5934_v50, %v10199_v19 }
 0x199   : > { %7888 = vmatprep.mubr.msk.bf16.mxu1 %vm1399_vm4, %v9997_v18  ;;  %v3241_v18 = vsel %vm8491_vm5, %v3236_v37, %v10133_v38  ;;  %v5925_v38 = vor.u32 %v5924_v15, %v10187_v41  ;;  %v6969_v16 = vcombine.low %v3465_v60, %v3468_v0  ;;  %v6958_v41 = vrot.slane %v3431_v22, 9  ;;  %v3434_v22 = vld [vmem:[#allocation2 + $0x48] sm:$0xe] }
 0x19a   : > { %7717 = vmatmul.mubr.msk.bf16.gmra.mrb[8].mxu0 %vm1399_vm4, %v6944_v61  ;;  %v6946_v17 = vcombine.low %v3241_v18, %v3251_v28  ;;  %v5948_v61 = vrot.slane %v5946_v32, 5  ;;  %v3474_v37 = vrot.slane %v9908_v49, 5  ;;  %v6959_v55 = vrot.slane %v3432_v40, 9  ;;  %v3433_v18 = vld [vmem:[#allocation2 + $0x3c] sm:$0xe] }
 0x19b   : > { %7720 = vmatprep.mubr.msk.bf16.mxu0 %vm1399_vm4, %v6945_v1  ;;  %v3473_v1 = vrot.slane %v3471_v3, 4  ;;  %v3480_v20 = vrot.slane %v3478_v44, 4  ;;  %v3481_v33 = vrot.slane %v9954_v30, 5  ;;  %v5967_v23 = vshrl.u32 %v5795_v8, 16 }
 0x19c   : > { %v5970_v24 = vshll.u32 %v5795_v8, 16  ;;  %v5976_v46 = vshll.u32 %v10230_v31, 16  ;;  %v5980_v49 = vshrl.u32 %v10230_v31, 16  ;;  %v7177_v15 = vcombine.low %v5907_v62, %v5917_v6 }
 0x19d   : > { %v5959_v13 = vor.u32 %v5958_v51, %v10228_v29  ;;  %v5962_v30 = vshll.u32 %v10232_v34, 16  ;;  %v5926_v11 = vrot.slane %v5925_v38, 4  ;;  %v3485_v32 = vrot.slane %v9948_v56, 5 }
 0x19e   : > { %v5936_v25 = vrot.slane %v5935_v35, 4  ;;  %v3479_v26 = vsel %vm9049_vm14, %v6959_v55, %v3478_v44  ;;  %v3482_v62 = vsel %vm9049_vm14, %v3480_v20, %v3481_v33  ;;  %v3492_v28 = vrot.slane %v10002_v54, 5  ;;  %v6167_v35 = vld [vmem:[#allocation2 + $0x78] sm:$0xe] }
 0x19f   : > { %v5969_v50 = vrot.slane %v5967_v23, 4  ;;  %v5972_v60 = vrot.slane %v5970_v24, 5  ;;  %v10258_v0 = vrot.slane %v5976_v46, 5  ;;  %v5960_v38 = vrot.slane %v5959_v13, 4  ;;  %v3435_v24 = vld [vmem:[#allocation2 + $0x54] sm:$0xe] }
 0x1a0   : > { %7889 = vmatmul.mubr.msk.bf16.vlgmr.msra.gmra.mrb[0].mxu1 %vm1399_vm4, %v10034_v14  ;;  %v5949_v14 = vor.u32 %v5948_v61, %v5945_v52  ;;  %v5964_v56 = vrot.slane %v5962_v30, 5  ;;  %v10260_v52 = vld [vmem:[#allocation2 + $0xd4] sm:$0x1]  ;;  %v6971_v44 = vcombine.low %v3479_v26, %v3482_v62  ;;  %v6960_v40 = vrot.slane %v3433_v18, 9  ;;  %v3436_v13 = vld [vmem:[#allocation2 + $0x60] sm:$0xe] }
 0x1a1   : > { %7905 = vmatpush3.bf16.msra.mxu1 %v10071_v48  ;;  %7892 = vmatprep.mubr.msk.bf16.mxu1 %vm1399_vm4, %v10170_v43  ;;  %v3472_v48 = vsel %vm9049_vm14, %v6958_v41, %v3471_v3  ;;  %v3475_v43 = vsel %vm9049_vm14, %v3473_v1, %v3474_v37  ;;  %v5982_v3 = vrot.slane %v5980_v49, 4  ;;  %v3488_v61 = vrot.slane %v9989_v47, 5 }
 0x1a2   : > { %7906 = vmatprep.subr.bf16.mxu1 %v8274_v45  ;;  %7721 = vmatmul.mubr.msk.bf16.gmra.mrb[12].mxu0 %vm1399_vm4, %v6946_v17  ;;  %v5950_v6 = vrot.slane %v5949_v14, 4  ;;  %v6970_v8 = vcombine.low %v3472_v48, %v3475_v43  ;;  %v3487_v17 = vrot.slane %v3485_v32, 4  ;;  %v5931_v54 = vsel %vm8491_vm5, %v5926_v11, %v10199_v19 }
 0x1a3   : > { %7728 = vmatprep.mubr.msk.bf16.mxu0 %vm1399_vm4, %v6969_v16  ;;  %v3494_v51 = vrot.slane %v3492_v28, 4  ;;  %v3495_v16 = vrot.slane %v10037_v39, 5  ;;  %v5941_v41 = vsel %vm8491_vm5, %v5936_v25, %v10223_v57  ;;  %v5973_v1 = vor.u32 %v5972_v60, %v5969_v50  ;;  %v10631_v50 = vld [vmem:[#allocation8_spill] sm:$0xff] }
 0x1a4   : > { %v5983_v47 = vor.u32 %v5982_v3, %v10258_v0  ;;  %v5986_v37 = vshll.u32 %v10260_v52, 16  ;;  %v5965_v19 = vsel %vm8491_vm5, %v5960_v38, %v5964_v56  ;;  %v6201_v39 = vrot.slane %v9870_v53, 5  ;;  %v6169_v38 = vld [vmem:[#allocation2 + $0x90] sm:$0xe]  ;;  %v10633_v56 = vld [vmem:[#allocation5_spill] sm:$0xff] }
 0x1a5   : > { %7907 = vmatpush3.bf16.msra.mxu1 %v8274_v45  ;;  %v6961_v45 = vrot.slane %v3434_v22, 9  ;;  %v3486_v57 = vsel %vm9049_vm14, %v6960_v40, %v3485_v32  ;;  %v3489_v55 = vsel %vm9049_vm14, %v3487_v17, %v3488_v61  ;;  %v3499_v20 = vrot.slane %v10053_v21, 5  ;;  %v6168_v22 = vld [vmem:[#allocation2 + $0x84] sm:$0xe]  ;;  %v3437_v61 = vld [vmem:[#allocation2 + $0x6c] sm:$0xe] }
 0x1a6   : > { %v7178_v33 = vcombine.low %v5931_v54, %v5941_v41  ;;  %v3496_v23 = vsel %vm9049_vm14, %v3494_v51, %v3495_v16  ;;  %v3506_v53 = vrot.slane %v10065_v59, 5  ;;  %v5974_v49 = vrot.slane %v5973_v1, 4  ;;  %v10634_v16 = vld [vmem:[#allocation3_spill] sm:$0xff] }
 0x1a7   : > { %v5988_v14 = vrot.slane %v5986_v37, 5  ;;  %v7191_v30 = vrot.slane %v6167_v35, 9  ;;  %v6203_v11 = vrot.slane %v6201_v39, 4  ;;  %v6204_v48 = vrot.slane %v9910_v7, 5  ;;  %v10635_v37 = vld [vmem:[#allocation9_spill] sm:$0xff] }
 0x1a8   : > { %7893 = vmatmul.mubr.msk.bf16.gmra.mrb[4].mxu1 %vm1399_vm4, %v10178_v27  ;;  %v5955_v27 = vsel %vm8491_vm5, %v5950_v6, %v10228_v29  ;;  %v3493_v29 = vsel %vm9049_vm14, %v6961_v45, %v3492_v28  ;;  %v6972_v21 = vcombine.low %v3486_v57, %v3489_v55  ;;  %v6962_v32 = vrot.slane %v3435_v24, 9 }
 0x1a9   : > { %7896 = vmatprep.mubr.msk.bf16.mxu1 %vm1399_vm4, %v7177_v15  ;;  %v7179_v46 = vcombine.low %v5955_v27, %v5965_v19  ;;  %v5984_v15 = vrot.slane %v5983_v47, 4  ;;  %v6973_v43 = vcombine.low %v3493_v29, %v3496_v23  ;;  %v3501_v25 = vrot.slane %v3499_v20, 4  ;;  %v10636_v29 = vld [vmem:[#allocation12_spill] sm:$0xff] }
 0x1aa   : > { %7729 = vmatmul.mubr.msk.bf16.vlgmr.msra.gmra.mrb[0].mxu0 %vm1399_vm4, %v6970_v8  ;;  %v3502_v26 = vrot.slane %v10084_v42, 5  ;;  %v6963_v62 = vrot.slane %v3436_v13, 9  ;;  %v3508_v18 = vrot.slane %v3506_v53, 4  ;;  %v3509_v59 = vrot.slane %v10113_v4, 5  ;;  %v10632_v4 = vld [vmem:[#allocation4_spill] sm:$0xff] }
 0x1ab   : > { %7732 = vmatprep.mubr.msk.bf16.mxu0 %vm1399_vm4, %v6971_v44  ;;  %v5979_v28 = vsel %vm8491_vm5, %v5974_v49, %v10258_v0  ;;  %v5989_v7 = vsel %vm8491_vm5, %v5984_v15, %v5988_v14  ;;  %v6208_v60 = vrot.slane %v10631_v50, 5  ;;  %v6202_v42 = vsel %vm9049_vm14, %v7191_v30, %v6201_v39  ;;  %v6171_v49 = vld [vmem:[#allocation2 + $0xa8] sm:$0xe] }
 0x1ac   : > { %v6205_v3 = vsel %vm9049_vm14, %v6203_v11, %v6204_v48  ;;  %v6215_v6 = vrot.slane %v10632_v4, 5  ;;  %v3500_v36 = vsel %vm9049_vm14, %v6962_v32, %v3499_v20  ;;  %v3503_v0 = vsel %vm9049_vm14, %v3501_v25, %v3502_v26 }
 0x1ad   : > { %v3513_v8 = vrot.slane %v10633_v56, 5  ;;  %v7180_v44 = vcombine.low %v5979_v28, %v5989_v7  ;;  %v3507_v40 = vsel %vm9049_vm14, %v6963_v62, %v3506_v53  ;;  %v3510_v17 = vsel %vm9049_vm14, %v3508_v18, %v3509_v59 }
 0x1ae   : > { %v7203_v54 = vcombine.low %v6202_v42, %v6205_v3  ;;  %v7192_v45 = vrot.slane %v6168_v22, 9  ;;  %v6210_v51 = vrot.slane %v6208_v60, 4  ;;  %v6211_v41 = vrot.slane %v10634_v16, 5 }
 0x1af   : > { %v7193_v1 = vrot.slane %v6169_v38, 9  ;;  %v6217_v47 = vrot.slane %v6215_v6, 4  ;;  %v6218_v27 = vrot.slane %v10635_v37, 5  ;;  %v6974_v19 = vcombine.low %v3500_v36, %v3503_v0 }
 0x1b0   : > { %7897 = vmatmul.mubr.msk.bf16.gmra.mrb[8].mxu1 %vm1399_vm4, %v7178_v33  ;;  %v6975_v39 = vcombine.low %v3507_v40, %v3510_v17  ;;  %v6964_v35 = vrot.slane %v3437_v61, 9  ;;  %v3515_v57 = vrot.slane %v3513_v8, 4  ;;  %v3516_v55 = vrot.slane %v10140_v10, 5 }
 0x1b1   : > { %7900 = vmatprep.mubr.msk.bf16.mxu1 %vm1399_vm4, %v7179_v46  ;;  %v6209_v20 = vsel %vm9049_vm14, %v7192_v45, %v6208_v60  ;;  %v6212_v33 = vsel %vm9049_vm14, %v6210_v51, %v6211_v41  ;;  %v6222_v23 = vrot.slane %v10636_v29, 5  ;;  %v6216_v24 = vsel %vm9049_vm14, %v7193_v1, %v6215_v6  ;;  %v6170_v46 = vld [vmem:[#allocation2 + $0x9c] sm:$0xe]  ;;  %v6173_v60 = vld [vmem:[#allocation2 + $0xc0] sm:$0xe] }
 0x1b2   : > { %7733 = vmatmul.mubr.msk.bf16.gmra.mrb[4].mxu0 %vm1399_vm4, %v6972_v21  ;;  %v6219_v53 = vsel %vm9049_vm14, %v6217_v47, %v6218_v27  ;;  %v6229_v10 = vrot.slane %v10120_v63, 5  ;;  %v3514_v15 = vsel %vm9049_vm14, %v6964_v35, %v3513_v8  ;;  %v3517_v14 = vsel %vm9049_vm14, %v3515_v57, %v3516_v55  ;;  %v10637_v21 = vld [vmem:[#allocation6_spill] sm:$0xff] }
 0x1b3   : > { %7736 = vmatprep.mubr.msk.bf16.mxu0 %vm1399_vm4, %v6973_v43  ;;  %v7204_v13 = vcombine.low %v6209_v20, %v6212_v33  ;;  %v7205_v30 = vcombine.low %v6216_v24, %v6219_v53  ;;  %v7194_v11 = vrot.slane %v6170_v46, 9  ;;  %v6224_v48 = vrot.slane %v6222_v23, 4 }
 0x1b4   : > { %v6225_v43 = vrot.slane %v10637_v21, 5  ;;  %v7195_v32 = vrot.slane %v6171_v49, 9  ;;  %v6231_v25 = vrot.slane %v6229_v10, 4  ;;  %v6232_v26 = vrot.slane %v10131_v12, 5  ;;  %v6172_v12 = vld [vmem:[#allocation2 + $0xb4] sm:$0xe] }
 0x1b5   : > { %v6976_v63 = vcombine.low %v3514_v15, %v3517_v14  ;;  %v6223_v62 = vsel %vm9049_vm14, %v7194_v11, %v6222_v23  ;;  %v6236_v59 = vrot.slane %v10161_v2, 5  ;;  %v6243_v50 = vrot.slane %v10190_v5, 5 }
 0x1b6   : > { %v6226_v18 = vsel %vm9049_vm14, %v6224_v48, %v6225_v43  ;;  %v6230_v28 = vsel %vm9049_vm14, %v7195_v32, %v6229_v10  ;;  %v6233_v7 = vsel %vm9049_vm14, %v6231_v25, %v6232_v26  ;;  %v7196_v22 = vrot.slane %v6172_v12, 9 }
 0x1b7   : > { %v7206_v42 = vcombine.low %v6223_v62, %v6226_v18  ;;  %v7207_v3 = vcombine.low %v6230_v28, %v6233_v7  ;;  %v6238_v4 = vrot.slane %v6236_v59, 4  ;;  %v6239_v6 = vrot.slane %v10183_v9, 5 }
 0x1b8   : > { %7901 = vmatmul.mubr.msk.bf16.gmra.mrb[12].mxu1 %vm1399_vm4, %v7180_v44  ;;  %v7197_v38 = vrot.slane %v6173_v60, 9  ;;  %v6245_v2 = vrot.slane %v6243_v50, 4  ;;  %v6246_v36 = vrot.slane %v10232_v34, 5  ;;  %v6237_v0 = vsel %vm9049_vm14, %v7196_v22, %v6236_v59  ;;  %v6174_v34 = vld [vmem:[#allocation2 + $0xcc] sm:$0xe] }
 0x1b9   : > { %7908 = vmatprep.mubr.msk.bf16.mxu1 %vm1399_vm4, %v7203_v54  ;;  %v6240_v5 = vsel %vm9049_vm14, %v6238_v4, %v6239_v6  ;;  %v6250_v56 = vrot.slane %v10230_v31, 5  ;;  %v7198_v17 = vrot.slane %v6174_v34, 9  ;;  %v6253_v54 = vrot.slane %v10260_v52, 5 }
 0x1ba   : > { %7737 = vmatmul.mubr.msk.bf16.gmra.mrb[8].mxu0 %vm1399_vm4, %v6974_v19  ;;  %v6244_v9 = vsel %vm9049_vm14, %v7197_v38, %v6243_v50  ;;  %v6247_v8 = vsel %vm9049_vm14, %v6245_v2, %v6246_v36  ;;  %v7208_v44 = vcombine.low %v6237_v0, %v6240_v5  ;;  %v8329_v52 = vmov 0.0  }
 0x1bb   : > { %7740 = vmatprep.mubr.msk.bf16.mxu0 %vm1399_vm4, %v6975_v39  ;;  %v7209_v40 = vcombine.low %v6244_v9, %v6247_v8  ;;  %v6252_v61 = vrot.slane %v6250_v56, 4  ;;  %v6251_v31 = vsel %vm9049_vm14, %v7198_v17, %v6250_v56  ;;  %293 = vst.msk [vmem:[%s10381_s16] sm:$0x3] %vm292_vm15, %v8329_v52 }
 0x1bd   : > { %v6254_v45 = vsel %vm9049_vm14, %v6252_v61, %v6253_v54 }
 0x1be   : > { %v7210_v51 = vcombine.low %v6251_v31, %v6254_v45 }
 0x1c0   : > { %7909 = vmatmul.mubr.msk.bf16.vlgmr.msra.gmra.mrb[0].mxu1 %vm1399_vm4, %v7204_v13 }
 0x1c1   : > { %7912 = vmatprep.mubr.msk.bf16.mxu1 %vm1399_vm4, %v7205_v30 }
 0x1c2   : > { %7741 = vmatmul.mubr.msk.bf16.gmra.mrb[12].mxu0 %vm1399_vm4, %v6976_v63 }
 0x1c8   : > { %7913 = vmatmul.mubr.msk.bf16.gmra.mrb[4].mxu1 %vm1399_vm4, %v7206_v42 }
 0x1c9   : > { %7916 = vmatprep.mubr.msk.bf16.mxu1 %vm1399_vm4, %v7207_v3 }
 0x1d0   : > { %7917 = vmatmul.mubr.msk.bf16.gmra.mrb[8].mxu1 %vm1399_vm4, %v7208_v44 }
 0x1d1   : > { %7920 = vmatprep.mubr.msk.bf16.mxu1 %vm1399_vm4, %v7209_v40 }
 0x1d8   : > { %7921 = vmatmul.mubr.msk.bf16.gmra.mrb[12].mxu1 %vm1399_vm4, %v7210_v51 }
 0x27d   : > { %v7730_v58 = vpop.f32.mrb[0].mxu0 }
 0x27e   : > { %v7275_v16 = vpack.c.bf16 %v7730_v58, %v7730_v58  ;;  %v3617_v41 = vpop.f32.mrb[1].mxu0 }
 0x27f   : > { %v7273_v1 = vpack.c.bf16 %v3617_v41, %v3617_v41  ;;  %v7731_v47 = vpop.f32.mrb[2].mxu0 }
 0x280   : > { %3762 = vst.msk [vmem:[%s10389_s29 + $0x8] sm:$0xf] %vm294_vm0, %v7275_v16  ;;  %v3697_v37 = vpack.c.bf16 %v7731_v47, %v7730_v58  ;;  %v7276_v27 = vpack.c.bf16 %v7731_v47, %v7731_v47  ;;  %v3620_v19 = vpop.f32.mrb[3].mxu0 }
 0x281   : > { %3760 = vst.msk [vmem:[%s10389_s29] sm:$0xf] %vm294_vm0, %v7273_v1  ;;  %v3696_v39 = vpack.c.bf16 %v3620_v19, %v3617_v41  ;;  %v7274_v35 = vpack.c.bf16 %v3620_v19, %v3620_v19 }
 0x282   : > { %3763 = vst.msk [vmem:[%s10389_s29 + $0xc] sm:$0xf] %vm294_vm0, %v7276_v27  ;;  %v3778_v57 = vunpack.c.l.bf16 %v3697_v37  ;;  %v3779_v55 = vunpack.c.h.bf16 %v3697_v37 }
 0x283   : > { %3761 = vst.msk [vmem:[%s10389_s29 + $0x4] sm:$0xf] %vm294_vm0, %v7274_v35  ;;  %v3776_v20 = vunpack.c.l.bf16 %v3696_v39  ;;  %v3777_v33 = vunpack.c.h.bf16 %v3696_v39 }
 0x284   : > { %v3832_v29 = vmul.f32 %v3778_v57, %v3778_v57  ;;  %v3795_v49 = vsel %vm1399_vm4, %v3778_v57, 0.0  ;;  %v3833_v30 = vmul.f32 %v3779_v55, %v3779_v55  ;;  %v3797_v18 = vsel %vm1399_vm4, %v3779_v55, 0.0 }
 0x285   : > { %v3792_v23 = vsel %vm1399_vm4, %v3776_v20, 0.0  ;;  %v3793_v24 = vsel %vm1399_vm4, %v3777_v33, 0.0  ;;  %v3830_v53 = vmul.f32 %v3776_v20, %v3776_v20  ;;  %v3831_v46 = vmul.f32 %v3777_v33, %v3777_v33  ;;  %v7734_v10 = vpop.f32.mrb[4].mxu0 }
 0x286   : > { %v3794_v15 = vadd.f32 %v3793_v24, %v3792_v23  ;;  %v7279_v14 = vpack.c.bf16 %v7734_v10, %v7734_v10  ;;  %v3633_v13 = vpop.f32.mrb[5].mxu0  ;;  %v3849_v59 = vsel %vm1399_vm4, %v3832_v29, 0.0  ;;  %v3851_v22 = vsel %vm1399_vm4, %v3833_v30, 0.0 }
 0x287   : > { %v3846_v11 = vsel %vm1399_vm4, %v3830_v53, 0.0  ;;  %v3847_v48 = vsel %vm1399_vm4, %v3831_v46, 0.0  ;;  %v7277_v21 = vpack.c.bf16 %v3633_v13, %v3633_v13  ;;  %v7735_v43 = vpop.f32.mrb[6].mxu0 }
 0x288   : > { %v3796_v32 = vadd.f32 %v3795_v49, %v3794_v15  ;;  %v3848_v25 = vadd.f32 %v3847_v48, %v3846_v11  ;;  %3766 = vst.msk [vmem:[%s10389_s29 + $0x18] sm:$0xf] %vm294_vm0, %v7279_v14  ;;  %v3699_v26 = vpack.c.bf16 %v7735_v43, %v7734_v10  ;;  %v7280_v63 = vpack.c.bf16 %v7735_v43, %v7735_v43  ;;  %v3636_v62 = vpop.f32.mrb[7].mxu0 }
 0x289   : > { %3764 = vst.msk [vmem:[%s10389_s29 + $0x10] sm:$0xf] %vm294_vm0, %v7277_v21  ;;  %v3698_v28 = vpack.c.bf16 %v3636_v62, %v3633_v13  ;;  %v7278_v7 = vpack.c.bf16 %v3636_v62, %v3636_v62 }
 0x28a   : > { %v3850_v12 = vadd.f32 %v3849_v59, %v3848_v25  ;;  %3767 = vst.msk [vmem:[%s10389_s29 + $0x1c] sm:$0xf] %vm294_vm0, %v7280_v63  ;;  %v3782_v50 = vunpack.c.l.bf16 %v3699_v26  ;;  %v3798_v60 = vadd.f32 %v3797_v18, %v3796_v32  ;;  %v3783_v4 = vunpack.c.h.bf16 %v3699_v26 }
 0x28b   : > { %3765 = vst.msk [vmem:[%s10389_s29 + $0x14] sm:$0xf] %vm294_vm0, %v7278_v7  ;;  %v3780_v42 = vunpack.c.l.bf16 %v3698_v28  ;;  %v3781_v3 = vunpack.c.h.bf16 %v3698_v28 }
 0x28c   : > { %v3803_v0 = vsel %vm1399_vm4, %v3782_v50, 0.0  ;;  %v3836_v5 = vmul.f32 %v3782_v50, %v3782_v50  ;;  %v3852_v9 = vadd.f32 %v3851_v22, %v3850_v12  ;;  %v3837_v58 = vmul.f32 %v3783_v4, %v3783_v4 }
 0x28d   : > { %v3799_v6 = vsel %vm1399_vm4, %v3780_v42, 0.0  ;;  %v3834_v38 = vmul.f32 %v3780_v42, %v3780_v42  ;;  %v3835_v2 = vmul.f32 %v3781_v3, %v3781_v3  ;;  %v7738_v36 = vpop.f32.mrb[8].mxu0  ;;  %v3801_v34 = vsel %vm1399_vm4, %v3781_v3, 0.0 }
 0x28e   : > { %v3800_v56 = vadd.f32 %v3799_v6, %v3798_v60  ;;  %v3649_v8 = vpop.f32.mrb[9].mxu0  ;;  %v7283_v40 = vpack.c.bf16 %v7738_v36, %v7738_v36  ;;  %v3857_v19 = vsel %vm1399_vm4, %v3836_v5, 0.0  ;;  %v3805_v20 = vsel %vm1399_vm4, %v3783_v4, 0.0 }
 0x28f   : > { %v3853_v44 = vsel %vm1399_vm4, %v3834_v38, 0.0  ;;  %v7281_v17 = vpack.c.bf16 %v3649_v8, %v3649_v8  ;;  %v7739_v61 = vpop.f32.mrb[10].mxu0  ;;  %v3855_v16 = vsel %vm1399_vm4, %v3835_v2, 0.0  ;;  %v3859_v53 = vsel %vm1399_vm4, %v3837_v58, 0.0 }
 0x290   : > { %v3802_v54 = vadd.f32 %v3801_v34, %v3800_v56  ;;  %v3854_v31 = vadd.f32 %v3853_v44, %v3852_v9  ;;  %v3701_v45 = vpack.c.bf16 %v7739_v61, %v7738_v36  ;;  %v7284_v51 = vpack.c.bf16 %v7739_v61, %v7739_v61  ;;  %v3652_v52 = vpop.f32.mrb[11].mxu0  ;;  %3770 = vst.msk [vmem:[%s10389_s29 + $0x28] sm:$0xf] %vm294_vm0, %v7283_v40 }
 0x291   : > { %3768 = vst.msk [vmem:[%s10389_s29 + $0x20] sm:$0xf] %vm294_vm0, %v7281_v17  ;;  %v3700_v41 = vpack.c.bf16 %v3652_v52, %v3649_v8  ;;  %v7282_v1 = vpack.c.bf16 %v3652_v52, %v3652_v52 }
 0x292   : > { %v3804_v47 = vadd.f32 %v3803_v0, %v3802_v54  ;;  %v3856_v37 = vadd.f32 %v3855_v16, %v3854_v31  ;;  %3771 = vst.msk [vmem:[%s10389_s29 + $0x2c] sm:$0xf] %vm294_vm0, %v7284_v51  ;;  %v3786_v39 = vunpack.c.l.bf16 %v3701_v45  ;;  %v10435_v13 = vunpack.c.h.bf16 %v3701_v45 }
 0x293   : > { %v7910_v27 = vpop.f32.mrb[0].mxu1  ;;  %3769 = vst.msk [vmem:[%s10389_s29 + $0x24] sm:$0xf] %vm294_vm0, %v7282_v1  ;;  %v3784_v35 = vunpack.c.l.bf16 %v3700_v41  ;;  %v3785_v29 = vunpack.c.h.bf16 %v3700_v41 }
 0x294   : > { %v7291_v57 = vpack.c.bf16 %v7910_v27, %v7910_v27  ;;  %v6353_v55 = vpop.f32.mrb[1].mxu1  ;;  %v3858_v33 = vadd.f32 %v3857_v19, %v3856_v37  ;;  %v3806_v46 = vadd.f32 %v3805_v20, %v3804_v47  ;;  %v3811_v43 = vsel %vm1399_vm4, %v3786_v39, 0.0 }
 0x295   : > { %v7289_v23 = vpack.c.bf16 %v6353_v55, %v6353_v55  ;;  %v7911_v24 = vpop.f32.mrb[2].mxu1  ;;  %v10431_v10 = vpop.f32.mrb[12].mxu0  ;;  %v3807_v30 = vsel %vm1399_vm4, %v3784_v35, 0.0  ;;  %v3840_v32 = vmul.f32 %v3786_v39, %v3786_v39  ;;  %v3809_v18 = vsel %vm1399_vm4, %v3785_v29, 0.0 }
 0x296   : > { %6498 = vst.msk [vmem:[%s10389_s29 + $0x48] sm:$0xf] %vm294_vm0, %v7291_v57  ;;  %v6433_v49 = vpack.c.bf16 %v7911_v24, %v7910_v27  ;;  %v7292_v15 = vpack.c.bf16 %v7911_v24, %v7911_v24  ;;  %v6356_v14 = vpop.f32.mrb[3].mxu1  ;;  %v10438_v11 = vpop.f32.mrb[13].mxu0  ;;  %v3808_v62 = vadd.f32 %v3807_v30, %v3806_v46  ;;  %v3838_v12 = vmul.f32 %v3784_v35, %v3784_v35 }
 0x297   : > { %6496 = vst.msk [vmem:[%s10389_s29 + $0x40] sm:$0xf] %vm294_vm0, %v7289_v23  ;;  %v6432_v48 = vpack.c.bf16 %v6356_v14, %v6353_v55  ;;  %v7290_v21 = vpack.c.bf16 %v6356_v14, %v6356_v14  ;;  %v10443_v25 = vpop.f32.mrb[14].mxu0  ;;  %v3860_v50 = vadd.f32 %v3859_v53, %v3858_v33  ;;  %v3839_v22 = vmul.f32 %v3785_v29, %v3785_v29 }
 0x298   : > { %6499 = vst.msk [vmem:[%s10389_s29 + $0x4c] sm:$0xf] %vm294_vm0, %v7292_v15  ;;  %v6514_v26 = vunpack.c.l.bf16 %v6433_v49  ;;  %v6515_v63 = vunpack.c.h.bf16 %v6433_v49  ;;  %v10448_v59 = vpop.f32.mrb[15].mxu0  ;;  %v3810_v61 = vadd.f32 %v3809_v18, %v3808_v62  ;;  %v3861_v1 = vsel %vm1399_vm4, %v3838_v12, 0.0 }
 0x299   : > { %6497 = vst.msk [vmem:[%s10389_s29 + $0x44] sm:$0xf] %vm294_vm0, %v7290_v21  ;;  %v6512_v28 = vunpack.c.l.bf16 %v6432_v48  ;;  %v6513_v7 = vunpack.c.h.bf16 %v6432_v48  ;;  %v3865_v57 = vsel %vm1399_vm4, %v3840_v32, 0.0  ;;  %v3862_v55 = vadd.f32 %v3861_v1, %v3860_v50 }
 0x29a   : > { %v6531_v60 = vsel %vm1399_vm4, %v6514_v26, 0.0  ;;  %v6533_v42 = vsel %vm1399_vm4, %v6515_v63, 0.0  ;;  %v6568_v3 = vmul.f32 %v6514_v26, %v6514_v26  ;;  %v6569_v0 = vmul.f32 %v6515_v63, %v6515_v63 }
 0x29b   : > { %v6528_v4 = vsel %vm1399_vm4, %v6512_v28, 0.0  ;;  %v6529_v6 = vsel %vm1399_vm4, %v6513_v7, 0.0  ;;  %v6566_v38 = vmul.f32 %v6512_v28, %v6512_v28  ;;  %v6567_v2 = vmul.f32 %v6513_v7, %v6513_v7  ;;  %v7914_v36 = vpop.f32.mrb[4].mxu1 }
 0x29c   : > { %v6585_v5 = vsel %vm1399_vm4, %v6568_v3, 0.0  ;;  %v6530_v56 = vadd.f32 %v6529_v6, %v6528_v4  ;;  %v7295_v9 = vpack.c.bf16 %v7914_v36, %v7914_v36  ;;  %v6369_v8 = vpop.f32.mrb[5].mxu1  ;;  %v10463_v41 = vadd.f32 %v3811_v43, %v3810_v61 }
 0x29d   : > { %v6582_v34 = vsel %vm1399_vm4, %v6566_v38, 0.0  ;;  %v6583_v44 = vsel %vm1399_vm4, %v6567_v2, 0.0  ;;  %v7293_v40 = vpack.c.bf16 %v6369_v8, %v6369_v8  ;;  %v7915_v17 = vpop.f32.mrb[6].mxu1  ;;  %v6587_v20 = vsel %vm1399_vm4, %v6569_v0, 0.0 }
 0x29e   : > { %v6532_v54 = vadd.f32 %v6531_v60, %v6530_v56  ;;  %v6584_v31 = vadd.f32 %v6583_v44, %v6582_v34  ;;  %6502 = vst.msk [vmem:[%s10389_s29 + $0x58] sm:$0xf] %vm294_vm0, %v7295_v9  ;;  %v6435_v45 = vpack.c.bf16 %v7915_v17, %v7914_v36  ;;  %v7296_v51 = vpack.c.bf16 %v7915_v17, %v7915_v17  ;;  %v6372_v52 = vpop.f32.mrb[7].mxu1 }
 0x29f   : > { %6500 = vst.msk [vmem:[%s10389_s29 + $0x50] sm:$0xf] %vm294_vm0, %v7293_v40  ;;  %v6434_v58 = vpack.c.bf16 %v6372_v52, %v6369_v8  ;;  %v7294_v16 = vpack.c.bf16 %v6372_v52, %v6372_v52  ;;  %v3863_v23 = vsel %vm1399_vm4, %v3839_v22, 0.0  ;;  %v7287_v4 = vpack.c.bf16 %v10431_v10, %v10431_v10 }
 0x2a0   : > { %v6586_v47 = vadd.f32 %v6585_v5, %v6584_v31  ;;  %6503 = vst.msk [vmem:[%s10389_s29 + $0x5c] sm:$0xf] %vm294_vm0, %v7296_v51  ;;  %v6518_v37 = vunpack.c.l.bf16 %v6435_v45  ;;  %v6519_v27 = vunpack.c.h.bf16 %v6435_v45  ;;  %v6534_v19 = vadd.f32 %v6533_v42, %v6532_v54 }
 0x2a1   : > { %6501 = vst.msk [vmem:[%s10389_s29 + $0x54] sm:$0xf] %vm294_vm0, %v7294_v16  ;;  %v6516_v39 = vunpack.c.l.bf16 %v6434_v58  ;;  %v6517_v35 = vunpack.c.h.bf16 %v6434_v58  ;;  %v3864_v12 = vadd.f32 %v3863_v23, %v3862_v55  ;;  %3774 = vst.msk [vmem:[%s10389_s29 + $0x38] sm:$0xf] %vm294_vm0, %v7287_v4  ;;  %v7285_v9 = vpack.c.bf16 %v10438_v11, %v10438_v11 }
 0x2a2   : > { %v6539_v33 = vsel %vm1399_vm4, %v6518_v37, 0.0  ;;  %v6541_v29 = vsel %vm1399_vm4, %v6519_v27, 0.0  ;;  %v6572_v24 = vmul.f32 %v6518_v37, %v6518_v37  ;;  %v6573_v14 = vmul.f32 %v6519_v27, %v6519_v27 }
 0x2a3   : > { %v6535_v53 = vsel %vm1399_vm4, %v6516_v39, 0.0  ;;  %v6570_v46 = vmul.f32 %v6516_v39, %v6516_v39  ;;  %v6571_v49 = vmul.f32 %v6517_v35, %v6517_v35  ;;  %v7918_v15 = vpop.f32.mrb[8].mxu1  ;;  %v6537_v48 = vsel %vm1399_vm4, %v6517_v35, 0.0  ;;  %3772 = vst.msk [vmem:[%s10389_s29 + $0x30] sm:$0xf] %vm294_vm0, %v7285_v9 }
 0x2a4   : > { %v6536_v30 = vadd.f32 %v6535_v53, %v6534_v19  ;;  %v6588_v21 = vadd.f32 %v6587_v20, %v6586_v47  ;;  %v6385_v43 = vpop.f32.mrb[9].mxu1  ;;  %v7299_v63 = vpack.c.bf16 %v7918_v15, %v7918_v15  ;;  %v3866_v2 = vadd.f32 %v3865_v57, %v3864_v12 }
 0x2a5   : > { %v6589_v32 = vsel %vm1399_vm4, %v6570_v46, 0.0  ;;  %v6591_v26 = vsel %vm1399_vm4, %v6571_v49, 0.0  ;;  %v7297_v62 = vpack.c.bf16 %v6385_v43, %v6385_v43  ;;  %v7919_v18 = vpop.f32.mrb[10].mxu1  ;;  %v6593_v0 = vsel %vm1399_vm4, %v6572_v24, 0.0 }
 0x2a6   : > { %v6538_v28 = vadd.f32 %v6537_v48, %v6536_v30  ;;  %v6590_v7 = vadd.f32 %v6589_v32, %v6588_v21  ;;  %v6437_v50 = vpack.c.bf16 %v7919_v18, %v7918_v15  ;;  %v6388_v60 = vpop.f32.mrb[11].mxu1  ;;  %6506 = vst.msk [vmem:[%s10389_s29 + $0x68] sm:$0xf] %vm294_vm0, %v7299_v63  ;;  %v7300_v42 = vpack.c.bf16 %v7919_v18, %v7919_v18 }
 0x2a7   : > { %6504 = vst.msk [vmem:[%s10389_s29 + $0x60] sm:$0xf] %vm294_vm0, %v7297_v62  ;;  %v6436_v3 = vpack.c.bf16 %v6388_v60, %v6385_v43  ;;  %v7298_v22 = vpack.c.bf16 %v6388_v60, %v6388_v60  ;;  %v3813_v34 = vsel %vm1399_vm4, %v10435_v13, 0.0  ;;  %v6595_v40 = vsel %vm1399_vm4, %v6573_v14, 0.0 }
 0x2a8   : > { %v6540_v6 = vadd.f32 %v6539_v33, %v6538_v28  ;;  %v6592_v38 = vadd.f32 %v6591_v26, %v6590_v7  ;;  %v6522_v36 = vunpack.c.l.bf16 %v6437_v50  ;;  %6507 = vst.msk [vmem:[%s10389_s29 + $0x6c] sm:$0xf] %vm294_vm0, %v7300_v42  ;;  %v3841_v17 = vmul.f32 %v10435_v13, %v10435_v13 }
 0x2a9   : > { %6505 = vst.msk [vmem:[%s10389_s29 + $0x64] sm:$0xf] %vm294_vm0, %v7298_v22  ;;  %v6520_v5 = vunpack.c.l.bf16 %v6436_v3  ;;  %v6521_v56 = vunpack.c.h.bf16 %v6436_v3  ;;  %v6523_v61 = vunpack.c.h.bf16 %v6437_v50  ;;  %v3703_v13 = vpack.c.bf16 %v10443_v25, %v10431_v10 }
 0x2aa   : > { %v6594_v8 = vadd.f32 %v6593_v0, %v6592_v38  ;;  %v6542_v44 = vadd.f32 %v6541_v29, %v6540_v6  ;;  %v6547_v45 = vsel %vm1399_vm4, %v6522_v36, 0.0  ;;  %v6576_v19 = vmul.f32 %v6522_v36, %v6522_v36 }
 0x2ab   : > { %v6543_v54 = vsel %vm1399_vm4, %v6520_v5, 0.0  ;;  %v7922_v31 = vpop.f32.mrb[12].mxu1  ;;  %v6574_v52 = vmul.f32 %v6520_v5, %v6520_v5  ;;  %v6575_v58 = vmul.f32 %v6521_v56, %v6521_v56  ;;  %v6545_v1 = vsel %vm1399_vm4, %v6521_v56, 0.0 }
 0x2ac   : > { %v6544_v51 = vadd.f32 %v6543_v54, %v6542_v44  ;;  %v6401_v16 = vpop.f32.mrb[13].mxu1  ;;  %v6596_v47 = vadd.f32 %v6595_v40, %v6594_v8  ;;  %v7303_v37 = vpack.c.bf16 %v7922_v31, %v7922_v31  ;;  %v7288_v57 = vpack.c.bf16 %v10443_v25, %v10443_v25 }
 0x2ad   : > { %v7923_v27 = vpop.f32.mrb[14].mxu1  ;;  %v6597_v35 = vsel %vm1399_vm4, %v6574_v52, 0.0  ;;  %v6577_v20 = vmul.f32 %v6523_v61, %v6523_v61  ;;  %v6599_v29 = vsel %vm1399_vm4, %v6575_v58, 0.0  ;;  %v7301_v23 = vpack.c.bf16 %v6401_v16, %v6401_v16 }
 0x2ae   : > { %v6546_v39 = vadd.f32 %v6545_v1, %v6544_v51  ;;  %v6404_v55 = vpop.f32.mrb[15].mxu1  ;;  %v6598_v33 = vadd.f32 %v6597_v35, %v6596_v47  ;;  %6510 = vst.msk [vmem:[%s10389_s29 + $0x78] sm:$0xf] %vm294_vm0, %v7303_v37  ;;  %3775 = vst.msk [vmem:[%s10389_s29 + $0x3c] sm:$0xf] %vm294_vm0, %v7288_v57  ;;  %v3702_v10 = vpack.c.bf16 %v10448_v59, %v10438_v11  ;;  %v3867_v46 = vsel %vm1399_vm4, %v3841_v17, 0.0 }
 0x2af   : > { %v7286_v53 = vpack.c.bf16 %v10448_v59, %v10448_v59  ;;  %v3814_v25 = vadd.f32 %v3813_v34, %v10463_v41  ;;  %v3790_v15 = vunpack.c.l.bf16 %v3703_v13  ;;  %6508 = vst.msk [vmem:[%s10389_s29 + $0x70] sm:$0xf] %vm294_vm0, %v7301_v23  ;;  %v6601_v14 = vsel %vm1399_vm4, %v6576_v19, 0.0 }
 0x2b0   : > { %v6548_v24 = vadd.f32 %v6547_v45, %v6546_v39  ;;  %v6600_v49 = vadd.f32 %v6599_v29, %v6598_v33  ;;  %v3788_v30 = vunpack.c.l.bf16 %v3702_v10  ;;  %v3789_v48 = vunpack.c.h.bf16 %v3702_v10 }
 0x2b1   : > { %3773 = vst.msk [vmem:[%s10389_s29 + $0x34] sm:$0xf] %vm294_vm0, %v7286_v53  ;;  %v3868_v21 = vadd.f32 %v3867_v46, %v3866_v2  ;;  %v3791_v43 = vunpack.c.h.bf16 %v3703_v13  ;;  %v6439_v32 = vpack.c.bf16 %v7923_v27, %v7922_v31  ;;  %v7304_v59 = vpack.c.bf16 %v7923_v27, %v7923_v27 }
 0x2b2   : > { %v6602_v11 = vadd.f32 %v6601_v14, %v6600_v49  ;;  %v6549_v41 = vsel %vm1399_vm4, %v6523_v61, 0.0  ;;  %v6603_v26 = vsel %vm1399_vm4, %v6577_v20, 0.0  ;;  %v3815_v63 = vsel %vm1399_vm4, %v3788_v30, 0.0 }
 0x2b3   : > { %v3842_v62 = vmul.f32 %v3788_v30, %v3788_v30  ;;  %v3844_v18 = vmul.f32 %v3790_v15, %v3790_v15  ;;  %v3816_v28 = vadd.f32 %v3815_v63, %v3814_v25  ;;  %v3817_v7 = vsel %vm1399_vm4, %v3789_v48, 0.0  ;;  %6511 = vst.msk [vmem:[%s10389_s29 + $0x7c] sm:$0xf] %vm294_vm0, %v7304_v59 }
 0x2b4   : > { %v3843_v12 = vmul.f32 %v3789_v48, %v3789_v48  ;;  %v6438_v60 = vpack.c.bf16 %v6404_v55, %v6401_v16  ;;  %v7302_v42 = vpack.c.bf16 %v6404_v55, %v6404_v55  ;;  %v6550_v3 = vadd.f32 %v6549_v41, %v6548_v24 }
 0x2b5   : > { %v3869_v50 = vsel %vm1399_vm4, %v3842_v62, 0.0  ;;  %v3819_v22 = vsel %vm1399_vm4, %v3790_v15, 0.0  ;;  %v3845_v4 = vmul.f32 %v3791_v43, %v3791_v43  ;;  %v3818_v6 = vadd.f32 %v3817_v7, %v3816_v28 }
 0x2b6   : > { %v3870_v38 = vadd.f32 %v3869_v50, %v3868_v21  ;;  %v3821_v2 = vsel %vm1399_vm4, %v3791_v43, 0.0  ;;  %v3871_v36 = vsel %vm1399_vm4, %v3843_v12, 0.0  ;;  %v6526_v0 = vunpack.c.l.bf16 %v6439_v32  ;;  %6509 = vst.msk [vmem:[%s10389_s29 + $0x74] sm:$0xf] %vm294_vm0, %v7302_v42 }
 0x2b7   : > { %v6524_v5 = vunpack.c.l.bf16 %v6438_v60  ;;  %v3820_v56 = vadd.f32 %v3819_v22, %v3818_v6  ;;  %v6525_v8 = vunpack.c.h.bf16 %v6438_v60  ;;  %v6604_v34 = vadd.f32 %v6603_v26, %v6602_v11  ;;  %v6620_v60 = vld [vmem:[%s10381_s16] sm:$0x1]  ;;  %v6624_v22 = vld [vmem:[%s10381_s16 + $0x1] sm:$0x1] }
 0x2b8   : > { %v3872_v9 = vadd.f32 %v3871_v36, %v3870_v38  ;;  %v3873_v44 = vsel %vm1399_vm4, %v3844_v18, 0.0  ;;  %v6527_v40 = vunpack.c.h.bf16 %v6439_v32  ;;  %v3875_v54 = vsel %vm1399_vm4, %v3845_v4, 0.0 }
 0x2b9   : > { %v6551_v17 = vsel %vm1399_vm4, %v6524_v5, 0.0  ;;  %v6578_v61 = vmul.f32 %v6524_v5, %v6524_v5  ;;  %v3822_v31 = vadd.f32 %v3821_v2, %v3820_v56  ;;  %v6580_v52 = vmul.f32 %v6526_v0, %v6526_v0 }
 0x2ba   : > { %v3874_v45 = vadd.f32 %v3873_v44, %v3872_v9  ;;  %v6552_v51 = vadd.f32 %v6551_v17, %v6550_v3  ;;  %v6553_v58 = vsel %vm1399_vm4, %v6525_v8, 0.0  ;;  %v6579_v16 = vmul.f32 %v6525_v8, %v6525_v8 }
 0x2bb   : > { %v6605_v1 = vsel %vm1399_vm4, %v6578_v61, 0.0  ;;  %v3823_v47 = vrot.slane %v3822_v31, 4  ;;  %v6555_v19 = vsel %vm1399_vm4, %v6526_v0, 0.0  ;;  %v6581_v39 = vmul.f32 %v6527_v40, %v6527_v40 }
 0x2bc   : > { %v3876_v37 = vadd.f32 %v3875_v54, %v3874_v45  ;;  %v6554_v13 = vadd.f32 %v6553_v58, %v6552_v51  ;;  %v6606_v27 = vadd.f32 %v6605_v1, %v6604_v34  ;;  %v6607_v35 = vsel %vm1399_vm4, %v6579_v16, 0.0 }
 0x2bd   : > { %v3824_v57 = vadd.f32 %v3823_v47, %v3822_v31  ;;  %v6557_v29 = vsel %vm1399_vm4, %v6527_v40, 0.0  ;;  %v6609_v23 = vsel %vm1399_vm4, %v6580_v52, 0.0  ;;  %v6611_v46 = vsel %vm1399_vm4, %v6581_v39, 0.0 }
 0x2be   : > { %v3877_v55 = vrot.slane %v3876_v37, 4  ;;  %v6556_v20 = vadd.f32 %v6555_v19, %v6554_v13  ;;  %v6608_v33 = vadd.f32 %v6607_v35, %v6606_v27 }
 0x2bf   : > { %v3825_v24 = vrot.slane %v3824_v57, 2 }
 0x2c0   : > { %v3878_v10 = vadd.f32 %v3877_v55, %v3876_v37  ;;  %v6558_v53 = vadd.f32 %v6557_v29, %v6556_v20  ;;  %v6610_v25 = vadd.f32 %v6609_v23, %v6608_v33 }
 0x2c1   : > { %v3826_v49 = vadd.f32 %v3825_v24, %v3824_v57 }
 0x2c2   : > { %v3879_v15 = vrot.slane %v3878_v10, 2  ;;  %v6559_v14 = vrot.slane %v6558_v53, 4  ;;  %v6612_v30 = vadd.f32 %v6611_v46, %v6610_v25 }
 0x2c3   : > { %v3827_v43 = vrot.slane %v3826_v49, 1 }
 0x2c4   : > { %v3880_v48 = vadd.f32 %v3879_v15, %v3878_v10  ;;  %v6560_v21 = vadd.f32 %v6559_v14, %v6558_v53  ;;  %v6613_v11 = vrot.slane %v6612_v30, 4 }
 0x2c5   : > { %v3828_v62 = vadd.f32 %v3827_v43, %v3826_v49 }
 0x2c6   : > { %v6561_v32 = vrot.slane %v6560_v21, 2  ;;  %v6614_v59 = vadd.f32 %v6613_v11, %v6612_v30  ;;  %v3881_v41 = vrot.slane %v3880_v48, 1 }
 0x2c8   : > { %v6562_v26 = vadd.f32 %v6561_v32, %v6560_v21  ;;  %v6615_v63 = vrot.slane %v6614_v59, 2  ;;  %v3882_v7 = vadd.f32 %v3881_v41, %v3880_v48 }
 0x2ca   : > { %v6563_v18 = vrot.slane %v6562_v26, 1  ;;  %v6616_v28 = vadd.f32 %v6615_v63, %v6614_v59 }
 0x2cc   : > { %v6564_v12 = vadd.f32 %v6563_v18, %v6562_v26  ;;  %v6617_v50 = vrot.slane %v6616_v28, 1 }
 0x2ce   : > { %v6565_v42 = vadd.f32 %v6564_v12, %v3828_v62  ;;  %v6618_v3 = vadd.f32 %v6617_v50, %v6616_v28 }
 0x2d0   : > { %v6619_v4 = vadd.f32 %v6618_v3, %v3882_v7  ;;  %v6621_v6 = vadd.f32 %v6620_v60, %v6565_v42 }
 0x2d2   : > { %6623 = vst.msk [vmem:[%s10381_s16] sm:$0x1] %vm297_vm1, %v6621_v6  ;;  %v6625_v38 = vadd.f32 %v6624_v22, %v6619_v4 }
 0x2d4   : > { %6626 = vst.msk [vmem:[%s10381_s16 + $0x1] sm:$0x1] %vm297_vm1, %v6625_v38 }
 0x2d5 PF: > { %s17_s23 = sadd.s32 1, %s8326_s23   ;;  %s10638_s21 = smov %s8322_s22 }
 0x2d6   : > { %p14_p5 = scmp.ge.s32.totalorder %s17_s23, 4   ;;  %s10639_s22 = smov %s10641_s24 }
 0x2d8   :  { %16 = sbr.rel (!%p14_p5) target bundleno = 2 (0x2), region = 99 }

</bundles_post_ra>
